<compile_context>
chip_gen: v5e
topology: v5e:2x2
jax: 0.10.0
libtpu: 0.0.40
codegen_flags: <defaults>
</compile_context>

<pallas_src>
import functools
import math

import jax
import jax.numpy as jnp
from jax import lax
from jax.experimental import pallas as pl
from jax.experimental.pallas import tpu as pltpu

NEG_SLOPE = 0.01
BN_EPS = 1e-5
LANE = 128


def _to_pair(v):
    return (v, v) if isinstance(v, int) else tuple(v)


def _round_up(x, m):
    return m * int(pl.cdiv(x, m))


def _vmem_limit_bytes():
    # v5e/v6e: 128 MiB physical VMEM -> allow large blocks; conservative 48 MiB fallback (v7x).
    cap = 64 << 20
    try:
        info = pltpu.get_tpu_info()
        cap = int(getattr(info, "vmem_capacity_bytes", cap) or cap)
    except Exception:
        pass
    return int(min(cap * 3 // 4, 100 << 20))


# ------------------------------ Pallas kernels ------------------------------ #

def _matmul_bn_act_kernel(x_ref, w_ref, scale_ref, shift_ref, o_ref):
    """Folded-K path (small cin): single matmul + folded BN + LeakyReLU.

    x_ref    : (TM, Kp)    bf16  im2col patches (Kp = kh*kw*cin padded to 128)
    w_ref    : (Kp, TCOUT) bf16
    scale_ref: (1, TCOUT)  f32
    shift_ref: (1, TCOUT)  f32
    o_ref    : (TM, TCOUT)
    """
    y = jnp.dot(x_ref[...], w_ref[...], preferred_element_type=jnp.float32)
    y = y * scale_ref[...] + shift_ref[...]
    o_ref[...] = jnp.where(y >= 0, y, NEG_SLOPE * y).astype(o_ref.dtype)


def _conv_bn_act_kernel(x_ref, w_ref, scale_ref, shift_ref, o_ref, *,
                        kh, kw, sh, sw, ph, pw, oh, ow, residual):
    """Per-tap path (wide cin): fused shifted-slice matmuls + BN + residual + LeakyReLU.

    x_ref    : (P, Hp/sh, Wp/sw, CINP) bf16  stride-phase-decomposed padded input
    w_ref    : (KH*KW, CINP, TCOUT)    bf16  per-tap weight slab
    scale_ref: (1, TCOUT) f32
    shift_ref: (1, TCOUT) f32
    o_ref    : (OH*OW, TCOUT)
    """
    m = oh * ow
    # Value accumulation: first tap's dot initializes acc (no zero-init pass, no per-tap
    # VMEM read-modify-write of the f32 accumulator tile).
    acc = None
    for i in range(kh):
        for j in range(kw):
            p = (i % sh) * sw + (j % sw)
            h0 = i // sh
            w0 = j // sw
            xs = x_ref[p, h0:h0 + oh, w0:w0 + ow, :]         # (oh, ow, cinp) bf16
            xs = xs.reshape(m, xs.shape[-1])
            d = jnp.dot(xs, w_ref[i * kw + j], preferred_element_type=jnp.float32)
            acc = d if acc is None else acc + d
    # NOTE: a further win on v6e/v7x is concatenating pairs of taps along K (K=256);
    # kept as per-tap K=cinp matmuls here for portability/simplicity.

    y = acc * scale_ref[...] + shift_ref[...]

    if residual:
        # residual blocks: stride 1 / "same" padding / cinp == cout_pad == tcout
        r = x_ref[0, ph:ph + oh, pw:pw + ow, :]
        y = y + r.reshape(m, r.shape[-1]).astype(jnp.float32)

    o_ref[...] = jnp.where(y >= 0, y, NEG_SLOPE * y).astype(o_ref.dtype)


# --------------------------------- module ---------------------------------- #

class Conv2dPallas:
    """Pallas-TPU port of syncnet.Conv2d (Conv2d + BatchNorm2d (eval) + residual + LeakyReLU)."""

    def __init__(self, cin, cout, kernel_size, stride, padding, residual=False, *, key):
        self.cin, self.cout = cin, cout
        self.kh, self.kw = _to_pair(kernel_size)
        self.sh, self.sw = _to_pair(stride)
        self.ph, self.pw = _to_pair(padding)
        self.residual = residual
        if residual:
            assert cin == cout and self.sh == 1 and self.sw == 1, \
                "residual blocks must preserve shape (stride 1, cin == cout)"
            assert self.ph == (self.kh - 1) // 2 and self.pw == (self.kw - 1) // 2, \
                "residual blocks require 'same' padding (OH == H, OW == W)"

        kw_, kb, kg, kbt, km, kv = jax.random.split(key, 6)
        fan_in = float(cin * self.kh * self.kw)
        # raw parameters in PyTorch layout (also used by the f32 reference in __main__)
        self.w = jax.random.normal(kw_, (cout, cin, self.kh, self.kw), jnp.float32) / math.sqrt(fan_in)
        self.b = 0.01 * jax.random.normal(kb, (cout,), jnp.float32)
        self.bn_gamma = 1.0 + 0.1 * jax.random.normal(kg, (cout,), jnp.float32)
        self.bn_beta = 0.05 * jax.random.normal(kbt, (cout,), jnp.float32)
        self.bn_mean = 0.05 * jax.random.normal(km, (cout,), jnp.float32)
        self.bn_var = 1.0 + 0.1 * jax.random.uniform(kv, (cout,), jnp.float32)

        # lane-dense channel padding for BOTH paths (including residual blocks)
        self.cout_pad = _round_up(cout, LANE)
        self.cin_pad = _round_up(cin, LANE)

        # path selection: fold all taps into the contraction dim for small cin
        # (K = kh*kw*cin instead of kh*kw matmuls with K = cin); wide layers keep the
        # fused per-tap path (no HBM im2col inflation).
        self.fold_k = (not residual) and (self.kh * self.kw * cin <= 512)

        # ----- kernel operands precomputed ONCE (not per forward) -----
        inv_std = 1.0 / jnp.sqrt(self.bn_var + BN_EPS)
        scale = self.bn_gamma * inv_std
        shift = scale * (self.b - self.bn_mean) + self.bn_beta
        self.scale = jnp.pad(scale, (0, self.cout_pad - cout))
        self.shift = jnp.pad(shift, (0, self.cout_pad - cout))

        # (COUT, CIN, KH, KW) -> (KH, KW, CIN, COUT) bf16 slabs
        w_tap_major = jnp.transpose(self.w, (2, 3, 1, 0))
        if self.fold_k:
            k_raw = self.kh * self.kw * cin
            self.k_pad = _round_up(k_raw, LANE)
            wmat = w_tap_major.reshape(k_raw, cout)
            wmat = jnp.pad(wmat, ((0, self.k_pad - k_raw), (0, self.cout_pad - cout)))
        else:
            self.k_pad = None
            wmat = w_tap_major.reshape(self.kh * self.kw, cin, cout)
            wmat = jnp.pad(wmat, ((0, 0), (0, self.cin_pad - cin), (0, self.cout_pad - cout)))
        self.wmat = wmat.astype(jnp.bfloat16)

        self._vmem_limit = _vmem_limit_bytes()

    # ------------------------------------------------------------------ #

    def __call__(self, x_nchw):
        """PyTorch-compatible API: f32 NCHW in -> f32 NCHW out."""
        return self.apply(x_nchw)

    def apply(self, x, *, nhwc_in=False, nhwc_out=False):
        """nhwc_in : x is channel-padded NHWC bf16 (as produced with nhwc_out=True).
           nhwc_out: return channel-padded NHWC bf16 (cheap chain between layers)."""
        kh, kw = self.kh, self.kw
        sh, sw, ph, pw = self.sh, self.sw, self.ph, self.pw

        if nhwc_in:
            N, H, W, Cp = x.shape
            assert Cp == self.cin_pad, (Cp, self.cin_pad)
            x = x.astype(jnp.bfloat16)
        else:
            N, C, H, W = x.shape
            assert C == self.cin
            x = jnp.transpose(x, (0, 2, 3, 1)).astype(jnp.bfloat16)   # NHWC bf16

        if self.fold_k:
            x = x[..., :self.cin]                                     # true channels only
        elif x.shape[-1] < self.cin_pad:
            x = jnp.pad(x, ((0, 0), (0, 0), (0, 0), (0, self.cin_pad - x.shape[-1])))

        OH = (H + 2 * ph - kh) // sh + 1
        OW = (W + 2 * pw - kw) // sw + 1
        if self.residual:
            assert OH == H and OW == W, "residual block must preserve spatial shape"
        out_dtype = jnp.bfloat16 if nhwc_out else jnp.float32

        if self.fold_k:
            out = self._forward_folded(x, N, OH, OW, out_dtype)
        else:
            out = self._forward_taps(x, N, H, W, OH, OW, out_dtype)

        if nhwc_out:
            return out                                                # (N, OH, OW, cout_pad) bf16
        out = out[..., :self.cout].astype(jnp.float32)
        return jnp.transpose(out, (0, 3, 1, 2))                       # NHWC -> NCHW

    # ---------------------------- folded-K path ---------------------------- #

    def _forward_folded(self, x, N, OH, OW, out_dtype):
        kh, kw, sh, sw, ph, pw = self.kh, self.kw, self.sh, self.sw, self.ph, self.pw
        cin, cpad, kp = self.cin, self.cout_pad, self.k_pad

        # wrapper-side im2col (cheap: small cin => small array), K = kh*kw*cin
        xpad = jnp.pad(x, ((0, 0), (ph, ph), (pw, pw), (0, 0)))
        taps = [xpad[:, i:i + sh * (OH - 1) + 1:sh, j:j + sw * (OW - 1) + 1:sw, :]
                for i in range(kh) for j in range(kw)]
        patches = jnp.concatenate(taps, axis=-1)                      # (N, OH, OW, kh*kw*cin)
        k_raw = kh * kw * cin
        NM = N * OH * OW
        patches = patches.reshape(NM, k_raw)
        if kp > k_raw:
            patches = jnp.pad(patches, ((0, 0), (0, kp - k_raw)))

        # fold batch into M (amortize per-grid-step overhead); tile M only when large
        TM = NM if NM <= 2048 else 1024
        NM_pad = _round_up(NM, TM)
        if NM_pad > NM:
            patches = jnp.pad(patches, ((0, NM_pad - NM), (0, 0)))

        tcout = 256 if (cpad > 256 and cpad % 256 == 0) else cpad
        n_ct = cpad // tcout
        scale = self.scale.reshape(1, cpad)
        shift = self.shift.reshape(1, cpad)

        out = pl.pallas_call(
            _matmul_bn_act_kernel,
            out_shape=jax.ShapeDtypeStruct((NM_pad, cpad), out_dtype),
            # M innermost: weight/scale/shift block indices are invariant -> DMA'd once per cout tile
            grid=(n_ct, NM_pad // TM),
            in_specs=[
                pl.BlockSpec((TM, kp), lambda c, m: (m, 0)),
                pl.BlockSpec((kp, tcout), lambda c, m: (0, c)),
                pl.BlockSpec((1, tcout), lambda c, m: (0, c)),
                pl.BlockSpec((1, tcout), lambda c, m: (0, c)),
            ],
            out_specs=pl.BlockSpec((TM, tcout), lambda c, m: (m, c)),
            compiler_params=pltpu.CompilerParams(
                dimension_semantics=("parallel", "parallel"),
                vmem_limit_bytes=self._vmem_limit,
            ),
        )(patches, self.wmat, scale, shift)

        return out[:NM].reshape(N, OH, OW, cpad)

    # ---------------------------- per-tap path ----------------------------- #

    def _forward_taps(self, x, N, H, W, OH, OW, out_dtype):
        kh, kw, sh, sw, ph, pw = self.kh, self.kw, self.sh, self.sw, self.ph, self.pw
        cinp = x.shape[-1]
        cpad = self.cout_pad
        M = OH * OW

        # zero-pad so every tap's window is in range; round padded extents up to a
        # multiple of the stride for the phase decomposition below.
        Hp = sh * int(pl.cdiv(sh * (OH - 1) + kh, sh))
        Wp = sw * int(pl.cdiv(sw * (OW - 1) + kw, sw))
        x = jnp.pad(x, ((0, 0),
                        (ph, max(Hp - H - ph, 0)),
                        (pw, max(Wp - W - pw, 0)),
                        (0, 0)))[:, :Hp, :Wp, :]

        # stride-phase decomposition (one copy, done by XLA): each kernel tap becomes
        # a CONTIGUOUS static slice inside the Pallas kernel (no HBM im2col).
        P = sh * sw
        if P == 1:
            phases = x[:, None]                                       # (N, 1, Hp, Wp, C)
        else:
            phases = x.reshape(N, Hp // sh, sh, Wp // sw, sw, cinp)
            phases = phases.transpose(0, 2, 4, 1, 3, 5).reshape(N, P, Hp // sh, Wp // sw, cinp)

        # residual blocks keep one full-width cout tile so the skip-add needs no
        # dynamic channel slice; otherwise tile cout at 256 lanes.
        if self.residual:
            tcout = cpad
        else:
            tcout = 256 if (cpad > 256 and cpad % 256 == 0) else cpad
        n_ct = cpad // tcout

        scale = self.scale.reshape(1, cpad)
        shift = self.shift.reshape(1, cpad)

        kernel = functools.partial(
            _conv_bn_act_kernel,
            kh=kh, kw=kw, sh=sh, sw=sw, ph=ph, pw=pw, oh=OH, ow=OW,
            residual=self.residual)

        # TODO(synk): for very large feature maps on v7x (64 MiB VMEM), add an OH-row
        # tiling grid axis to bound the per-step output/accumulator footprint.
        out = pl.pallas_call(
            kernel,
            out_shape=jax.ShapeDtypeStruct((N, M, cpad), out_dtype),
            # cout tiles outermost / batch innermost: weight, scale, shift stay resident
            grid=(n_ct, N),
            in_specs=[
                pl.BlockSpec((None, P, Hp // sh, Wp // sw, cinp),
                             lambda c, n: (n, 0, 0, 0, 0)),
                pl.BlockSpec((kh * kw, cinp, tcout), lambda c, n: (0, 0, c)),
                pl.BlockSpec((1, tcout), lambda c, n: (0, c)),
                pl.BlockSpec((1, tcout), lambda c, n: (0, c)),
            ],
            out_specs=pl.BlockSpec((None, M, tcout), lambda c, n: (n, 0, c)),
            compiler_params=pltpu.CompilerParams(
                dimension_semantics=("parallel", "parallel"),
                vmem_limit_bytes=self._vmem_limit,
            ),
        )(phases, self.wmat, scale, shift)

        return out.reshape(N, OH, OW, cpad)


# ----------------------------------- main ----------------------------------- #

def _ref_block(blk, x):
    """Pure-JAX f32 reference of the PyTorch Conv2d block (eval-mode BN)."""
    y = lax.conv_general_dilated(
        x, blk.w, window_strides=(blk.sh, blk.sw),
        padding=((blk.ph, blk.ph), (blk.pw, blk.pw)),
        dimension_numbers=("NCHW", "OIHW", "NCHW"))
    y = y + blk.b.reshape(1, -1, 1, 1)
    inv_std = 1.0 / jnp.sqrt(blk.bn_var + BN_EPS)
    y = (y - blk.bn_mean.reshape(1, -1, 1, 1)) * (blk.bn_gamma * inv_std).reshape(1, -1, 1, 1) \
        + blk.bn_beta.reshape(1, -1, 1, 1)
    if blk.residual:
        y = y + x
    return jnp.where(y >= 0, y, NEG_SLOPE * y)


if __name__ == "__main__":
    key = jax.random.PRNGKey(0)
    k0, k1, k2, k3 = jax.random.split(key, 4)

    # Small SyncNet-style stack: folded-K first layer, residual layer, strided layer.
    blk1 = Conv2dPallas(8, 128, 3, 1, 1, residual=False, key=k1)    # folded-K path
    blk2 = Conv2dPallas(128, 128, 3, 1, 1, residual=True, key=k2)   # per-tap path + residual
    blk3 = Conv2dPallas(128, 256, 3, 2, 1, residual=False, key=k3)  # per-tap path, stride 2

    x = jax.random.normal(k0, (2, 8, 16, 16), jnp.float32)   # NCHW

    @jax.jit
    def forward(x):
        # padded-NHWC bf16 activation chain between layers: no per-layer NCHW<->NHWC
        # transposes and no f32 intermediates; layout converted only at the boundaries.
        h = blk1.apply(x, nhwc_in=False, nhwc_out=True)
        h = blk2.apply(h, nhwc_in=True, nhwc_out=True)
        return blk3.apply(h, nhwc_in=True, nhwc_out=False)

    out = forward(x)
    jax.block_until_ready(out)

    # correctness: compare against pure-JAX f32 reference (bf16 MXU operands / bf16
    # chained intermediates => loose tolerance)
    ref = _ref_block(blk3, _ref_block(blk2, _ref_block(blk1, x)))
    err = float(jnp.max(jnp.abs(out.astype(jnp.float32) - ref)))
    scl = float(jnp.max(jnp.abs(ref))) + 1e-6

    assert out.shape == (2, 256, 8, 8), out.shape
    assert bool(jnp.all(jnp.isfinite(out)))
    assert err / scl < 0.1, f"mismatch vs reference: rel_max_err={err / scl:.4f}"

    print("KERNEL_OK")
</pallas_src>

<mosaic_0001>
module attributes {stable_mosaic.version = 11 : i64} {
  func.func @_conv_bn_act_kernel(%arg0: i32, %arg1: i32, %arg2: memref<1x1x18x18x128xbf16, #tpu.memory_space<vmem>>, %arg3: memref<9x128x128xbf16, #tpu.memory_space<vmem>>, %arg4: memref<1x128xf32, #tpu.memory_space<vmem>>, %arg5: memref<1x128xf32, #tpu.memory_space<vmem>>, %arg6: memref<1x256x128xbf16, #tpu.memory_space<vmem>>) attributes {dimension_semantics = [#tpu.dimension_semantics<parallel>, #tpu.dimension_semantics<parallel>], iteration_bounds = array<i64: 1, 2>, scalar_prefetch = 0 : i64, scratch_operands = 0 : i64, tpu.core_type = #tpu.core_type<tc>, window_params = [{transform_indices = @transform_0, window_bounds = array<i64: 1, 1, 18, 18, 128>}, {transform_indices = @transform_1, window_bounds = array<i64: 9, 128, 128>}, {transform_indices = @transform_2, window_bounds = array<i64: 1, 128>}, {transform_indices = @transform_3, window_bounds = array<i64: 1, 128>}, {transform_indices = @transform_4, window_bounds = array<i64: 1, 256, 128>}]} {
    %c0 = arith.constant 0 : index
    %c0_0 = arith.constant 0 : index
    %c0_1 = arith.constant 0 : index
    %c0_2 = arith.constant 0 : index
    %c0_3 = arith.constant 0 : index
    %0 = vector.load %arg2[%c0, %c0_0, %c0_1, %c0_2, %c0_3] : memref<1x1x18x18x128xbf16, #tpu.memory_space<vmem>>, vector<1x1x16x16x128xbf16>
    %1 = vector.shape_cast %0 : vector<1x1x16x16x128xbf16> to vector<16x16x128xbf16>
    %2 = vector.shape_cast %1 : vector<16x16x128xbf16> to vector<256x128xbf16>
    %c0_4 = arith.constant 0 : index
    %c0_5 = arith.constant 0 : index
    %c0_6 = arith.constant 0 : index
    %3 = vector.load %arg3[%c0_4, %c0_5, %c0_6] : memref<9x128x128xbf16, #tpu.memory_space<vmem>>, vector<1x128x128xbf16>
    %4 = vector.shape_cast %3 : vector<1x128x128xbf16> to vector<128x128xbf16>
    %cst = arith.constant dense<0.000000e+00> : vector<256x128xf32>
    %5 = tpu.matmul %2, %4, %cst {dimension_numbers = #tpu.dot_dimension_numbers<[1], [0], [0], [1], [0, 0, 1, 1], [], []>} : vector<256x128xbf16>, vector<128x128xbf16>, vector<256x128xf32> -> vector<256x128xf32>
    %c0_7 = arith.constant 0 : index
    %c0_8 = arith.constant 0 : index
    %c0_9 = arith.constant 0 : index
    %c1 = arith.constant 1 : index
    %c0_10 = arith.constant 0 : index
    %6 = vector.load %arg2[%c0_7, %c0_8, %c0_9, %c1, %c0_10] : memref<1x1x18x18x128xbf16, #tpu.memory_space<vmem>>, vector<1x1x16x16x128xbf16>
    %7 = vector.shape_cast %6 : vector<1x1x16x16x128xbf16> to vector<16x16x128xbf16>
    %8 = vector.shape_cast %7 : vector<16x16x128xbf16> to vector<256x128xbf16>
    %c1_11 = arith.constant 1 : index
    %c0_12 = arith.constant 0 : index
    %c0_13 = arith.constant 0 : index
    %9 = vector.load %arg3[%c1_11, %c0_12, %c0_13] : memref<9x128x128xbf16, #tpu.memory_space<vmem>>, vector<1x128x128xbf16>
    %10 = vector.shape_cast %9 : vector<1x128x128xbf16> to vector<128x128xbf16>
    %cst_14 = arith.constant dense<0.000000e+00> : vector<256x128xf32>
    %11 = tpu.matmul %8, %10, %cst_14 {dimension_numbers = #tpu.dot_dimension_numbers<[1], [0], [0], [1], [0, 0, 1, 1], [], []>} : vector<256x128xbf16>, vector<128x128xbf16>, vector<256x128xf32> -> vector<256x128xf32>
    %12 = arith.addf %5, %11 : vector<256x128xf32>
    %c0_15 = arith.constant 0 : index
    %c0_16 = arith.constant 0 : index
    %c0_17 = arith.constant 0 : index
    %c2 = arith.constant 2 : index
    %c0_18 = arith.constant 0 : index
    %13 = vector.load %arg2[%c0_15, %c0_16, %c0_17, %c2, %c0_18] : memref<1x1x18x18x128xbf16, #tpu.memory_space<vmem>>, vector<1x1x16x16x128xbf16>
    %14 = vector.shape_cast %13 : vector<1x1x16x16x128xbf16> to vector<16x16x128xbf16>
    %15 = vector.shape_cast %14 : vector<16x16x128xbf16> to vector<256x128xbf16>
    %c2_19 = arith.constant 2 : index
    %c0_20 = arith.constant 0 : index
    %c0_21 = arith.constant 0 : index
    %16 = vector.load %arg3[%c2_19, %c0_20, %c0_21] : memref<9x128x128xbf16, #tpu.memory_space<vmem>>, vector<1x128x128xbf16>
    %17 = vector.shape_cast %16 : vector<1x128x128xbf16> to vector<128x128xbf16>
    %cst_22 = arith.constant dense<0.000000e+00> : vector<256x128xf32>
    %18 = tpu.matmul %15, %17, %cst_22 {dimension_numbers = #tpu.dot_dimension_numbers<[1], [0], [0], [1], [0, 0, 1, 1], [], []>} : vector<256x128xbf16>, vector<128x128xbf16>, vector<256x128xf32> -> vector<256x128xf32>
    %19 = arith.addf %12, %18 : vector<256x128xf32>
    %c0_23 = arith.constant 0 : index
    %c0_24 = arith.constant 0 : index
    %c1_25 = arith.constant 1 : index
    %c0_26 = arith.constant 0 : index
    %c0_27 = arith.constant 0 : index
    %20 = vector.load %arg2[%c0_23, %c0_24, %c1_25, %c0_26, %c0_27] : memref<1x1x18x18x128xbf16, #tpu.memory_space<vmem>>, vector<1x1x16x16x128xbf16>
    %21 = vector.shape_cast %20 : vector<1x1x16x16x128xbf16> to vector<16x16x128xbf16>
    %22 = vector.shape_cast %21 : vector<16x16x128xbf16> to vector<256x128xbf16>
    %c3 = arith.constant 3 : index
    %c0_28 = arith.constant 0 : index
    %c0_29 = arith.constant 0 : index
    %23 = vector.load %arg3[%c3, %c0_28, %c0_29] : memref<9x128x128xbf16, #tpu.memory_space<vmem>>, vector<1x128x128xbf16>
    %24 = vector.shape_cast %23 : vector<1x128x128xbf16> to vector<128x128xbf16>
    %cst_30 = arith.constant dense<0.000000e+00> : vector<256x128xf32>
    %25 = tpu.matmul %22, %24, %cst_30 {dimension_numbers = #tpu.dot_dimension_numbers<[1], [0], [0], [1], [0, 0, 1, 1], [], []>} : vector<256x128xbf16>, vector<128x128xbf16>, vector<256x128xf32> -> vector<256x128xf32>
    %26 = arith.addf %19, %25 : vector<256x128xf32>
    %c0_31 = arith.constant 0 : index
    %c0_32 = arith.constant 0 : index
    %c1_33 = arith.constant 1 : index
    %c1_34 = arith.constant 1 : index
    %c0_35 = arith.constant 0 : index
    %27 = vector.load %arg2[%c0_31, %c0_32, %c1_33, %c1_34, %c0_35] : memref<1x1x18x18x128xbf16, #tpu.memory_space<vmem>>, vector<1x1x16x16x128xbf16>
    %28 = vector.shape_cast %27 : vector<1x1x16x16x128xbf16> to vector<16x16x128xbf16>
    %29 = vector.shape_cast %28 : vector<16x16x128xbf16> to vector<256x128xbf16>
    %c4 = arith.constant 4 : index
    %c0_36 = arith.constant 0 : index
    %c0_37 = arith.constant 0 : index
    %30 = vector.load %arg3[%c4, %c0_36, %c0_37] : memref<9x128x128xbf16, #tpu.memory_space<vmem>>, vector<1x128x128xbf16>
    %31 = vector.shape_cast %30 : vector<1x128x128xbf16> to vector<128x128xbf16>
    %cst_38 = arith.constant dense<0.000000e+00> : vector<256x128xf32>
    %32 = tpu.matmul %29, %31, %cst_38 {dimension_numbers = #tpu.dot_dimension_numbers<[1], [0], [0], [1], [0, 0, 1, 1], [], []>} : vector<256x128xbf16>, vector<128x128xbf16>, vector<256x128xf32> -> vector<256x128xf32>
    %33 = arith.addf %26, %32 : vector<256x128xf32>
    %c0_39 = arith.constant 0 : index
    %c0_40 = arith.constant 0 : index
    %c1_41 = arith.constant 1 : index
    %c2_42 = arith.constant 2 : index
    %c0_43 = arith.constant 0 : index
    %34 = vector.load %arg2[%c0_39, %c0_40, %c1_41, %c2_42, %c0_43] : memref<1x1x18x18x128xbf16, #tpu.memory_space<vmem>>, vector<1x1x16x16x128xbf16>
    %35 = vector.shape_cast %34 : vector<1x1x16x16x128xbf16> to vector<16x16x128xbf16>
    %36 = vector.shape_cast %35 : vector<16x16x128xbf16> to vector<256x128xbf16>
    %c5 = arith.constant 5 : index
    %c0_44 = arith.constant 0 : index
    %c0_45 = arith.constant 0 : index
    %37 = vector.load %arg3[%c5, %c0_44, %c0_45] : memref<9x128x128xbf16, #tpu.memory_space<vmem>>, vector<1x128x128xbf16>
    %38 = vector.shape_cast %37 : vector<1x128x128xbf16> to vector<128x128xbf16>
    %cst_46 = arith.constant dense<0.000000e+00> : vector<256x128xf32>
    %39 = tpu.matmul %36, %38, %cst_46 {dimension_numbers = #tpu.dot_dimension_numbers<[1], [0], [0], [1], [0, 0, 1, 1], [], []>} : vector<256x128xbf16>, vector<128x128xbf16>, vector<256x128xf32> -> vector<256x128xf32>
    %40 = arith.addf %33, %39 : vector<256x128xf32>
    %c0_47 = arith.constant 0 : index
    %c0_48 = arith.constant 0 : index
    %c2_49 = arith.constant 2 : index
    %c0_50 = arith.constant 0 : index
    %c0_51 = arith.constant 0 : index
    %41 = vector.load %arg2[%c0_47, %c0_48, %c2_49, %c0_50, %c0_51] : memref<1x1x18x18x128xbf16, #tpu.memory_space<vmem>>, vector<1x1x16x16x128xbf16>
    %42 = vector.shape_cast %41 : vector<1x1x16x16x128xbf16> to vector<16x16x128xbf16>
    %43 = vector.shape_cast %42 : vector<16x16x128xbf16> to vector<256x128xbf16>
    %c6 = arith.constant 6 : index
    %c0_52 = arith.constant 0 : index
    %c0_53 = arith.constant 0 : index
    %44 = vector.load %arg3[%c6, %c0_52, %c0_53] : memref<9x128x128xbf16, #tpu.memory_space<vmem>>, vector<1x128x128xbf16>
    %45 = vector.shape_cast %44 : vector<1x128x128xbf16> to vector<128x128xbf16>
    %cst_54 = arith.constant dense<0.000000e+00> : vector<256x128xf32>
    %46 = tpu.matmul %43, %45, %cst_54 {dimension_numbers = #tpu.dot_dimension_numbers<[1], [0], [0], [1], [0, 0, 1, 1], [], []>} : vector<256x128xbf16>, vector<128x128xbf16>, vector<256x128xf32> -> vector<256x128xf32>
    %47 = arith.addf %40, %46 : vector<256x128xf32>
    %c0_55 = arith.constant 0 : index
    %c0_56 = arith.constant 0 : index
    %c2_57 = arith.constant 2 : index
    %c1_58 = arith.constant 1 : index
    %c0_59 = arith.constant 0 : index
    %48 = vector.load %arg2[%c0_55, %c0_56, %c2_57, %c1_58, %c0_59] : memref<1x1x18x18x128xbf16, #tpu.memory_space<vmem>>, vector<1x1x16x16x128xbf16>
    %49 = vector.shape_cast %48 : vector<1x1x16x16x128xbf16> to vector<16x16x128xbf16>
    %50 = vector.shape_cast %49 : vector<16x16x128xbf16> to vector<256x128xbf16>
    %c7 = arith.constant 7 : index
    %c0_60 = arith.constant 0 : index
    %c0_61 = arith.constant 0 : index
    %51 = vector.load %arg3[%c7, %c0_60, %c0_61] : memref<9x128x128xbf16, #tpu.memory_space<vmem>>, vector<1x128x128xbf16>
    %52 = vector.shape_cast %51 : vector<1x128x128xbf16> to vector<128x128xbf16>
    %cst_62 = arith.constant dense<0.000000e+00> : vector<256x128xf32>
    %53 = tpu.matmul %50, %52, %cst_62 {dimension_numbers = #tpu.dot_dimension_numbers<[1], [0], [0], [1], [0, 0, 1, 1], [], []>} : vector<256x128xbf16>, vector<128x128xbf16>, vector<256x128xf32> -> vector<256x128xf32>
    %54 = arith.addf %47, %53 : vector<256x128xf32>
    %c0_63 = arith.constant 0 : index
    %c0_64 = arith.constant 0 : index
    %c2_65 = arith.constant 2 : index
    %c2_66 = arith.constant 2 : index
    %c0_67 = arith.constant 0 : index
    %55 = vector.load %arg2[%c0_63, %c0_64, %c2_65, %c2_66, %c0_67] : memref<1x1x18x18x128xbf16, #tpu.memory_space<vmem>>, vector<1x1x16x16x128xbf16>
    %56 = vector.shape_cast %55 : vector<1x1x16x16x128xbf16> to vector<16x16x128xbf16>
    %57 = vector.shape_cast %56 : vector<16x16x128xbf16> to vector<256x128xbf16>
    %c8 = arith.constant 8 : index
    %c0_68 = arith.constant 0 : index
    %c0_69 = arith.constant 0 : index
    %58 = vector.load %arg3[%c8, %c0_68, %c0_69] : memref<9x128x128xbf16, #tpu.memory_space<vmem>>, vector<1x128x128xbf16>
    %59 = vector.shape_cast %58 : vector<1x128x128xbf16> to vector<128x128xbf16>
    %cst_70 = arith.constant dense<0.000000e+00> : vector<256x128xf32>
    %60 = tpu.matmul %57, %59, %cst_70 {dimension_numbers = #tpu.dot_dimension_numbers<[1], [0], [0], [1], [0, 0, 1, 1], [], []>} : vector<256x128xbf16>, vector<128x128xbf16>, vector<256x128xf32> -> vector<256x128xf32>
    %61 = arith.addf %54, %60 : vector<256x128xf32>
    %c0_71 = arith.constant 0 : index
    %c0_72 = arith.constant 0 : index
    %62 = vector.load %arg4[%c0_71, %c0_72] : memref<1x128xf32, #tpu.memory_space<vmem>>, vector<1x128xf32>
    %63 = vector.broadcast %62 : vector<1x128xf32> to vector<256x128xf32>
    %64 = arith.mulf %61, %63 : vector<256x128xf32>
    %c0_73 = arith.constant 0 : index
    %c0_74 = arith.constant 0 : index
    %65 = vector.load %arg5[%c0_73, %c0_74] : memref<1x128xf32, #tpu.memory_space<vmem>>, vector<1x128xf32>
    %66 = vector.broadcast %65 : vector<1x128xf32> to vector<256x128xf32>
    %67 = arith.addf %64, %66 : vector<256x128xf32>
    %c0_75 = arith.constant 0 : index
    %c0_76 = arith.constant 0 : index
    %c1_77 = arith.constant 1 : index
    %c1_78 = arith.constant 1 : index
    %c0_79 = arith.constant 0 : index
    %68 = vector.load %arg2[%c0_75, %c0_76, %c1_77, %c1_78, %c0_79] : memref<1x1x18x18x128xbf16, #tpu.memory_space<vmem>>, vector<1x1x16x16x128xbf16>
    %69 = vector.shape_cast %68 : vector<1x1x16x16x128xbf16> to vector<16x16x128xbf16>
    %70 = vector.shape_cast %69 : vector<16x16x128xbf16> to vector<256x128xbf16>
    %71 = arith.extf %70 : vector<256x128xbf16> to vector<256x128xf32>
    %72 = arith.addf %67, %71 : vector<256x128xf32>
    %cst_80 = arith.constant 0.000000e+00 : f32
    %73 = vector.broadcast %cst_80 : f32 to vector<256x128xf32>
    %74 = arith.cmpf oge, %72, %73 : vector<256x128xf32>
    %cst_81 = arith.constant 0.00999999977 : f32
    %75 = vector.broadcast %cst_81 : f32 to vector<256x128xf32>
    %76 = arith.mulf %75, %72 : vector<256x128xf32>
    %77 = arith.select %74, %72, %76 : vector<256x128xi1>, vector<256x128xf32>
    %78 = arith.truncf %77 : vector<256x128xf32> to vector<256x128xbf16>
    %c0_82 = arith.constant 0 : index
    %c0_83 = arith.constant 0 : index
    %c0_84 = arith.constant 0 : index
    %79 = vector.load %arg6[%c0_82, %c0_83, %c0_84] : memref<1x256x128xbf16, #tpu.memory_space<vmem>>, vector<1x256x128xbf16>
    %80 = vector.shape_cast %79 : vector<1x256x128xbf16> to vector<256x128xbf16>
    %81 = vector.shape_cast %78 : vector<256x128xbf16> to vector<1x256x128xbf16>
    tpu.vector_store %arg6[%c0_82, %c0_83, %c0_84], %81 {strides = array<i32>} : memref<1x256x128xbf16, #tpu.memory_space<vmem>>, vector<1x256x128xbf16>,
    return
  }
  func.func @transform_0(%arg0: i32, %arg1: i32) -> (i32, i32, i32, i32, i32) {
    %c0_i32 = arith.constant 0 : i32
    %c0_i32_0 = arith.constant 0 : i32
    %c0_i32_1 = arith.constant 0 : i32
    %c0_i32_2 = arith.constant 0 : i32
    %c0_i32_3 = arith.constant 0 : i32
    return %arg1, %c0_i32, %c0_i32_0, %c0_i32_1, %c0_i32_2 : i32, i32, i32, i32, i32
  }
  func.func @transform_1(%arg0: i32, %arg1: i32) -> (i32, i32, i32) {
    %c0_i32 = arith.constant 0 : i32
    %c0_i32_0 = arith.constant 0 : i32
    %c0_i32_1 = arith.constant 0 : i32
    return %c0_i32, %c0_i32_0, %arg0 : i32, i32, i32
  }
  func.func @transform_2(%arg0: i32, %arg1: i32) -> (i32, i32) {
    %c0_i32 = arith.constant 0 : i32
    %c0_i32_0 = arith.constant 0 : i32
    return %c0_i32, %arg0 : i32, i32
  }
  func.func @transform_3(%arg0: i32, %arg1: i32) -> (i32, i32) {
    %c0_i32 = arith.constant 0 : i32
    %c0_i32_0 = arith.constant 0 : i32
    return %c0_i32, %arg0 : i32, i32
  }
  func.func @transform_4(%arg0: i32, %arg1: i32) -> (i32, i32, i32) {
    %c0_i32 = arith.constant 0 : i32
    %c0_i32_0 = arith.constant 0 : i32
    return %arg1, %c0_i32, %arg0 : i32, i32, i32
  }
}

module attributes {stable_mosaic.version = 11 : i64} {
  func.func @_matmul_bn_act_kernel(%arg0: i32, %arg1: i32, %arg2: memref<512x128xbf16, #tpu.memory_space<vmem>>, %arg3: memref<128x128xbf16, #tpu.memory_space<vmem>>, %arg4: memref<1x128xf32, #tpu.memory_space<vmem>>, %arg5: memref<1x128xf32, #tpu.memory_space<vmem>>, %arg6: memref<512x128xbf16, #tpu.memory_space<vmem>>) attributes {dimension_semantics = [#tpu.dimension_semantics<parallel>, #tpu.dimension_semantics<parallel>], iteration_bounds = array<i64: 1, 1>, scalar_prefetch = 0 : i64, scratch_operands = 0 : i64, tpu.core_type = #tpu.core_type<tc>, window_params = [{transform_indices = @transform_0, window_bounds = array<i64: 512, 128>}, {transform_indices = @transform_1, window_bounds = array<i64: 128, 128>}, {transform_indices = @transform_2, window_bounds = array<i64: 1, 128>}, {transform_indices = @transform_3, window_bounds = array<i64: 1, 128>}, {transform_indices = @transform_4, window_bounds = array<i64: 512, 128>}]} {
    %c0 = arith.constant 0 : index
    %c0_0 = arith.constant 0 : index
    %0 = vector.load %arg2[%c0, %c0_0] : memref<512x128xbf16, #tpu.memory_space<vmem>>, vector<512x128xbf16>
    %c0_1 = arith.constant 0 : index
    %c0_2 = arith.constant 0 : index
    %1 = vector.load %arg3[%c0_1, %c0_2] : memref<128x128xbf16, #tpu.memory_space<vmem>>, vector<128x128xbf16>
    %cst = arith.constant dense<0.000000e+00> : vector<512x128xf32>
    %2 = tpu.matmul %0, %1, %cst {dimension_numbers = #tpu.dot_dimension_numbers<[1], [0], [0], [1], [0, 0, 1, 1], [], []>} : vector<512x128xbf16>, vector<128x128xbf16>, vector<512x128xf32> -> vector<512x128xf32>
    %c0_3 = arith.constant 0 : index
    %c0_4 = arith.constant 0 : index
    %3 = vector.load %arg4[%c0_3, %c0_4] : memref<1x128xf32, #tpu.memory_space<vmem>>, vector<1x128xf32>
    %4 = vector.broadcast %3 : vector<1x128xf32> to vector<512x128xf32>
    %5 = arith.mulf %2, %4 : vector<512x128xf32>
    %c0_5 = arith.constant 0 : index
    %c0_6 = arith.constant 0 : index
    %6 = vector.load %arg5[%c0_5, %c0_6] : memref<1x128xf32, #tpu.memory_space<vmem>>, vector<1x128xf32>
    %7 = vector.broadcast %6 : vector<1x128xf32> to vector<512x128xf32>
    %8 = arith.addf %5, %7 : vector<512x128xf32>
    %cst_7 = arith.constant 0.000000e+00 : f32
    %9 = vector.broadcast %cst_7 : f32 to vector<512x128xf32>
    %10 = arith.cmpf oge, %8, %9 : vector<512x128xf32>
    %cst_8 = arith.constant 0.00999999977 : f32
    %11 = vector.broadcast %cst_8 : f32 to vector<512x128xf32>
    %12 = arith.mulf %11, %8 : vector<512x128xf32>
    %13 = arith.select %10, %8, %12 : vector<512x128xi1>, vector<512x128xf32>
    %14 = arith.truncf %13 : vector<512x128xf32> to vector<512x128xbf16>
    %c0_9 = arith.constant 0 : index
    %c0_10 = arith.constant 0 : index
    %15 = vector.load %arg6[%c0_9, %c0_10] : memref<512x128xbf16, #tpu.memory_space<vmem>>, vector<512x128xbf16>
    tpu.vector_store %arg6[%c0_9, %c0_10], %14 {strides = array<i32>} : memref<512x128xbf16, #tpu.memory_space<vmem>>, vector<512x128xbf16>,
    return
  }
  func.func @transform_0(%arg0: i32, %arg1: i32) -> (i32, i32) {
    %c0_i32 = arith.constant 0 : i32
    %c0_i32_0 = arith.constant 0 : i32
    return %arg1, %c0_i32 : i32, i32
  }
  func.func @transform_1(%arg0: i32, %arg1: i32) -> (i32, i32) {
    %c0_i32 = arith.constant 0 : i32
    %c0_i32_0 = arith.constant 0 : i32
    return %c0_i32, %arg0 : i32, i32
  }
  func.func @transform_2(%arg0: i32, %arg1: i32) -> (i32, i32) {
    %c0_i32 = arith.constant 0 : i32
    %c0_i32_0 = arith.constant 0 : i32
    return %c0_i32, %arg0 : i32, i32
  }
  func.func @transform_3(%arg0: i32, %arg1: i32) -> (i32, i32) {
    %c0_i32 = arith.constant 0 : i32
    %c0_i32_0 = arith.constant 0 : i32
    return %c0_i32, %arg0 : i32, i32
  }
  func.func @transform_4(%arg0: i32, %arg1: i32) -> (i32, i32) {
    %c0_i32 = arith.constant 0 : i32
    return %arg1, %arg0 : i32, i32
  }
}

module attributes {stable_mosaic.version = 11 : i64} {
  func.func @_conv_bn_act_kernel(%arg0: i32, %arg1: i32, %arg2: memref<1x4x9x9x128xbf16, #tpu.memory_space<vmem>>, %arg3: memref<9x128x256xbf16, #tpu.memory_space<vmem>>, %arg4: memref<1x256xf32, #tpu.memory_space<vmem>>, %arg5: memref<1x256xf32, #tpu.memory_space<vmem>>, %arg6: memref<1x64x256xf32, #tpu.memory_space<vmem>>) attributes {dimension_semantics = [#tpu.dimension_semantics<parallel>, #tpu.dimension_semantics<parallel>], iteration_bounds = array<i64: 1, 2>, scalar_prefetch = 0 : i64, scratch_operands = 0 : i64, tpu.core_type = #tpu.core_type<tc>, window_params = [{transform_indices = @transform_0, window_bounds = array<i64: 1, 4, 9, 9, 128>}, {transform_indices = @transform_1, window_bounds = array<i64: 9, 128, 256>}, {transform_indices = @transform_2, window_bounds = array<i64: 1, 256>}, {transform_indices = @transform_3, window_bounds = array<i64: 1, 256>}, {transform_indices = @transform_4, window_bounds = array<i64: 1, 64, 256>}]} {
    %c0 = arith.constant 0 : index
    %c0_0 = arith.constant 0 : index
    %c0_1 = arith.constant 0 : index
    %c0_2 = arith.constant 0 : index
    %c0_3 = arith.constant 0 : index
    %0 = vector.load %arg2[%c0, %c0_0, %c0_1, %c0_2, %c0_3] : memref<1x4x9x9x128xbf16, #tpu.memory_space<vmem>>, vector<1x1x8x8x128xbf16>
    %1 = vector.shape_cast %0 : vector<1x1x8x8x128xbf16> to vector<8x8x128xbf16>
    %2 = vector.shape_cast %1 : vector<8x8x128xbf16> to vector<64x128xbf16>
    %c0_4 = arith.constant 0 : index
    %c0_5 = arith.constant 0 : index
    %c0_6 = arith.constant 0 : index
    %3 = vector.load %arg3[%c0_4, %c0_5, %c0_6] : memref<9x128x256xbf16, #tpu.memory_space<vmem>>, vector<1x128x256xbf16>
    %4 = vector.shape_cast %3 : vector<1x128x256xbf16> to vector<128x256xbf16>
    %cst = arith.constant dense<0.000000e+00> : vector<64x256xf32>
    %5 = tpu.matmul %2, %4, %cst {dimension_numbers = #tpu.dot_dimension_numbers<[1], [0], [0], [1], [0, 0, 1, 1], [], []>} : vector<64x128xbf16>, vector<128x256xbf16>, vector<64x256xf32> -> vector<64x256xf32>
    %c0_7 = arith.constant 0 : index
    %c1 = arith.constant 1 : index
    %c0_8 = arith.constant 0 : index
    %c0_9 = arith.constant 0 : index
    %c0_10 = arith.constant 0 : index
    %6 = vector.load %arg2[%c0_7, %c1, %c0_8, %c0_9, %c0_10] : memref<1x4x9x9x128xbf16, #tpu.memory_space<vmem>>, vector<1x1x8x8x128xbf16>
    %7 = vector.shape_cast %6 : vector<1x1x8x8x128xbf16> to vector<8x8x128xbf16>
    %8 = vector.shape_cast %7 : vector<8x8x128xbf16> to vector<64x128xbf16>
    %c1_11 = arith.constant 1 : index
    %c0_12 = arith.constant 0 : index
    %c0_13 = arith.constant 0 : index
    %9 = vector.load %arg3[%c1_11, %c0_12, %c0_13] : memref<9x128x256xbf16, #tpu.memory_space<vmem>>, vector<1x128x256xbf16>
    %10 = vector.shape_cast %9 : vector<1x128x256xbf16> to vector<128x256xbf16>
    %cst_14 = arith.constant dense<0.000000e+00> : vector<64x256xf32>
    %11 = tpu.matmul %8, %10, %cst_14 {dimension_numbers = #tpu.dot_dimension_numbers<[1], [0], [0], [1], [0, 0, 1, 1], [], []>} : vector<64x128xbf16>, vector<128x256xbf16>, vector<64x256xf32> -> vector<64x256xf32>
    %12 = arith.addf %5, %11 : vector<64x256xf32>
    %c0_15 = arith.constant 0 : index
    %c0_16 = arith.constant 0 : index
    %c0_17 = arith.constant 0 : index
    %c1_18 = arith.constant 1 : index
    %c0_19 = arith.constant 0 : index
    %13 = vector.load %arg2[%c0_15, %c0_16, %c0_17, %c1_18, %c0_19] : memref<1x4x9x9x128xbf16, #tpu.memory_space<vmem>>, vector<1x1x8x8x128xbf16>
    %14 = vector.shape_cast %13 : vector<1x1x8x8x128xbf16> to vector<8x8x128xbf16>
    %15 = vector.shape_cast %14 : vector<8x8x128xbf16> to vector<64x128xbf16>
    %c2 = arith.constant 2 : index
    %c0_20 = arith.constant 0 : index
    %c0_21 = arith.constant 0 : index
    %16 = vector.load %arg3[%c2, %c0_20, %c0_21] : memref<9x128x256xbf16, #tpu.memory_space<vmem>>, vector<1x128x256xbf16>
    %17 = vector.shape_cast %16 : vector<1x128x256xbf16> to vector<128x256xbf16>
    %cst_22 = arith.constant dense<0.000000e+00> : vector<64x256xf32>
    %18 = tpu.matmul %15, %17, %cst_22 {dimension_numbers = #tpu.dot_dimension_numbers<[1], [0], [0], [1], [0, 0, 1, 1], [], []>} : vector<64x128xbf16>, vector<128x256xbf16>, vector<64x256xf32> -> vector<64x256xf32>
    %19 = arith.addf %12, %18 : vector<64x256xf32>
    %c0_23 = arith.constant 0 : index
    %c2_24 = arith.constant 2 : index
    %c0_25 = arith.constant 0 : index
    %c0_26 = arith.constant 0 : index
    %c0_27 = arith.constant 0 : index
    %20 = vector.load %arg2[%c0_23, %c2_24, %c0_25, %c0_26, %c0_27] : memref<1x4x9x9x128xbf16, #tpu.memory_space<vmem>>, vector<1x1x8x8x128xbf16>
    %21 = vector.shape_cast %20 : vector<1x1x8x8x128xbf16> to vector<8x8x128xbf16>
    %22 = vector.shape_cast %21 : vector<8x8x128xbf16> to vector<64x128xbf16>
    %c3 = arith.constant 3 : index
    %c0_28 = arith.constant 0 : index
    %c0_29 = arith.constant 0 : index
    %23 = vector.load %arg3[%c3, %c0_28, %c0_29] : memref<9x128x256xbf16, #tpu.memory_space<vmem>>, vector<1x128x256xbf16>
    %24 = vector.shape_cast %23 : vector<1x128x256xbf16> to vector<128x256xbf16>
    %cst_30 = arith.constant dense<0.000000e+00> : vector<64x256xf32>
    %25 = tpu.matmul %22, %24, %cst_30 {dimension_numbers = #tpu.dot_dimension_numbers<[1], [0], [0], [1], [0, 0, 1, 1], [], []>} : vector<64x128xbf16>, vector<128x256xbf16>, vector<64x256xf32> -> vector<64x256xf32>
    %26 = arith.addf %19, %25 : vector<64x256xf32>
    %c0_31 = arith.constant 0 : index
    %c3_32 = arith.constant 3 : index
    %c0_33 = arith.constant 0 : index
    %c0_34 = arith.constant 0 : index
    %c0_35 = arith.constant 0 : index
    %27 = vector.load %arg2[%c0_31, %c3_32, %c0_33, %c0_34, %c0_35] : memref<1x4x9x9x128xbf16, #tpu.memory_space<vmem>>, vector<1x1x8x8x128xbf16>
    %28 = vector.shape_cast %27 : vector<1x1x8x8x128xbf16> to vector<8x8x128xbf16>
    %29 = vector.shape_cast %28 : vector<8x8x128xbf16> to vector<64x128xbf16>
    %c4 = arith.constant 4 : index
    %c0_36 = arith.constant 0 : index
    %c0_37 = arith.constant 0 : index
    %30 = vector.load %arg3[%c4, %c0_36, %c0_37] : memref<9x128x256xbf16, #tpu.memory_space<vmem>>, vector<1x128x256xbf16>
    %31 = vector.shape_cast %30 : vector<1x128x256xbf16> to vector<128x256xbf16>
    %cst_38 = arith.constant dense<0.000000e+00> : vector<64x256xf32>
    %32 = tpu.matmul %29, %31, %cst_38 {dimension_numbers = #tpu.dot_dimension_numbers<[1], [0], [0], [1], [0, 0, 1, 1], [], []>} : vector<64x128xbf16>, vector<128x256xbf16>, vector<64x256xf32> -> vector<64x256xf32>
    %33 = arith.addf %26, %32 : vector<64x256xf32>
    %c0_39 = arith.constant 0 : index
    %c2_40 = arith.constant 2 : index
    %c0_41 = arith.constant 0 : index
    %c1_42 = arith.constant 1 : index
    %c0_43 = arith.constant 0 : index
    %34 = vector.load %arg2[%c0_39, %c2_40, %c0_41, %c1_42, %c0_43] : memref<1x4x9x9x128xbf16, #tpu.memory_space<vmem>>, vector<1x1x8x8x128xbf16>
    %35 = vector.shape_cast %34 : vector<1x1x8x8x128xbf16> to vector<8x8x128xbf16>
    %36 = vector.shape_cast %35 : vector<8x8x128xbf16> to vector<64x128xbf16>
    %c5 = arith.constant 5 : index
    %c0_44 = arith.constant 0 : index
    %c0_45 = arith.constant 0 : index
    %37 = vector.load %arg3[%c5, %c0_44, %c0_45] : memref<9x128x256xbf16, #tpu.memory_space<vmem>>, vector<1x128x256xbf16>
    %38 = vector.shape_cast %37 : vector<1x128x256xbf16> to vector<128x256xbf16>
    %cst_46 = arith.constant dense<0.000000e+00> : vector<64x256xf32>
    %39 = tpu.matmul %36, %38, %cst_46 {dimension_numbers = #tpu.dot_dimension_numbers<[1], [0], [0], [1], [0, 0, 1, 1], [], []>} : vector<64x128xbf16>, vector<128x256xbf16>, vector<64x256xf32> -> vector<64x256xf32>
    %40 = arith.addf %33, %39 : vector<64x256xf32>
    %c0_47 = arith.constant 0 : index
    %c0_48 = arith.constant 0 : index
    %c1_49 = arith.constant 1 : index
    %c0_50 = arith.constant 0 : index
    %c0_51 = arith.constant 0 : index
    %41 = vector.load %arg2[%c0_47, %c0_48, %c1_49, %c0_50, %c0_51] : memref<1x4x9x9x128xbf16, #tpu.memory_space<vmem>>, vector<1x1x8x8x128xbf16>
    %42 = vector.shape_cast %41 : vector<1x1x8x8x128xbf16> to vector<8x8x128xbf16>
    %43 = vector.shape_cast %42 : vector<8x8x128xbf16> to vector<64x128xbf16>
    %c6 = arith.constant 6 : index
    %c0_52 = arith.constant 0 : index
    %c0_53 = arith.constant 0 : index
    %44 = vector.load %arg3[%c6, %c0_52, %c0_53] : memref<9x128x256xbf16, #tpu.memory_space<vmem>>, vector<1x128x256xbf16>
    %45 = vector.shape_cast %44 : vector<1x128x256xbf16> to vector<128x256xbf16>
    %cst_54 = arith.constant dense<0.000000e+00> : vector<64x256xf32>
    %46 = tpu.matmul %43, %45, %cst_54 {dimension_numbers = #tpu.dot_dimension_numbers<[1], [0], [0], [1], [0, 0, 1, 1], [], []>} : vector<64x128xbf16>, vector<128x256xbf16>, vector<64x256xf32> -> vector<64x256xf32>
    %47 = arith.addf %40, %46 : vector<64x256xf32>
    %c0_55 = arith.constant 0 : index
    %c1_56 = arith.constant 1 : index
    %c1_57 = arith.constant 1 : index
    %c0_58 = arith.constant 0 : index
    %c0_59 = arith.constant 0 : index
    %48 = vector.load %arg2[%c0_55, %c1_56, %c1_57, %c0_58, %c0_59] : memref<1x4x9x9x128xbf16, #tpu.memory_space<vmem>>, vector<1x1x8x8x128xbf16>
    %49 = vector.shape_cast %48 : vector<1x1x8x8x128xbf16> to vector<8x8x128xbf16>
    %50 = vector.shape_cast %49 : vector<8x8x128xbf16> to vector<64x128xbf16>
    %c7 = arith.constant 7 : index
    %c0_60 = arith.constant 0 : index
    %c0_61 = arith.constant 0 : index
    %51 = vector.load %arg3[%c7, %c0_60, %c0_61] : memref<9x128x256xbf16, #tpu.memory_space<vmem>>, vector<1x128x256xbf16>
    %52 = vector.shape_cast %51 : vector<1x128x256xbf16> to vector<128x256xbf16>
    %cst_62 = arith.constant dense<0.000000e+00> : vector<64x256xf32>
    %53 = tpu.matmul %50, %52, %cst_62 {dimension_numbers = #tpu.dot_dimension_numbers<[1], [0], [0], [1], [0, 0, 1, 1], [], []>} : vector<64x128xbf16>, vector<128x256xbf16>, vector<64x256xf32> -> vector<64x256xf32>
    %54 = arith.addf %47, %53 : vector<64x256xf32>
    %c0_63 = arith.constant 0 : index
    %c0_64 = arith.constant 0 : index
    %c1_65 = arith.constant 1 : index
    %c1_66 = arith.constant 1 : index
    %c0_67 = arith.constant 0 : index
    %55 = vector.load %arg2[%c0_63, %c0_64, %c1_65, %c1_66, %c0_67] : memref<1x4x9x9x128xbf16, #tpu.memory_space<vmem>>, vector<1x1x8x8x128xbf16>
    %56 = vector.shape_cast %55 : vector<1x1x8x8x128xbf16> to vector<8x8x128xbf16>
    %57 = vector.shape_cast %56 : vector<8x8x128xbf16> to vector<64x128xbf16>
    %c8 = arith.constant 8 : index
    %c0_68 = arith.constant 0 : index
    %c0_69 = arith.constant 0 : index
    %58 = vector.load %arg3[%c8, %c0_68, %c0_69] : memref<9x128x256xbf16, #tpu.memory_space<vmem>>, vector<1x128x256xbf16>
    %59 = vector.shape_cast %58 : vector<1x128x256xbf16> to vector<128x256xbf16>
    %cst_70 = arith.constant dense<0.000000e+00> : vector<64x256xf32>
    %60 = tpu.matmul %57, %59, %cst_70 {dimension_numbers = #tpu.dot_dimension_numbers<[1], [0], [0], [1], [0, 0, 1, 1], [], []>} : vector<64x128xbf16>, vector<128x256xbf16>, vector<64x256xf32> -> vector<64x256xf32>
    %61 = arith.addf %54, %60 : vector<64x256xf32>
    %c0_71 = arith.constant 0 : index
    %c0_72 = arith.constant 0 : index
    %62 = vector.load %arg4[%c0_71, %c0_72] : memref<1x256xf32, #tpu.memory_space<vmem>>, vector<1x256xf32>
    %63 = vector.broadcast %62 : vector<1x256xf32> to vector<64x256xf32>
    %64 = arith.mulf %61, %63 : vector<64x256xf32>
    %c0_73 = arith.constant 0 : index
    %c0_74 = arith.constant 0 : index
    %65 = vector.load %arg5[%c0_73, %c0_74] : memref<1x256xf32, #tpu.memory_space<vmem>>, vector<1x256xf32>
    %66 = vector.broadcast %65 : vector<1x256xf32> to vector<64x256xf32>
    %67 = arith.addf %64, %66 : vector<64x256xf32>
    %cst_75 = arith.constant 0.000000e+00 : f32
    %68 = vector.broadcast %cst_75 : f32 to vector<64x256xf32>
    %69 = arith.cmpf oge, %67, %68 : vector<64x256xf32>
    %cst_76 = arith.constant 0.00999999977 : f32
    %70 = vector.broadcast %cst_76 : f32 to vector<64x256xf32>
    %71 = arith.mulf %70, %67 : vector<64x256xf32>
    %72 = arith.select %69, %67, %71 : vector<64x256xi1>, vector<64x256xf32>
    %c0_77 = arith.constant 0 : index
    %c0_78 = arith.constant 0 : index
    %c0_79 = arith.constant 0 : index
    %73 = vector.load %arg6[%c0_77, %c0_78, %c0_79] : memref<1x64x256xf32, #tpu.memory_space<vmem>>, vector<1x64x256xf32>
    %74 = vector.shape_cast %73 : vector<1x64x256xf32> to vector<64x256xf32>
    %75 = vector.shape_cast %72 : vector<64x256xf32> to vector<1x64x256xf32>
    tpu.vector_store %arg6[%c0_77, %c0_78, %c0_79], %75 {strides = array<i32>} : memref<1x64x256xf32, #tpu.memory_space<vmem>>, vector<1x64x256xf32>,
    return
  }
  func.func @transform_0(%arg0: i32, %arg1: i32) -> (i32, i32, i32, i32, i32) {
    %c0_i32 = arith.constant 0 : i32
    %c0_i32_0 = arith.constant 0 : i32
    %c0_i32_1 = arith.constant 0 : i32
    %c0_i32_2 = arith.constant 0 : i32
    %c0_i32_3 = arith.constant 0 : i32
    return %arg1, %c0_i32, %c0_i32_0, %c0_i32_1, %c0_i32_2 : i32, i32, i32, i32, i32
  }
  func.func @transform_1(%arg0: i32, %arg1: i32) -> (i32, i32, i32) {
    %c0_i32 = arith.constant 0 : i32
    %c0_i32_0 = arith.constant 0 : i32
    %c0_i32_1 = arith.constant 0 : i32
    return %c0_i32, %c0_i32_0, %arg0 : i32, i32, i32
  }
  func.func @transform_2(%arg0: i32, %arg1: i32) -> (i32, i32) {
    %c0_i32 = arith.constant 0 : i32
    %c0_i32_0 = arith.constant 0 : i32
    return %c0_i32, %arg0 : i32, i32
  }
  func.func @transform_3(%arg0: i32, %arg1: i32) -> (i32, i32) {
    %c0_i32 = arith.constant 0 : i32
    %c0_i32_0 = arith.constant 0 : i32
    return %c0_i32, %arg0 : i32, i32
  }
  func.func @transform_4(%arg0: i32, %arg1: i32) -> (i32, i32, i32) {
    %c0_i32 = arith.constant 0 : i32
    %c0_i32_0 = arith.constant 0 : i32
    return %arg1, %c0_i32, %arg0 : i32, i32, i32
  }
}

</mosaic_0001>

<bundles_post_ra>
// kernel: forward.3
= control target key start
LH: loop header
LB: loop body
LE: loop exit
PB: predicated region body
PF: predicated region fallthrough
CT: control target
= control target key end

     0   :  { %s1762_s1 = inlined_call_operand.vmem [shape: bf16[128,128], index: 1, kind: input, shape index: {}]   ;;  %s1763_s2 = inlined_call_operand.vmem [shape: f32[1,128], index: 2, kind: input, shape index: {}]   ;;  %s1764_s3 = inlined_call_operand.vmem [shape: f32[1,128], index: 3, kind: input, shape index: {}]   ;;  %s1765_s0 = inlined_call_operand.vmem [shape: bf16[512,128], index: 0, kind: input, shape index: {}]   ;;  %s1766_s4 = inlined_call_operand.vmem [shape: bf16[512,128], index: 4, kind: output, shape index: {}]  }
   0x1   :  { %v1165_v0 = vld [vmem:[%s1762_s1 + $0x38] sm:$0xff]  ;;  %v1164_v1 = vld [vmem:[%s1762_s1 + $0x30] sm:$0xff]  ;;  %v1163_v2 = vld [vmem:[%s1762_s1 + $0x28] sm:$0xff] }
   0x2   :  { %337 = vmatpush.bf16.msra.mxu0 %v1165_v0  ;;  %1357 = vmatpush.bf16.msra.mxu1 %v1165_v0  ;;  %v1162_v3 = vld [vmem:[%s1762_s1 + $0x20] sm:$0xff]  ;;  %v1161_v4 = vld [vmem:[%s1762_s1 + $0x18] sm:$0xff]  ;;  %v1160_v5 = vld [vmem:[%s1762_s1 + $0x10] sm:$0xff] }
   0x3   :  { %1358 = vmatpush.bf16.msra.mxu2 %v1165_v0  ;;  %1359 = vmatpush.bf16.msra.mxu3 %v1165_v0  ;;  %v1159_v6 = vld [vmem:[%s1762_s1 + $0x8] sm:$0xff]  ;;  %v1158_v7 = vld [vmem:[%s1762_s1] sm:$0xff]  ;;  %v1128_v16 = vld [vmem:[%s1765_s0 + $0x10] sm:$0xff] }
   0x4   :  { %v1126_v8 = vld [vmem:[%s1765_s0] sm:$0xff]  ;;  %v1127_v12 = vld [vmem:[%s1765_s0 + $0x8] sm:$0xff]  ;;  %v1136_v17 = vld [vmem:[%s1765_s0 + $0x50] sm:$0xff] }
   0x5   :  { %v1134_v9 = vld [vmem:[%s1765_s0 + $0x40] sm:$0xff]  ;;  %v1135_v13 = vld [vmem:[%s1765_s0 + $0x48] sm:$0xff]  ;;  %v1144_v18 = vld [vmem:[%s1765_s0 + $0x90] sm:$0xff] }
   0x6   :  { %338 = vmatpush.bf16.msra.mxu0 %v1164_v1  ;;  %1360 = vmatpush.bf16.msra.mxu1 %v1164_v1  ;;  %v1142_v10 = vld [vmem:[%s1765_s0 + $0x80] sm:$0xff]  ;;  %v1143_v14 = vld [vmem:[%s1765_s0 + $0x88] sm:$0xff]  ;;  %v1152_v19 = vld [vmem:[%s1765_s0 + $0xd0] sm:$0xff] }
   0x7   :  { %1361 = vmatpush.bf16.msra.mxu2 %v1164_v1  ;;  %1362 = vmatpush.bf16.msra.mxu3 %v1164_v1  ;;  %v1150_v11 = vld [vmem:[%s1765_s0 + $0xc0] sm:$0xff]  ;;  %v1151_v15 = vld [vmem:[%s1765_s0 + $0xc8] sm:$0xff]  ;;  %v1129_v20 = vld [vmem:[%s1765_s0 + $0x18] sm:$0xff] }
   0x8   :  { %v1137_v21 = vld [vmem:[%s1765_s0 + $0x58] sm:$0xff]  ;;  %v1130_v24 = vld [vmem:[%s1765_s0 + $0x20] sm:$0xff]  ;;  %v1131_v28 = vld [vmem:[%s1765_s0 + $0x28] sm:$0xff] }
   0x9   :  { %v1145_v22 = vld [vmem:[%s1765_s0 + $0x98] sm:$0xff]  ;;  %v1138_v25 = vld [vmem:[%s1765_s0 + $0x60] sm:$0xff]  ;;  %v1139_v29 = vld [vmem:[%s1765_s0 + $0x68] sm:$0xff] }
   0xa   :  { %339 = vmatpush.bf16.msra.mxu0 %v1163_v2  ;;  %1363 = vmatpush.bf16.msra.mxu1 %v1163_v2  ;;  %v1153_v23 = vld [vmem:[%s1765_s0 + $0xd8] sm:$0xff]  ;;  %v1146_v26 = vld [vmem:[%s1765_s0 + $0xa0] sm:$0xff]  ;;  %v1147_v30 = vld [vmem:[%s1765_s0 + $0xa8] sm:$0xff] }
   0xb   :  { %1364 = vmatpush.bf16.msra.mxu2 %v1163_v2  ;;  %1365 = vmatpush.bf16.msra.mxu3 %v1163_v2  ;;  %v1154_v27 = vld [vmem:[%s1765_s0 + $0xe0] sm:$0xff]  ;;  %v1155_v31 = vld [vmem:[%s1765_s0 + $0xe8] sm:$0xff]  ;;  %v1132_v32 = vld [vmem:[%s1765_s0 + $0x30] sm:$0xff] }
   0xc   :  { %v1140_v33 = vld [vmem:[%s1765_s0 + $0x70] sm:$0xff]  ;;  %v1133_v36 = vld [vmem:[%s1765_s0 + $0x38] sm:$0xff]  ;;  %v1531_v40 = vld [vmem:[%s1763_s2] ss:$0 sm:$0xff] }
   0xd   :  { %v1148_v34 = vld [vmem:[%s1765_s0 + $0xb0] sm:$0xff]  ;;  %v1141_v37 = vld [vmem:[%s1765_s0 + $0x78] sm:$0xff]  ;;  %v1537_v44 = vld [vmem:[%s1764_s3] ss:$0 sm:$0xff] }
   0xe   :  { %340 = vmatpush.bf16.msra.mxu0 %v1162_v3  ;;  %1366 = vmatpush.bf16.msra.mxu1 %v1162_v3  ;;  %v1156_v35 = vld [vmem:[%s1765_s0 + $0xf0] sm:$0xff]  ;;  %v1149_v38 = vld [vmem:[%s1765_s0 + $0xb8] sm:$0xff] }
   0xf   :  { %1367 = vmatpush.bf16.msra.mxu2 %v1162_v3  ;;  %1368 = vmatpush.bf16.msra.mxu3 %v1162_v3  ;;  %v1157_v39 = vld [vmem:[%s1765_s0 + $0xf8] sm:$0xff] }
  0x12   :  { %341 = vmatpush.bf16.msra.mxu0 %v1161_v4  ;;  %1369 = vmatpush.bf16.msra.mxu1 %v1161_v4 }
  0x13   :  { %1370 = vmatpush.bf16.msra.mxu2 %v1161_v4  ;;  %1371 = vmatpush.bf16.msra.mxu3 %v1161_v4 }
  0x16   :  { %342 = vmatpush.bf16.msra.mxu0 %v1160_v5  ;;  %1372 = vmatpush.bf16.msra.mxu1 %v1160_v5 }
  0x17   :  { %1373 = vmatpush.bf16.msra.mxu2 %v1160_v5  ;;  %1374 = vmatpush.bf16.msra.mxu3 %v1160_v5 }
  0x1a   :  { %343 = vmatpush.bf16.msra.mxu0 %v1159_v6  ;;  %1375 = vmatpush.bf16.msra.mxu1 %v1159_v6 }
  0x1b   :  { %1376 = vmatpush.bf16.msra.mxu2 %v1159_v6  ;;  %1377 = vmatpush.bf16.msra.mxu3 %v1159_v6 }
  0x1e   :  { %344 = vmatpush.bf16.msra.mxu0 %v1158_v7  ;;  %1378 = vmatpush.bf16.msra.mxu1 %v1158_v7 }
  0x1f   :  { %1379 = vmatpush.bf16.msra.mxu2 %v1158_v7  ;;  %1380 = vmatpush.bf16.msra.mxu3 %v1158_v7 }
  0x21   :  { %345 = vmatmul.bf16.vlgmr.msra.gmra.mxu0 %v1126_v8  ;;  %385 = vmatmul.bf16.vlgmr.msra.gmra.mxu1 %v1134_v9 }
  0x22   :  { %425 = vmatmul.bf16.vlgmr.msra.gmra.mxu2 %v1142_v10  ;;  %465 = vmatmul.bf16.vlgmr.msra.gmra.mxu3 %v1150_v11 }
  0x31   :  { %350 = vmatmul.bf16.gmra.mxu0 %v1127_v12  ;;  %390 = vmatmul.bf16.gmra.mxu1 %v1135_v13 }
  0x32   :  { %430 = vmatmul.bf16.gmra.mxu2 %v1143_v14  ;;  %470 = vmatmul.bf16.gmra.mxu3 %v1151_v15 }
  0x41   :  { %355 = vmatmul.bf16.gmra.mxu0 %v1128_v16  ;;  %395 = vmatmul.bf16.gmra.mxu1 %v1136_v17 }
  0x42   :  { %435 = vmatmul.bf16.gmra.mxu2 %v1144_v18  ;;  %475 = vmatmul.bf16.gmra.mxu3 %v1152_v19 }
  0x51   :  { %360 = vmatmul.bf16.gmra.mxu0 %v1129_v20  ;;  %400 = vmatmul.bf16.gmra.mxu1 %v1137_v21 }
  0x52   :  { %440 = vmatmul.bf16.gmra.mxu2 %v1145_v22  ;;  %480 = vmatmul.bf16.gmra.mxu3 %v1153_v23 }
  0x61   :  { %365 = vmatmul.bf16.gmra.mxu0 %v1130_v24  ;;  %405 = vmatmul.bf16.gmra.mxu1 %v1138_v25 }
  0x62   :  { %445 = vmatmul.bf16.gmra.mxu2 %v1146_v26  ;;  %485 = vmatmul.bf16.gmra.mxu3 %v1154_v27 }
  0x71   :  { %370 = vmatmul.bf16.gmra.mxu0 %v1131_v28  ;;  %410 = vmatmul.bf16.gmra.mxu1 %v1139_v29 }
  0x72   :  { %450 = vmatmul.bf16.gmra.mxu2 %v1147_v30  ;;  %490 = vmatmul.bf16.gmra.mxu3 %v1155_v31 }
  0x81   :  { %375 = vmatmul.bf16.gmra.mxu0 %v1132_v32  ;;  %415 = vmatmul.bf16.gmra.mxu1 %v1140_v33 }
  0x82   :  { %455 = vmatmul.bf16.gmra.mxu2 %v1148_v34  ;;  %495 = vmatmul.bf16.gmra.mxu3 %v1156_v35 }
  0x91   :  { %380 = vmatmul.bf16.gmra.mxu0 %v1133_v36  ;;  %420 = vmatmul.bf16.gmra.mxu1 %v1141_v37 }
  0x92   :  { %460 = vmatmul.bf16.gmra.mxu2 %v1149_v38  ;;  %500 = vmatmul.bf16.gmra.mxu3 %v1157_v39 }
  0x9e   :  { %v346_v41 = vpop.f32.mrf.mxu0  ;;  %v386_v42 = vpop.f32.mrf.mxu1 }
  0x9f   :  { %v510_v43 = vmul.f32 %v1531_v40, %v346_v41  ;;  %v526_v45 = vmul.f32 %v1531_v40, %v386_v42 }
  0xa1   :  { %v578_v46 = vadd.f32 %v1537_v44, %v510_v43  ;;  %v594_v47 = vadd.f32 %v1537_v44, %v526_v45 }
  0xa3   :  { %v706_v56 = vmul.f32 0.01, %v578_v46  ;;  %v722_v57 = vmul.f32 0.01, %v594_v47  ;;  %vm642_vm0 = vcmp.ge.f32.partialorder %v578_v46, 0.0  ;;  %vm658_vm1 = vcmp.ge.f32.partialorder %v594_v47, 0.0 }
  0xa5   :  { %v426_v48 = vpop.f32.mrf.mxu2  ;;  %v466_v49 = vpop.f32.mrf.mxu3  ;;  %v770_v0 = vsel %vm642_vm0, %v578_v46, %v706_v56  ;;  %v786_v1 = vsel %vm658_vm1, %v594_v47, %v722_v57 }
  0xa6   :  { %v348_v50 = vpop.f32.mrf.mxu0  ;;  %v388_v51 = vpop.f32.mrf.mxu1  ;;  %v542_v54 = vmul.f32 %v1531_v40, %v426_v48  ;;  %v558_v55 = vmul.f32 %v1531_v40, %v466_v49 }
  0xa7   :  { %v511_v52 = vmul.f32 %v1531_v40, %v348_v50  ;;  %v527_v53 = vmul.f32 %v1531_v40, %v388_v51 }
  0xa8   :  { %v610_v62 = vadd.f32 %v1537_v44, %v542_v54  ;;  %v626_v63 = vadd.f32 %v1537_v44, %v558_v55 }
  0xa9   :  { %v579_v58 = vadd.f32 %v1537_v44, %v511_v52  ;;  %v595_v59 = vadd.f32 %v1537_v44, %v527_v53 }
  0xaa   :  { %v738_v12 = vmul.f32 0.01, %v610_v62  ;;  %v754_v13 = vmul.f32 0.01, %v626_v63  ;;  %vm674_vm4 = vcmp.ge.f32.partialorder %v610_v62, 0.0  ;;  %vm690_vm5 = vcmp.ge.f32.partialorder %v626_v63, 0.0 }
  0xab   :  { %vm643_vm2 = vcmp.ge.f32.partialorder %v579_v58, 0.0  ;;  %v707_v60 = vmul.f32 0.01, %v579_v58  ;;  %vm659_vm3 = vcmp.ge.f32.partialorder %v595_v59, 0.0  ;;  %v723_v61 = vmul.f32 0.01, %v595_v59 }
  0xac   :  { %v802_v20 = vsel %vm674_vm4, %v610_v62, %v738_v12  ;;  %v818_v21 = vsel %vm690_vm5, %v626_v63, %v754_v13 }
  0xad   :  { %v771_v2 = vsel %vm643_vm2, %v579_v58, %v707_v60  ;;  %v787_v3 = vsel %vm659_vm3, %v595_v59, %v723_v61  ;;  %v428_v4 = vpop.f32.mrf.mxu2  ;;  %v468_v5 = vpop.f32.mrf.mxu3 }
  0xae   :  { %v1169_v6 = vpack.c.bf16 %v771_v2, %v770_v0  ;;  %v1209_v7 = vpack.c.bf16 %v787_v3, %v786_v1  ;;  %v543_v8 = vmul.f32 %v1531_v40, %v428_v4  ;;  %v559_v9 = vmul.f32 %v1531_v40, %v468_v5  ;;  %v351_v10 = vpop.f32.mrf.mxu0  ;;  %v391_v11 = vpop.f32.mrf.mxu1 }
  0xaf   :  { %v512_v16 = vmul.f32 %v1531_v40, %v351_v10  ;;  %v528_v17 = vmul.f32 %v1531_v40, %v391_v11 }
  0xb0   :  { %1170 = vst [vmem:[%s1766_s4] sm:$0xff] %v1169_v6   ;;  %v611_v14 = vadd.f32 %v1537_v44, %v543_v8  ;;  %v627_v15 = vadd.f32 %v1537_v44, %v559_v9 }
  0xb1   :  { %1333 = vst [vmem:[%s1766_s4 + $0x40] sm:$0xff] %v1209_v7   ;;  %v580_v26 = vadd.f32 %v1537_v44, %v512_v16  ;;  %v596_v27 = vadd.f32 %v1537_v44, %v528_v17 }
  0xb2   :  { %vm675_vm6 = vcmp.ge.f32.partialorder %v611_v14, 0.0  ;;  %v739_v18 = vmul.f32 0.01, %v611_v14  ;;  %vm691_vm7 = vcmp.ge.f32.partialorder %v627_v15, 0.0  ;;  %v755_v19 = vmul.f32 0.01, %v627_v15 }
  0xb3   :  { %v708_v36 = vmul.f32 0.01, %v580_v26  ;;  %v724_v37 = vmul.f32 0.01, %v596_v27  ;;  %vm644_vm8 = vcmp.ge.f32.partialorder %v580_v26, 0.0  ;;  %vm660_vm9 = vcmp.ge.f32.partialorder %v596_v27, 0.0 }
  0xb4   :  { %v803_v22 = vsel %vm675_vm6, %v611_v14, %v739_v18  ;;  %v819_v23 = vsel %vm691_vm7, %v627_v15, %v755_v19 }
  0xb5   :  { %v1249_v24 = vpack.c.bf16 %v803_v22, %v802_v20  ;;  %v1289_v25 = vpack.c.bf16 %v819_v23, %v818_v21  ;;  %v431_v28 = vpop.f32.mrf.mxu2  ;;  %v471_v29 = vpop.f32.mrf.mxu3  ;;  %v772_v46 = vsel %vm644_vm8, %v580_v26, %v708_v36  ;;  %v788_v47 = vsel %vm660_vm9, %v596_v27, %v724_v37 }
  0xb6   :  { %v353_v30 = vpop.f32.mrf.mxu0  ;;  %v393_v31 = vpop.f32.mrf.mxu1  ;;  %v544_v34 = vmul.f32 %v1531_v40, %v431_v28  ;;  %v560_v35 = vmul.f32 %v1531_v40, %v471_v29 }
  0xb7   :  { %1341 = vst [vmem:[%s1766_s4 + $0x80] sm:$0xff] %v1249_v24   ;;  %v513_v32 = vmul.f32 %v1531_v40, %v353_v30  ;;  %v529_v33 = vmul.f32 %v1531_v40, %v393_v31 }
  0xb8   :  { %1349 = vst [vmem:[%s1766_s4 + $0xc0] sm:$0xff] %v1289_v25   ;;  %v612_v43 = vadd.f32 %v1537_v44, %v544_v34  ;;  %v628_v45 = vadd.f32 %v1537_v44, %v560_v35 }
  0xb9   :  { %v581_v38 = vadd.f32 %v1537_v44, %v513_v32  ;;  %v597_v39 = vadd.f32 %v1537_v44, %v529_v33 }
  0xba   :  { %v740_v58 = vmul.f32 0.01, %v612_v43  ;;  %v756_v59 = vmul.f32 0.01, %v628_v45  ;;  %vm676_vm12 = vcmp.ge.f32.partialorder %v612_v43, 0.0  ;;  %vm692_vm13 = vcmp.ge.f32.partialorder %v628_v45, 0.0 }
  0xbb   :  { %vm645_vm10 = vcmp.ge.f32.partialorder %v581_v38, 0.0  ;;  %v709_v41 = vmul.f32 0.01, %v581_v38  ;;  %vm661_vm11 = vcmp.ge.f32.partialorder %v597_v39, 0.0  ;;  %v725_v42 = vmul.f32 0.01, %v597_v39 }
  0xbc   :  { %v804_v2 = vsel %vm676_vm12, %v612_v43, %v740_v58  ;;  %v820_v3 = vsel %vm692_vm13, %v628_v45, %v756_v59 }
  0xbd   :  { %v773_v48 = vsel %vm645_vm10, %v581_v38, %v709_v41  ;;  %v789_v49 = vsel %vm661_vm11, %v597_v39, %v725_v42  ;;  %v433_v50 = vpop.f32.mrf.mxu2  ;;  %v473_v51 = vpop.f32.mrf.mxu3 }
  0xbe   :  { %v1174_v52 = vpack.c.bf16 %v773_v48, %v772_v46  ;;  %v1214_v53 = vpack.c.bf16 %v789_v49, %v788_v47  ;;  %v545_v54 = vmul.f32 %v1531_v40, %v433_v50  ;;  %v561_v55 = vmul.f32 %v1531_v40, %v473_v51  ;;  %v356_v56 = vpop.f32.mrf.mxu0  ;;  %v396_v57 = vpop.f32.mrf.mxu1 }
  0xbf   :  { %v514_v62 = vmul.f32 %v1531_v40, %v356_v56  ;;  %v530_v63 = vmul.f32 %v1531_v40, %v396_v57 }
  0xc0   :  { %1326 = vst [vmem:[%s1766_s4 + $0x8] sm:$0xff] %v1174_v52   ;;  %v613_v60 = vadd.f32 %v1537_v44, %v545_v54  ;;  %v629_v61 = vadd.f32 %v1537_v44, %v561_v55 }
  0xc1   :  { %1334 = vst [vmem:[%s1766_s4 + $0x48] sm:$0xff] %v1214_v53   ;;  %v582_v8 = vadd.f32 %v1537_v44, %v514_v62  ;;  %v598_v9 = vadd.f32 %v1537_v44, %v530_v63 }
  0xc2   :  { %vm677_vm14 = vcmp.ge.f32.partialorder %v613_v60, 0.0  ;;  %v741_v0 = vmul.f32 0.01, %v613_v60  ;;  %vm693_vm15 = vcmp.ge.f32.partialorder %v629_v61, 0.0  ;;  %v757_v1 = vmul.f32 0.01, %v629_v61 }
  0xc3   :  { %v710_v18 = vmul.f32 0.01, %v582_v8  ;;  %v726_v19 = vmul.f32 0.01, %v598_v9  ;;  %vm646_vm0 = vcmp.ge.f32.partialorder %v582_v8, 0.0  ;;  %vm662_vm1 = vcmp.ge.f32.partialorder %v598_v9, 0.0 }
  0xc4   :  { %v805_v4 = vsel %vm677_vm14, %v613_v60, %v741_v0  ;;  %v821_v5 = vsel %vm693_vm15, %v629_v61, %v757_v1 }
  0xc5   :  { %v1254_v6 = vpack.c.bf16 %v805_v4, %v804_v2  ;;  %v1294_v7 = vpack.c.bf16 %v821_v5, %v820_v3  ;;  %v436_v10 = vpop.f32.mrf.mxu2  ;;  %v476_v11 = vpop.f32.mrf.mxu3  ;;  %v774_v26 = vsel %vm646_vm0, %v582_v8, %v710_v18  ;;  %v790_v27 = vsel %vm662_vm1, %v598_v9, %v726_v19 }
  0xc6   :  { %v358_v12 = vpop.f32.mrf.mxu0  ;;  %v398_v13 = vpop.f32.mrf.mxu1  ;;  %v546_v16 = vmul.f32 %v1531_v40, %v436_v10  ;;  %v562_v17 = vmul.f32 %v1531_v40, %v476_v11 }
  0xc7   :  { %1342 = vst [vmem:[%s1766_s4 + $0x88] sm:$0xff] %v1254_v6   ;;  %v515_v14 = vmul.f32 %v1531_v40, %v358_v12  ;;  %v531_v15 = vmul.f32 %v1531_v40, %v398_v13 }
  0xc8   :  { %1350 = vst [vmem:[%s1766_s4 + $0xc8] sm:$0xff] %v1294_v7   ;;  %v614_v24 = vadd.f32 %v1537_v44, %v546_v16  ;;  %v630_v25 = vadd.f32 %v1537_v44, %v562_v17 }
  0xc9   :  { %v583_v20 = vadd.f32 %v1537_v44, %v515_v14  ;;  %v599_v21 = vadd.f32 %v1537_v44, %v531_v15 }
  0xca   :  { %v742_v38 = vmul.f32 0.01, %v614_v24  ;;  %v758_v39 = vmul.f32 0.01, %v630_v25  ;;  %vm678_vm4 = vcmp.ge.f32.partialorder %v614_v24, 0.0  ;;  %vm694_vm5 = vcmp.ge.f32.partialorder %v630_v25, 0.0 }
  0xcb   :  { %vm647_vm2 = vcmp.ge.f32.partialorder %v583_v20, 0.0  ;;  %v711_v22 = vmul.f32 0.01, %v583_v20  ;;  %vm663_vm3 = vcmp.ge.f32.partialorder %v599_v21, 0.0  ;;  %v727_v23 = vmul.f32 0.01, %v599_v21 }
  0xcc   :  { %v806_v48 = vsel %vm678_vm4, %v614_v24, %v742_v38  ;;  %v822_v49 = vsel %vm694_vm5, %v630_v25, %v758_v39 }
  0xcd   :  { %v775_v28 = vsel %vm647_vm2, %v583_v20, %v711_v22  ;;  %v791_v29 = vsel %vm663_vm3, %v599_v21, %v727_v23  ;;  %v438_v30 = vpop.f32.mrf.mxu2  ;;  %v478_v31 = vpop.f32.mrf.mxu3 }
  0xce   :  { %v1179_v32 = vpack.c.bf16 %v775_v28, %v774_v26  ;;  %v1219_v33 = vpack.c.bf16 %v791_v29, %v790_v27  ;;  %v547_v34 = vmul.f32 %v1531_v40, %v438_v30  ;;  %v563_v35 = vmul.f32 %v1531_v40, %v478_v31  ;;  %v361_v36 = vpop.f32.mrf.mxu0  ;;  %v401_v37 = vpop.f32.mrf.mxu1 }
  0xcf   :  { %v516_v43 = vmul.f32 %v1531_v40, %v361_v36  ;;  %v532_v45 = vmul.f32 %v1531_v40, %v401_v37 }
  0xd0   :  { %1327 = vst [vmem:[%s1766_s4 + $0x10] sm:$0xff] %v1179_v32   ;;  %v615_v41 = vadd.f32 %v1537_v44, %v547_v34  ;;  %v631_v42 = vadd.f32 %v1537_v44, %v563_v35 }
  0xd1   :  { %1335 = vst [vmem:[%s1766_s4 + $0x50] sm:$0xff] %v1219_v33   ;;  %v584_v54 = vadd.f32 %v1537_v44, %v516_v43  ;;  %v600_v55 = vadd.f32 %v1537_v44, %v532_v45 }
  0xd2   :  { %vm679_vm6 = vcmp.ge.f32.partialorder %v615_v41, 0.0  ;;  %v743_v46 = vmul.f32 0.01, %v615_v41  ;;  %vm695_vm7 = vcmp.ge.f32.partialorder %v631_v42, 0.0  ;;  %v759_v47 = vmul.f32 0.01, %v631_v42 }
  0xd3   :  { %v712_v0 = vmul.f32 0.01, %v584_v54  ;;  %v728_v1 = vmul.f32 0.01, %v600_v55  ;;  %vm648_vm8 = vcmp.ge.f32.partialorder %v584_v54, 0.0  ;;  %vm664_vm9 = vcmp.ge.f32.partialorder %v600_v55, 0.0 }
  0xd4   :  { %v807_v50 = vsel %vm679_vm6, %v615_v41, %v743_v46  ;;  %v823_v51 = vsel %vm695_vm7, %v631_v42, %v759_v47 }
  0xd5   :  { %v1259_v52 = vpack.c.bf16 %v807_v50, %v806_v48  ;;  %v1299_v53 = vpack.c.bf16 %v823_v51, %v822_v49  ;;  %v441_v56 = vpop.f32.mrf.mxu2  ;;  %v481_v57 = vpop.f32.mrf.mxu3  ;;  %v776_v8 = vsel %vm648_vm8, %v584_v54, %v712_v0  ;;  %v792_v9 = vsel %vm664_vm9, %v600_v55, %v728_v1 }
  0xd6   :  { %v363_v58 = vpop.f32.mrf.mxu0  ;;  %v403_v59 = vpop.f32.mrf.mxu1  ;;  %v548_v62 = vmul.f32 %v1531_v40, %v441_v56  ;;  %v564_v63 = vmul.f32 %v1531_v40, %v481_v57 }
  0xd7   :  { %1343 = vst [vmem:[%s1766_s4 + $0x90] sm:$0xff] %v1259_v52   ;;  %v517_v60 = vmul.f32 %v1531_v40, %v363_v58  ;;  %v533_v61 = vmul.f32 %v1531_v40, %v403_v59 }
  0xd8   :  { %1351 = vst [vmem:[%s1766_s4 + $0xd0] sm:$0xff] %v1299_v53   ;;  %v616_v6 = vadd.f32 %v1537_v44, %v548_v62  ;;  %v632_v7 = vadd.f32 %v1537_v44, %v564_v63 }
  0xd9   :  { %v585_v2 = vadd.f32 %v1537_v44, %v517_v60  ;;  %v601_v3 = vadd.f32 %v1537_v44, %v533_v61 }
  0xda   :  { %v744_v20 = vmul.f32 0.01, %v616_v6  ;;  %v760_v21 = vmul.f32 0.01, %v632_v7  ;;  %vm680_vm12 = vcmp.ge.f32.partialorder %v616_v6, 0.0  ;;  %vm696_vm13 = vcmp.ge.f32.partialorder %v632_v7, 0.0 }
  0xdb   :  { %vm649_vm10 = vcmp.ge.f32.partialorder %v585_v2, 0.0  ;;  %v713_v4 = vmul.f32 0.01, %v585_v2  ;;  %vm665_vm11 = vcmp.ge.f32.partialorder %v601_v3, 0.0  ;;  %v729_v5 = vmul.f32 0.01, %v601_v3 }
  0xdc   :  { %v808_v28 = vsel %vm680_vm12, %v616_v6, %v744_v20  ;;  %v824_v29 = vsel %vm696_vm13, %v632_v7, %v760_v21 }
  0xdd   :  { %v777_v10 = vsel %vm649_vm10, %v585_v2, %v713_v4  ;;  %v793_v11 = vsel %vm665_vm11, %v601_v3, %v729_v5  ;;  %v443_v12 = vpop.f32.mrf.mxu2  ;;  %v483_v13 = vpop.f32.mrf.mxu3 }
  0xde   :  { %v1184_v14 = vpack.c.bf16 %v777_v10, %v776_v8  ;;  %v1224_v15 = vpack.c.bf16 %v793_v11, %v792_v9  ;;  %v549_v16 = vmul.f32 %v1531_v40, %v443_v12  ;;  %v565_v17 = vmul.f32 %v1531_v40, %v483_v13  ;;  %v366_v18 = vpop.f32.mrf.mxu0  ;;  %v406_v19 = vpop.f32.mrf.mxu1 }
  0xdf   :  { %v518_v24 = vmul.f32 %v1531_v40, %v366_v18  ;;  %v534_v25 = vmul.f32 %v1531_v40, %v406_v19 }
  0xe0   :  { %1328 = vst [vmem:[%s1766_s4 + $0x18] sm:$0xff] %v1184_v14   ;;  %v617_v22 = vadd.f32 %v1537_v44, %v549_v16  ;;  %v633_v23 = vadd.f32 %v1537_v44, %v565_v17 }
  0xe1   :  { %1336 = vst [vmem:[%s1766_s4 + $0x58] sm:$0xff] %v1224_v15   ;;  %v586_v34 = vadd.f32 %v1537_v44, %v518_v24  ;;  %v602_v35 = vadd.f32 %v1537_v44, %v534_v25 }
  0xe2   :  { %vm681_vm14 = vcmp.ge.f32.partialorder %v617_v22, 0.0  ;;  %v745_v26 = vmul.f32 0.01, %v617_v22  ;;  %vm697_vm15 = vcmp.ge.f32.partialorder %v633_v23, 0.0  ;;  %v761_v27 = vmul.f32 0.01, %v633_v23 }
  0xe3   :  { %v714_v46 = vmul.f32 0.01, %v586_v34  ;;  %v730_v47 = vmul.f32 0.01, %v602_v35  ;;  %vm650_vm0 = vcmp.ge.f32.partialorder %v586_v34, 0.0  ;;  %vm666_vm1 = vcmp.ge.f32.partialorder %v602_v35, 0.0 }
  0xe4   :  { %v809_v30 = vsel %vm681_vm14, %v617_v22, %v745_v26  ;;  %v825_v31 = vsel %vm697_vm15, %v633_v23, %v761_v27 }
  0xe5   :  { %v1264_v32 = vpack.c.bf16 %v809_v30, %v808_v28  ;;  %v1304_v33 = vpack.c.bf16 %v825_v31, %v824_v29  ;;  %v446_v36 = vpop.f32.mrf.mxu2  ;;  %v486_v37 = vpop.f32.mrf.mxu3  ;;  %v778_v54 = vsel %vm650_vm0, %v586_v34, %v714_v46  ;;  %v794_v55 = vsel %vm666_vm1, %v602_v35, %v730_v47 }
  0xe6   :  { %v368_v38 = vpop.f32.mrf.mxu0  ;;  %v408_v39 = vpop.f32.mrf.mxu1  ;;  %v550_v43 = vmul.f32 %v1531_v40, %v446_v36  ;;  %v566_v45 = vmul.f32 %v1531_v40, %v486_v37 }
  0xe7   :  { %1344 = vst [vmem:[%s1766_s4 + $0x98] sm:$0xff] %v1264_v32   ;;  %v519_v41 = vmul.f32 %v1531_v40, %v368_v38  ;;  %v535_v42 = vmul.f32 %v1531_v40, %v408_v39 }
  0xe8   :  { %1352 = vst [vmem:[%s1766_s4 + $0xd8] sm:$0xff] %v1304_v33   ;;  %v618_v52 = vadd.f32 %v1537_v44, %v550_v43  ;;  %v634_v53 = vadd.f32 %v1537_v44, %v566_v45 }
  0xe9   :  { %v587_v48 = vadd.f32 %v1537_v44, %v519_v41  ;;  %v603_v49 = vadd.f32 %v1537_v44, %v535_v42 }
  0xea   :  { %v746_v2 = vmul.f32 0.01, %v618_v52  ;;  %v762_v3 = vmul.f32 0.01, %v634_v53  ;;  %vm682_vm4 = vcmp.ge.f32.partialorder %v618_v52, 0.0  ;;  %vm698_vm5 = vcmp.ge.f32.partialorder %v634_v53, 0.0 }
  0xeb   :  { %vm651_vm2 = vcmp.ge.f32.partialorder %v587_v48, 0.0  ;;  %v715_v50 = vmul.f32 0.01, %v587_v48  ;;  %vm667_vm3 = vcmp.ge.f32.partialorder %v603_v49, 0.0  ;;  %v731_v51 = vmul.f32 0.01, %v603_v49 }
  0xec   :  { %v810_v10 = vsel %vm682_vm4, %v618_v52, %v746_v2  ;;  %v826_v11 = vsel %vm698_vm5, %v634_v53, %v762_v3 }
  0xed   :  { %v779_v56 = vsel %vm651_vm2, %v587_v48, %v715_v50  ;;  %v795_v57 = vsel %vm667_vm3, %v603_v49, %v731_v51  ;;  %v448_v58 = vpop.f32.mrf.mxu2  ;;  %v488_v59 = vpop.f32.mrf.mxu3 }
  0xee   :  { %v1189_v60 = vpack.c.bf16 %v779_v56, %v778_v54  ;;  %v1229_v61 = vpack.c.bf16 %v795_v57, %v794_v55  ;;  %v551_v62 = vmul.f32 %v1531_v40, %v448_v58  ;;  %v567_v63 = vmul.f32 %v1531_v40, %v488_v59  ;;  %v371_v0 = vpop.f32.mrf.mxu0  ;;  %v411_v1 = vpop.f32.mrf.mxu1 }
  0xef   :  { %v520_v6 = vmul.f32 %v1531_v40, %v371_v0  ;;  %v536_v7 = vmul.f32 %v1531_v40, %v411_v1 }
  0xf0   :  { %1329 = vst [vmem:[%s1766_s4 + $0x20] sm:$0xff] %v1189_v60   ;;  %v619_v4 = vadd.f32 %v1537_v44, %v551_v62  ;;  %v635_v5 = vadd.f32 %v1537_v44, %v567_v63 }
  0xf1   :  { %1337 = vst [vmem:[%s1766_s4 + $0x60] sm:$0xff] %v1229_v61   ;;  %v588_v16 = vadd.f32 %v1537_v44, %v520_v6  ;;  %v604_v17 = vadd.f32 %v1537_v44, %v536_v7 }
  0xf2   :  { %vm683_vm6 = vcmp.ge.f32.partialorder %v619_v4, 0.0  ;;  %v747_v8 = vmul.f32 0.01, %v619_v4  ;;  %vm699_vm7 = vcmp.ge.f32.partialorder %v635_v5, 0.0  ;;  %v763_v9 = vmul.f32 0.01, %v635_v5 }
  0xf3   :  { %v716_v26 = vmul.f32 0.01, %v588_v16  ;;  %v732_v27 = vmul.f32 0.01, %v604_v17  ;;  %vm652_vm8 = vcmp.ge.f32.partialorder %v588_v16, 0.0  ;;  %vm668_vm9 = vcmp.ge.f32.partialorder %v604_v17, 0.0 }
  0xf4   :  { %v811_v12 = vsel %vm683_vm6, %v619_v4, %v747_v8  ;;  %v827_v13 = vsel %vm699_vm7, %v635_v5, %v763_v9 }
  0xf5   :  { %v1269_v14 = vpack.c.bf16 %v811_v12, %v810_v10  ;;  %v1309_v15 = vpack.c.bf16 %v827_v13, %v826_v11  ;;  %v451_v18 = vpop.f32.mrf.mxu2  ;;  %v491_v19 = vpop.f32.mrf.mxu3  ;;  %v780_v34 = vsel %vm652_vm8, %v588_v16, %v716_v26  ;;  %v796_v35 = vsel %vm668_vm9, %v604_v17, %v732_v27 }
  0xf6   :  { %v373_v20 = vpop.f32.mrf.mxu0  ;;  %v413_v21 = vpop.f32.mrf.mxu1  ;;  %v552_v24 = vmul.f32 %v1531_v40, %v451_v18  ;;  %v568_v25 = vmul.f32 %v1531_v40, %v491_v19 }
  0xf7   :  { %1345 = vst [vmem:[%s1766_s4 + $0xa0] sm:$0xff] %v1269_v14   ;;  %v521_v22 = vmul.f32 %v1531_v40, %v373_v20  ;;  %v537_v23 = vmul.f32 %v1531_v40, %v413_v21 }
  0xf8   :  { %1353 = vst [vmem:[%s1766_s4 + $0xe0] sm:$0xff] %v1309_v15   ;;  %v620_v32 = vadd.f32 %v1537_v44, %v552_v24  ;;  %v636_v33 = vadd.f32 %v1537_v44, %v568_v25 }
  0xf9   :  { %v589_v28 = vadd.f32 %v1537_v44, %v521_v22  ;;  %v605_v29 = vadd.f32 %v1537_v44, %v537_v23 }
  0xfa   :  { %v748_v48 = vmul.f32 0.01, %v620_v32  ;;  %v764_v49 = vmul.f32 0.01, %v636_v33  ;;  %vm684_vm12 = vcmp.ge.f32.partialorder %v620_v32, 0.0  ;;  %vm700_vm13 = vcmp.ge.f32.partialorder %v636_v33, 0.0 }
  0xfb   :  { %vm653_vm10 = vcmp.ge.f32.partialorder %v589_v28, 0.0  ;;  %v717_v30 = vmul.f32 0.01, %v589_v28  ;;  %vm669_vm11 = vcmp.ge.f32.partialorder %v605_v29, 0.0  ;;  %v733_v31 = vmul.f32 0.01, %v605_v29 }
  0xfc   :  { %v812_v56 = vsel %vm684_vm12, %v620_v32, %v748_v48  ;;  %v828_v57 = vsel %vm700_vm13, %v636_v33, %v764_v49 }
  0xfd   :  { %v781_v36 = vsel %vm653_vm10, %v589_v28, %v717_v30  ;;  %v797_v37 = vsel %vm669_vm11, %v605_v29, %v733_v31  ;;  %v453_v38 = vpop.f32.mrf.mxu2  ;;  %v493_v39 = vpop.f32.mrf.mxu3 }
  0xfe   :  { %v1194_v41 = vpack.c.bf16 %v781_v36, %v780_v34  ;;  %v1234_v42 = vpack.c.bf16 %v797_v37, %v796_v35  ;;  %v553_v43 = vmul.f32 %v1531_v40, %v453_v38  ;;  %v569_v45 = vmul.f32 %v1531_v40, %v493_v39  ;;  %v376_v46 = vpop.f32.mrf.mxu0  ;;  %v416_v47 = vpop.f32.mrf.mxu1 }
  0xff   :  { %v522_v52 = vmul.f32 %v1531_v40, %v376_v46  ;;  %v538_v53 = vmul.f32 %v1531_v40, %v416_v47 }
 0x100   :  { %1330 = vst [vmem:[%s1766_s4 + $0x28] sm:$0xff] %v1194_v41   ;;  %v621_v50 = vadd.f32 %v1537_v44, %v553_v43  ;;  %v637_v51 = vadd.f32 %v1537_v44, %v569_v45 }
 0x101   :  { %1338 = vst [vmem:[%s1766_s4 + $0x68] sm:$0xff] %v1234_v42   ;;  %v590_v62 = vadd.f32 %v1537_v44, %v522_v52  ;;  %v606_v63 = vadd.f32 %v1537_v44, %v538_v53 }
 0x102   :  { %vm685_vm14 = vcmp.ge.f32.partialorder %v621_v50, 0.0  ;;  %v749_v54 = vmul.f32 0.01, %v621_v50  ;;  %vm701_vm15 = vcmp.ge.f32.partialorder %v637_v51, 0.0  ;;  %v765_v55 = vmul.f32 0.01, %v637_v51 }
 0x103   :  { %v718_v8 = vmul.f32 0.01, %v590_v62  ;;  %v734_v9 = vmul.f32 0.01, %v606_v63  ;;  %vm654_vm0 = vcmp.ge.f32.partialorder %v590_v62, 0.0  ;;  %vm670_vm1 = vcmp.ge.f32.partialorder %v606_v63, 0.0 }
 0x104   :  { %v813_v58 = vsel %vm685_vm14, %v621_v50, %v749_v54  ;;  %v829_v59 = vsel %vm701_vm15, %v637_v51, %v765_v55 }
 0x105   :  { %v1274_v60 = vpack.c.bf16 %v813_v58, %v812_v56  ;;  %v1314_v61 = vpack.c.bf16 %v829_v59, %v828_v57  ;;  %v456_v0 = vpop.f32.mrf.mxu2  ;;  %v496_v1 = vpop.f32.mrf.mxu3  ;;  %v782_v16 = vsel %vm654_vm0, %v590_v62, %v718_v8  ;;  %v798_v17 = vsel %vm670_vm1, %v606_v63, %v734_v9 }
 0x106   :  { %v378_v2 = vpop.f32.mrf.mxu0  ;;  %v418_v3 = vpop.f32.mrf.mxu1  ;;  %v554_v6 = vmul.f32 %v1531_v40, %v456_v0  ;;  %v570_v7 = vmul.f32 %v1531_v40, %v496_v1 }
 0x107   :  { %1346 = vst [vmem:[%s1766_s4 + $0xa8] sm:$0xff] %v1274_v60   ;;  %v523_v4 = vmul.f32 %v1531_v40, %v378_v2  ;;  %v539_v5 = vmul.f32 %v1531_v40, %v418_v3 }
 0x108   :  { %1354 = vst [vmem:[%s1766_s4 + $0xe8] sm:$0xff] %v1314_v61   ;;  %v622_v14 = vadd.f32 %v1537_v44, %v554_v6  ;;  %v638_v15 = vadd.f32 %v1537_v44, %v570_v7 }
 0x109   :  { %v591_v10 = vadd.f32 %v1537_v44, %v523_v4  ;;  %v607_v11 = vadd.f32 %v1537_v44, %v539_v5 }
 0x10a   :  { %v750_v28 = vmul.f32 0.01, %v622_v14  ;;  %v766_v29 = vmul.f32 0.01, %v638_v15  ;;  %vm686_vm4 = vcmp.ge.f32.partialorder %v622_v14, 0.0  ;;  %vm702_vm5 = vcmp.ge.f32.partialorder %v638_v15, 0.0 }
 0x10b   :  { %vm655_vm2 = vcmp.ge.f32.partialorder %v591_v10, 0.0  ;;  %v719_v12 = vmul.f32 0.01, %v591_v10  ;;  %vm671_vm3 = vcmp.ge.f32.partialorder %v607_v11, 0.0  ;;  %v735_v13 = vmul.f32 0.01, %v607_v11 }
 0x10c   :  { %v814_v36 = vsel %vm686_vm4, %v622_v14, %v750_v28  ;;  %v830_v37 = vsel %vm702_vm5, %v638_v15, %v766_v29 }
 0x10d   :  { %v783_v18 = vsel %vm655_vm2, %v591_v10, %v719_v12  ;;  %v799_v19 = vsel %vm671_vm3, %v607_v11, %v735_v13  ;;  %v458_v20 = vpop.f32.mrf.mxu2  ;;  %v498_v21 = vpop.f32.mrf.mxu3 }
 0x10e   :  { %v1199_v22 = vpack.c.bf16 %v783_v18, %v782_v16  ;;  %v1239_v23 = vpack.c.bf16 %v799_v19, %v798_v17  ;;  %v555_v24 = vmul.f32 %v1531_v40, %v458_v20  ;;  %v571_v25 = vmul.f32 %v1531_v40, %v498_v21  ;;  %v381_v26 = vpop.f32.mrf.mxu0  ;;  %v421_v27 = vpop.f32.mrf.mxu1 }
 0x10f   :  { %v524_v32 = vmul.f32 %v1531_v40, %v381_v26  ;;  %v540_v33 = vmul.f32 %v1531_v40, %v421_v27 }
 0x110   :  { %1331 = vst [vmem:[%s1766_s4 + $0x30] sm:$0xff] %v1199_v22   ;;  %v623_v30 = vadd.f32 %v1537_v44, %v555_v24  ;;  %v639_v31 = vadd.f32 %v1537_v44, %v571_v25 }
 0x111   :  { %1339 = vst [vmem:[%s1766_s4 + $0x70] sm:$0xff] %v1239_v23   ;;  %v592_v43 = vadd.f32 %v1537_v44, %v524_v32  ;;  %v608_v45 = vadd.f32 %v1537_v44, %v540_v33 }
 0x112   :  { %vm687_vm6 = vcmp.ge.f32.partialorder %v623_v30, 0.0  ;;  %v751_v34 = vmul.f32 0.01, %v623_v30  ;;  %vm703_vm7 = vcmp.ge.f32.partialorder %v639_v31, 0.0  ;;  %v767_v35 = vmul.f32 0.01, %v639_v31 }
 0x113   :  { %v720_v54 = vmul.f32 0.01, %v592_v43  ;;  %v736_v55 = vmul.f32 0.01, %v608_v45  ;;  %vm656_vm8 = vcmp.ge.f32.partialorder %v592_v43, 0.0  ;;  %vm672_vm9 = vcmp.ge.f32.partialorder %v608_v45, 0.0 }
 0x114   :  { %v815_v38 = vsel %vm687_vm6, %v623_v30, %v751_v34  ;;  %v831_v39 = vsel %vm703_vm7, %v639_v31, %v767_v35 }
 0x115   :  { %v1279_v41 = vpack.c.bf16 %v815_v38, %v814_v36  ;;  %v1319_v42 = vpack.c.bf16 %v831_v39, %v830_v37  ;;  %v461_v46 = vpop.f32.mrf.mxu2  ;;  %v501_v47 = vpop.f32.mrf.mxu3  ;;  %v784_v62 = vsel %vm656_vm8, %v592_v43, %v720_v54  ;;  %v800_v63 = vsel %vm672_vm9, %v608_v45, %v736_v55 }
 0x116   :  { %v383_v48 = vpop.f32.mrf.mxu0  ;;  %v423_v49 = vpop.f32.mrf.mxu1  ;;  %v556_v52 = vmul.f32 %v1531_v40, %v461_v46  ;;  %v572_v53 = vmul.f32 %v1531_v40, %v501_v47 }
 0x117   :  { %1347 = vst [vmem:[%s1766_s4 + $0xb0] sm:$0xff] %v1279_v41   ;;  %v525_v50 = vmul.f32 %v1531_v40, %v383_v48  ;;  %v541_v51 = vmul.f32 %v1531_v40, %v423_v49 }
 0x118   :  { %1355 = vst [vmem:[%s1766_s4 + $0xf0] sm:$0xff] %v1319_v42   ;;  %v624_v60 = vadd.f32 %v1537_v44, %v556_v52  ;;  %v640_v61 = vadd.f32 %v1537_v44, %v572_v53 }
 0x119   :  { %v593_v56 = vadd.f32 %v1537_v44, %v525_v50  ;;  %v609_v57 = vadd.f32 %v1537_v44, %v541_v51 }
 0x11a   :  { %v752_v8 = vmul.f32 0.01, %v624_v60  ;;  %v768_v9 = vmul.f32 0.01, %v640_v61  ;;  %vm688_vm12 = vcmp.ge.f32.partialorder %v624_v60, 0.0  ;;  %vm704_vm13 = vcmp.ge.f32.partialorder %v640_v61, 0.0 }
 0x11b   :  { %vm657_vm10 = vcmp.ge.f32.partialorder %v593_v56, 0.0  ;;  %v721_v58 = vmul.f32 0.01, %v593_v56  ;;  %vm673_vm11 = vcmp.ge.f32.partialorder %v609_v57, 0.0  ;;  %v737_v59 = vmul.f32 0.01, %v609_v57 }
 0x11c   :  { %v816_v13 = vsel %vm688_vm12, %v624_v60, %v752_v8  ;;  %v832_v14 = vsel %vm704_vm13, %v640_v61, %v768_v9 }
 0x11d   :  { %v785_v0 = vsel %vm657_vm10, %v593_v56, %v721_v58  ;;  %v801_v1 = vsel %vm673_vm11, %v609_v57, %v737_v59  ;;  %v463_v2 = vpop.f32.mrf.mxu2  ;;  %v503_v3 = vpop.f32.mrf.mxu3 }
 0x11e   :  { %v1204_v4 = vpack.c.bf16 %v785_v0, %v784_v62  ;;  %v1244_v5 = vpack.c.bf16 %v801_v1, %v800_v63  ;;  %v557_v6 = vmul.f32 %v1531_v40, %v463_v2  ;;  %v573_v7 = vmul.f32 %v1531_v40, %v503_v3 }
 0x120   :  { %1332 = vst [vmem:[%s1766_s4 + $0x38] sm:$0xff] %v1204_v4   ;;  %v625_v10 = vadd.f32 %v1537_v44, %v557_v6  ;;  %v641_v11 = vadd.f32 %v1537_v44, %v573_v7 }
 0x121   :  { %1340 = vst [vmem:[%s1766_s4 + $0x78] sm:$0xff] %v1244_v5  }
 0x122   :  { %vm689_vm14 = vcmp.ge.f32.partialorder %v625_v10, 0.0  ;;  %v753_v12 = vmul.f32 0.01, %v625_v10  ;;  %vm705_vm15 = vcmp.ge.f32.partialorder %v641_v11, 0.0  ;;  %v769_v40 = vmul.f32 0.01, %v641_v11 }
 0x124   :  { %v817_v15 = vsel %vm689_vm14, %v625_v10, %v753_v12  ;;  %v833_v16 = vsel %vm705_vm15, %v641_v11, %v769_v40 }
 0x125   :  { %v1284_v17 = vpack.c.bf16 %v817_v15, %v816_v13  ;;  %v1324_v18 = vpack.c.bf16 %v833_v16, %v832_v14 }
 0x127   :  { %1348 = vst [vmem:[%s1766_s4 + $0xb8] sm:$0xff] %v1284_v17  }
 0x128   :  { %1356 = vst [vmem:[%s1766_s4 + $0xf8] sm:$0xff] %v1324_v18  }

// kernel: forward.4
= control target key start
LH: loop header
LB: loop body
LE: loop exit
PB: predicated region body
PF: predicated region fallthrough
CT: control target
= control target key end

     0   :  { %s6101_s15 = smov 0   ;;  %s6103_s16 = smov 0   ;;  %s7765_s0 = inlined_call_operand.vmem [shape: bf16[2,1,18,18,128], index: 0, kind: input, shape index: {}]   ;;  %s7766_s1 = inlined_call_operand.vmem [shape: bf16[9,128,128], index: 1, kind: input, shape index: {}]   ;;  %s7767_s2 = inlined_call_operand.vmem [shape: f32[1,128], index: 2, kind: input, shape index: {}]   ;;  %s7768_s3 = inlined_call_operand.vmem [shape: f32[1,128], index: 3, kind: input, shape index: {}]   ;;  %s7769_s4 = inlined_call_operand.vmem [shape: bf16[2,256,128], index: 4, kind: output, shape index: {}]  }
   0x1   :  { %s6105_s17 = smov 0  }
   0x2 LB: > { %s23_s18 = sadd.s32 1, %s6070_s16  ;;  %p4876_p0 = scmp.ge.s32.totalorder %s6074_s17, 1  ;;  %s6074_s17 = sphi %s6105_s17, %s14_s17   ;;  %s6070_s16 = sphi %s6103_s16, %s7885_s16   ;;  %s6066_s15 = sphi %s6101_s15, %s7884_s15  }
   0x3   : > { %p24_p1 = scmp.ge.s32.totalorder %s23_s18, 2  ;;  %p201_p2 = scmp.lt.s32.totalorder %s6074_s17, 3 }
   0x5   : > { %s7887_s18 = smov (%p24_p1, %s23_s18), 0  ;;  %p202_p3 = pnand %p4876_p0, %p201_p2 }
   0x7   : > { %205 = sbr.rel (%p202_p3) target bundleno = 766 (0x2fe), region = 36 }
   0xc   : > { %v5762_v0 = vld [vmem:[%s7766_s1 + $0x78] sm:$0xff]  ;;  %p240_p4 = scmp.lt.s32.totalorder %s6066_s15, 1  ;;  %v5761_v1 = vld [vmem:[%s7766_s1 + $0x70] sm:$0xff]  ;;  %v5760_v2 = vld [vmem:[%s7766_s1 + $0x68] sm:$0xff]  ;;  %vm327_vm0 = vsmask.f32 3328 }
   0xd   : > { %5946 = vmatpush.bf16.msra.mxu1 %v5762_v0  ;;  %5947 = vmatpush.bf16.msra.mxu2 %v5762_v0  ;;  %vm328_vm1 = vsmask.f32 7440  ;;  %v5759_v6 = vld [vmem:[%s7766_s1 + $0x60] sm:$0xff]  ;;  %v5758_v35 = vld [vmem:[%s7766_s1 + $0x58] sm:$0xff]  ;;  %v5757_v54 = vld [vmem:[%s7766_s1 + $0x50] sm:$0xff]  ;;  %vm1213_vm3 = vcmask 1042432  }
   0xe   : > { %s7889_s15 = smov (!%p240_p4, %s6066_s15), 1  ;;  %5948 = vmatpush.bf16.msra.mxu3 %v5762_v0  ;;  %843 = vmatpush.bf16.msra.mxu0 %v5762_v0  ;;  %vm6149_vm2 = vmor %vm327_vm0, %vm328_vm1  ;;  %vm1214_vm4 = vcmask 1046532  }
   0xf   : > { %s5970_s23 = smul.u32 216, %s7889_s15  ;;  %vm6449_vm5 = vmor %vm1213_vm3, %vm1214_vm4 }
  0x11   : > { %5949 = vmatpush.bf16.msra.mxu1 %v5761_v1  ;;  %5950 = vmatpush.bf16.msra.mxu2 %v5761_v1  ;;  %s6134_s28 = scalar_lea.vmem %s7765_s0, %s5970_s23  ;;  %s5730_s23 = sshll.u32 %s7889_s15, 7 }
  0x12   : > { %5951 = vmatpush.bf16.msra.mxu3 %v5761_v1  ;;  %844 = vmatpush.bf16.msra.mxu0 %v5761_v1  ;;  %v271_v3 = vld [vmem:[%s6134_s28 + $0x30] sm:$0xf]  ;;  %v272_v4 = vld [vmem:[%s6134_s28 + $0x34] sm:$0xf]  ;;  %v315_v5 = vld [vmem:[%s6134_s28 + $0x38] sm:$0x1]  ;;  %s7438_s25 = scalar_lea.vmem %s7769_s4, %s5730_s23 }
  0x13   : > { %v427_v7 = vshrl.u32 %v271_v3, 16  ;;  %v430_v8 = vshll.u32 %v271_v3, 16  ;;  %v436_v9 = vshll.u32 %v272_v4, 16  ;;  %v440_v10 = vshrl.u32 %v272_v4, 16  ;;  %v279_v11 = vld [vmem:[%s6134_s28 + $0x60] sm:$0xf] }
  0x14   : > { %v446_v12 = vshll.u32 %v315_v5, 16  ;;  %v280_v13 = vld [vmem:[%s6134_s28 + $0x64] sm:$0xf]  ;;  %v319_v14 = vld [vmem:[%s6134_s28 + $0x68] sm:$0x1]  ;;  %v523_v15 = vshrl.u32 %v279_v11, 16 }
  0x15   : > { %5952 = vmatpush.bf16.msra.mxu1 %v5760_v2  ;;  %5953 = vmatpush.bf16.msra.mxu2 %v5760_v2  ;;  %v429_v16 = vrot.slane %v427_v7, 4  ;;  %v432_v17 = vrot.slane %v430_v8, 5  ;;  %v438_v18 = vrot.slane %v436_v9, 5  ;;  %v442_v19 = vrot.slane %v440_v10, 4  ;;  %v287_v20 = vld [vmem:[%s6134_s28 + $0x90] sm:$0xf] }
  0x16   : > { %5954 = vmatpush.bf16.msra.mxu3 %v5760_v2  ;;  %845 = vmatpush.bf16.msra.mxu0 %v5760_v2  ;;  %v448_v21 = vrot.slane %v446_v12, 5  ;;  %v525_v22 = vrot.slane %v523_v15, 4  ;;  %v526_v23 = vshll.u32 %v279_v11, 16  ;;  %v532_v24 = vshll.u32 %v280_v13, 16  ;;  %v288_v29 = vld [vmem:[%s6134_s28 + $0x94] sm:$0xf] }
  0x17   : > { %v433_v25 = vor.u32 %v432_v17, %v429_v16  ;;  %v443_v26 = vor.u32 %v442_v19, %v438_v18  ;;  %v536_v27 = vshrl.u32 %v280_v13, 16  ;;  %v542_v28 = vshll.u32 %v319_v14, 16  ;;  %v323_v41 = vld [vmem:[%s6134_s28 + $0x98] sm:$0x1]  ;;  %v263_v49 = vld [vmem:[%s6134_s28] sm:$0xf] }
  0x18   : > { %v528_v31 = vrot.slane %v526_v23, 5  ;;  %v534_v32 = vrot.slane %v532_v24, 5  ;;  %v619_v33 = vshrl.u32 %v287_v20, 16  ;;  %v622_v34 = vshll.u32 %v287_v20, 16  ;;  %v6174_v62 = vld [vmem:[%s6134_s28 + $0x4] sm:$0xf] }
  0x19   : > { %5955 = vmatpush.bf16.msra.mxu1 %v5759_v6  ;;  %5956 = vmatpush.bf16.msra.mxu2 %v5759_v6  ;;  %v434_v36 = vrot.slane %v433_v25, 4  ;;  %v444_v37 = vrot.slane %v443_v26, 4  ;;  %v538_v38 = vrot.slane %v536_v27, 4  ;;  %v544_v39 = vrot.slane %v542_v28, 5  ;;  %v6181_v4 = vld [vmem:[%s6134_s28 + $0x8] sm:$0x1] }
  0x1a   : > { %5957 = vmatpush.bf16.msra.mxu3 %v5759_v6  ;;  %846 = vmatpush.bf16.msra.mxu0 %v5759_v6  ;;  %v529_v40 = vor.u32 %v528_v31, %v525_v22  ;;  %v621_v42 = vrot.slane %v619_v33, 4  ;;  %v624_v43 = vrot.slane %v622_v34, 5  ;;  %v628_v44 = vshll.u32 %v288_v29, 16  ;;  %v273_v5 = vld [vmem:[%s6134_s28 + $0x3c] sm:$0xf]  ;;  %v5756_v10 = vld [vmem:[%s7766_s1 + $0x48] sm:$0xff] }
  0x1b   : > { %v439_v45 = vsel %vm6149_vm2, %v434_v36, %v438_v18  ;;  %v449_v46 = vsel %vm6149_vm2, %v444_v37, %v448_v21  ;;  %v539_v47 = vor.u32 %v538_v38, %v534_v32  ;;  %v632_v48 = vshrl.u32 %v288_v29, 16  ;;  %v274_v15 = vld [vmem:[%s6134_s28 + $0x40] sm:$0xf]  ;;  %v316_v19 = vld [vmem:[%s6134_s28 + $0x44] sm:$0x1]  ;;  %v5770_v37 = vld [vmem:[%s7766_s1 + $0xb8] sm:$0xff] }
  0x1c   : > { %v6162_v50 = vunpack.c.l.b16 %v439_v45  ;;  %v6164_v51 = vunpack.c.l.b16 %v449_v46  ;;  %v530_v52 = vrot.slane %v529_v40, 4  ;;  %v625_v53 = vor.u32 %v624_v43, %v621_v42  ;;  %v281_v25 = vld [vmem:[%s6134_s28 + $0x6c] sm:$0xf]  ;;  %v5755_v31 = vld [vmem:[%s7766_s1 + $0x40] sm:$0xff]  ;;  %v282_v40 = vld [vmem:[%s6134_s28 + $0x70] sm:$0xf] }
  0x1d   : > { %5958 = vmatpush.bf16.msra.mxu1 %v5758_v35  ;;  %5959 = vmatpush.bf16.msra.mxu2 %v5758_v35  ;;  %v540_v55 = vrot.slane %v539_v47, 4  ;;  %v630_v56 = vrot.slane %v628_v44, 5  ;;  %v634_v57 = vrot.slane %v632_v48, 4  ;;  %v638_v58 = vshll.u32 %v323_v41, 16  ;;  %v5794_v43 = vld [vmem:[%s7766_s1 + $0xf8] sm:$0xff] }
  0x1e   : > { %5960 = vmatpush.bf16.msra.mxu3 %v5758_v35  ;;  %847 = vmatpush.bf16.msra.mxu0 %v5758_v35  ;;  %v767_v59 = vpack.c.b16 %v6164_v51, %v6162_v50  ;;  %v535_v60 = vsel %vm6149_vm2, %v530_v52, %v534_v32  ;;  %v626_v61 = vrot.slane %v625_v53, 4  ;;  %v331_v63 = vshrl.u32 %v263_v49, 16  ;;  %v320_v47 = vld [vmem:[%s6134_s28 + $0x74] sm:$0x1] }
  0x1f   : > { %v545_v0 = vsel %vm6149_vm2, %v540_v55, %v544_v39  ;;  %v6178_v1 = vunpack.c.l.b16 %v535_v60  ;;  %v635_v2 = vor.u32 %v634_v57, %v630_v56  ;;  %v640_v3 = vrot.slane %v638_v58, 5  ;;  %v5754_v57 = vld [vmem:[%s7766_s1 + $0x38] sm:$0xff] }
  0x20   : > { %v6184_v6 = vunpack.c.l.b16 %v545_v0  ;;  %v631_v7 = vsel %vm6149_vm2, %v626_v61, %v630_v56  ;;  %v333_v8 = vrot.slane %v331_v63, 4  ;;  %v334_v9 = vshll.u32 %v263_v49, 16  ;;  %v5769_v63 = vld [vmem:[%s7766_s1 + $0xb0] sm:$0xff] }
  0x21   : > { %5961 = vmatpush.bf16.msra.mxu1 %v5757_v54  ;;  %5962 = vmatpush.bf16.msra.mxu2 %v5757_v54  ;;  %v636_v11 = vrot.slane %v635_v2, 4  ;;  %v6191_v12 = vunpack.c.l.b16 %v631_v7  ;;  %v340_v13 = vshll.u32 %v6174_v62, 16  ;;  %v344_v14 = vshrl.u32 %v6174_v62, 16 }
  0x22   : > { %5963 = vmatpush.bf16.msra.mxu3 %v5757_v54  ;;  %848 = vmatpush.bf16.msra.mxu0 %v5757_v54  ;;  %v771_v16 = vpack.c.b16 %v6184_v6, %v6178_v1  ;;  %v336_v17 = vrot.slane %v334_v9, 5  ;;  %v350_v18 = vshll.u32 %v6181_v4, 16  ;;  %v451_v20 = vshrl.u32 %v273_v5, 16  ;;  %v289_v54 = vld [vmem:[%s6134_s28 + $0x9c] sm:$0xf] }
  0x23   : > { %v641_v21 = vsel %vm6149_vm2, %v636_v11, %v640_v3  ;;  %v342_v22 = vrot.slane %v340_v13, 5  ;;  %v346_v23 = vrot.slane %v344_v14, 4  ;;  %v454_v24 = vshll.u32 %v273_v5, 16  ;;  %v5793_v3 = vld [vmem:[%s7766_s1 + $0xf0] sm:$0xff]  ;;  %v5802_v11 = vld [vmem:[%s7766_s1 + $0x138] sm:$0xff] }
  0x24   : > { %v756_v26 = vunpack.c.l.b16 %v641_v21  ;;  %v337_v27 = vor.u32 %v336_v17, %v333_v8  ;;  %v352_v28 = vrot.slane %v350_v18, 5  ;;  %v453_v29 = vrot.slane %v451_v20, 4  ;;  %v290_v8 = vld [vmem:[%s6134_s28 + $0xa0] sm:$0xf]  ;;  %v265_v17 = vld [vmem:[%s6134_s28 + $0xc] sm:$0xf] }
  0x25   : > { %5964 = vmatpush.bf16.msra.mxu1 %v5756_v10  ;;  %5965 = vmatpush.bf16.msra.mxu2 %v5756_v10  ;;  %v347_v32 = vor.u32 %v346_v23, %v342_v22  ;;  %v456_v33 = vrot.slane %v454_v24, 5  ;;  %v460_v34 = vshll.u32 %v274_v15, 16  ;;  %v464_v35 = vshrl.u32 %v274_v15, 16  ;;  %v324_v15 = vld [vmem:[%s6134_s28 + $0xa4] sm:$0x1]  ;;  %v5753_v18 = vld [vmem:[%s7766_s1 + $0x30] sm:$0xff] }
  0x26   : > { %5966 = vmatpush.bf16.msra.mxu3 %v5756_v10  ;;  %849 = vmatpush.bf16.msra.mxu0 %v5756_v10  ;;  %v775_v36 = vpack.c.b16 %v756_v26, %v6191_v12  ;;  %v338_v38 = vrot.slane %v337_v27, 4  ;;  %v470_v39 = vshll.u32 %v316_v19, 16  ;;  %v547_v41 = vshrl.u32 %v281_v25, 16  ;;  %v5768_v23 = vld [vmem:[%s7766_s1 + $0xa8] sm:$0xff]  ;;  %v6253_v27 = vld [vmem:[%s6134_s28 + $0x10] sm:$0xf] }
  0x27   : > { %v348_v42 = vrot.slane %v347_v32, 4  ;;  %v457_v44 = vor.u32 %v456_v33, %v453_v29  ;;  %v462_v45 = vrot.slane %v460_v34, 5  ;;  %v466_v46 = vrot.slane %v464_v35, 4  ;;  %v5792_v29 = vld [vmem:[%s7766_s1 + $0xe8] sm:$0xff]  ;;  %v6263_v35 = vld [vmem:[%s6134_s28 + $0x14] sm:$0x1] }
  0x28   : > { %v343_v48 = vsel %vm6149_vm2, %v338_v38, %v342_v22  ;;  %v472_v49 = vrot.slane %v470_v39, 5  ;;  %v549_v52 = vrot.slane %v547_v41, 4  ;;  %v550_v53 = vshll.u32 %v281_v25, 16  ;;  %v5752_v41 = vld [vmem:[%s7766_s1 + $0x28] sm:$0xff] }
  0x29   : > { %5967 = vmatpush.bf16.msra.mxu1 %v5755_v31  ;;  %5968 = vmatpush.bf16.msra.mxu2 %v5755_v31  ;;  %v353_v55 = vsel %vm6149_vm2, %v348_v42, %v352_v28  ;;  %v731_v56 = vunpack.c.l.b16 %v343_v48  ;;  %v458_v58 = vrot.slane %v457_v44, 4  ;;  %v467_v60 = vor.u32 %v466_v46, %v462_v45  ;;  %v275_v46 = vld [vmem:[%s6134_s28 + $0x48] sm:$0xf] }
  0x2a   : > { %5969 = vmatpush.bf16.msra.mxu3 %v5755_v31  ;;  %850 = vmatpush.bf16.msra.mxu0 %v5755_v31  ;;  %v732_v61 = vunpack.c.l.b16 %v353_v55  ;;  %v552_v0 = vrot.slane %v550_v53, 5  ;;  %v556_v1 = vshll.u32 %v282_v40, 16  ;;  %v560_v2 = vshrl.u32 %v282_v40, 16  ;;  %v5767_v53 = vld [vmem:[%s7766_s1 + $0xa0] sm:$0xff] }
  0x2b   : > { %v463_v5 = vsel %vm6149_vm2, %v458_v58, %v462_v45  ;;  %v468_v6 = vrot.slane %v467_v60, 4  ;;  %v566_v7 = vshll.u32 %v320_v47, 16  ;;  %v643_v9 = vshrl.u32 %v289_v54, 16  ;;  %v5800_v60 = vld [vmem:[%s7766_s1 + $0x128] sm:$0xff] }
  0x2c   : > { %871 = vmatmul.bf16.vlgmr.msra.gmra.mxu1 %v767_v59  ;;  %891 = vmatmul.bf16.vlgmr.msra.gmra.mxu2 %v771_v16  ;;  %v763_v10 = vpack.c.b16 %v732_v61, %v731_v56  ;;  %v6238_v12 = vunpack.c.l.b16 %v463_v5  ;;  %v553_v13 = vor.u32 %v552_v0, %v549_v52  ;;  %v558_v14 = vrot.slane %v556_v1, 5  ;;  %v5751_v61 = vld [vmem:[%s7766_s1 + $0x20] sm:$0xff] }
  0x2d   : > { %1457 = vmatpush.bf16.msrb.mxu2 %v5770_v37  ;;  %911 = vmatmul.bf16.vlgmr.msra.gmra.mxu3 %v775_v36  ;;  %v473_v50 = vsel %vm6149_vm2, %v468_v6, %v472_v49  ;;  %v562_v51 = vrot.slane %v560_v2, 4  ;;  %v568_v59 = vrot.slane %v566_v7, 5  ;;  %v645_v16 = vrot.slane %v643_v9, 4  ;;  %v5801_v36 = vld [vmem:[%s7766_s1 + $0x130] sm:$0xff]  ;;  %v6292_v2 = vld [vmem:[%s6134_s28 + $0x4c] sm:$0xf] }
  0x2e   : > { %1772 = vmatpush.bf16.msrb.mxu3 %v5794_v43  ;;  %1076 = vmatpush.bf16.msrb.mxu1 %v5754_v57  ;;  %v6247_v19 = vunpack.c.l.b16 %v473_v50  ;;  %v554_v20 = vrot.slane %v553_v13, 4  ;;  %v646_v21 = vshll.u32 %v289_v54, 16  ;;  %v652_v22 = vshll.u32 %v290_v8, 16  ;;  %v5791_v54 = vld [vmem:[%s7766_s1 + $0xe0] sm:$0xff] }
  0x2f   : > { %851 = vmatmul.bf16.vlgmr.msra.gmra.mxu0 %v763_v10  ;;  %v563_v24 = vor.u32 %v562_v51, %v558_v14  ;;  %v656_v25 = vshrl.u32 %v290_v8, 16  ;;  %v662_v26 = vshll.u32 %v324_v15, 16  ;;  %v355_v28 = vshrl.u32 %v265_v17, 16  ;;  %v317_v8 = vld [vmem:[%s6134_s28 + $0x50] sm:$0x1] }
  0x30   : > { %2486 = vmatpush.bf16.msrb.mxu0 %v5802_v11  ;;  %v768_v31 = vpack.c.b16 %v6247_v19, %v6238_v12  ;;  %v559_v32 = vsel %vm6149_vm2, %v554_v20, %v558_v14  ;;  %v648_v33 = vrot.slane %v646_v21, 5  ;;  %v654_v34 = vrot.slane %v652_v22, 5  ;;  %v283_v10 = vld [vmem:[%s6134_s28 + $0x78] sm:$0xf] }
  0x31   : > { %1458 = vmatpush.bf16.msrb.mxu2 %v5769_v63  ;;  %v564_v37 = vrot.slane %v563_v24, 4  ;;  %v6268_v38 = vunpack.c.l.b16 %v559_v32  ;;  %v658_v39 = vrot.slane %v656_v25, 4  ;;  %v664_v40 = vrot.slane %v662_v26, 5  ;;  %v5799_v24 = vld [vmem:[%s7766_s1 + $0x120] sm:$0xff]  ;;  %v284_v32 = vld [vmem:[%s6134_s28 + $0x7c] sm:$0xf] }
  0x32   : > { %1773 = vmatpush.bf16.msrb.mxu3 %v5793_v3  ;;  %1077 = vmatpush.bf16.msrb.mxu1 %v5753_v18  ;;  %v649_v42 = vor.u32 %v648_v33, %v645_v16  ;;  %v357_v43 = vrot.slane %v355_v28, 4  ;;  %v358_v44 = vshll.u32 %v265_v17, 16  ;;  %v364_v45 = vshll.u32 %v6253_v27, 16  ;;  %v5766_v17 = vld [vmem:[%s7766_s1 + $0x98] sm:$0xff]  ;;  %v321_v33 = vld [vmem:[%s6134_s28 + $0x80] sm:$0x1] }
  0x33   : > { %v569_v47 = vsel %vm6149_vm2, %v564_v37, %v568_v59  ;;  %v659_v48 = vor.u32 %v658_v39, %v654_v34  ;;  %v368_v49 = vshrl.u32 %v6253_v27, 16  ;;  %v374_v52 = vshll.u32 %v6263_v35, 16  ;;  %v5790_v18 = vld [vmem:[%s7766_s1 + $0xd8] sm:$0xff] }
  0x34   : > { %v750_v55 = vunpack.c.l.b16 %v569_v47  ;;  %v650_v56 = vrot.slane %v649_v42, 4  ;;  %v360_v57 = vrot.slane %v358_v44, 5  ;;  %v366_v58 = vrot.slane %v364_v45, 5  ;;  %2487 = vmatpush.bf16.msrb.mxu0 %v5801_v36  ;;  %v5789_v42 = vld [vmem:[%s7766_s1 + $0xd0] sm:$0xff] }
  0x35   : > { %1459 = vmatpush.bf16.msrb.mxu2 %v5768_v23  ;;  %v660_v63 = vrot.slane %v659_v48, 4  ;;  %v370_v0 = vrot.slane %v368_v49, 4  ;;  %v376_v1 = vrot.slane %v374_v52, 5  ;;  %v475_v3 = vshrl.u32 %v275_v46, 16 }
  0x36   : > { %1774 = vmatpush.bf16.msrb.mxu3 %v5792_v29  ;;  %1078 = vmatpush.bf16.msrb.mxu1 %v5752_v41  ;;  %v772_v5 = vpack.c.b16 %v750_v55, %v6268_v38  ;;  %v655_v6 = vsel %vm6149_vm2, %v650_v56, %v654_v34  ;;  %v361_v7 = vor.u32 %v360_v57, %v357_v43  ;;  %v478_v9 = vshll.u32 %v275_v46, 16  ;;  %v5750_v34 = vld [vmem:[%s7766_s1 + $0x18] sm:$0xff]  ;;  %v5765_v41 = vld [vmem:[%s7766_s1 + $0x90] sm:$0xff] }
  0x37   : > { %v665_v11 = vsel %vm6149_vm2, %v660_v63, %v664_v40  ;;  %v757_v13 = vunpack.c.l.b16 %v655_v6  ;;  %v371_v14 = vor.u32 %v370_v0, %v366_v58  ;;  %v477_v15 = vrot.slane %v475_v3, 4  ;;  %v291_v40 = vld [vmem:[%s6134_s28 + $0xa8] sm:$0xf]  ;;  %v5749_v56 = vld [vmem:[%s7766_s1 + $0x10] sm:$0xff]  ;;  %v267_v6 = vld [vmem:[%s6134_s28 + $0x18] sm:$0xf] }
  0x38   : > { %v758_v50 = vunpack.c.l.b16 %v665_v11  ;;  %v362_v51 = vrot.slane %v361_v7, 4  ;;  %2488 = vmatpush.bf16.msrb.mxu0 %v5800_v60  ;;  %v480_v59 = vrot.slane %v478_v9, 5  ;;  %v484_v16 = vshll.u32 %v6292_v2, 16  ;;  %v325_v63 = vld [vmem:[%s6134_s28 + $0xb0] sm:$0x1] }
  0x39   : > { %1460 = vmatpush.bf16.msrb.mxu2 %v5767_v53  ;;  %v372_v20 = vrot.slane %v371_v14, 4  ;;  %v488_v21 = vshrl.u32 %v6292_v2, 16  ;;  %v494_v22 = vshll.u32 %v317_v8, 16  ;;  %v571_v23 = vshrl.u32 %v283_v10, 16  ;;  %v5798_v53 = vld [vmem:[%s7766_s1 + $0x118] sm:$0xff] }
  0x3a   : > { %1775 = vmatpush.bf16.msrb.mxu3 %v5791_v54  ;;  %1079 = vmatpush.bf16.msrb.mxu1 %v5751_v61  ;;  %v776_v25 = vpack.c.b16 %v758_v50, %v757_v13  ;;  %v367_v26 = vsel %vm6149_vm2, %v362_v51, %v366_v58  ;;  %v481_v28 = vor.u32 %v480_v59, %v477_v15  ;;  %v486_v29 = vrot.slane %v484_v16, 5  ;;  %v6350_v59 = vld [vmem:[%s6134_s28 + $0x1c] sm:$0xf] }
  0x3b   : > { %v377_v36 = vsel %vm6149_vm2, %v372_v20, %v376_v1  ;;  %v733_v37 = vunpack.c.l.b16 %v367_v26  ;;  %v490_v38 = vrot.slane %v488_v21, 4  ;;  %v496_v39 = vrot.slane %v494_v22, 5 }
  0x3c   : > { %876 = vmatmul.bf16.gmra.mxu1 %v768_v31  ;;  %896 = vmatmul.bf16.gmra.mxu2 %v772_v5  ;;  %v734_v43 = vunpack.c.l.b16 %v377_v36  ;;  %v482_v44 = vrot.slane %v481_v28, 4  ;;  %v573_v45 = vrot.slane %v571_v23, 4  ;;  %v574_v46 = vshll.u32 %v283_v10, 16  ;;  %v292_v31 = vld [vmem:[%s6134_s28 + $0xac] sm:$0xf] }
  0x3d   : > { %1461 = vmatpush.bf16.msrb.mxu2 %v5766_v17  ;;  %916 = vmatmul.bf16.gmra.mxu3 %v776_v25  ;;  %v491_v47 = vor.u32 %v490_v38, %v486_v29  ;;  %v580_v48 = vshll.u32 %v284_v32, 16  ;;  %v584_v49 = vshrl.u32 %v284_v32, 16  ;;  %v590_v52 = vshll.u32 %v321_v33, 16  ;;  %v5764_v17 = vld [vmem:[%s7766_s1 + $0x88] sm:$0xff]  ;;  %v277_v25 = vld [vmem:[%s6134_s28 + $0x54] sm:$0xf] }
  0x3e   : > { %1776 = vmatpush.bf16.msrb.mxu3 %v5790_v18  ;;  %2489 = vmatpush.bf16.msrb.mxu0 %v5799_v24  ;;  %v764_v54 = vpack.c.b16 %v734_v43, %v733_v37  ;;  %v487_v12 = vsel %vm6149_vm2, %v482_v44, %v486_v29  ;;  %v576_v19 = vrot.slane %v574_v46, 5  ;;  %v667_v55 = vshrl.u32 %v291_v40, 16  ;;  %v6356_v24 = vld [vmem:[%s6134_s28 + $0x20] sm:$0x1]  ;;  %v5788_v38 = vld [vmem:[%s7766_s1 + $0xc8] sm:$0xff] }
  0x3f   : > { %1080 = vmatpush.bf16.msrb.mxu1 %v5750_v34  ;;  %v492_v57 = vrot.slane %v491_v47, 4  ;;  %v6340_v58 = vunpack.c.l.b16 %v487_v12  ;;  %v582_v60 = vrot.slane %v580_v48, 5  ;;  %v586_v61 = vrot.slane %v584_v49, 4 }
  0x40   : > { %856 = vmatmul.bf16.gmra.mxu0 %v764_v54  ;;  %v577_v0 = vor.u32 %v576_v19, %v573_v45  ;;  %v592_v1 = vrot.slane %v590_v52, 5  ;;  %v669_v3 = vrot.slane %v667_v55, 4  ;;  %v670_v5 = vshll.u32 %v291_v40, 16  ;;  %v5748_v40 = vld [vmem:[%s7766_s1 + $0x8] sm:$0xff]  ;;  %v5763_v45 = vld [vmem:[%s7766_s1 + $0x80] sm:$0xff] }
  0x41   : > { %1462 = vmatpush.bf16.msrb.mxu2 %v5765_v41  ;;  %v497_v7 = vsel %vm6149_vm2, %v492_v57, %v496_v39  ;;  %v587_v8 = vor.u32 %v586_v61, %v582_v60  ;;  %v676_v9 = vshll.u32 %v292_v31, 16  ;;  %v680_v10 = vshrl.u32 %v292_v31, 16  ;;  %v5797_v39 = vld [vmem:[%s7766_s1 + $0x110] sm:$0xff]  ;;  %v6379_v52 = vld [vmem:[%s6134_s28 + $0x58] sm:$0xf]  ;;  %v5796_v57 = vld [vmem:[%s7766_s1 + $0x108] sm:$0xff] }
  0x42   : > { %1777 = vmatpush.bf16.msrb.mxu3 %v5789_v42  ;;  %2490 = vmatpush.bf16.msrb.mxu0 %v5798_v53  ;;  %v744_v11 = vunpack.c.l.b16 %v497_v7  ;;  %v578_v13 = vrot.slane %v577_v0, 4  ;;  %v672_v14 = vrot.slane %v670_v5, 5  ;;  %v686_v15 = vshll.u32 %v325_v63, 16  ;;  %v6382_v53 = vld [vmem:[%s6134_s28 + $0x5c] sm:$0x1]  ;;  %v5747_v0 = vld [vmem:[%s7766_s1] sm:$0xff] }
  0x43   : > { %1081 = vmatpush.bf16.msrb.mxu1 %v5749_v56  ;;  %v588_v18 = vrot.slane %v587_v8, 4  ;;  %v678_v50 = vrot.slane %v676_v9, 5  ;;  %v682_v51 = vrot.slane %v680_v10, 4  ;;  %v379_v16 = vshrl.u32 %v267_v6, 16  ;;  %v285_v55 = vld [vmem:[%s6134_s28 + $0x84] sm:$0xf] }
  0x44   : > { %v769_v20 = vpack.c.b16 %v744_v11, %v6340_v58  ;;  %v583_v21 = vsel %vm6149_vm2, %v578_v13, %v582_v60  ;;  %v673_v22 = vor.u32 %v672_v14, %v669_v3  ;;  %v688_v23 = vrot.slane %v686_v15, 5  ;;  %v5787_v56 = vld [vmem:[%s7766_s1 + $0xc0] sm:$0xff]  ;;  %v286_v10 = vld [vmem:[%s6134_s28 + $0x88] sm:$0xf] }
  0x45   : > { %1463 = vmatpush.bf16.msrb.mxu2 %v5764_v17  ;;  %v593_v26 = vsel %vm6149_vm2, %v588_v18, %v592_v1  ;;  %v751_v28 = vunpack.c.l.b16 %v583_v21  ;;  %v683_v29 = vor.u32 %v682_v51, %v678_v50  ;;  %v381_v32 = vrot.slane %v379_v16, 4  ;;  %v5795_v18 = vld [vmem:[%s7766_s1 + $0x100] sm:$0xff]  ;;  %v322_v16 = vld [vmem:[%s6134_s28 + $0x8c] sm:$0x1] }
  0x46   : > { %v752_v33 = vunpack.c.l.b16 %v593_v26  ;;  %v674_v34 = vrot.slane %v673_v22, 4  ;;  %v382_v36 = vshll.u32 %v267_v6, 16  ;;  %v388_v37 = vshll.u32 %v6350_v59, 16  ;;  %1778 = vmatpush.bf16.msrb.mxu3 %v5788_v38  ;;  %2491 = vmatpush.bf16.msrb.mxu0 %v5797_v39  ;;  %v293_v22 = vld [vmem:[%s6134_s28 + $0xb4] sm:$0xf] }
  0x47   : > { %v684_v41 = vrot.slane %v683_v29, 4  ;;  %v392_v42 = vshrl.u32 %v6350_v59, 16  ;;  %v398_v43 = vshll.u32 %v6356_v24, 16  ;;  %v499_v44 = vshrl.u32 %v277_v25, 16  ;;  %1082 = vmatpush.bf16.msrb.mxu1 %v5748_v40  ;;  %v294_v39 = vld [vmem:[%s6134_s28 + $0xb8] sm:$0xf] }
  0x48   : > { %v773_v46 = vpack.c.b16 %v752_v33, %v751_v28  ;;  %v679_v47 = vsel %vm6149_vm2, %v674_v34, %v678_v50  ;;  %v384_v48 = vrot.slane %v382_v36, 5  ;;  %v390_v49 = vrot.slane %v388_v37, 5 }
  0x49   : > { %v689_v54 = vsel %vm6149_vm2, %v684_v41, %v688_v23  ;;  %v759_v12 = vunpack.c.l.b16 %v679_v47  ;;  %v394_v19 = vrot.slane %v392_v42, 4  ;;  %v400_v31 = vrot.slane %v398_v43, 5  ;;  %1464 = vmatpush.bf16.msrb.mxu2 %v5763_v45  ;;  %v326_v45 = vld [vmem:[%s6134_s28 + $0xbc] sm:$0x1] }
  0x4a   : > { %v760_v58 = vunpack.c.l.b16 %v689_v54  ;;  %v385_v60 = vor.u32 %v384_v48, %v381_v32  ;;  %v501_v61 = vrot.slane %v499_v44, 4  ;;  %v502_v63 = vshll.u32 %v277_v25, 16  ;;  %1779 = vmatpush.bf16.msrb.mxu3 %v5787_v56  ;;  %2492 = vmatpush.bf16.msrb.mxu0 %v5796_v57  ;;  %v5834_v47 = vld [vmem:[%s7766_s1 + $0x1b8] sm:$0xff] }
  0x4b   : > { %v395_v1 = vor.u32 %v394_v19, %v390_v49  ;;  %v508_v3 = vshll.u32 %v6379_v52, 16  ;;  %v512_v5 = vshrl.u32 %v6379_v52, 16  ;;  %v518_v6 = vshll.u32 %v6382_v53, 16  ;;  %1083 = vmatpush.bf16.msrb.mxu1 %v5747_v0 }
  0x4c   : > { %881 = vmatmul.bf16.gmra.mxu1 %v769_v20  ;;  %901 = vmatmul.bf16.gmra.mxu2 %v773_v46  ;;  %v777_v7 = vpack.c.b16 %v760_v58, %v759_v12  ;;  %v386_v8 = vrot.slane %v385_v60, 4  ;;  %v504_v9 = vrot.slane %v502_v63, 5  ;;  %v595_v11 = vshrl.u32 %v285_v55, 16  ;;  %v269_v46 = vld [vmem:[%s6134_s28 + $0x24] sm:$0xf] }
  0x4d   : > { %v396_v13 = vrot.slane %v395_v1, 4  ;;  %v510_v14 = vrot.slane %v508_v3, 5  ;;  %v514_v15 = vrot.slane %v512_v5, 4  ;;  %v520_v17 = vrot.slane %v518_v6, 5  ;;  %3227 = vmatpush.bf16.msra.mxu2 %v5834_v47  ;;  %v5842_v6 = vld [vmem:[%s7766_s1 + $0x1f8] sm:$0xff] }
  0x4e   : > { %921 = vmatmul.bf16.gmra.mxu3 %v777_v7  ;;  %v391_v50 = vsel %vm6149_vm2, %v386_v8, %v390_v49  ;;  %v505_v51 = vor.u32 %v504_v9, %v501_v61  ;;  %v597_v20 = vrot.slane %v595_v11, 4  ;;  %v598_v21 = vshll.u32 %v285_v55, 16  ;;  %2493 = vmatpush.bf16.msrb.mxu0 %v5795_v18  ;;  %v6420_v61 = vld [vmem:[%s6134_s28 + $0x28] sm:$0xf]  ;;  %v5810_v7 = vld [vmem:[%s7766_s1 + $0x178] sm:$0xff] }
  0x4f   : > { %v401_v23 = vsel %vm6149_vm2, %v396_v13, %v400_v31  ;;  %v735_v25 = vunpack.c.l.b16 %v391_v50  ;;  %v515_v26 = vor.u32 %v514_v15, %v510_v14  ;;  %v604_v28 = vshll.u32 %v286_v10, 16  ;;  %v5850_v8 = vld [vmem:[%s7766_s1 + $0x238] sm:$0xff]  ;;  %3909 = vmatpush.bf16.msra.mxu3 %v5842_v6  ;;  %2912 = vmatpush.bf16.msra.mxu1 %v5810_v7 }
  0x50   : > { %v736_v29 = vunpack.c.l.b16 %v401_v23  ;;  %v506_v32 = vrot.slane %v505_v51, 4  ;;  %v600_v33 = vrot.slane %v598_v21, 5  ;;  %v608_v34 = vshrl.u32 %v286_v10, 16 }
  0x51   : > { %v516_v36 = vrot.slane %v515_v26, 4  ;;  %v606_v37 = vrot.slane %v604_v28, 5  ;;  %v614_v38 = vshll.u32 %v322_v16, 16  ;;  %v691_v40 = vshrl.u32 %v293_v22, 16  ;;  %v1165_v26 = vld [vmem:[%s6134_s28] sm:$0xe] }
  0x52   : > { %v765_v41 = vpack.c.b16 %v736_v29, %v735_v25  ;;  %v511_v42 = vsel %vm6149_vm2, %v506_v32, %v510_v14  ;;  %v601_v43 = vor.u32 %v600_v33, %v597_v20  ;;  %v610_v44 = vrot.slane %v608_v34, 4  ;;  %v6434_v14 = vld [vmem:[%s6134_s28 + $0x2c] sm:$0x1]  ;;  %4335 = vmatpush.bf16.msra.mxu0 %v5850_v8 }
  0x53   : > { %v521_v48 = vsel %vm6149_vm2, %v516_v36, %v520_v17  ;;  %v745_v49 = vunpack.c.l.b16 %v511_v42  ;;  %v616_v54 = vrot.slane %v614_v38, 5  ;;  %v693_v12 = vrot.slane %v691_v40, 4  ;;  %v5232_v38 = vld [vmem:[%s6134_s28 + $0xc] sm:$0xf] }
  0x54   : > { %861 = vmatmul.bf16.gmra.mxu0 %v765_v41  ;;  %v746_v19 = vunpack.c.l.b16 %v521_v48  ;;  %v602_v31 = vrot.slane %v601_v43, 4  ;;  %v611_v55 = vor.u32 %v610_v44, %v606_v37  ;;  %v694_v56 = vshll.u32 %v293_v22, 16 }
  0x55   : > { %v700_v57 = vshll.u32 %v294_v39, 16  ;;  %v704_v58 = vshrl.u32 %v294_v39, 16  ;;  %v710_v60 = vshll.u32 %v326_v45, 16  ;;  %v403_v63 = vshrl.u32 %v269_v46, 16  ;;  %v5233_v39 = vld [vmem:[%s6134_s28 + $0x10] sm:$0xf] }
  0x56   : > { %v770_v0 = vpack.c.b16 %v746_v19, %v745_v49  ;;  %v607_v1 = vsel %vm6149_vm2, %v602_v31, %v606_v37  ;;  %v612_v3 = vrot.slane %v611_v55, 4  ;;  %v696_v5 = vrot.slane %v694_v56, 5 }
  0x57   : > { %v753_v9 = vunpack.c.l.b16 %v607_v1  ;;  %v702_v10 = vrot.slane %v700_v57, 5  ;;  %v706_v11 = vrot.slane %v704_v58, 4  ;;  %v712_v13 = vrot.slane %v710_v60, 5  ;;  %v5234_v58 = vld [vmem:[%s6134_s28 + $0x14] sm:$0x1] }
  0x58   : > { %v617_v15 = vsel %vm6149_vm2, %v612_v3, %v616_v54  ;;  %v697_v17 = vor.u32 %v696_v5, %v693_v12  ;;  %v405_v18 = vrot.slane %v403_v63, 4  ;;  %v406_v50 = vshll.u32 %v269_v46, 16 }
  0x59   : > { %v754_v51 = vunpack.c.l.b16 %v617_v15  ;;  %v707_v16 = vor.u32 %v706_v11, %v702_v10  ;;  %v412_v20 = vshll.u32 %v6420_v61, 16  ;;  %v416_v21 = vshrl.u32 %v6420_v61, 16 }
  0x5a   : > { %v698_v22 = vrot.slane %v697_v17, 4  ;;  %v408_v23 = vrot.slane %v406_v50, 5  ;;  %v422_v25 = vshll.u32 %v6434_v14, 16  ;;  %v5024_v44 = vrot.slane %v1165_v26, 9  ;;  %v5235_v50 = vld [vmem:[%s6134_s28 + $0x18] sm:$0xf] }
  0x5b   : > { %v774_v28 = vpack.c.b16 %v754_v51, %v753_v9  ;;  %v708_v29 = vrot.slane %v707_v16, 4  ;;  %v414_v32 = vrot.slane %v412_v20, 5  ;;  %v418_v33 = vrot.slane %v416_v21, 4  ;;  %v5731_v51 = vld [vmem:[%s6134_s28] sm:$0xff]  ;;  %v5236_v16 = vld [vmem:[%s6134_s28 + $0x1c] sm:$0xf] }
  0x5c   : > { %886 = vmatmul.bf16.gmra.mxu1 %v770_v0  ;;  %v703_v34 = vsel %vm6149_vm2, %v698_v22, %v702_v10  ;;  %v409_v36 = vor.u32 %v408_v23, %v405_v18  ;;  %v424_v37 = vrot.slane %v422_v25, 5  ;;  %v1218_v47 = vrot.slane %v6174_v62, 5  ;;  %v1166_v21 = vld [vmem:[%s6134_s28 + $0xc] sm:$0xe] }
  0x5d   : > { %906 = vmatmul.bf16.gmra.mxu2 %v774_v28  ;;  %v713_v40 = vsel %vm6149_vm2, %v708_v29, %v712_v13  ;;  %v761_v41 = vunpack.c.l.b16 %v703_v34  ;;  %v419_v42 = vor.u32 %v418_v33, %v414_v32  ;;  %v1221_v48 = vrot.slane %v6181_v4, 5  ;;  %v5771_v34 = vld [vmem:[%s6134_s28 + $0xc] sm:$0xff] }
  0x5e   : > { %v762_v45 = vunpack.c.l.b16 %v713_v40  ;;  %v410_v46 = vrot.slane %v409_v36, 4  ;;  %v1942_v54 = vshrl.u32 %v5232_v38, 16  ;;  %v1945_v12 = vshll.u32 %v5232_v38, 16 }
  0x5f   : > { %v420_v49 = vrot.slane %v419_v42, 4  ;;  %v1951_v19 = vshll.u32 %v5233_v39, 16  ;;  %v1219_v56 = vsel %vm6449_vm5, %v5024_v44, %v1218_v47  ;;  %v1220_v57 = vrot.slane %v1218_v47, 4  ;;  %v5237_v44 = vld [vmem:[%s6134_s28 + $0x20] sm:$0x1] }
  0x60   : > { %v778_v31 = vpack.c.b16 %v762_v45, %v761_v41  ;;  %v415_v55 = vsel %vm6149_vm2, %v410_v46, %v414_v32  ;;  %v1345_v62 = vunpack.c.l.b16 %v1219_v56  ;;  %v1944_v0 = vrot.slane %v1942_v54, 4  ;;  %v5809_v56 = vld [vmem:[%s7766_s1 + $0x170] sm:$0xff] }
  0x61   : > { %v425_v60 = vsel %vm6149_vm2, %v420_v49, %v424_v37  ;;  %v737_v63 = vunpack.c.l.b16 %v415_v55  ;;  %v1222_v1 = vsel %vm6449_vm5, %v1220_v57, %v1221_v48  ;;  %v1947_v3 = vrot.slane %v1945_v12, 5  ;;  %v5833_v48 = vld [vmem:[%s7766_s1 + $0x1b0] sm:$0xff]  ;;  %2913 = vmatpush.bf16.msra.mxu1 %v5809_v56  ;;  %v5773_v56 = vld [vmem:[%s6134_s28 + $0x24] sm:$0xff] }
  0x62   : > { %926 = vmatmul.bf16.gmra.mxu3 %v778_v31  ;;  %v738_v4 = vunpack.c.l.b16 %v425_v60  ;;  %v1346_v5 = vunpack.c.l.b16 %v1222_v1  ;;  %v1953_v6 = vrot.slane %v1951_v19, 5  ;;  %v1955_v7 = vshrl.u32 %v5233_v39, 16  ;;  %3228 = vmatpush.bf16.msra.mxu2 %v5833_v48  ;;  %v5238_v31 = vld [vmem:[%s6134_s28 + $0x24] sm:$0xf]  ;;  %v5841_v55 = vld [vmem:[%s7766_s1 + $0x1f0] sm:$0xff] }
  0x63   : > { %v1961_v8 = vshll.u32 %v5234_v58, 16  ;;  %v1948_v10 = vor.u32 %v1947_v3, %v1944_v0  ;;  %v1225_v22 = vrot.slane %v6253_v27, 5  ;;  %v1966_v23 = vshrl.u32 %v5235_v50, 16  ;;  %v5849_v57 = vld [vmem:[%s7766_s1 + $0x230] sm:$0xff]  ;;  %3910 = vmatpush.bf16.msra.mxu3 %v5841_v55  ;;  %v1167_v1 = vld [vmem:[%s6134_s28 + $0x18] sm:$0xe] }
  0x64   : > { %v766_v9 = vpack.c.b16 %v738_v4, %v737_v63  ;;  %v1377_v11 = vpack.c.b16 %v1346_v5, %v1345_v62  ;;  %v1957_v13 = vrot.slane %v1955_v7, 4  ;;  %v1969_v25 = vshll.u32 %v5235_v50, 16  ;;  %v5239_v62 = vld [vmem:[%s6134_s28 + $0x28] sm:$0xf]  ;;  %v5732_v0 = vld [vmem:[%s6134_s28 + $0xc] sm:$0xff]  ;;  %4336 = vmatpush.bf16.msra.mxu0 %v5849_v57 }
  0x65   : > { %v1949_v15 = vrot.slane %v1948_v10, 4  ;;  %v1963_v18 = vrot.slane %v1961_v8, 5  ;;  %v1975_v29 = vshll.u32 %v5236_v16, 16  ;;  %v1979_v32 = vshrl.u32 %v5236_v16, 16 }
  0x66   : > { %866 = vmatmul.bf16.gmra.mxu0 %v766_v9  ;;  %v1958_v17 = vor.u32 %v1957_v13, %v1953_v6  ;;  %v5025_v33 = vrot.slane %v1166_v21, 9  ;;  %v1227_v37 = vrot.slane %v1225_v22, 4  ;;  %v1228_v38 = vrot.slane %v6263_v35, 5  ;;  %v5240_v21 = vld [vmem:[%s6134_s28 + $0x2c] sm:$0x1] }
  0x67   : > { %v6471_v26 = vsel %vm6149_vm2, %v1949_v15, %v1953_v6  ;;  %v1968_v39 = vrot.slane %v1966_v23, 4  ;;  %v1971_v40 = vrot.slane %v1969_v25, 5  ;;  %v1977_v41 = vrot.slane %v1975_v29, 5 }
  0x68   : > { %v1959_v20 = vrot.slane %v1958_v17, 4  ;;  %v2374_v36 = vunpack.c.l.b16 %v6471_v26  ;;  %v1981_v42 = vrot.slane %v1979_v32, 4  ;;  %v1226_v46 = vsel %vm6449_vm5, %v5025_v33, %v1225_v22 }
  0x69   : > { %v1229_v47 = vsel %vm6449_vm5, %v1227_v37, %v1228_v38  ;;  %v1972_v35 = vor.u32 %v1971_v40, %v1968_v39  ;;  %v1985_v54 = vshll.u32 %v5237_v44, 16  ;;  %v1347_v12 = vunpack.c.l.b16 %v1226_v46  ;;  %v5241_v38 = vld [vmem:[%s6134_s28 + $0x30] sm:$0xf]  ;;  %v5242_v39 = vld [vmem:[%s6134_s28 + $0x34] sm:$0xf]  ;;  %v5733_v40 = vld [vmem:[%s6134_s28 + $0x18] sm:$0xff] }
  0x6a   : > { %v6475_v28 = vsel %vm6149_vm2, %v1959_v20, %v1963_v18  ;;  %v1982_v49 = vor.u32 %v1981_v42, %v1977_v41  ;;  %v1348_v19 = vunpack.c.l.b16 %v1229_v47  ;;  %v1232_v3 = vrot.slane %v6350_v59, 5  ;;  %v5772_v18 = vld [vmem:[%s6134_s28 + $0x18] sm:$0xff] }
  0x6b   : > { %7806 = vst [vmem:[#allocation2_spill] sm:$0xff] %v6475_v28  ;;  %v2375_v27 = vunpack.c.l.b16 %v6475_v28  ;;  %v1973_v58 = vrot.slane %v1972_v35, 4  ;;  %v1987_v63 = vrot.slane %v1985_v54, 5  ;;  %v1990_v5 = vshrl.u32 %v5238_v31, 16 }
  0x6c   : > { %1084 = vmatmul.bf16.vlgmr.msrb.gmra.mxu1 %v5731_v51  ;;  %v1983_v60 = vrot.slane %v1982_v49, 4  ;;  %v1378_v4 = vpack.c.b16 %v1348_v19, %v1347_v12  ;;  %v1993_v6 = vshll.u32 %v5238_v31, 16  ;;  %v1999_v7 = vshll.u32 %v5239_v62, 16  ;;  %v1168_v49 = vld [vmem:[%s6134_s28 + $0x24] sm:$0xe] }
  0x6d   : > { %1465 = vmatmul.bf16.vlgmr.msrb.gmra.mxu2 %v1377_v11  ;;  %v2406_v45 = vpack.c.b16 %v2375_v27, %v2374_v36  ;;  %v2003_v8 = vshrl.u32 %v5239_v62, 16  ;;  %v6505_v9 = vsel %vm6149_vm2, %v1973_v58, %v1977_v41  ;;  %v5026_v11 = vrot.slane %v1167_v1, 9 }
  0x6e   : > { %7807 = vst [vmem:[#allocation3_spill] sm:$0xff] %v6505_v9  ;;  %v6509_v10 = vsel %vm6149_vm2, %v1983_v60, %v1987_v63  ;;  %v1234_v13 = vrot.slane %v1232_v3, 4  ;;  %v1235_v59 = vrot.slane %v6356_v24, 5  ;;  %v1992_v15 = vrot.slane %v1990_v5, 4  ;;  %v5243_v63 = vld [vmem:[%s6134_s28 + $0x38] sm:$0x1] }
  0x6f   : > { %7808 = vst [vmem:[#allocation4_spill] sm:$0xff] %v6509_v10  ;;  %v1995_v17 = vrot.slane %v1993_v6, 5  ;;  %v2376_v50 = vunpack.c.l.b16 %v6505_v9  ;;  %v2377_v51 = vunpack.c.l.b16 %v6509_v10  ;;  %v2001_v16 = vrot.slane %v1999_v7, 5  ;;  %v5832_v5 = vld [vmem:[%s7766_s1 + $0x1a8] sm:$0xff] }
  0x70   : > { %v2005_v20 = vrot.slane %v2003_v8, 4  ;;  %v1233_v22 = vsel %vm6449_vm5, %v5026_v11, %v1232_v3  ;;  %v1236_v24 = vsel %vm6449_vm5, %v1234_v13, %v1235_v59  ;;  %v2009_v32 = vshll.u32 %v5240_v21, 16  ;;  %3229 = vmatpush.bf16.msra.mxu2 %v5832_v5  ;;  %v5244_v8 = vld [vmem:[%s6134_s28 + $0x3c] sm:$0xf]  ;;  %v5245_v11 = vld [vmem:[%s6134_s28 + $0x40] sm:$0xf] }
  0x71   : > { %v1996_v23 = vor.u32 %v1995_v17, %v1992_v15  ;;  %v2407_v25 = vpack.c.b16 %v2377_v51, %v2376_v50  ;;  %v1349_v33 = vunpack.c.l.b16 %v1233_v22  ;;  %v2014_v44 = vshrl.u32 %v5241_v38, 16  ;;  %v5840_v17 = vld [vmem:[%s7766_s1 + $0x1e8] sm:$0xff] }
  0x72   : > { %1780 = vmatmul.bf16.vlgmr.msrb.gmra.mxu3 %v5771_v34  ;;  %v2006_v29 = vor.u32 %v2005_v20, %v2001_v16  ;;  %v1350_v34 = vunpack.c.l.b16 %v1236_v24  ;;  %v2011_v37 = vrot.slane %v2009_v32, 5  ;;  %v1239_v47 = vrot.slane %v6420_v61, 5  ;;  %v5848_v50 = vld [vmem:[%s7766_s1 + $0x228] sm:$0xff]  ;;  %v5997_v24 = vld [vmem:[%s6134_s28 + $0x34] sm:$0xf] }
  0x73   : > { %v1997_v36 = vrot.slane %v1996_v23, 4  ;;  %v2023_v48 = vshll.u32 %v5242_v39, 16  ;;  %v2027_v35 = vshrl.u32 %v5242_v39, 16  ;;  %v1242_v19 = vrot.slane %v6434_v14, 5  ;;  %v5734_v51 = vld [vmem:[%s6134_s28 + $0x24] sm:$0xff]  ;;  %3911 = vmatpush.bf16.msra.mxu3 %v5840_v17  ;;  %4337 = vmatpush.bf16.msra.mxu0 %v5848_v50  ;;  %v5774_v39 = vld [vmem:[%s6134_s28 + $0x30] sm:$0xff] }
  0x74   : > { %v2007_v27 = vrot.slane %v2006_v29, 4  ;;  %v1379_v41 = vpack.c.b16 %v1350_v34, %v1349_v33  ;;  %v2016_v31 = vrot.slane %v2014_v44, 4  ;;  %v5027_v57 = vrot.slane %v1168_v49, 9  ;;  %v1169_v33 = vld [vmem:[%s6134_s28 + $0x30] sm:$0xe] }
  0x75   : > { %v6525_v42 = vsel %vm6149_vm2, %v1997_v36, %v2001_v16  ;;  %v1241_v58 = vrot.slane %v1239_v47, 4  ;;  %v2025_v61 = vrot.slane %v2023_v48, 5  ;;  %v2029_v60 = vrot.slane %v2027_v35, 4  ;;  %v5998_v44 = vld [vmem:[%s6134_s28 + $0x38] sm:$0x1] }
  0x76   : > { %2494 = vmatmul.bf16.vlgmr.msrb.gmra.mxu0 %v2406_v45  ;;  %7809 = vst [vmem:[#allocation5_spill] sm:$0xff] %v6525_v42  ;;  %v2017_v45 = vshll.u32 %v5241_v38, 16  ;;  %v6529_v46 = vsel %vm6149_vm2, %v2007_v27, %v2011_v37  ;;  %v2378_v54 = vunpack.c.l.b16 %v6525_v42  ;;  %v2033_v3 = vshll.u32 %v5243_v63, 16  ;;  %v5246_v48 = vld [vmem:[%s6134_s28 + $0x44] sm:$0x1] }
  0x77   : > { %7810 = vst [vmem:[#allocation6_spill] sm:$0xff] %v6529_v46  ;;  %v2379_v12 = vunpack.c.l.b16 %v6529_v46  ;;  %v1243_v1 = vsel %vm6449_vm5, %v1241_v58, %v1242_v19  ;;  %v2030_v14 = vor.u32 %v2029_v60, %v2025_v61  ;;  %v2038_v16 = vshrl.u32 %v5244_v8, 16  ;;  %v5247_v60 = vld [vmem:[%s6134_s28 + $0x48] sm:$0xf]  ;;  %v5248_v63 = vld [vmem:[%s6134_s28 + $0x4c] sm:$0xf] }
  0x78   : > { %v2019_v55 = vrot.slane %v2017_v45, 5  ;;  %v1352_v7 = vunpack.c.l.b16 %v1243_v1  ;;  %v2035_v15 = vrot.slane %v2033_v3, 5  ;;  %v2041_v20 = vshll.u32 %v5244_v8, 16  ;;  %v5264_v42 = vld [vmem:[%s6134_s28 + $0x8c] sm:$0x1] }
  0x79   : > { %v2408_v62 = vpack.c.b16 %v2379_v12, %v2378_v54  ;;  %v2031_v59 = vrot.slane %v2030_v14, 4  ;;  %v2047_v22 = vshll.u32 %v5245_v11, 16  ;;  %v1246_v29 = vrot.slane %v5997_v24, 5 }
  0x7a   : > { %v2051_v32 = vshrl.u32 %v5245_v11, 16  ;;  %v2040_v34 = vrot.slane %v2038_v16, 4  ;;  %v2043_v36 = vrot.slane %v2041_v20, 5  ;;  %v1249_v45 = vrot.slane %v5998_v44, 5  ;;  %v5775_v16 = vld [vmem:[%s6134_s28 + $0x3c] sm:$0xff] }
  0x7b   : > { %v2049_v38 = vrot.slane %v2047_v22, 5  ;;  %v2062_v14 = vshrl.u32 %v5247_v60, 16  ;;  %v2065_v3 = vshll.u32 %v5247_v60, 16  ;;  %v2071_v5 = vshll.u32 %v5248_v63, 16  ;;  %v6000_v22 = vld [vmem:[%s6134_s28 + $0x44] sm:$0x1] }
  0x7c   : > { %1089 = vmatmul.bf16.gmra.mxu1 %v5732_v0  ;;  %v2020_v0 = vor.u32 %v2019_v55, %v2016_v31  ;;  %v2044_v35 = vor.u32 %v2043_v36, %v2040_v34  ;;  %v2057_v31 = vshll.u32 %v5246_v48, 16  ;;  %v2075_v11 = vshrl.u32 %v5248_v63, 16  ;;  %v5831_v44 = vld [vmem:[%s7766_s1 + $0x1a0] sm:$0xff] }
  0x7d   : > { %1470 = vmatmul.bf16.gmra.mxu2 %v1378_v4  ;;  %v1240_v4 = vsel %vm6449_vm5, %v5027_v57, %v1239_v47  ;;  %v2053_v47 = vrot.slane %v2051_v32, 4  ;;  %v2067_v50 = vrot.slane %v2065_v3, 5  ;;  %v1256_v24 = vrot.slane %v6000_v22, 5  ;;  %v6001_v22 = vld [vmem:[%s6134_s28 + $0x50] sm:$0x1] }
  0x7e   : > { %v1351_v6 = vunpack.c.l.b16 %v1240_v4  ;;  %v2021_v13 = vrot.slane %v2020_v0, 4  ;;  %v2045_v55 = vrot.slane %v2044_v35, 4  ;;  %3230 = vmatpush.bf16.msra.mxu2 %v5831_v44 }
  0x7f   : > { %v2054_v19 = vor.u32 %v2053_v47, %v2049_v38 }
  0x80   : > { %v1380_v21 = vpack.c.b16 %v1352_v7, %v1351_v6  ;;  %v6559_v23 = vsel %vm6149_vm2, %v2021_v13, %v2025_v61  ;;  %v2059_v61 = vrot.slane %v2057_v31, 5  ;;  %v6581_v0 = vsel %vm6149_vm2, %v2045_v55, %v2049_v38  ;;  %v5999_v7 = vld [vmem:[%s6134_s28 + $0x40] sm:$0xf] }
  0x81   : > { %7811 = vst [vmem:[#allocation7_spill] sm:$0xff] %v6559_v23  ;;  %v2380_v27 = vunpack.c.l.b16 %v6559_v23  ;;  %v2055_v58 = vrot.slane %v2054_v19, 4  ;;  %v1253_v8 = vrot.slane %v5999_v7, 5  ;;  %v5251_v19 = vld [vmem:[%s6134_s28 + $0x58] sm:$0xf]  ;;  %v5839_v31 = vld [vmem:[%s7766_s1 + $0x1e0] sm:$0xff] }
  0x82   : > { %1785 = vmatmul.bf16.gmra.mxu3 %v5772_v18  ;;  %v5808_v18 = vld [vmem:[%s7766_s1 + $0x168] sm:$0xff]  ;;  %7813 = vst [vmem:[#allocation9_spill] sm:$0xff] %v6581_v0  ;;  %v5807_v55 = vld [vmem:[%s7766_s1 + $0x160] sm:$0xff]  ;;  %v1260_v7 = vrot.slane %v6292_v2, 5  ;;  %v1263_v2 = vrot.slane %v6001_v22, 5 }
  0x83   : > { %2914 = vmatpush.bf16.msra.mxu1 %v5808_v18  ;;  %v6587_v6 = vsel %vm6149_vm2, %v2055_v58, %v2059_v61  ;;  %v2064_v18 = vrot.slane %v2062_v14, 4  ;;  %v5736_v58 = vld [vmem:[%s6134_s28 + $0x3c] sm:$0xff]  ;;  %3912 = vmatpush.bf16.msra.mxu3 %v5839_v31  ;;  %v5254_v31 = vld [vmem:[%s6134_s28 + $0x64] sm:$0xf]  ;;  %v5779_v23 = vld [vmem:[%s6134_s28 + $0x6c] sm:$0xff] }
  0x84   : > { %7814 = vst [vmem:[#allocation10_spill] sm:$0xff] %v6587_v6  ;;  %v2383_v17 = vunpack.c.l.b16 %v6587_v6  ;;  %v5847_v14 = vld [vmem:[%s7766_s1 + $0x220] sm:$0xff] }
  0x85   : > { %4338 = vmatpush.bf16.msra.mxu0 %v5847_v14 }
  0x86   : > { %2499 = vmatmul.bf16.gmra.mxu0 %v2407_v25  ;;  %v6563_v25 = vsel %vm6149_vm2, %v2031_v59, %v2035_v15  ;;  %v1170_v59 = vld [vmem:[%s6134_s28 + $0x3c] sm:$0xe]  ;;  %v2382_v15 = vunpack.c.l.b16 %v6581_v0 }
  0x87   : > { %7812 = vst [vmem:[#allocation8_spill] sm:$0xff] %v6563_v25  ;;  %v2381_v37 = vunpack.c.l.b16 %v6563_v25  ;;  %v5029_v20 = vrot.slane %v1170_v59, 9  ;;  %2915 = vmatpush.bf16.msra.mxu1 %v5807_v55  ;;  %v5261_v25 = vld [vmem:[%s6134_s28 + $0x80] sm:$0x1] }
  0x88   : > { %v2410_v36 = vpack.c.b16 %v2383_v17, %v2382_v15 }
  0x89   : > { %v2409_v49 = vpack.c.b16 %v2381_v37, %v2380_v27  ;;  %v2068_v37 = vor.u32 %v2067_v50, %v2064_v18  ;;  %v1254_v38 = vsel %vm6449_vm5, %v5029_v20, %v1253_v8 }
  0x8a   : > { %v1355_v47 = vunpack.c.l.b16 %v1254_v38 }
  0x8b   : > { %v2069_v35 = vrot.slane %v2068_v37, 4 }
  0x8c   : > { %1094 = vmatmul.bf16.gmra.mxu1 %v5733_v40  ;;  %v5028_v40 = vrot.slane %v1169_v33, 9  ;;  %v5249_v33 = vld [vmem:[%s6134_s28 + $0x50] sm:$0x1] }
  0x8d   : > { %1475 = vmatmul.bf16.gmra.mxu2 %v1379_v41  ;;  %v1248_v41 = vrot.slane %v1246_v29, 4 }
  0x8e   : > { %v1247_v54 = vsel %vm6449_vm5, %v5028_v40, %v1246_v29  ;;  %v2077_v29 = vrot.slane %v2075_v11, 4  ;;  %v1171_v11 = vld [vmem:[%s6134_s28 + $0x48] sm:$0xe] }
  0x8f   : > { %v1250_v12 = vsel %vm6449_vm5, %v1248_v41, %v1249_v45  ;;  %v2081_v41 = vshll.u32 %v5249_v33, 16  ;;  %v5030_v20 = vrot.slane %v1171_v11, 9  ;;  %v5252_v33 = vld [vmem:[%s6134_s28 + $0x5c] sm:$0x1]  ;;  %v2119_v11 = vshll.u32 %v5254_v31, 16 }
  0x90   : > { %v1354_v57 = vunpack.c.l.b16 %v1250_v12 }
  0x91   : > { %v2083_v12 = vrot.slane %v2081_v41, 5  ;;  %v2121_v22 = vrot.slane %v2119_v11, 5  ;;  %v5256_v11 = vld [vmem:[%s6134_s28 + $0x6c] sm:$0xf] }
  0x92   : > { %1790 = vmatmul.bf16.gmra.mxu3 %v5773_v56  ;;  %v1353_v56 = vunpack.c.l.b16 %v1247_v54 }
  0x94   : > { %v1381_v1 = vpack.c.b16 %v1354_v57, %v1353_v56 }
  0x96   : > { %2504 = vmatmul.bf16.gmra.mxu0 %v2408_v62  ;;  %v5735_v62 = vld [vmem:[%s6134_s28 + $0x30] sm:$0xff] }
  0x9c   : > { %1099 = vmatmul.bf16.gmra.mxu1 %v5734_v51  ;;  %v2073_v51 = vrot.slane %v2071_v5, 5 }
  0x9d   : > { %1480 = vmatmul.bf16.gmra.mxu2 %v1380_v21  ;;  %v1255_v21 = vrot.slane %v1253_v8, 4  ;;  %v2099_v8 = vshrl.u32 %v5251_v19, 16 }
  0x9e   : > { %v2078_v40 = vor.u32 %v2077_v29, %v2073_v51  ;;  %v6633_v3 = vsel %vm6149_vm2, %v2069_v35, %v2073_v51 }
  0x9f   : > { %7815 = vst [vmem:[#allocation11_spill] sm:$0xff] %v6633_v3  ;;  %v2384_v18 = vunpack.c.l.b16 %v6633_v3 }
  0xa0   : > { %v2079_v54 = vrot.slane %v2078_v40, 4  ;;  %v1261_v40 = vsel %vm6449_vm5, %v5030_v20, %v1260_v7 }
  0xa1   : > { %v1357_v35 = vunpack.c.l.b16 %v1261_v40 }
  0xa2   : > { %1795 = vmatmul.bf16.gmra.mxu3 %v5774_v39  ;;  %v1257_v39 = vsel %vm6449_vm5, %v1255_v21, %v1256_v24  ;;  %v6637_v5 = vsel %vm6149_vm2, %v2079_v54, %v2083_v12  ;;  %v1262_v21 = vrot.slane %v1260_v7, 4  ;;  %v2101_v24 = vrot.slane %v2099_v8, 4 }
  0xa3   : > { %v1356_v48 = vunpack.c.l.b16 %v1257_v39  ;;  %7816 = vst [vmem:[#allocation12_spill] sm:$0xff] %v6637_v5  ;;  %v2385_v50 = vunpack.c.l.b16 %v6637_v5  ;;  %v6004_v5 = vld [vmem:[%s6134_s28 + $0x70] sm:$0xf] }
  0xa4   : > { %v1264_v41 = vsel %vm6449_vm5, %v1262_v21, %v1263_v2  ;;  %v5777_v2 = vld [vmem:[%s6134_s28 + $0x54] sm:$0xff]  ;;  %v1281_v3 = vrot.slane %v6004_v5, 5 }
  0xa5   : > { %v2411_v38 = vpack.c.b16 %v2385_v50, %v2384_v18  ;;  %v2123_v18 = vshrl.u32 %v5254_v31, 16  ;;  %v1172_v50 = vld [vmem:[%s6134_s28 + $0x54] sm:$0xe] }
  0xa6   : > { %2509 = vmatmul.bf16.gmra.mxu0 %v2409_v49  ;;  %v5250_v49 = vld [vmem:[%s6134_s28 + $0x54] sm:$0xf] }
  0xa7   : > { %v2086_v61 = vshrl.u32 %v5250_v49, 16  ;;  %v2089_v60 = vshll.u32 %v5250_v49, 16  ;;  %v1358_v49 = vunpack.c.l.b16 %v1264_v41 }
  0xa9   : > { %v6583_v4 = vpop.f32.mrf.mxu1  ;;  %v2088_v59 = vrot.slane %v2086_v61, 4  ;;  %v2091_v15 = vrot.slane %v2089_v60, 5  ;;  %v5737_v60 = vld [vmem:[%s6134_s28 + $0x48] sm:$0xff]  ;;  %v1383_v14 = vpack.c.b16 %v1358_v49, %v1357_v35 }
  0xab   : > { %v2092_v37 = vor.u32 %v2091_v15, %v2088_v59  ;;  %v1267_v15 = vrot.slane %v6379_v52, 5  ;;  %v5255_v52 = vld [vmem:[%s6134_s28 + $0x68] sm:$0x1] }
  0xac   : > { %v6590_v13 = vpop.f32.mrf.mxu0  ;;  %1104 = vmatmul.bf16.gmra.mxu1 %v5735_v62  ;;  %v1382_v62 = vpack.c.b16 %v1356_v48, %v1355_v47  ;;  %v2105_v47 = vshll.u32 %v5252_v33, 16 }
  0xad   : > { %1485 = vmatmul.bf16.gmra.mxu2 %v1381_v1  ;;  %v2095_v1 = vshll.u32 %v5251_v19, 16  ;;  %v2093_v48 = vrot.slane %v2092_v37, 4  ;;  %v5253_v19 = vld [vmem:[%s6134_s28 + $0x60] sm:$0xf]  ;;  %v1269_v33 = vrot.slane %v1267_v15, 4  ;;  %v1270_v37 = vrot.slane %v6382_v53, 5 }
  0xae   : > { %v2107_v12 = vrot.slane %v2105_v47, 5  ;;  %v2110_v7 = vshrl.u32 %v5253_v19, 16  ;;  %v2113_v8 = vshll.u32 %v5253_v19, 16  ;;  %v5830_v19 = vld [vmem:[%s7766_s1 + $0x198] sm:$0xff] }
  0xaf   : > { %v6597_v32 = vpop.f32.mrf.mxu2  ;;  %v2097_v51 = vrot.slane %v2095_v1, 5  ;;  %v1271_v53 = vsel %vm6449_vm5, %v1269_v33, %v1270_v37  ;;  %3231 = vmatpush.bf16.msra.mxu2 %v5830_v19 }
  0xb0   : > { %v6600_v34 = vpop.f32.mrf.mxu3  ;;  %v2112_v20 = vrot.slane %v2110_v7, 4  ;;  %v2115_v21 = vrot.slane %v2113_v8, 5 }
  0xb1   : > { %v6602_v27 = vpop.f32.mrf.mxu1  ;;  %v2102_v44 = vor.u32 %v2101_v24, %v2097_v51  ;;  %v5031_v24 = vrot.slane %v1172_v50, 9 }
  0xb2   : > { %1800 = vmatmul.bf16.gmra.mxu3 %v5775_v16  ;;  %v5776_v16 = vld [vmem:[%s6134_s28 + $0x48] sm:$0xff] }
  0xb3   : > { %v2103_v54 = vrot.slane %v2102_v44, 4  ;;  %v1268_v49 = vsel %vm6449_vm5, %v5031_v24, %v1267_v15  ;;  %v5838_v15 = vld [vmem:[%s7766_s1 + $0x1d8] sm:$0xff] }
  0xb4   : > { %v6611_v45 = vpop.f32.mrf.mxu0  ;;  %v1359_v31 = vunpack.c.l.b16 %v1268_v49  ;;  %3913 = vmatpush.bf16.msra.mxu3 %v5838_v15  ;;  %v1173_v49 = vld [vmem:[%s6134_s28 + $0x60] sm:$0xe] }
  0xb5   : > { %v6675_v59 = vsel %vm6149_vm2, %v2103_v54, %v2107_v12  ;;  %v2129_v12 = vshll.u32 %v5255_v52, 16 }
  0xb6   : > { %2514 = vmatmul.bf16.gmra.mxu0 %v2410_v36  ;;  %7818 = vst [vmem:[#allocation14_spill] sm:$0xff] %v6675_v59 }
  0xb7   : > { %v6621_v56 = vpop.f32.mrf.mxu2  ;;  %v2131_v8 = vrot.slane %v2129_v12, 5  ;;  %v5846_v12 = vld [vmem:[%s7766_s1 + $0x218] sm:$0xff] }
  0xb8   : > { %v6623_v57 = vpop.f32.mrf.mxu3  ;;  %4339 = vmatpush.bf16.msra.mxu0 %v5846_v12 }
  0xb9   : > { %v6626_v63 = vpop.f32.mrf.mxu1 }
  0xbc   : > { %1109 = vmatmul.bf16.gmra.mxu1 %v5736_v58 }
  0xbd   : > { %v6641_v17 = vpop.f32.mrf.mxu0  ;;  %1490 = vmatmul.bf16.gmra.mxu2 %v1382_v62  ;;  %v6669_v62 = vsel %vm6149_vm2, %v2093_v48, %v2097_v51  ;;  %v2116_v48 = vor.u32 %v2115_v21, %v2112_v20 }
  0xbe   : > { %7817 = vst [vmem:[#allocation13_spill] sm:$0xff] %v6669_v62  ;;  %v2386_v51 = vunpack.c.l.b16 %v6669_v62 }
  0xbf   : > { %v6647_v29 = vpop.f32.mrf.mxu2 }
  0xc0   : > { %v6650_v36 = vpop.f32.mrf.mxu3 }
  0xc1   : > { %v6652_v39 = vpop.f32.mrf.mxu1 }
  0xc2   : > { %1805 = vmatmul.bf16.gmra.mxu3 %v5776_v16  ;;  %v2387_v16 = vunpack.c.l.b16 %v6675_v59 }
  0xc4   : > { %v2412_v44 = vpack.c.b16 %v2387_v16, %v2386_v51  ;;  %v5738_v51 = vld [vmem:[%s6134_s28 + $0x54] sm:$0xff]  ;;  %v5257_v16 = vld [vmem:[%s6134_s28 + $0x70] sm:$0xf] }
  0xc5   : > { %v6660_v55 = vpop.f32.mrf.mxu0 }
  0xc6   : > { %2519 = vmatmul.bf16.gmra.mxu0 %v2411_v38  ;;  %v2125_v38 = vrot.slane %v2123_v18, 4  ;;  %v5806_v18 = vld [vmem:[%s7766_s1 + $0x158] sm:$0xff] }
  0xc7   : > { %v6662_v58 = vpop.f32.mrf.mxu2  ;;  %2916 = vmatpush.bf16.msra.mxu1 %v5806_v18 }
  0xc8   : > { %v6664_v61 = vpop.f32.mrf.mxu3  ;;  %v2126_v54 = vor.u32 %v2125_v38, %v2121_v22  ;;  %v6002_v38 = vld [vmem:[%s6134_s28 + $0x64] sm:$0xf] }
  0xc9   : > { %v6671_v1 = vpop.f32.mrf.mxu1  ;;  %v1274_v52 = vrot.slane %v6002_v38, 5 }
  0xca   : > { %v2127_v7 = vrot.slane %v2126_v54, 4  ;;  %v2147_v54 = vshrl.u32 %v5257_v16, 16 }
  0xcc   : > { %1114 = vmatmul.bf16.gmra.mxu1 %v5737_v60  ;;  %v1360_v60 = vunpack.c.l.b16 %v1271_v53  ;;  %v6720_v37 = vsel %vm6149_vm2, %v2127_v7, %v2131_v8  ;;  %v2143_v53 = vshll.u32 %v5257_v16, 16  ;;  %v1276_v7 = vrot.slane %v1274_v52, 4  ;;  %v6003_v8 = vld [vmem:[%s6134_s28 + $0x68] sm:$0x1] }
  0xcd   : > { %1495 = vmatmul.bf16.gmra.mxu2 %v1383_v14  ;;  %v2117_v14 = vrot.slane %v2116_v48, 4  ;;  %7820 = vst [vmem:[#allocation16_spill] sm:$0xff] %v6720_v37  ;;  %v2389_v19 = vunpack.c.l.b16 %v6720_v37  ;;  %v2149_v16 = vrot.slane %v2147_v54, 4  ;;  %v5259_v54 = vld [vmem:[%s6134_s28 + $0x78] sm:$0xf] }
  0xce   : > { %v1384_v21 = vpack.c.b16 %v1360_v60, %v1359_v31  ;;  %v5778_v60 = vld [vmem:[%s6134_s28 + $0x60] sm:$0xff]  ;;  %v2145_v18 = vrot.slane %v2143_v53, 5  ;;  %v2158_v62 = vshrl.u32 %v5259_v54, 16 }
  0xcf   : > { %v6683_v40 = vpop.f32.mrf.mxu2  ;;  %v6716_v33 = vsel %vm6149_vm2, %v2117_v14, %v2121_v22  ;;  %v5032_v14 = vrot.slane %v1173_v49, 9 }
  0xd0   : > { %7819 = vst [vmem:[#allocation15_spill] sm:$0xff] %v6716_v33  ;;  %v2388_v22 = vunpack.c.l.b16 %v6716_v33 }
  0xd1   : > { %v6686_v41 = vpop.f32.mrf.mxu0  ;;  %v6688_v47 = vpop.f32.mrf.mxu3 }
  0xd2   : > { %1810 = vmatmul.bf16.gmra.mxu3 %v5777_v2  ;;  %v6690_v35 = vpop.f32.mrf.mxu1  ;;  %v2134_v2 = vshrl.u32 %v5256_v11, 16 }
  0xd4   : > { %v2136_v31 = vrot.slane %v2134_v2, 4  ;;  %v1275_v2 = vsel %vm6449_vm5, %v5032_v14, %v1274_v52 }
  0xd6   : > { %2524 = vmatmul.bf16.gmra.mxu0 %v2412_v44  ;;  %v2137_v44 = vshll.u32 %v5256_v11, 16  ;;  %v1277_v11 = vrot.slane %v6003_v8, 5 }
  0xd7   : > { %v6706_v50 = vpop.f32.mrf.mxu2 }
  0xd8   : > { %v2139_v15 = vrot.slane %v2137_v44, 5  ;;  %v1278_v49 = vsel %vm6449_vm5, %v1276_v7, %v1277_v11  ;;  %v2150_v44 = vor.u32 %v2149_v16, %v2145_v18  ;;  %v2161_v7 = vshll.u32 %v5259_v54, 16  ;;  %v5739_v11 = vld [vmem:[%s6134_s28 + $0x60] sm:$0xff] }
  0xd9   : > { %v6710_v20 = vpop.f32.mrf.mxu0  ;;  %v6723_v48 = vpop.f32.mrf.mxu3 }
  0xda   : > { %v6712_v24 = vpop.f32.mrf.mxu1  ;;  %v2140_v12 = vor.u32 %v2139_v15, %v2136_v31  ;;  %v2151_v52 = vrot.slane %v2150_v44, 4  ;;  %v2163_v54 = vrot.slane %v2161_v7, 5  ;;  %v2177_v7 = vshll.u32 %v5261_v25, 16  ;;  %v5829_v25 = vld [vmem:[%s7766_s1 + $0x190] sm:$0xff] }
  0xdb   : > { %3232 = vmatpush.bf16.msra.mxu2 %v5829_v25 }
  0xdc   : > { %1119 = vmatmul.bf16.gmra.mxu1 %v5738_v51  ;;  %v5258_v51 = vld [vmem:[%s6134_s28 + $0x74] sm:$0x1]  ;;  %v2141_v59 = vrot.slane %v2140_v12, 4 }
  0xdd   : > { %1500 = vmatmul.bf16.gmra.mxu2 %v1384_v21  ;;  %v2413_v21 = vpack.c.b16 %v2389_v19, %v2388_v22  ;;  %v2153_v53 = vshll.u32 %v5258_v51, 16  ;;  %v1362_v22 = vunpack.c.l.b16 %v1278_v49  ;;  %v5260_v19 = vld [vmem:[%s6134_s28 + $0x7c] sm:$0xf] }
  0xde   : > { %v2167_v15 = vshll.u32 %v5260_v19, 16  ;;  %v2171_v16 = vshrl.u32 %v5260_v19, 16  ;;  %v6005_v19 = vld [vmem:[%s6134_s28 + $0x74] sm:$0x1] }
  0xdf   : > { %v2155_v14 = vrot.slane %v2153_v53, 5  ;;  %v2160_v53 = vrot.slane %v2158_v62, 4  ;;  %v1284_v0 = vrot.slane %v6005_v19, 5 }
  0xe0   : > { %v6733_v38 = vpop.f32.mrf.mxu2  ;;  %v2169_v5 = vrot.slane %v2167_v15, 5 }
  0xe1   : > { %v6762_v44 = vsel %vm6149_vm2, %v2151_v52, %v2155_v14  ;;  %v2164_v52 = vor.u32 %v2163_v54, %v2160_v53 }
  0xe2   : > { %1815 = vmatmul.bf16.gmra.mxu3 %v5778_v60  ;;  %v6736_v33 = vpop.f32.mrf.mxu1  ;;  %v1361_v60 = vunpack.c.l.b16 %v1275_v2  ;;  %v6754_v2 = vsel %vm6149_vm2, %v2141_v59, %v2145_v18  ;;  %7822 = vst [vmem:[#allocation18_spill] sm:$0xff] %v6762_v44  ;;  %v1283_v18 = vrot.slane %v1281_v3, 4 }
  0xe3   : > { %v6742_v8 = vpop.f32.mrf.mxu0  ;;  %7821 = vst [vmem:[#allocation17_spill] sm:$0xff] %v6754_v2 }
  0xe4   : > { %v1385_v51 = vpack.c.b16 %v1362_v22, %v1361_v60  ;;  %v2173_v60 = vrot.slane %v2171_v16, 4  ;;  %v1285_v16 = vsel %vm6449_vm5, %v1283_v18, %v1284_v0  ;;  %v5262_v0 = vld [vmem:[%s6134_s28 + $0x84] sm:$0xf]  ;;  %v5805_v18 = vld [vmem:[%s7766_s1 + $0x150] sm:$0xff] }
  0xe5   : > { %v6745_v37 = vpop.f32.mrf.mxu3  ;;  %v1364_v53 = vunpack.c.l.b16 %v1285_v16  ;;  %2917 = vmatpush.bf16.msra.mxu1 %v5805_v18  ;;  %v2185_v16 = vshll.u32 %v5262_v0, 16  ;;  %v5780_v18 = vld [vmem:[%s6134_s28 + $0x78] sm:$0xff] }
  0xe6   : > { %2529 = vmatmul.bf16.gmra.mxu0 %v2413_v21  ;;  %v1174_v21 = vld [vmem:[%s6134_s28 + $0x6c] sm:$0xe]  ;;  %v2174_v62 = vor.u32 %v2173_v60, %v2169_v5 }
  0xe7   : > { %v5033_v59 = vrot.slane %v1174_v21, 9 }
  0xe8   : > { %v6748_v31 = vpop.f32.mrf.mxu2  ;;  %v2175_v54 = vrot.slane %v2174_v62, 4 }
  0xe9   : > { %v1282_v15 = vsel %vm6449_vm5, %v5033_v59, %v1281_v3  ;;  %v2179_v3 = vrot.slane %v2177_v7, 5  ;;  %v5263_v59 = vld [vmem:[%s6134_s28 + $0x88] sm:$0xf]  ;;  %v2182_v7 = vshrl.u32 %v5262_v0, 16 }
  0xea   : > { %v1085_v6 = vpop.f32.mrf.mxu1 }
  0xeb   : > { %v6757_v49 = vpop.f32.mrf.mxu0  ;;  %v1086_v12 = vadd.f32 %v1085_v6, %v6590_v13  ;;  %v2390_v6 = vunpack.c.l.b16 %v6754_v2  ;;  %v2391_v13 = vunpack.c.l.b16 %v6762_v44  ;;  %v2165_v44 = vrot.slane %v2164_v52, 4  ;;  %v5740_v52 = vld [vmem:[%s6134_s28 + $0x6c] sm:$0xff] }
  0xec   : > { %1124 = vmatmul.bf16.gmra.mxu1 %v5739_v11  ;;  %v6794_v62 = vsel %vm6149_vm2, %v2175_v54, %v2179_v3  ;;  %v5845_v54 = vld [vmem:[%s7766_s1 + $0x210] sm:$0xff]  ;;  %v2184_v0 = vrot.slane %v2182_v7, 4 }
  0xed   : > { %v6764_v22 = vpop.f32.mrf.mxu3  ;;  %1505 = vmatmul.bf16.gmra.mxu2 %v1385_v51  ;;  %v2414_v51 = vpack.c.b16 %v2391_v13, %v2390_v6  ;;  %v6789_v6 = vsel %vm6149_vm2, %v2165_v44, %v2169_v5  ;;  %7824 = vst [vmem:[#allocation20_spill] sm:$0xff] %v6794_v62  ;;  %v6006_v44 = vld [vmem:[%s6134_s28 + $0x7c] sm:$0xf]  ;;  %4340 = vmatpush.bf16.msra.mxu0 %v5845_v54 }
  0xee   : > { %7823 = vst [vmem:[#allocation19_spill] sm:$0xff] %v6789_v6  ;;  %v1288_v5 = vrot.slane %v6006_v44, 5  ;;  %v6007_v44 = vld [vmem:[%s6134_s28 + $0x80] sm:$0x1] }
  0xef   : > { %v1291_v46 = vrot.slane %v6007_v44, 5 }
  0xf0   : > { %v1466_v14 = vpop.f32.mrf.mxu2 }
  0xf1   : > { %v1546_v11 = vadd.f32 %v1466_v14, %v1086_v12  ;;  %v1363_v12 = vunpack.c.l.b16 %v1282_v15 }
  0xf2   : > { %1820 = vmatmul.bf16.gmra.mxu3 %v5779_v23  ;;  %v1087_v21 = vpop.f32.mrf.mxu1 }
  0xf3   : > { %v2495_v19 = vpop.f32.mrf.mxu0  ;;  %v1088_v2 = vadd.f32 %v1087_v21, %v6611_v45  ;;  %v5837_v45 = vld [vmem:[%s7766_s1 + $0x1d0] sm:$0xff]  ;;  %v1386_v14 = vpack.c.b16 %v1364_v53, %v1363_v12  ;;  %v2195_v21 = vshrl.u32 %v5263_v59, 16  ;;  %v1175_v53 = vld [vmem:[%s6134_s28 + $0x78] sm:$0xe] }
  0xf4   : > { %3914 = vmatpush.bf16.msra.mxu3 %v5837_v45 }
  0xf5   : > { %v1781_v60 = vpop.f32.mrf.mxu3  ;;  %v2197_v45 = vrot.slane %v2195_v21, 4 }
  0xf6   : > { %2534 = vmatmul.bf16.gmra.mxu0 %v2414_v51  ;;  %v1861_v23 = vadd.f32 %v1781_v60, %v1546_v11  ;;  %v2191_v51 = vshll.u32 %v5263_v59, 16 }
  0xf8   : > { %v1468_v13 = vpop.f32.mrf.mxu2  ;;  %v6796_v11 = vadd.f32 %v2495_v19, %v1861_v23  ;;  %v2393_v19 = vunpack.c.l.b16 %v6794_v62  ;;  %v2187_v23 = vrot.slane %v2185_v16, 5  ;;  %v2193_v59 = vrot.slane %v2191_v51, 5 }
  0xf9   : > { %v1547_v15 = vadd.f32 %v1468_v13, %v1088_v2  ;;  %v2392_v2 = vunpack.c.l.b16 %v6789_v6  ;;  %v5034_v13 = vrot.slane %v1175_v53, 9  ;;  %v2201_v51 = vshll.u32 %v5264_v42, 16 }
  0xfa   : > { %v1090_v25 = vpop.f32.mrf.mxu1  ;;  %v2188_v6 = vor.u32 %v2187_v23, %v2184_v0  ;;  %v2198_v16 = vor.u32 %v2197_v45, %v2193_v59 }
  0xfb   : > { %v2497_v60 = vpop.f32.mrf.mxu0  ;;  %v1091_v12 = vadd.f32 %v1090_v25, %v6641_v17  ;;  %v1290_v25 = vrot.slane %v1288_v5, 4  ;;  %v2415_v10 = vpack.c.b16 %v2393_v19, %v2392_v2  ;;  %v1289_v7 = vsel %vm6449_vm5, %v5034_v13, %v1288_v5  ;;  %v5265_v5 = vld [vmem:[%s6134_s28 + $0x90] sm:$0xf] }
  0xfc   : > { %1129 = vmatmul.bf16.gmra.mxu1 %v5740_v52  ;;  %v1365_v54 = vunpack.c.l.b16 %v1289_v7  ;;  %v2189_v19 = vrot.slane %v2188_v6, 4  ;;  %v2203_v0 = vrot.slane %v2201_v51, 5  ;;  %v2206_v13 = vshrl.u32 %v5265_v5, 16  ;;  %v6008_v6 = vld [vmem:[%s6134_s28 + $0x88] sm:$0xf] }
  0xfd   : > { %v1783_v3 = vpop.f32.mrf.mxu3  ;;  %1510 = vmatmul.bf16.gmra.mxu2 %v1386_v14  ;;  %v1295_v44 = vrot.slane %v6008_v6, 5  ;;  %v1176_v7 = vld [vmem:[%s6134_s28 + $0x84] sm:$0xe] }
  0xfe   : > { %v1862_v17 = vadd.f32 %v1783_v3, %v1547_v15  ;;  %v1292_v15 = vsel %vm6449_vm5, %v1290_v25, %v1291_v46  ;;  %v2199_v3 = vrot.slane %v2198_v16, 4  ;;  %v5266_v46 = vld [vmem:[%s6134_s28 + $0x94] sm:$0xf] }
  0xff   : > { %v2219_v16 = vshrl.u32 %v5266_v46, 16 }
 0x100   : > { %v1471_v52 = vpop.f32.mrf.mxu2  ;;  %v6809_v28 = vadd.f32 %v2497_v60, %v1862_v17  ;;  %v1366_v60 = vunpack.c.l.b16 %v1292_v15  ;;  %v5741_v17 = vld [vmem:[%s6134_s28 + $0x78] sm:$0xff]  ;;  %v2215_v15 = vshll.u32 %v5266_v46, 16 }
 0x101   : > { %v1548_v9 = vadd.f32 %v1471_v52, %v1091_v12 }
 0x102   : > { %1825 = vmatmul.bf16.gmra.mxu3 %v5780_v18  ;;  %v1092_v14 = vpop.f32.mrf.mxu1  ;;  %v1387_v45 = vpack.c.b16 %v1366_v60, %v1365_v54  ;;  %v5781_v60 = vld [vmem:[%s6134_s28 + $0x84] sm:$0xff] }
 0x103   : > { %v2500_v21 = vpop.f32.mrf.mxu0  ;;  %v1093_v53 = vadd.f32 %v1092_v14, %v6660_v55  ;;  %v2209_v55 = vshll.u32 %v5265_v5, 16  ;;  %v2221_v5 = vrot.slane %v2219_v16, 4 }
 0x105   : > { %v1786_v12 = vpop.f32.mrf.mxu3 }
 0x106   : > { %2539 = vmatmul.bf16.gmra.mxu0 %v2415_v10  ;;  %v1863_v2 = vadd.f32 %v1786_v12, %v1548_v9  ;;  %v6823_v10 = vsel %vm6149_vm2, %v2189_v19, %v2193_v59  ;;  %v6827_v9 = vsel %vm6149_vm2, %v2199_v3, %v2203_v0  ;;  %v2211_v12 = vrot.slane %v2209_v55, 5  ;;  %v6009_v3 = vld [vmem:[%s6134_s28 + $0x8c] sm:$0x1] }
 0x107   : > { %7825 = vst [vmem:[#allocation21_spill] sm:$0xff] %v6823_v10  ;;  %v2394_v59 = vunpack.c.l.b16 %v6823_v10  ;;  %v1297_v19 = vrot.slane %v1295_v44, 4  ;;  %v1298_v0 = vrot.slane %v6009_v3, 5 }
 0x108   : > { %v1473_v23 = vpop.f32.mrf.mxu2  ;;  %v6819_v18 = vadd.f32 %v2500_v21, %v1863_v2  ;;  %7826 = vst [vmem:[#allocation22_spill] sm:$0xff] %v6827_v9  ;;  %v2395_v21 = vunpack.c.l.b16 %v6827_v9  ;;  %v5035_v2 = vrot.slane %v1176_v7, 9 }
 0x109   : > { %v1549_v42 = vadd.f32 %v1473_v23, %v1093_v53  ;;  %v2208_v53 = vrot.slane %v2206_v13, 4  ;;  %v1299_v13 = vsel %vm6449_vm5, %v1297_v19, %v1298_v0 }
 0x10a   : > { %v1095_v25 = vpop.f32.mrf.mxu1 }
 0x10b   : > { %v2502_v52 = vpop.f32.mrf.mxu0  ;;  %v1096_v14 = vadd.f32 %v1095_v25, %v6686_v41  ;;  %v2217_v41 = vrot.slane %v2215_v15, 5  ;;  %v2212_v55 = vor.u32 %v2211_v12, %v2208_v53  ;;  %v5804_v53 = vld [vmem:[%s7766_s1 + $0x148] sm:$0xff] }
 0x10c   : > { %1134 = vmatmul.bf16.gmra.mxu1 %v5741_v17  ;;  %v5267_v17 = vld [vmem:[%s6134_s28 + $0x98] sm:$0x1] }
 0x10d   : > { %v1788_v51 = vpop.f32.mrf.mxu3  ;;  %1515 = vmatmul.bf16.gmra.mxu2 %v1387_v45  ;;  %v2416_v45 = vpack.c.b16 %v2395_v21, %v2394_v59  ;;  %v2222_v16 = vor.u32 %v2221_v5, %v2217_v41  ;;  %2918 = vmatpush.bf16.msra.mxu1 %v5804_v53  ;;  %v6011_v53 = vld [vmem:[%s6134_s28 + $0x98] sm:$0x1] }
 0x10e   : > { %v1864_v54 = vadd.f32 %v1788_v51, %v1549_v42  ;;  %v1296_v42 = vsel %vm6449_vm5, %v5035_v2, %v1295_v44  ;;  %v2225_v51 = vshll.u32 %v5267_v17, 16  ;;  %v5269_v44 = vld [vmem:[%s6134_s28 + $0xa0] sm:$0xf]  ;;  %v2213_v2 = vrot.slane %v2212_v55, 4 }
 0x10f   : > { %v1367_v21 = vunpack.c.l.b16 %v1296_v42  ;;  %v2223_v12 = vrot.slane %v2222_v16, 4  ;;  %v2239_v17 = vshll.u32 %v5269_v44, 16 }
 0x110   : > { %v1476_v23 = vpop.f32.mrf.mxu2  ;;  %v6837_v25 = vadd.f32 %v2502_v52, %v1864_v54  ;;  %v5828_v52 = vld [vmem:[%s7766_s1 + $0x188] sm:$0xff]  ;;  %v1368_v54 = vunpack.c.l.b16 %v1299_v13  ;;  %v2227_v19 = vrot.slane %v2225_v51, 5  ;;  %v6010_v13 = vld [vmem:[%s6134_s28 + $0x94] sm:$0xf]  ;;  %v6861_v16 = vsel %vm6149_vm2, %v2213_v2, %v2217_v41  ;;  %v1177_v51 = vld [vmem:[%s6134_s28 + $0x90] sm:$0xe] }
 0x111   : > { %v1550_v46 = vadd.f32 %v1476_v23, %v1096_v14  ;;  %v5268_v14 = vld [vmem:[%s6134_s28 + $0x9c] sm:$0xf]  ;;  %3233 = vmatpush.bf16.msra.mxu2 %v5828_v52  ;;  %v5742_v23 = vld [vmem:[%s6134_s28 + $0x84] sm:$0xff]  ;;  %v1302_v55 = vrot.slane %v6010_v13, 5  ;;  %7827 = vst [vmem:[#allocation23_spill] sm:$0xff] %v6861_v16  ;;  %v5036_v2 = vrot.slane %v1177_v51, 9 }
 0x112   : > { %1830 = vmatmul.bf16.gmra.mxu3 %v5781_v60  ;;  %v1097_v6 = vpop.f32.mrf.mxu1  ;;  %v2230_v3 = vshrl.u32 %v5268_v14, 16  ;;  %v2233_v0 = vshll.u32 %v5268_v14, 16  ;;  %v1388_v42 = vpack.c.b16 %v1368_v54, %v1367_v21  ;;  %v5844_v21 = vld [vmem:[%s7766_s1 + $0x208] sm:$0xff]  ;;  %v2241_v54 = vrot.slane %v2239_v17, 5 }
 0x113   : > { %v2505_v7 = vpop.f32.mrf.mxu0  ;;  %v1098_v15 = vadd.f32 %v1097_v6, %v6710_v20  ;;  %v5836_v20 = vld [vmem:[%s7766_s1 + $0x1c8] sm:$0xff]  ;;  %4341 = vmatpush.bf16.msra.mxu0 %v5844_v21 }
 0x114   : > { %3915 = vmatpush.bf16.msra.mxu3 %v5836_v20  ;;  %v1304_v20 = vrot.slane %v1302_v55, 4 }
 0x115   : > { %v1791_v59 = vpop.f32.mrf.mxu3 }
 0x116   : > { %2544 = vmatmul.bf16.gmra.mxu0 %v2416_v45  ;;  %v1865_v60 = vadd.f32 %v1791_v59, %v1550_v46  ;;  %v2243_v45 = vshrl.u32 %v5269_v44, 16  ;;  %v6867_v44 = vsel %vm6149_vm2, %v2223_v12, %v2227_v19  ;;  %v5782_v19 = vld [vmem:[%s6134_s28 + $0x90] sm:$0xff] }
 0x117   : > { %7828 = vst [vmem:[#allocation24_spill] sm:$0xff] %v6867_v44 }
 0x118   : > { %v1478_v5 = vpop.f32.mrf.mxu2  ;;  %v6856_v46 = vadd.f32 %v2505_v7, %v1865_v60  ;;  %v2232_v7 = vrot.slane %v2230_v3, 4  ;;  %v2245_v41 = vrot.slane %v2243_v45, 4  ;;  %v2396_v3 = vunpack.c.l.b16 %v6861_v16 }
 0x119   : > { %v1551_v6 = vadd.f32 %v1478_v5, %v1098_v15  ;;  %v2235_v15 = vrot.slane %v2233_v0, 5  ;;  %v5270_v5 = vld [vmem:[%s6134_s28 + $0xa4] sm:$0x1]  ;;  %v2397_v0 = vunpack.c.l.b16 %v6867_v44  ;;  %v1303_v45 = vsel %vm6449_vm5, %v5036_v2, %v1302_v55  ;;  %v5271_v55 = vld [vmem:[%s6134_s28 + $0xa8] sm:$0xf] }
 0x11a   : > { %v1100_v52 = vpop.f32.mrf.mxu1  ;;  %v2246_v9 = vor.u32 %v2245_v41, %v2241_v54  ;;  %v1369_v41 = vunpack.c.l.b16 %v1303_v45 }
 0x11b   : > { %v2507_v14 = vpop.f32.mrf.mxu0  ;;  %v1101_v59 = vadd.f32 %v1100_v52, %v6742_v8  ;;  %v1305_v8 = vrot.slane %v6011_v53, 5  ;;  %v2236_v13 = vor.u32 %v2235_v15, %v2232_v7 }
 0x11c   : > { %1139 = vmatmul.bf16.gmra.mxu1 %v5742_v23  ;;  %v2249_v23 = vshll.u32 %v5270_v5, 16 }
 0x11d   : > { %v1793_v60 = vpop.f32.mrf.mxu3  ;;  %1520 = vmatmul.bf16.gmra.mxu2 %v1388_v42  ;;  %v1306_v42 = vsel %vm6449_vm5, %v1304_v20, %v1305_v8  ;;  %v2237_v15 = vrot.slane %v2236_v13, 4  ;;  %v5272_v20 = vld [vmem:[%s6134_s28 + $0xac] sm:$0xf]  ;;  %v2257_v13 = vshll.u32 %v5271_v55, 16 }
 0x11e   : > { %v1866_v12 = vadd.f32 %v1793_v60, %v1551_v6  ;;  %v2417_v6 = vpack.c.b16 %v2397_v0, %v2396_v3  ;;  %v1370_v53 = vunpack.c.l.b16 %v1306_v42  ;;  %v2251_v5 = vrot.slane %v2249_v23, 5  ;;  %v6012_v42 = vld [vmem:[%s6134_s28 + $0xa0] sm:$0xf] }
 0x11f   : > { %v2263_v23 = vshll.u32 %v5272_v20, 16 }
 0x120   : > { %v1481_v52 = vpop.f32.mrf.mxu2  ;;  %v6881_v51 = vadd.f32 %v2507_v14, %v1866_v12  ;;  %v6888_v14 = vsel %vm6149_vm2, %v2237_v15, %v2241_v54  ;;  %v5743_v12 = vld [vmem:[%s6134_s28 + $0x90] sm:$0xff] }
 0x121   : > { %v1552_v17 = vadd.f32 %v1481_v52, %v1101_v59  ;;  %v2247_v59 = vrot.slane %v2246_v9, 4  ;;  %7829 = vst [vmem:[#allocation25_spill] sm:$0xff] %v6888_v14  ;;  %v2254_v9 = vshrl.u32 %v5271_v55, 16  ;;  %v2398_v15 = vunpack.c.l.b16 %v6888_v14  ;;  %v5783_v55 = vld [vmem:[%s6134_s28 + $0x9c] sm:$0xff] }
 0x122   : > { %1835 = vmatmul.bf16.gmra.mxu3 %v5782_v19  ;;  %v1102_v21 = vpop.f32.mrf.mxu1  ;;  %v1389_v19 = vpack.c.b16 %v1370_v53, %v1369_v41 }
 0x123   : > { %v2510_v60 = vpop.f32.mrf.mxu0  ;;  %v1103_v7 = vadd.f32 %v1102_v21, %v6757_v49  ;;  %v6893_v49 = vsel %vm6149_vm2, %v2247_v59, %v2251_v5  ;;  %v1178_v21 = vld [vmem:[%s6134_s28 + $0x9c] sm:$0xe]  ;;  %v2265_v59 = vrot.slane %v2263_v23, 5 }
 0x124   : > { %7830 = vst [vmem:[#allocation26_spill] sm:$0xff] %v6893_v49  ;;  %v2399_v41 = vunpack.c.l.b16 %v6893_v49 }
 0x125   : > { %v1796_v52 = vpop.f32.mrf.mxu3 }
 0x126   : > { %2549 = vmatmul.bf16.gmra.mxu0 %v2417_v6  ;;  %v1867_v2 = vadd.f32 %v1796_v52, %v1552_v17  ;;  %v2267_v17 = vshrl.u32 %v5272_v20, 16  ;;  %v1309_v6 = vrot.slane %v6012_v42, 5  ;;  %v2418_v10 = vpack.c.b16 %v2399_v41, %v2398_v15 }
 0x128   : > { %v1483_v8 = vpop.f32.mrf.mxu2  ;;  %v6895_v3 = vadd.f32 %v2510_v60, %v1867_v2  ;;  %v2256_v60 = vrot.slane %v2254_v9, 4  ;;  %v2269_v5 = vrot.slane %v2267_v17, 4  ;;  %v5037_v2 = vrot.slane %v1178_v21, 9 }
 0x129   : > { %v1553_v0 = vadd.f32 %v1483_v8, %v1103_v7  ;;  %v2259_v7 = vrot.slane %v2257_v13, 5  ;;  %v1311_v20 = vrot.slane %v1309_v6, 4  ;;  %v6013_v8 = vld [vmem:[%s6134_s28 + $0xa4] sm:$0x1] }
 0x12a   : > { %v1105_v45 = vpop.f32.mrf.mxu1  ;;  %v1312_v42 = vrot.slane %v6013_v8, 5  ;;  %v1310_v9 = vsel %vm6449_vm5, %v5037_v2, %v1309_v6  ;;  %v2270_v13 = vor.u32 %v2269_v5, %v2265_v59 }
 0x12b   : > { %v2512_v54 = vpop.f32.mrf.mxu0  ;;  %v1106_v44 = vadd.f32 %v1105_v45, %v6583_v4  ;;  %v2260_v49 = vor.u32 %v2259_v7, %v2256_v60  ;;  %v5827_v4 = vld [vmem:[%s7766_s1 + $0x180] sm:$0xff] }
 0x12c   : > { %1144 = vmatmul.bf16.gmra.mxu1 %v5743_v12  ;;  %v5273_v12 = vld [vmem:[%s6134_s28 + $0xb0] sm:$0x1]  ;;  %3234 = vmatpush.bf16.msra.mxu2 %v5827_v4  ;;  %v2271_v15 = vrot.slane %v2270_v13, 4  ;;  %v5803_v60 = vld [vmem:[%s7766_s1 + $0x140] sm:$0xff] }
 0x12d   : > { %v1798_v53 = vpop.f32.mrf.mxu3  ;;  %1525 = vmatmul.bf16.gmra.mxu2 %v1389_v19  ;;  %v2273_v23 = vshll.u32 %v5273_v12, 16  ;;  %v2261_v6 = vrot.slane %v2260_v49, 4  ;;  %2919 = vmatpush.bf16.msra.mxu1 %v5803_v60  ;;  %v6014_v12 = vld [vmem:[%s6134_s28 + $0xac] sm:$0xf] }
 0x12e   : > { %v1868_v52 = vadd.f32 %v1798_v53, %v1553_v0  ;;  %v1313_v0 = vsel %vm6449_vm5, %v1311_v20, %v1312_v42  ;;  %v5835_v53 = vld [vmem:[%s7766_s1 + $0x1c0] sm:$0xff] }
 0x12f   : > { %v1372_v45 = vunpack.c.l.b16 %v1313_v0  ;;  %v2275_v41 = vrot.slane %v2273_v23, 5  ;;  %3916 = vmatpush.bf16.msra.mxu3 %v5835_v53  ;;  %v6928_v42 = vsel %vm6149_vm2, %v2261_v6, %v2265_v59  ;;  %v1179_v0 = vld [vmem:[%s6134_s28 + $0xa8] sm:$0xe] }
 0x130   : > { %v1486_v16 = vpop.f32.mrf.mxu2  ;;  %v6905_v62 = vadd.f32 %v2512_v54, %v1868_v52  ;;  %v5274_v54 = vld [vmem:[%s6134_s28 + $0xb4] sm:$0xf]  ;;  %v5744_v52 = vld [vmem:[%s6134_s28 + $0x9c] sm:$0xff]  ;;  %7831 = vst [vmem:[#allocation27_spill] sm:$0xff] %v6928_v42  ;;  %v5038_v6 = vrot.slane %v1179_v0, 9 }
 0x131   : > { %v1554_v14 = vadd.f32 %v1486_v16, %v1106_v44  ;;  %v1371_v44 = vunpack.c.l.b16 %v1310_v9 }
 0x132   : > { %1840 = vmatmul.bf16.gmra.mxu3 %v5783_v55  ;;  %v1107_v19 = vpop.f32.mrf.mxu1  ;;  %v5275_v55 = vld [vmem:[%s6134_s28 + $0xb8] sm:$0xf] }
 0x133   : > { %v2515_v17 = vpop.f32.mrf.mxu0  ;;  %v1108_v7 = vadd.f32 %v1107_v19, %v6602_v27  ;;  %v1390_v20 = vpack.c.b16 %v1372_v45, %v1371_v44  ;;  %v6932_v27 = vsel %vm6149_vm2, %v2271_v15, %v2275_v41  ;;  %v1316_v19 = vrot.slane %v6014_v12, 5  ;;  %v6015_v41 = vld [vmem:[%s6134_s28 + $0xb0] sm:$0x1] }
 0x134   : > { %7832 = vst [vmem:[#allocation28_spill] sm:$0xff] %v6932_v27  ;;  %v2287_v13 = vshll.u32 %v5275_v55, 16  ;;  %v2291_v23 = vshrl.u32 %v5275_v55, 16  ;;  %v2400_v44 = vunpack.c.l.b16 %v6928_v42  ;;  %v2401_v45 = vunpack.c.l.b16 %v6932_v27  ;;  %v5276_v55 = vld [vmem:[%s6134_s28 + $0xbc] sm:$0x1] }
 0x135   : > { %v1801_v16 = vpop.f32.mrf.mxu3  ;;  %v1318_v15 = vrot.slane %v1316_v19, 4  ;;  %v1319_v53 = vrot.slane %v6015_v41, 5  ;;  %v1317_v0 = vsel %vm6449_vm5, %v5038_v6, %v1316_v19 }
 0x136   : > { %2554 = vmatmul.bf16.gmra.mxu0 %v2418_v10  ;;  %v1869_v21 = vadd.f32 %v1801_v16, %v1554_v14  ;;  %v2278_v10 = vshrl.u32 %v5274_v54, 16  ;;  %v2281_v14 = vshll.u32 %v5274_v54, 16 }
 0x138   : > { %v1488_v5 = vpop.f32.mrf.mxu2  ;;  %v6924_v49 = vadd.f32 %v2515_v17, %v1869_v21  ;;  %v5843_v17 = vld [vmem:[%s7766_s1 + $0x200] sm:$0xff]  ;;  %v2280_v4 = vrot.slane %v2278_v10, 4  ;;  %v2283_v59 = vrot.slane %v2281_v14, 5  ;;  %v5784_v21 = vld [vmem:[%s6134_s28 + $0xa8] sm:$0xff] }
 0x139   : > { %v1555_v2 = vadd.f32 %v1488_v5, %v1108_v7  ;;  %4342 = vmatpush.bf16.msra.mxu0 %v5843_v17  ;;  %v2289_v7 = vrot.slane %v2287_v13, 5  ;;  %v2293_v5 = vrot.slane %v2291_v23, 4  ;;  %v2297_v23 = vshll.u32 %v5276_v55, 16 }
 0x13a   : > { %v1110_v8 = vpop.f32.mrf.mxu1  ;;  %v2284_v10 = vor.u32 %v2283_v59, %v2280_v4  ;;  %v1373_v59 = vunpack.c.l.b16 %v1317_v0 }
 0x13b   : > { %v2517_v9 = vpop.f32.mrf.mxu0  ;;  %v1111_v60 = vadd.f32 %v1110_v8, %v6626_v63  ;;  %v1320_v63 = vsel %vm6449_vm5, %v1318_v15, %v1319_v53  ;;  %v2294_v13 = vor.u32 %v2293_v5, %v2289_v7  ;;  %v2299_v15 = vrot.slane %v2297_v23, 5  ;;  %v5745_v53 = vld [vmem:[%s6134_s28 + $0xa8] sm:$0xff] }
 0x13c   : > { %1149 = vmatmul.bf16.gmra.mxu1 %v5744_v52  ;;  %v2285_v17 = vrot.slane %v2284_v10, 4 }
 0x13d   : > { %v1803_v16 = vpop.f32.mrf.mxu3  ;;  %1530 = vmatmul.bf16.gmra.mxu2 %v1390_v20  ;;  %v2295_v6 = vrot.slane %v2294_v13, 4 }
 0x13e   : > { %v1870_v54 = vadd.f32 %v1803_v16, %v1555_v2  ;;  %v2419_v2 = vpack.c.b16 %v2401_v45, %v2400_v44  ;;  %v5277_v16 = vld [vmem:[%s6134_s28 + $0xc0] sm:$0xf]  ;;  %v6016_v44 = vld [vmem:[%s6134_s28 + $0x10] sm:$0xf] }
 0x13f   : > { %v2673_v45 = vrot.slane %v6016_v44, 5  ;;  %v2302_v5 = vshrl.u32 %v5277_v16, 16 }
 0x140   : > { %v1491_v52 = vpop.f32.mrf.mxu2  ;;  %v6945_v20 = vadd.f32 %v2517_v9, %v1870_v54  ;;  %v1374_v9 = vunpack.c.l.b16 %v1320_v63 }
 0x141   : > { %v1556_v14 = vadd.f32 %v1491_v52, %v1111_v60  ;;  %v6958_v60 = vsel %vm6149_vm2, %v2285_v17, %v2289_v7  ;;  %v2305_v52 = vshll.u32 %v5277_v16, 16  ;;  %v2675_v23 = vrot.slane %v2673_v45, 4 }
 0x142   : > { %1845 = vmatmul.bf16.gmra.mxu3 %v5784_v21  ;;  %v1112_v12 = vpop.f32.mrf.mxu1  ;;  %v5278_v21 = vld [vmem:[%s6134_s28 + $0xc4] sm:$0xf]  ;;  %7833 = vst [vmem:[#allocation29_spill] sm:$0xff] %v6958_v60  ;;  %v6967_v7 = vsel %vm6149_vm2, %v2295_v6, %v2299_v15  ;;  %v2304_v17 = vrot.slane %v2302_v5, 4  ;;  %v6019_v15 = vld [vmem:[%s6134_s28 + $0xbc] sm:$0x1] }
 0x143   : > { %v2520_v8 = vpop.f32.mrf.mxu0  ;;  %v1113_v19 = vadd.f32 %v1112_v12, %v6652_v39  ;;  %v2315_v0 = vshrl.u32 %v5278_v21, 16  ;;  %v1180_v39 = vld [vmem:[%s6134_s28 + $0xb4] sm:$0xe]  ;;  %v6017_v12 = vld [vmem:[%s6134_s28 + $0xb8] sm:$0xf]  ;;  %7835 = vst [vmem:[#allocation31_spill] sm:$0xff] %v6967_v7  ;;  %v2403_v42 = vunpack.c.l.b16 %v6967_v7 }
 0x144   : > { %v1323_v13 = vrot.slane %v6017_v12, 5  ;;  %v7033_v7 = vld [vmem:[%s6134_s28 + $0x2c] sm:$0x1] }
 0x145   : > { %v1806_v4 = vpop.f32.mrf.mxu3 }
 0x146   : > { %2559 = vmatmul.bf16.gmra.mxu0 %v2419_v2  ;;  %v1871_v54 = vadd.f32 %v1806_v4, %v1556_v14  ;;  %v1391_v14 = vpack.c.b16 %v1374_v9, %v1373_v59  ;;  %v2311_v2 = vshll.u32 %v5278_v21, 16  ;;  %v6018_v4 = vld [vmem:[%s6134_s28 + $0x14] sm:$0x1]  ;;  %v2307_v59 = vrot.slane %v2305_v52, 5  ;;  %v5328_v9 = vld [vmem:[%s6134_s28 + $0xc] sm:$0xe] }
 0x147   : > { %v2676_v44 = vrot.slane %v6018_v4, 5  ;;  %v5785_v4 = vld [vmem:[%s6134_s28 + $0xb4] sm:$0xff]  ;;  %v1325_v6 = vrot.slane %v1323_v13, 4 }
 0x148   : > { %v1493_v41 = vpop.f32.mrf.mxu2  ;;  %v6960_v55 = vadd.f32 %v2520_v8, %v1871_v54  ;;  %v2402_v8 = vunpack.c.l.b16 %v6958_v60  ;;  %v5039_v54 = vrot.slane %v1180_v39, 9  ;;  %v2313_v21 = vrot.slane %v2311_v2, 5 }
 0x149   : > { %v1557_v10 = vadd.f32 %v1493_v41, %v1113_v19  ;;  %v2317_v19 = vrot.slane %v2315_v0, 4  ;;  %v5344_v41 = vrot.slane %v5328_v9, 9  ;;  %v2677_v52 = vsel %vm6449_vm5, %v2675_v23, %v2676_v44  ;;  %v5552_v23 = vld [vmem:[%s6134_s28 + $0x18] sm:$0xf] }
 0x14a   : > { %7834 = vst [vmem:[#allocation30_spill] sm:$0xff] %v6960_v55  ;;  %v1115_v63 = vpop.f32.mrf.mxu1  ;;  %v1326_v55 = vrot.slane %v6019_v15, 5  ;;  %v2308_v2 = vor.u32 %v2307_v59, %v2304_v17  ;;  %v2801_v0 = vunpack.c.l.b16 %v2677_v52  ;;  %v1324_v9 = vsel %vm6449_vm5, %v5039_v54, %v1323_v13  ;;  %v6990_v59 = vld [vmem:[%s6134_s28 + $0x1c] sm:$0xf]  ;;  %v5746_v52 = vld [vmem:[%s6134_s28 + $0xb4] sm:$0xff] }
 0x14b   : > { %v2522_v27 = vpop.f32.mrf.mxu0  ;;  %v1116_v60 = vadd.f32 %v1115_v63, %v6671_v1  ;;  %v2674_v5 = vsel %vm6449_vm5, %v5344_v41, %v2673_v45  ;;  %v2420_v1 = vpack.c.b16 %v2403_v42, %v2402_v8  ;;  %v3397_v42 = vshrl.u32 %v5552_v23, 16 }
 0x14c   : > { %1154 = vmatmul.bf16.gmra.mxu1 %v5745_v53  ;;  %v5279_v53 = vld [vmem:[%s6134_s28 + $0xc8] sm:$0x1]  ;;  %v1327_v45 = vsel %vm6449_vm5, %v1325_v6, %v1326_v55  ;;  %v3406_v55 = vshll.u32 %v6990_v59, 16 }
 0x14d   : > { %v1808_v16 = vpop.f32.mrf.mxu3  ;;  %1535 = vmatmul.bf16.gmra.mxu2 %v1391_v14  ;;  %v2321_v15 = vshll.u32 %v5279_v53, 16  ;;  %v1376_v54 = vunpack.c.l.b16 %v1327_v45  ;;  %v3400_v53 = vshll.u32 %v5552_v23, 16  ;;  %v5554_v45 = vld [vmem:[%s6134_s28 + $0x20] sm:$0x1] }
 0x14e   : > { %v1872_v12 = vadd.f32 %v1808_v16, %v1557_v10  ;;  %v2800_v10 = vunpack.c.l.b16 %v2674_v5  ;;  %v2318_v16 = vor.u32 %v2317_v19, %v2313_v21  ;;  %v2309_v5 = vrot.slane %v2308_v2, 4 }
 0x150   : > { %v1496_v14 = vpop.f32.mrf.mxu2  ;;  %v6984_v41 = vpack.c.b16 %v2801_v0, %v2800_v10  ;;  %v6987_v44 = vadd.f32 %v2522_v27, %v1872_v12  ;;  %v2319_v19 = vrot.slane %v2318_v16, 4  ;;  %v3410_v27 = vshrl.u32 %v6990_v59, 16 }
 0x151   : > { %v1558_v39 = vadd.f32 %v1496_v14, %v1116_v60  ;;  %v1375_v60 = vunpack.c.l.b16 %v1324_v9  ;;  %v7000_v0 = vsel %vm6149_vm2, %v2309_v5, %v2313_v21  ;;  %v3399_v16 = vrot.slane %v3397_v42, 4  ;;  %v5786_v5 = vld [vmem:[%s6134_s28 + $0xc0] sm:$0xff] }
 0x152   : > { %1850 = vmatmul.bf16.gmra.mxu3 %v5785_v4  ;;  %v1117_v63 = vpop.f32.mrf.mxu1  ;;  %v2323_v4 = vrot.slane %v2321_v15, 5  ;;  %7836 = vst [vmem:[#allocation32_spill] sm:$0xff] %v7000_v0  ;;  %v3402_v15 = vrot.slane %v3400_v53, 5 }
 0x153   : > { %v2525_v17 = vpop.f32.mrf.mxu0  ;;  %v1118_v12 = vadd.f32 %v1117_v63, %v6690_v35  ;;  %v1392_v10 = vpack.c.b16 %v1376_v54, %v1375_v60  ;;  %v3412_v35 = vrot.slane %v3410_v27, 4  ;;  %v7013_v27 = vld [vmem:[%s6134_s28 + $0x28] sm:$0xf] }
 0x155   : > { %v1811_v13 = vpop.f32.mrf.mxu3 }
 0x156   : > { %2564 = vmatmul.bf16.gmra.mxu0 %v2420_v1  ;;  %v1873_v8 = vadd.f32 %v1811_v13, %v1558_v39  ;;  %v7004_v39 = vsel %vm6149_vm2, %v2319_v19, %v2323_v4  ;;  %v3408_v1 = vrot.slane %v3406_v55, 5  ;;  %v3403_v13 = vor.u32 %v3402_v15, %v3399_v16  ;;  %v5648_v16 = vld [vmem:[%s6134_s28 + $0x18] sm:$0xe] }
 0x157   : > { %7837 = vst [vmem:[#allocation33_spill] sm:$0xff] %v7004_v39  ;;  %v2405_v21 = vunpack.c.l.b16 %v7004_v39  ;;  %v3416_v19 = vshll.u32 %v5554_v45, 16  ;;  %v4096_v15 = vrot.slane %v6990_v59, 5 }
 0x158   : > { %v1498_v6 = vpop.f32.mrf.mxu2  ;;  %v6996_v14 = vadd.f32 %v2525_v17, %v1873_v8  ;;  %v2404_v17 = vunpack.c.l.b16 %v7000_v0  ;;  %v3413_v54 = vor.u32 %v3412_v35, %v3408_v1  ;;  %v5555_v8 = vld [vmem:[%s6134_s28 + $0x24] sm:$0xf] }
 0x159   : > { %v1559_v2 = vadd.f32 %v1498_v6, %v1118_v12  ;;  %v3404_v6 = vrot.slane %v3403_v13, 4  ;;  %v3421_v35 = vshrl.u32 %v5555_v8, 16  ;;  %v4098_v13 = vrot.slane %v4096_v15, 4 }
 0x15a   : > { %v1120_v9 = vpop.f32.mrf.mxu1  ;;  %v2421_v53 = vpack.c.b16 %v2405_v21, %v2404_v17 }
 0x15b   : > { %v2527_v63 = vpop.f32.mrf.mxu0  ;;  %v1121_v4 = vadd.f32 %v1120_v9, %v6712_v24  ;;  %v3430_v24 = vshll.u32 %v7013_v27, 16  ;;  %v3434_v9 = vshrl.u32 %v7013_v27, 16 }
 0x15c   : > { %1159 = vmatmul.bf16.gmra.mxu1 %v5746_v52  ;;  %v3414_v52 = vrot.slane %v3413_v54, 4  ;;  %v4099_v54 = vrot.slane %v5554_v45, 5 }
 0x15d   : > { %v1813_v23 = vpop.f32.mrf.mxu3  ;;  %1540 = vmatmul.bf16.gmra.mxu2 %v1392_v10  ;;  %v3418_v10 = vrot.slane %v3416_v19, 5  ;;  %v3423_v19 = vrot.slane %v3421_v35, 4 }
 0x15e   : > { %v1874_v60 = vadd.f32 %v1813_v23, %v1559_v2  ;;  %v3424_v23 = vshll.u32 %v5555_v8, 16  ;;  %v7026_v8 = vrot.slane %v3430_v24, 5  ;;  %v4100_v35 = vsel %vm6449_vm5, %v4098_v13, %v4099_v54 }
 0x15f   : > { %v3440_v24 = vshll.u32 %v7033_v7, 16 }
 0x160   : > { %v1501_v42 = vpop.f32.mrf.mxu2  ;;  %v7015_v39 = vadd.f32 %v2527_v63, %v1874_v60  ;;  %v3419_v63 = vsel %vm6149_vm2, %v3414_v52, %v3418_v10  ;;  %v5664_v60 = vrot.slane %v5648_v16, 9  ;;  %v5329_v10 = vld [vmem:[%s6134_s28 + $0x18] sm:$0xe] }
 0x161   : > { %v1560_v55 = vadd.f32 %v1501_v42, %v1121_v4  ;;  %v3426_v42 = vrot.slane %v3424_v23, 5 }
 0x162   : > { %1855 = vmatmul.bf16.gmra.mxu3 %v5786_v5  ;;  %v1122_v12 = vpop.f32.mrf.mxu1  ;;  %v3409_v5 = vsel %vm6149_vm2, %v3404_v6, %v3408_v1  ;;  %v5811_v1 = vld [vmem:[%s6134_s28 + $0x18] sm:$0xff]  ;;  %v4097_v16 = vsel %vm6449_vm5, %v5664_v60, %v4096_v15  ;;  %v4224_v60 = vunpack.c.l.b16 %v4100_v35  ;;  %v7055_v35 = vld [vmem:[%s6134_s28 + $0x34] sm:$0xf] }
 0x163   : > { %v2530_v2 = vpop.f32.mrf.mxu0  ;;  %v1123_v59 = vadd.f32 %v1122_v12, %v6736_v33  ;;  %v6020_v6 = vld [vmem:[%s6134_s28 + $0x1c] sm:$0xf]  ;;  %v3797_v33 = vunpack.c.l.b16 %v3409_v5  ;;  %v3798_v12 = vunpack.c.l.b16 %v3419_v63  ;;  %v6021_v63 = vld [vmem:[%s6134_s28 + $0x20] sm:$0x1]  ;;  %v4223_v15 = vunpack.c.l.b16 %v4097_v16  ;;  %v5558_v16 = vld [vmem:[%s6134_s28 + $0x30] sm:$0xf] }
 0x164   : > { %v2680_v0 = vrot.slane %v6020_v6, 5 }
 0x165   : > { %v1816_v17 = vpop.f32.mrf.mxu3  ;;  %v3829_v6 = vpack.c.b16 %v3798_v12, %v3797_v33  ;;  %v4255_v33 = vpack.c.b16 %v4224_v60, %v4223_v15  ;;  %v3458_v15 = vshrl.u32 %v7055_v35, 16 }
 0x166   : > { %2569 = vmatmul.bf16.gmra.mxu0 %v2421_v53  ;;  %v1875_v21 = vadd.f32 %v1816_v17, %v1560_v55  ;;  %v3436_v53 = vrot.slane %v3434_v9, 4  ;;  %v2682_v5 = vrot.slane %v2680_v0, 4 }
 0x168   : > { %v1503_v4 = vpop.f32.mrf.mxu2  ;;  %v7028_v55 = vadd.f32 %v2530_v2, %v1875_v21  ;;  %v3427_v2 = vor.u32 %v3426_v42, %v3423_v19  ;;  %v3437_v23 = vor.u32 %v3436_v53, %v7026_v8  ;;  %v5345_v21 = vrot.slane %v5329_v10, 9 }
 0x169   : > { %v1561_v17 = vadd.f32 %v1503_v4, %v1123_v59  ;;  %v2683_v59 = vrot.slane %v6021_v63, 5  ;;  %v3442_v42 = vrot.slane %v3440_v24, 5  ;;  %v5649_v63 = vld [vmem:[%s6134_s28 + $0x24] sm:$0xe] }
 0x16a   : > { %v1125_v52 = vpop.f32.mrf.mxu1  ;;  %v3428_v54 = vrot.slane %v3427_v2, 4  ;;  %v3438_v19 = vrot.slane %v3437_v23, 4  ;;  %v5665_v24 = vrot.slane %v5649_v63, 9  ;;  %v5330_v63 = vld [vmem:[%s6134_s28 + $0x24] sm:$0xe] }
 0x16b   : > { %v2532_v45 = vpop.f32.mrf.mxu0  ;;  %v1126_v13 = vadd.f32 %v1125_v52, %v6597_v32  ;;  %v2684_v10 = vsel %vm6449_vm5, %v2682_v5, %v2683_v59  ;;  %v3445_v5 = vshrl.u32 %v5558_v16, 16 }
 0x16c   : > { %2920 = vmatmul.bf16.vlgmr.msra.gmra.mxu1 %v6984_v41  ;;  %v2803_v23 = vunpack.c.l.b16 %v2684_v10  ;;  %v5812_v10 = vld [vmem:[%s6134_s28 + $0x24] sm:$0xff] }
 0x16d   : > { %v1818_v9 = vpop.f32.mrf.mxu3  ;;  %3235 = vmatmul.bf16.vlgmr.msra.gmra.mxu2 %v5811_v1  ;;  %v2681_v1 = vsel %vm6449_vm5, %v5345_v21, %v2680_v0  ;;  %v3433_v0 = vsel %vm6149_vm2, %v3428_v54, %v7026_v8  ;;  %v6022_v54 = vld [vmem:[%s6134_s28 + $0x28] sm:$0xf] }
 0x16e   : > { %v1876_v4 = vadd.f32 %v1818_v9, %v1561_v17  ;;  %v4103_v17 = vrot.slane %v7013_v27, 5  ;;  %v2802_v2 = vunpack.c.l.b16 %v2681_v1  ;;  %v3443_v27 = vsel %vm6149_vm2, %v3438_v19, %v3442_v42 }
 0x16f   : > { %v2687_v19 = vrot.slane %v6022_v54, 5 }
 0x170   : > { %v1506_v41 = vpop.f32.mrf.mxu2  ;;  %v7052_v32 = vadd.f32 %v2532_v45, %v1876_v4  ;;  %v4105_v21 = vrot.slane %v4103_v17, 4  ;;  %v3448_v45 = vshll.u32 %v5558_v16, 16  ;;  %v4106_v4 = vrot.slane %v7033_v7, 5 }
 0x171   : > { %v1562_v53 = vadd.f32 %v1506_v41, %v1126_v13  ;;  %v2833_v13 = vpack.c.b16 %v2803_v23, %v2802_v2  ;;  %v3799_v41 = vunpack.c.l.b16 %v3433_v0  ;;  %v3447_v7 = vrot.slane %v3445_v5, 4 }
 0x172   : > { %3917 = vmatmul.bf16.vlgmr.msra.gmra.mxu3 %v3829_v6  ;;  %v1127_v12 = vpop.f32.mrf.mxu1  ;;  %v3454_v6 = vshll.u32 %v7055_v35, 16  ;;  %v3460_v2 = vrot.slane %v3458_v15, 4  ;;  %v5346_v0 = vrot.slane %v5330_v63, 9  ;;  %v5561_v63 = vld [vmem:[%s6134_s28 + $0x3c] sm:$0xf] }
 0x173   : > { %v2535_v52 = vpop.f32.mrf.mxu0  ;;  %v1128_v8 = vadd.f32 %v1127_v12, %v6621_v56  ;;  %v4107_v56 = vsel %vm6449_vm5, %v4105_v21, %v4106_v4 }
 0x174   : > { %v7075_v12 = vrot.slane %v3454_v6, 5  ;;  %v2688_v54 = vsel %vm6449_vm5, %v5346_v0, %v2687_v19 }
 0x175   : > { %v1821_v9 = vpop.f32.mrf.mxu3 }
 0x176   : > { %4343 = vmatmul.bf16.vlgmr.msra.gmra.mxu0 %v4255_v33  ;;  %v1877_v59 = vadd.f32 %v1821_v9, %v1562_v53  ;;  %v3800_v53 = vunpack.c.l.b16 %v3443_v27  ;;  %v3450_v33 = vrot.slane %v3448_v45, 5  ;;  %v4104_v9 = vsel %vm6449_vm5, %v5665_v24, %v4103_v17  ;;  %v6023_v27 = vld [vmem:[%s6134_s28 + $0x2c] sm:$0x1] }
 0x177   : > { %v2690_v5 = vrot.slane %v6023_v27, 5  ;;  %v4226_v17 = vunpack.c.l.b16 %v4107_v56  ;;  %v3461_v4 = vor.u32 %v3460_v2, %v7075_v12  ;;  %v5650_v27 = vld [vmem:[%s6134_s28 + $0x30] sm:$0xe] }
 0x178   : > { %v1508_v60 = vpop.f32.mrf.mxu2  ;;  %v7067_v42 = vadd.f32 %v2535_v52, %v1877_v59  ;;  %v7078_v52 = vld [vmem:[%s6134_s28 + $0x38] sm:$0x1]  ;;  %v2689_v59 = vrot.slane %v2687_v19, 4  ;;  %v3451_v24 = vor.u32 %v3450_v33, %v3447_v7  ;;  %v3830_v21 = vpack.c.b16 %v3800_v53, %v3799_v41 }
 0x179   : > { %v1563_v1 = vadd.f32 %v1508_v60, %v1128_v8  ;;  %v4225_v8 = vunpack.c.l.b16 %v4104_v9  ;;  %v3464_v6 = vshll.u32 %v7078_v52, 16  ;;  %v3462_v53 = vrot.slane %v3461_v4, 4 }
 0x17a   : > { %v1130_v16 = vpop.f32.mrf.mxu1  ;;  %v3452_v7 = vrot.slane %v3451_v24, 4  ;;  %v2804_v19 = vunpack.c.l.b16 %v2688_v54 }
 0x17b   : > { %v2537_v23 = vpop.f32.mrf.mxu0  ;;  %v1131_v15 = vadd.f32 %v1130_v16, %v6647_v29  ;;  %v4256_v9 = vpack.c.b16 %v4226_v17, %v4225_v8  ;;  %v3466_v33 = vrot.slane %v3464_v6, 5  ;;  %v4110_v29 = vrot.slane %v7055_v35, 5 }
 0x17c   : > { %2925 = vmatmul.bf16.gmra.mxu1 %v2833_v13  ;;  %v3457_v24 = vsel %vm6149_vm2, %v3452_v7, %v7075_v12  ;;  %v5813_v7 = vld [vmem:[%s6134_s28 + $0x30] sm:$0xff] }
 0x17d   : > { %v1823_v45 = vpop.f32.mrf.mxu3  ;;  %3240 = vmatmul.bf16.gmra.mxu2 %v5812_v10  ;;  %v2691_v10 = vsel %vm6449_vm5, %v2689_v59, %v2690_v5  ;;  %v3472_v59 = vshll.u32 %v5561_v63, 16 }
 0x17e   : > { %v1878_v60 = vadd.f32 %v1823_v45, %v1563_v1  ;;  %v7090_v1 = vld [vmem:[%s6134_s28 + $0x40] sm:$0xf]  ;;  %v2805_v0 = vunpack.c.l.b16 %v2691_v10  ;;  %v3469_v45 = vshrl.u32 %v5561_v63, 16 }
 0x17f   : > { %v3478_v5 = vshll.u32 %v7090_v1, 16  ;;  %v3482_v8 = vshrl.u32 %v7090_v1, 16  ;;  %v3474_v10 = vrot.slane %v3472_v59, 5 }
 0x180   : > { %v1511_v13 = vpop.f32.mrf.mxu2  ;;  %v7093_v16 = vadd.f32 %v2537_v23, %v1878_v60  ;;  %v3467_v23 = vsel %vm6149_vm2, %v3462_v53, %v3466_v33  ;;  %v5666_v60 = vrot.slane %v5650_v27, 9  ;;  %v2834_v6 = vpack.c.b16 %v2805_v0, %v2804_v19  ;;  %v6024_v53 = vld [vmem:[%s6134_s28 + $0x34] sm:$0xf]  ;;  %v7112_v27 = vld [vmem:[%s6134_s28 + $0x44] sm:$0x1] }
 0x181   : > { %v1564_v56 = vadd.f32 %v1511_v13, %v1131_v15  ;;  %v4113_v15 = vrot.slane %v7078_v52, 5  ;;  %v3471_v13 = vrot.slane %v3469_v45, 4  ;;  %v7105_v12 = vrot.slane %v3478_v5, 5  ;;  %v5331_v0 = vld [vmem:[%s6134_s28 + $0x30] sm:$0xe] }
 0x182   : > { %3922 = vmatmul.bf16.gmra.mxu3 %v3830_v21  ;;  %v1132_v41 = vpop.f32.mrf.mxu1  ;;  %v4112_v21 = vrot.slane %v4110_v29, 4  ;;  %v3484_v63 = vrot.slane %v3482_v8, 4  ;;  %v2694_v33 = vrot.slane %v6024_v53, 5  ;;  %v3802_v19 = vunpack.c.l.b16 %v3467_v23  ;;  %v6025_v23 = vld [vmem:[%s6134_s28 + $0x38] sm:$0x1] }
 0x183   : > { %v2540_v2 = vpop.f32.mrf.mxu0  ;;  %v1133_v4 = vadd.f32 %v1132_v41, %v6662_v58  ;;  %v3801_v41 = vunpack.c.l.b16 %v3457_v24  ;;  %v4111_v45 = vsel %vm6449_vm5, %v5666_v60, %v4110_v29  ;;  %v3488_v8 = vshll.u32 %v7112_v27, 16 }
 0x184   : > { %v4114_v59 = vsel %vm6449_vm5, %v4112_v21, %v4113_v15  ;;  %v3485_v5 = vor.u32 %v3484_v63, %v7105_v12  ;;  %v2696_v24 = vrot.slane %v2694_v33, 4  ;;  %v4227_v29 = vunpack.c.l.b16 %v4111_v45  ;;  %v5564_v45 = vld [vmem:[%s6134_s28 + $0x48] sm:$0xf] }
 0x185   : > { %v1826_v17 = vpop.f32.mrf.mxu3  ;;  %v3831_v53 = vpack.c.b16 %v3802_v19, %v3801_v41  ;;  %v4228_v60 = vunpack.c.l.b16 %v4114_v59  ;;  %v7133_v59 = vld [vmem:[%s6134_s28 + $0x4c] sm:$0xf] }
 0x186   : > { %4348 = vmatmul.bf16.gmra.mxu0 %v4256_v9  ;;  %v1879_v35 = vadd.f32 %v1826_v17, %v1564_v56 }
 0x187   : > { %v4257_v41 = vpack.c.b16 %v4228_v60, %v4227_v29  ;;  %v3506_v29 = vshrl.u32 %v7133_v59, 16 }
 0x188   : > { %v1513_v54 = vpop.f32.mrf.mxu2  ;;  %v7107_v9 = vadd.f32 %v2540_v2, %v1879_v35  ;;  %v3475_v2 = vor.u32 %v3474_v10, %v3471_v13  ;;  %v5347_v35 = vrot.slane %v5331_v0, 9  ;;  %v3486_v13 = vrot.slane %v3485_v5, 4 }
 0x189   : > { %v1565_v56 = vadd.f32 %v1513_v54, %v1133_v4  ;;  %v2697_v4 = vrot.slane %v6025_v23, 5  ;;  %v3490_v10 = vrot.slane %v3488_v8, 5  ;;  %v5651_v23 = vld [vmem:[%s6134_s28 + $0x3c] sm:$0xe] }
 0x18a   : > { %v1135_v58 = vpop.f32.mrf.mxu1  ;;  %v3476_v15 = vrot.slane %v3475_v2, 4  ;;  %v5667_v8 = vrot.slane %v5651_v23, 9  ;;  %v5332_v23 = vld [vmem:[%s6134_s28 + $0x3c] sm:$0xe] }
 0x18b   : > { %v2542_v52 = vpop.f32.mrf.mxu0  ;;  %v1136_v21 = vadd.f32 %v1135_v58, %v6683_v40  ;;  %v2698_v0 = vsel %vm6449_vm5, %v2696_v24, %v2697_v4  ;;  %v3493_v24 = vshrl.u32 %v5564_v45, 16 }
 0x18c   : > { %2930 = vmatmul.bf16.gmra.mxu1 %v2834_v6  ;;  %v2807_v5 = vunpack.c.l.b16 %v2698_v0  ;;  %v5814_v0 = vld [vmem:[%s6134_s28 + $0x3c] sm:$0xff] }
 0x18d   : > { %v1828_v17 = vpop.f32.mrf.mxu3  ;;  %3245 = vmatmul.bf16.gmra.mxu2 %v5813_v7  ;;  %v2695_v7 = vsel %vm6449_vm5, %v5347_v35, %v2694_v33  ;;  %v3481_v33 = vsel %vm6149_vm2, %v3476_v15, %v7105_v12  ;;  %v6026_v15 = vld [vmem:[%s6134_s28 + $0x40] sm:$0xf] }
 0x18e   : > { %v1880_v54 = vadd.f32 %v1828_v17, %v1565_v56  ;;  %v4117_v56 = vrot.slane %v7090_v1, 5  ;;  %v2806_v2 = vunpack.c.l.b16 %v2695_v7  ;;  %v3491_v1 = vsel %vm6149_vm2, %v3486_v13, %v3490_v10 }
 0x18f   : > { %v2701_v13 = vrot.slane %v6026_v15, 5 }
 0x190   : > { %v1516_v6 = vpop.f32.mrf.mxu2  ;;  %v7130_v40 = vadd.f32 %v2542_v52, %v1880_v54  ;;  %v4119_v35 = vrot.slane %v4117_v56, 4  ;;  %v3496_v52 = vshll.u32 %v5564_v45, 16  ;;  %v4120_v54 = vrot.slane %v7112_v27, 5 }
 0x191   : > { %v1566_v63 = vadd.f32 %v1516_v6, %v1136_v21  ;;  %v2835_v21 = vpack.c.b16 %v2807_v5, %v2806_v2  ;;  %v3803_v6 = vunpack.c.l.b16 %v3481_v33  ;;  %v3495_v27 = vrot.slane %v3493_v24, 4 }
 0x192   : > { %3927 = vmatmul.bf16.gmra.mxu3 %v3831_v53  ;;  %v1137_v19 = vpop.f32.mrf.mxu1  ;;  %v3502_v53 = vshll.u32 %v7133_v59, 16  ;;  %v3508_v2 = vrot.slane %v3506_v29, 4  ;;  %v5348_v33 = vrot.slane %v5332_v23, 9  ;;  %v5567_v23 = vld [vmem:[%s6134_s28 + $0x54] sm:$0xf] }
 0x193   : > { %v2545_v58 = vpop.f32.mrf.mxu0  ;;  %v1138_v12 = vadd.f32 %v1137_v19, %v6706_v50  ;;  %v4121_v50 = vsel %vm6449_vm5, %v4119_v35, %v4120_v54 }
 0x194   : > { %v7153_v19 = vrot.slane %v3502_v53, 5  ;;  %v2702_v15 = vsel %vm6449_vm5, %v5348_v33, %v2701_v13 }
 0x195   : > { %v1831_v17 = vpop.f32.mrf.mxu3 }
 0x196   : > { %4353 = vmatmul.bf16.gmra.mxu0 %v4257_v41  ;;  %v1881_v4 = vadd.f32 %v1831_v17, %v1566_v63  ;;  %v3804_v63 = vunpack.c.l.b16 %v3491_v1  ;;  %v3498_v41 = vrot.slane %v3496_v52, 5  ;;  %v4118_v17 = vsel %vm6449_vm5, %v5667_v8, %v4117_v56  ;;  %v6027_v1 = vld [vmem:[%s6134_s28 + $0x44] sm:$0x1] }
 0x197   : > { %v2704_v24 = vrot.slane %v6027_v1, 5  ;;  %v4230_v56 = vunpack.c.l.b16 %v4121_v50  ;;  %v3509_v54 = vor.u32 %v3508_v2, %v7153_v19  ;;  %v5652_v1 = vld [vmem:[%s6134_s28 + $0x48] sm:$0xe] }
 0x198   : > { %v1518_v60 = vpop.f32.mrf.mxu2  ;;  %v7145_v10 = vadd.f32 %v2545_v58, %v1881_v4  ;;  %v7156_v58 = vld [vmem:[%s6134_s28 + $0x50] sm:$0x1]  ;;  %v2703_v4 = vrot.slane %v2701_v13, 4  ;;  %v3499_v8 = vor.u32 %v3498_v41, %v3495_v27  ;;  %v3832_v35 = vpack.c.b16 %v3804_v63, %v3803_v6 }
 0x199   : > { %v1567_v7 = vadd.f32 %v1518_v60, %v1138_v12  ;;  %v4229_v12 = vunpack.c.l.b16 %v4118_v17  ;;  %v3512_v53 = vshll.u32 %v7156_v58, 16  ;;  %v3510_v63 = vrot.slane %v3509_v54, 4 }
 0x19a   : > { %v1140_v45 = vpop.f32.mrf.mxu1  ;;  %v3500_v27 = vrot.slane %v3499_v8, 4  ;;  %v2808_v13 = vunpack.c.l.b16 %v2702_v15 }
 0x19b   : > { %v2547_v5 = vpop.f32.mrf.mxu0  ;;  %v1141_v29 = vadd.f32 %v1140_v45, %v6733_v38  ;;  %v4258_v17 = vpack.c.b16 %v4230_v56, %v4229_v12  ;;  %v3514_v41 = vrot.slane %v3512_v53, 5  ;;  %v4124_v38 = vrot.slane %v7133_v59, 5 }
 0x19c   : > { %2935 = vmatmul.bf16.gmra.mxu1 %v2835_v21  ;;  %v3505_v8 = vsel %vm6149_vm2, %v3500_v27, %v7153_v19  ;;  %v5815_v27 = vld [vmem:[%s6134_s28 + $0x48] sm:$0xff] }
 0x19d   : > { %v1833_v52 = vpop.f32.mrf.mxu3  ;;  %3250 = vmatmul.bf16.gmra.mxu2 %v5814_v0  ;;  %v2705_v0 = vsel %vm6449_vm5, %v2703_v4, %v2704_v24  ;;  %v3520_v4 = vshll.u32 %v5567_v23, 16 }
 0x19e   : > { %v1882_v60 = vadd.f32 %v1833_v52, %v1567_v7  ;;  %v7168_v7 = vld [vmem:[%s6134_s28 + $0x58] sm:$0xf]  ;;  %v2809_v33 = vunpack.c.l.b16 %v2705_v0  ;;  %v3517_v52 = vshrl.u32 %v5567_v23, 16 }
 0x19f   : > { %v3526_v24 = vshll.u32 %v7168_v7, 16  ;;  %v3530_v12 = vshrl.u32 %v7168_v7, 16  ;;  %v3522_v0 = vrot.slane %v3520_v4, 5 }
 0x1a0   : > { %v1521_v21 = vpop.f32.mrf.mxu2  ;;  %v7171_v45 = vadd.f32 %v2547_v5, %v1882_v60  ;;  %v3515_v5 = vsel %vm6149_vm2, %v3510_v63, %v3514_v41  ;;  %v5668_v60 = vrot.slane %v5652_v1, 9  ;;  %v2836_v53 = vpack.c.b16 %v2809_v33, %v2808_v13  ;;  %v6028_v63 = vld [vmem:[%s6134_s28 + $0x4c] sm:$0xf]  ;;  %v7190_v1 = vld [vmem:[%s6134_s28 + $0x5c] sm:$0x1] }
 0x1a1   : > { %v1568_v50 = vadd.f32 %v1521_v21, %v1141_v29  ;;  %v4127_v29 = vrot.slane %v7156_v58, 5  ;;  %v3519_v21 = vrot.slane %v3517_v52, 4  ;;  %v7183_v19 = vrot.slane %v3526_v24, 5  ;;  %v5333_v33 = vld [vmem:[%s6134_s28 + $0x48] sm:$0xe] }
 0x1a2   : > { %3932 = vmatmul.bf16.gmra.mxu3 %v3832_v35  ;;  %v1142_v6 = vpop.f32.mrf.mxu1  ;;  %v4126_v35 = vrot.slane %v4124_v38, 4  ;;  %v3532_v23 = vrot.slane %v3530_v12, 4  ;;  %v2708_v41 = vrot.slane %v6028_v63, 5  ;;  %v3806_v13 = vunpack.c.l.b16 %v3515_v5  ;;  %v6029_v5 = vld [vmem:[%s6134_s28 + $0x50] sm:$0x1] }
 0x1a3   : > { %v2550_v2 = vpop.f32.mrf.mxu0  ;;  %v1143_v54 = vadd.f32 %v1142_v6, %v6748_v31  ;;  %v3805_v6 = vunpack.c.l.b16 %v3505_v8  ;;  %v4125_v52 = vsel %vm6449_vm5, %v5668_v60, %v4124_v38  ;;  %v3536_v12 = vshll.u32 %v7190_v1, 16 }
 0x1a4   : > { %v4128_v4 = vsel %vm6449_vm5, %v4126_v35, %v4127_v29  ;;  %v3533_v24 = vor.u32 %v3532_v23, %v7183_v19  ;;  %v2710_v8 = vrot.slane %v2708_v41, 4  ;;  %v4231_v38 = vunpack.c.l.b16 %v4125_v52  ;;  %v5570_v52 = vld [vmem:[%s6134_s28 + $0x60] sm:$0xf] }
 0x1a5   : > { %v1836_v56 = vpop.f32.mrf.mxu3  ;;  %v3833_v63 = vpack.c.b16 %v3806_v13, %v3805_v6  ;;  %v4232_v60 = vunpack.c.l.b16 %v4128_v4  ;;  %v7211_v4 = vld [vmem:[%s6134_s28 + $0x64] sm:$0xf] }
 0x1a6   : > { %4358 = vmatmul.bf16.gmra.mxu0 %v4258_v17  ;;  %v1883_v59 = vadd.f32 %v1836_v56, %v1568_v50 }
 0x1a7   : > { %v4259_v6 = vpack.c.b16 %v4232_v60, %v4231_v38  ;;  %v3554_v38 = vshrl.u32 %v7211_v4, 16 }
 0x1a8   : > { %v1523_v15 = vpop.f32.mrf.mxu2  ;;  %v7185_v17 = vadd.f32 %v2550_v2, %v1883_v59  ;;  %v3523_v2 = vor.u32 %v3522_v0, %v3519_v21  ;;  %v5349_v59 = vrot.slane %v5333_v33, 9  ;;  %v3534_v21 = vrot.slane %v3533_v24, 4 }
 0x1a9   : > { %v1569_v50 = vadd.f32 %v1523_v15, %v1143_v54  ;;  %v2711_v54 = vrot.slane %v6029_v5, 5  ;;  %v3538_v0 = vrot.slane %v3536_v12, 5  ;;  %v5653_v5 = vld [vmem:[%s6134_s28 + $0x54] sm:$0xe] }
 0x1aa   : > { %v1145_v31 = vpop.f32.mrf.mxu1  ;;  %v3524_v29 = vrot.slane %v3523_v2, 4  ;;  %v5669_v12 = vrot.slane %v5653_v5, 9  ;;  %v5334_v5 = vld [vmem:[%s6134_s28 + $0x54] sm:$0xe] }
 0x1ab   : > { %v2552_v58 = vpop.f32.mrf.mxu0  ;;  %v1146_v35 = vadd.f32 %v1145_v31, %v6600_v34  ;;  %v2712_v33 = vsel %vm6449_vm5, %v2710_v8, %v2711_v54  ;;  %v3541_v8 = vshrl.u32 %v5570_v52, 16 }
 0x1ac   : > { %2940 = vmatmul.bf16.gmra.mxu1 %v2836_v53  ;;  %v2811_v24 = vunpack.c.l.b16 %v2712_v33  ;;  %v5816_v33 = vld [vmem:[%s6134_s28 + $0x54] sm:$0xff] }
 0x1ad   : > { %v1838_v56 = vpop.f32.mrf.mxu3  ;;  %3255 = vmatmul.bf16.gmra.mxu2 %v5815_v27  ;;  %v2709_v27 = vsel %vm6449_vm5, %v5349_v59, %v2708_v41  ;;  %v3529_v41 = vsel %vm6149_vm2, %v3524_v29, %v7183_v19  ;;  %v6030_v29 = vld [vmem:[%s6134_s28 + $0x58] sm:$0xf] }
 0x1ae   : > { %v1884_v15 = vadd.f32 %v1838_v56, %v1569_v50  ;;  %v4131_v50 = vrot.slane %v7168_v7, 5  ;;  %v2810_v2 = vunpack.c.l.b16 %v2709_v27  ;;  %v3539_v7 = vsel %vm6149_vm2, %v3534_v21, %v3538_v0 }
 0x1af   : > { %v2715_v21 = vrot.slane %v6030_v29, 5 }
 0x1b0   : > { %v1526_v53 = vpop.f32.mrf.mxu2  ;;  %v7208_v34 = vadd.f32 %v2552_v58, %v1884_v15  ;;  %v4133_v59 = vrot.slane %v4131_v50, 4  ;;  %v3544_v58 = vshll.u32 %v5570_v52, 16  ;;  %v4134_v15 = vrot.slane %v7190_v1, 5 }
 0x1b1   : > { %v1570_v23 = vadd.f32 %v1526_v53, %v1146_v35  ;;  %v2837_v35 = vpack.c.b16 %v2811_v24, %v2810_v2  ;;  %v3807_v53 = vunpack.c.l.b16 %v3529_v41  ;;  %v3543_v1 = vrot.slane %v3541_v8, 4  ;;  %v7232_v41 = vld [vmem:[%s6134_s28 + $0x68] sm:$0x1] }
 0x1b2   : > { %3937 = vmatmul.bf16.gmra.mxu3 %v3833_v63  ;;  %v1147_v13 = vpop.f32.mrf.mxu1  ;;  %v3550_v63 = vshll.u32 %v7211_v4, 16  ;;  %v3556_v2 = vrot.slane %v3554_v38, 4 }
 0x1b3   : > { %v2555_v31 = vpop.f32.mrf.mxu0  ;;  %v1148_v19 = vadd.f32 %v1147_v13, %v6623_v57  ;;  %v4135_v57 = vsel %vm6449_vm5, %v4133_v59, %v4134_v15  ;;  %v3560_v15 = vshll.u32 %v7232_v41, 16 }
 0x1b4   : > { %v3552_v13 = vrot.slane %v3550_v63, 5 }
 0x1b5   : > { %v1841_v56 = vpop.f32.mrf.mxu3 }
 0x1b6   : > { %4363 = vmatmul.bf16.gmra.mxu0 %v4259_v6  ;;  %v1885_v54 = vadd.f32 %v1841_v56, %v1570_v23  ;;  %v3808_v23 = vunpack.c.l.b16 %v3539_v7  ;;  %v3546_v6 = vrot.slane %v3544_v58, 5  ;;  %v4132_v56 = vsel %vm6449_vm5, %v5669_v12, %v4131_v50  ;;  %v6031_v7 = vld [vmem:[%s6134_s28 + $0x5c] sm:$0x1] }
 0x1b7   : > { %v4233_v58 = vunpack.c.l.b16 %v4132_v56  ;;  %v3557_v59 = vor.u32 %v3556_v2, %v3552_v13 }
 0x1b8   : > { %v1528_v60 = vpop.f32.mrf.mxu2  ;;  %v7223_v0 = vadd.f32 %v2555_v31, %v1885_v54  ;;  %v5350_v31 = vrot.slane %v5334_v5, 9  ;;  %v2717_v54 = vrot.slane %v2715_v21, 4  ;;  %v3547_v50 = vor.u32 %v3546_v6, %v3543_v1  ;;  %v7243_v1 = vld [vmem:[%s6134_s28 + $0x70] sm:$0xf] }
 0x1b9   : > { %v1571_v27 = vadd.f32 %v1528_v60, %v1148_v19  ;;  %v2718_v19 = vrot.slane %v6031_v7, 5  ;;  %v4234_v60 = vunpack.c.l.b16 %v4135_v57  ;;  %v3834_v29 = vpack.c.b16 %v3808_v23, %v3807_v53 }
 0x1ba   : > { %v1150_v52 = vpop.f32.mrf.mxu1  ;;  %v3548_v57 = vrot.slane %v3547_v50, 4  ;;  %v3562_v23 = vrot.slane %v3560_v15, 5 }
 0x1bb   : > { %v2557_v24 = vpop.f32.mrf.mxu0  ;;  %v1151_v63 = vadd.f32 %v1150_v52, %v6650_v36  ;;  %v2719_v5 = vsel %vm6449_vm5, %v2717_v54, %v2718_v19  ;;  %v4260_v7 = vpack.c.b16 %v4234_v60, %v4233_v58  ;;  %v4138_v36 = vrot.slane %v7211_v4, 5 }
 0x1bc   : > { %2945 = vmatmul.bf16.gmra.mxu1 %v2837_v35  ;;  %v2716_v35 = vsel %vm6449_vm5, %v5350_v31, %v2715_v21  ;;  %v2813_v2 = vunpack.c.l.b16 %v2719_v5  ;;  %v5654_v31 = vld [vmem:[%s6134_s28 + $0x60] sm:$0xe]  ;;  %v3574_v19 = vshll.u32 %v7243_v1, 16  ;;  %v3578_v58 = vshrl.u32 %v7243_v1, 16 }
 0x1bd   : > { %v1843_v8 = vpop.f32.mrf.mxu3  ;;  %3260 = vmatmul.bf16.gmra.mxu2 %v5816_v33  ;;  %v5573_v33 = vld [vmem:[%s6134_s28 + $0x6c] sm:$0xf]  ;;  %v2812_v21 = vunpack.c.l.b16 %v2716_v35  ;;  %v3553_v50 = vsel %vm6149_vm2, %v3548_v57, %v3552_v13  ;;  %v5817_v57 = vld [vmem:[%s6134_s28 + $0x60] sm:$0xff] }
 0x1be   : > { %v1886_v12 = vadd.f32 %v1843_v8, %v1571_v27  ;;  %v3558_v27 = vrot.slane %v3557_v59, 4  ;;  %v3565_v8 = vshrl.u32 %v5573_v33, 16  ;;  %v3568_v54 = vshll.u32 %v5573_v33, 16 }
 0x1bf   : > { %v2838_v15 = vpack.c.b16 %v2813_v2, %v2812_v21  ;;  %v7257_v13 = vrot.slane %v3574_v19, 5  ;;  %v3580_v33 = vrot.slane %v3578_v58, 4  ;;  %v5335_v21 = vld [vmem:[%s6134_s28 + $0x60] sm:$0xe]  ;;  %v7265_v2 = vld [vmem:[%s6134_s28 + $0x74] sm:$0x1] }
 0x1c0   : > { %v1531_v38 = vpop.f32.mrf.mxu2  ;;  %v7246_v6 = vadd.f32 %v2557_v24, %v1886_v12  ;;  %v3563_v24 = vsel %vm6149_vm2, %v3558_v27, %v3562_v23  ;;  %v5670_v12 = vrot.slane %v5654_v31, 9  ;;  %v3570_v5 = vrot.slane %v3568_v54, 5  ;;  %v6032_v27 = vld [vmem:[%s6134_s28 + $0x64] sm:$0xf] }
 0x1c1   : > { %v1572_v56 = vadd.f32 %v1531_v38, %v1151_v63  ;;  %v4141_v63 = vrot.slane %v7232_v41, 5  ;;  %v3567_v38 = vrot.slane %v3565_v8, 4  ;;  %v2722_v23 = vrot.slane %v6032_v27, 5 }
 0x1c2   : > { %3942 = vmatmul.bf16.gmra.mxu3 %v3834_v29  ;;  %v1152_v53 = vpop.f32.mrf.mxu1  ;;  %7838 = vst [vmem:[#allocation34_spill] sm:$0xff] %v7246_v6  ;;  %v4140_v29 = vrot.slane %v4138_v36, 4  ;;  %v4139_v8 = vsel %vm6449_vm5, %v5670_v12, %v4138_v36  ;;  %v3581_v19 = vor.u32 %v3580_v33, %v7257_v13 }
 0x1c3   : > { %v2560_v52 = vpop.f32.mrf.mxu0  ;;  %v1153_v59 = vadd.f32 %v1152_v53, %v6664_v61  ;;  %v3809_v61 = vunpack.c.l.b16 %v3553_v50  ;;  %v3810_v53 = vunpack.c.l.b16 %v3563_v24  ;;  %v6033_v50 = vld [vmem:[%s6134_s28 + $0x68] sm:$0x1]  ;;  %v4235_v36 = vunpack.c.l.b16 %v4139_v8 }
 0x1c4   : > { %v4142_v54 = vsel %vm6449_vm5, %v4140_v29, %v4141_v63  ;;  %v2725_v24 = vrot.slane %v6033_v50, 5 }
 0x1c5   : > { %v1846_v60 = vpop.f32.mrf.mxu3  ;;  %v3835_v27 = vpack.c.b16 %v3810_v53, %v3809_v61  ;;  %v4236_v12 = vunpack.c.l.b16 %v4142_v54  ;;  %v5655_v61 = vld [vmem:[%s6134_s28 + $0x6c] sm:$0xe]  ;;  %v5576_v53 = vld [vmem:[%s6134_s28 + $0x78] sm:$0xf]  ;;  %v7285_v54 = vld [vmem:[%s6134_s28 + $0x7c] sm:$0xf] }
 0x1c6   : > { %4368 = vmatmul.bf16.gmra.mxu0 %v4260_v7  ;;  %v1887_v4 = vadd.f32 %v1846_v60, %v1572_v56  ;;  %v5351_v60 = vrot.slane %v5335_v21, 9  ;;  %v5671_v50 = vrot.slane %v5655_v61, 9  ;;  %v5336_v61 = vld [vmem:[%s6134_s28 + $0x6c] sm:$0xe] }
 0x1c8   : > { %v1533_v35 = vpop.f32.mrf.mxu2  ;;  %v7259_v7 = vadd.f32 %v2560_v52, %v1887_v4  ;;  %v3571_v52 = vor.u32 %v3570_v5, %v3567_v38  ;;  %v2724_v4 = vrot.slane %v2722_v23, 4  ;;  %v3582_v38 = vrot.slane %v3581_v19, 4 }
 0x1c9   : > { %v1573_v56 = vadd.f32 %v1533_v35, %v1153_v59  ;;  %v3584_v59 = vshll.u32 %v7265_v2, 16  ;;  %v2723_v33 = vsel %vm6449_vm5, %v5351_v60, %v2722_v23 }
 0x1ca   : > { %7839 = vst [vmem:[#allocation35_spill] sm:$0xff] %v7259_v7  ;;  %v1155_v31 = vpop.f32.mrf.mxu1  ;;  %v3572_v63 = vrot.slane %v3571_v52, 4  ;;  %v2814_v52 = vunpack.c.l.b16 %v2723_v33 }
 0x1cb   : > { %v2562_v41 = vpop.f32.mrf.mxu0  ;;  %v1156_v29 = vadd.f32 %v1155_v31, %v6688_v47  ;;  %v3586_v21 = vrot.slane %v3584_v59, 5  ;;  %v4145_v31 = vrot.slane %v7243_v1, 5  ;;  %v3592_v59 = vshll.u32 %v5576_v53, 16 }
 0x1cc   : > { %2950 = vmatmul.bf16.gmra.mxu1 %v2838_v15  ;;  %v3577_v60 = vsel %vm6149_vm2, %v3572_v63, %v7257_v13  ;;  %v3598_v1 = vshll.u32 %v7285_v54, 16 }
 0x1cd   : > { %v1848_v58 = vpop.f32.mrf.mxu3  ;;  %3265 = vmatmul.bf16.gmra.mxu2 %v5817_v57  ;;  %v2726_v57 = vsel %vm6449_vm5, %v2724_v4, %v2725_v24  ;;  %v3587_v4 = vsel %vm6149_vm2, %v3582_v38, %v3586_v21 }
 0x1ce   : > { %v1888_v35 = vadd.f32 %v1848_v58, %v1573_v56  ;;  %v4261_v56 = vpack.c.b16 %v4236_v12, %v4235_v36  ;;  %v2815_v19 = vunpack.c.l.b16 %v2726_v57  ;;  %v4147_v36 = vrot.slane %v4145_v31, 4 }
 0x1cf   : > { %v4148_v12 = vrot.slane %v7265_v2, 5  ;;  %v3811_v57 = vunpack.c.l.b16 %v3577_v60  ;;  %v3812_v21 = vunpack.c.l.b16 %v3587_v4  ;;  %v7303_v2 = vrot.slane %v3598_v1, 5  ;;  %v6035_v60 = vld [vmem:[%s6134_s28 + $0x74] sm:$0x1] }
 0x1d0   : > { %v1536_v15 = vpop.f32.mrf.mxu2  ;;  %v7281_v8 = vadd.f32 %v2562_v41, %v1888_v35  ;;  %v3589_v41 = vshrl.u32 %v5576_v53, 16  ;;  %v3602_v35 = vshrl.u32 %v7285_v54, 16  ;;  %v3594_v53 = vrot.slane %v3592_v59, 5 }
 0x1d1   : > { %v1574_v5 = vadd.f32 %v1536_v15, %v1156_v29  ;;  %v2839_v29 = vpack.c.b16 %v2815_v19, %v2814_v52  ;;  %v6034_v15 = vld [vmem:[%s6134_s28 + $0x70] sm:$0xf]  ;;  %v2732_v4 = vrot.slane %v6035_v60, 5  ;;  %v5579_v60 = vld [vmem:[%s6134_s28 + $0x84] sm:$0xf] }
 0x1d2   : > { %3947 = vmatmul.bf16.gmra.mxu3 %v3835_v27  ;;  %v1157_v58 = vpop.f32.mrf.mxu1  ;;  %7840 = vst [vmem:[#allocation36_spill] sm:$0xff] %v7281_v8  ;;  %v2729_v63 = vrot.slane %v6034_v15, 5  ;;  %v3604_v52 = vrot.slane %v3602_v35, 4 }
 0x1d3   : > { %v2565_v47 = vpop.f32.mrf.mxu0  ;;  %v1158_v27 = vadd.f32 %v1157_v58, %v6723_v48  ;;  %v3591_v58 = vrot.slane %v3589_v41, 4 }
 0x1d4   : > { %v3605_v35 = vor.u32 %v3604_v52, %v7303_v2 }
 0x1d5   : > { %v1851_v23 = vpop.f32.mrf.mxu3  ;;  %v3595_v1 = vor.u32 %v3594_v53, %v3591_v58 }
 0x1d6   : > { %4373 = vmatmul.bf16.gmra.mxu0 %v4261_v56  ;;  %v1889_v24 = vadd.f32 %v1851_v23, %v1574_v5  ;;  %v5818_v5 = vld [vmem:[%s6134_s28 + $0x6c] sm:$0xff]  ;;  %v4146_v56 = vsel %vm6449_vm5, %v5671_v50, %v4145_v31  ;;  %v5352_v23 = vrot.slane %v5336_v61, 9  ;;  %v3836_v31 = vpack.c.b16 %v3812_v21, %v3811_v57 }
 0x1d7   : > { %v4237_v50 = vunpack.c.l.b16 %v4146_v56  ;;  %v4152_v57 = vrot.slane %v7285_v54, 5  ;;  %v3596_v58 = vrot.slane %v3595_v1, 4  ;;  %v3606_v53 = vrot.slane %v3605_v35, 4 }
 0x1d8   : > { %v1538_v13 = vpop.f32.mrf.mxu2  ;;  %v7297_v38 = vadd.f32 %v2565_v47, %v1889_v24  ;;  %v4149_v47 = vsel %vm6449_vm5, %v4147_v36, %v4148_v12  ;;  %v2731_v24 = vrot.slane %v2729_v63, 4  ;;  %v2730_v15 = vsel %vm6449_vm5, %v5352_v23, %v2729_v63 }
 0x1d9   : > { %v1575_v33 = vadd.f32 %v1538_v13, %v1158_v27  ;;  %v5578_v27 = vld [vmem:[%s6134_s28 + $0x80] sm:$0x1]  ;;  %v4238_v59 = vunpack.c.l.b16 %v4149_v47  ;;  %v2816_v47 = vunpack.c.l.b16 %v2730_v15 }
 0x1da   : > { %7841 = vst [vmem:[#allocation37_spill] sm:$0xff] %v7297_v38  ;;  %v1160_v48 = vpop.f32.mrf.mxu1  ;;  %v3608_v12 = vshll.u32 %v5578_v27, 16  ;;  %v2733_v61 = vsel %vm6449_vm5, %v2731_v24, %v2732_v4  ;;  %v3616_v24 = vshll.u32 %v5579_v60, 16 }
 0x1db   : > { %v2567_v19 = vpop.f32.mrf.mxu0  ;;  %v1161_v36 = vadd.f32 %v1160_v48, %v6745_v37  ;;  %v4262_v21 = vpack.c.b16 %v4238_v59, %v4237_v50  ;;  %v5656_v37 = vld [vmem:[%s6134_s28 + $0x78] sm:$0xe]  ;;  %v2817_v63 = vunpack.c.l.b16 %v2733_v61  ;;  %v4155_v50 = vrot.slane %v5578_v27, 5 }
 0x1dc   : > { %2955 = vmatmul.bf16.gmra.mxu1 %v2839_v29  ;;  %v3610_v23 = vrot.slane %v3608_v12, 5  ;;  %v3618_v61 = vrot.slane %v3616_v24, 5  ;;  %v5581_v24 = vld [vmem:[%s6134_s28 + $0x8c] sm:$0x1] }
 0x1dd   : > { %v1853_v13 = vpop.f32.mrf.mxu3  ;;  %3270 = vmatmul.bf16.gmra.mxu2 %v5818_v5  ;;  %v2840_v1 = vpack.c.b16 %v2817_v63, %v2816_v47 }
 0x1de   : > { %v1890_v41 = vadd.f32 %v1853_v13, %v1575_v33  ;;  %v7318_v33 = vld [vmem:[%s6134_s28 + $0x88] sm:$0xf]  ;;  %v3613_v13 = vshrl.u32 %v5579_v60, 16  ;;  %v3611_v35 = vsel %vm6149_vm2, %v3606_v53, %v3610_v23  ;;  %v5337_v23 = vld [vmem:[%s6134_s28 + $0x78] sm:$0xe] }
 0x1df   : > { %v3622_v4 = vshll.u32 %v7318_v33, 16  ;;  %v3626_v54 = vshrl.u32 %v7318_v33, 16  ;;  %v3814_v63 = vunpack.c.l.b16 %v3611_v35  ;;  %v3632_v35 = vshll.u32 %v5581_v24, 16 }
 0x1e0   : > { %v1541_v29 = vpop.f32.mrf.mxu2  ;;  %v7321_v48 = vadd.f32 %v2567_v19, %v1890_v41  ;;  %v3601_v19 = vsel %vm6149_vm2, %v3596_v58, %v7303_v2  ;;  %v3615_v12 = vrot.slane %v3613_v13, 4 }
 0x1e1   : > { %v1576_v5 = vadd.f32 %v1541_v29, %v1161_v36  ;;  %v5672_v29 = vrot.slane %v5656_v37, 9  ;;  %v7331_v60 = vrot.slane %v3622_v4, 5  ;;  %v3628_v27 = vrot.slane %v3626_v54, 4  ;;  %v5819_v37 = vld [vmem:[%s6134_s28 + $0x78] sm:$0xff] }
 0x1e2   : > { %3952 = vmatmul.bf16.gmra.mxu3 %v3836_v31  ;;  %v1162_v56 = vpop.f32.mrf.mxu1  ;;  %7842 = vst [vmem:[#allocation38_spill] sm:$0xff] %v7321_v48  ;;  %v4154_v31 = vrot.slane %v4152_v57, 4  ;;  %v3813_v47 = vunpack.c.l.b16 %v3601_v19  ;;  %v3619_v54 = vor.u32 %v3618_v61, %v3615_v12 }
 0x1e3   : > { %v2570_v52 = vpop.f32.mrf.mxu0  ;;  %v1163_v41 = vadd.f32 %v1162_v56, %v6764_v22  ;;  %v4153_v2 = vsel %vm6449_vm5, %v5672_v29, %v4152_v57  ;;  %v6036_v56 = vld [vmem:[%s6134_s28 + $0x7c] sm:$0xf]  ;;  %v3629_v57 = vor.u32 %v3628_v27, %v7331_v60  ;;  %v5353_v29 = vrot.slane %v5337_v23, 9 }
 0x1e4   : > { %v4156_v22 = vsel %vm6449_vm5, %v4154_v31, %v4155_v50  ;;  %v2736_v58 = vrot.slane %v6036_v56, 5  ;;  %v6037_v50 = vld [vmem:[%s6134_s28 + $0x80] sm:$0x1]  ;;  %v5657_v56 = vld [vmem:[%s6134_s28 + $0x84] sm:$0xe]  ;;  %v3620_v61 = vrot.slane %v3619_v54, 4 }
 0x1e5   : > { %v1856_v36 = vpop.f32.mrf.mxu3  ;;  %v4240_v4 = vunpack.c.l.b16 %v4156_v22  ;;  %v3630_v27 = vrot.slane %v3629_v57, 4  ;;  %v7350_v22 = vld [vmem:[%s6134_s28 + $0x94] sm:$0xf] }
 0x1e6   : > { %4378 = vmatmul.bf16.gmra.mxu0 %v4262_v21  ;;  %v1891_v59 = vadd.f32 %v1856_v36, %v1576_v5  ;;  %v2738_v31 = vrot.slane %v2736_v58, 4  ;;  %v3646_v54 = vshll.u32 %v7350_v22, 16  ;;  %v3650_v57 = vshrl.u32 %v7350_v22, 16 }
 0x1e7   : > { %v4166_v38 = vrot.slane %v7350_v22, 5 }
 0x1e8   : > { %v1543_v15 = vpop.f32.mrf.mxu2  ;;  %v7333_v21 = vadd.f32 %v2570_v52, %v1891_v59  ;;  %v4239_v52 = vunpack.c.l.b16 %v4153_v2  ;;  %v2739_v59 = vrot.slane %v6037_v50, 5  ;;  %v5673_v50 = vrot.slane %v5657_v56, 9 }
 0x1e9   : > { %v1577_v5 = vadd.f32 %v1543_v15, %v1163_v41  ;;  %v3837_v41 = vpack.c.b16 %v3814_v63, %v3813_v47  ;;  %v5582_v15 = vld [vmem:[%s6134_s28 + $0x90] sm:$0xf]  ;;  %v3652_v56 = vrot.slane %v3650_v57, 4 }
 0x1ea   : > { %7843 = vst [vmem:[#allocation39_spill] sm:$0xff] %v7333_v21  ;;  %v2921_v53 = vpop.f32.mrf.mxu1  ;;  %v4159_v21 = vrot.slane %v7318_v33, 5  ;;  %v4263_v2 = vpack.c.b16 %v4240_v4, %v4239_v52  ;;  %v3637_v47 = vshrl.u32 %v5582_v15, 16  ;;  %v3640_v63 = vshll.u32 %v5582_v15, 16 }
 0x1eb   : > { %v2572_v13 = vpop.f32.mrf.mxu0  ;;  %v3634_v33 = vrot.slane %v3632_v35, 5  ;;  %v4162_v4 = vrot.slane %v5581_v24, 5  ;;  %v3625_v24 = vsel %vm6149_vm2, %v3620_v61, %v7331_v60  ;;  %v7374_v15 = vrot.slane %v3646_v54, 5 }
 0x1ec   : > { %2960 = vmatmul.bf16.gmra.mxu1 %v2840_v1  ;;  %v3001_v1 = vadd.f32 %v2921_v53, %v6796_v11  ;;  %v4161_v52 = vrot.slane %v4159_v21, 4  ;;  %v4160_v35 = vsel %vm6449_vm5, %v5673_v50, %v4159_v21  ;;  %v7384_v21 = vld [vmem:[%s6134_s28 + $0x98] sm:$0x1] }
 0x1ed   : > { %v1858_v36 = vpop.f32.mrf.mxu3  ;;  %3275 = vmatmul.bf16.gmra.mxu2 %v5819_v37  ;;  %v2737_v37 = vsel %vm6449_vm5, %v5353_v29, %v2736_v58  ;;  %v3653_v57 = vor.u32 %v3652_v56, %v7374_v15 }
 0x1ee   : > { %v1892_v19 = vadd.f32 %v1858_v36, %v1577_v5  ;;  %v2740_v5 = vsel %vm6449_vm5, %v2738_v31, %v2739_v59  ;;  %v2818_v58 = vunpack.c.l.b16 %v2737_v37  ;;  %v3639_v31 = vrot.slane %v3637_v47, 4  ;;  %v5820_v47 = vld [vmem:[%s6134_s28 + $0x84] sm:$0xff] }
 0x1ef   : > { %v2819_v29 = vunpack.c.l.b16 %v2740_v5  ;;  %v3642_v59 = vrot.slane %v3640_v63, 5  ;;  %v4528_v5 = vunpack.c.l.bf16 %v6471_v26  ;;  %v3815_v63 = vunpack.c.l.b16 %v3625_v24  ;;  %v6039_v24 = vld [vmem:[%s6134_s28 + $0x8c] sm:$0x1] }
 0x1f0   : > { %v3236_v12 = vpop.f32.mrf.mxu2  ;;  %v7356_v11 = vadd.f32 %v2572_v13, %v1892_v19  ;;  %v7363_v13 = vld [vmem:[%s7767_s2] ss:$0 sm:$0xff]  ;;  %v3635_v19 = vsel %vm6149_vm2, %v3630_v27, %v3634_v33  ;;  %v6038_v27 = vld [vmem:[%s6134_s28 + $0x88] sm:$0xf]  ;;  %v5338_v33 = vld [vmem:[%s6134_s28 + $0x84] sm:$0xe] }
 0x1f1   : > { %v3316_v23 = vadd.f32 %v3236_v12, %v3001_v1  ;;  %v2841_v61 = vpack.c.b16 %v2819_v29, %v2818_v58  ;;  %v2743_v37 = vrot.slane %v6038_v27, 5  ;;  %v3643_v50 = vor.u32 %v3642_v59, %v3639_v31  ;;  %v5585_v59 = vld [vmem:[%s6134_s28 + $0x9c] sm:$0xf] }
 0x1f2   : > { %3957 = vmatmul.bf16.gmra.mxu3 %v3837_v41  ;;  %v2923_v36 = vpop.f32.mrf.mxu1  ;;  %7844 = vst [vmem:[#allocation40_spill] sm:$0xff] %v7356_v11  ;;  %v3656_v58 = vshll.u32 %v7384_v21, 16  ;;  %v5354_v29 = vrot.slane %v5338_v33, 9  ;;  %v2746_v31 = vrot.slane %v6039_v24, 5  ;;  %v5658_v11 = vld [vmem:[%s6134_s28 + $0x90] sm:$0xe] }
 0x1f3   : > { %v4344_v53 = vpop.f32.mrf.mxu0  ;;  %v3002_v60 = vadd.f32 %v2923_v36, %v6809_v28  ;;  %v4241_v28 = vunpack.c.l.b16 %v4160_v35  ;;  %v3661_v8 = vshrl.u32 %v5585_v59, 16  ;;  %v3664_v7 = vshll.u32 %v5585_v59, 16 }
 0x1f4   : > { %v3658_v33 = vrot.slane %v3656_v58, 5 }
 0x1f5   : > { %v3918_v48 = vpop.f32.mrf.mxu3  ;;  %v3663_v58 = vrot.slane %v3661_v8, 4 }
 0x1f6   : > { %4383 = vmatmul.bf16.gmra.mxu0 %v4263_v2  ;;  %v3998_v41 = vadd.f32 %v3918_v48, %v3316_v23  ;;  %v4163_v48 = vsel %vm6449_vm5, %v4161_v52, %v4162_v4  ;;  %v7379_v2 = vld [vmem:[%s7768_s3] ss:$0 sm:$0xff]  ;;  %v3816_v23 = vunpack.c.l.b16 %v3635_v19 }
 0x1f7   : > { %v4242_v36 = vunpack.c.l.b16 %v4163_v48  ;;  %v7845_v19 = vld [vmem:[#allocation2_spill] sm:$0xff]  ;;  %v3644_v48 = vrot.slane %v3643_v50, 4 }
 0x1f8   : > { %v4424_v1 = vadd.f32 %v4344_v53, %v3998_v41  ;;  %v3238_v12 = vpop.f32.mrf.mxu2  ;;  %v2745_v41 = vrot.slane %v2743_v37, 4  ;;  %v3838_v35 = vpack.c.b16 %v3816_v23, %v3815_v63  ;;  %v5674_v63 = vrot.slane %v5658_v11, 9 }
 0x1f9   : > { %v3317_v52 = vadd.f32 %v3238_v12, %v3002_v60  ;;  %v4264_v27 = vpack.c.b16 %v4242_v36, %v4241_v28  ;;  %v3649_v22 = vsel %vm6149_vm2, %v3644_v48, %v7374_v15  ;;  %v4168_v28 = vrot.slane %v4166_v38, 4  ;;  %v7846_v15 = vld [vmem:[#allocation3_spill] sm:$0xff] }
 0x1fa   : > { %v4460_v53 = vmul.f32 %v7363_v13, %v4424_v1  ;;  %v2926_v4 = vpop.f32.mrf.mxu1  ;;  %v4529_v1 = vunpack.c.l.bf16 %v7845_v19  ;;  %v4530_v11 = vunpack.c.l.bf16 %v7846_v15 }
 0x1fb   : > { %v4346_v54 = vpop.f32.mrf.mxu0  ;;  %v3003_v6 = vadd.f32 %v2926_v4, %v6819_v18 }
 0x1fc   : > { %v4496_v26 = vadd.f32 %v7379_v2, %v4460_v53  ;;  %2965 = vmatmul.bf16.gmra.mxu1 %v2841_v61  ;;  %v7399_v53 = vld [vmem:[%s6134_s28 + $0xa0] sm:$0xf]  ;;  %v3654_v61 = vrot.slane %v3653_v57, 4 }
 0x1fd   : > { %v3920_v60 = vpop.f32.mrf.mxu3  ;;  %3280 = vmatmul.bf16.gmra.mxu2 %v5820_v47  ;;  %v2744_v47 = vsel %vm6449_vm5, %v5354_v29, %v2743_v37  ;;  %v3670_v23 = vshll.u32 %v7399_v53, 16  ;;  %v3674_v50 = vshrl.u32 %v7399_v53, 16  ;;  %v4169_v37 = vrot.slane %v7384_v21, 5 }
 0x1fe   : > { %v4560_v12 = vadd.f32 %v4528_v5, %v4496_v26  ;;  %v3999_v56 = vadd.f32 %v3920_v60, %v3317_v52  ;;  %v2747_v5 = vsel %vm6449_vm5, %v2745_v41, %v2746_v31  ;;  %v3666_v26 = vrot.slane %v3664_v7, 5 }
 0x1ff   : > { %v2821_v57 = vunpack.c.l.b16 %v2747_v5  ;;  %v3659_v41 = vsel %vm6149_vm2, %v3654_v61, %v3658_v33  ;;  %v4167_v21 = vsel %vm6449_vm5, %v5674_v63, %v4166_v38  ;;  %v7421_v59 = vrot.slane %v3670_v23, 5  ;;  %v6040_v61 = vld [vmem:[%s6134_s28 + $0x94] sm:$0xf] }
 0x200   : > { %v4425_v24 = vadd.f32 %v4346_v54, %v3999_v56  ;;  %v3241_v19 = vpop.f32.mrf.mxu2  ;;  %v2820_v54 = vunpack.c.l.b16 %v2744_v47  ;;  %v3676_v60 = vrot.slane %v3674_v50, 4  ;;  %v4624_v8 = vmul.f32 0.01, %v4560_v12  ;;  %v7431_v50 = vld [vmem:[%s6134_s28 + $0xa4] sm:$0x1] }
 0x201   : > { %v3318_v18 = vadd.f32 %v3241_v19, %v3003_v6  ;;  %v7417_v6 = vunpack.c.l.b16 %v3649_v22  ;;  %v4170_v48 = vsel %vm6449_vm5, %v4168_v28, %v4169_v37  ;;  %vm4592_vm6 = vcmp.ge.f32.partialorder %v4560_v12, 0.0  ;;  %v5821_v22 = vld [vmem:[%s6134_s28 + $0x90] sm:$0xff] }
 0x202   : > { %v4461_v52 = vmul.f32 %v7363_v13, %v4425_v24  ;;  %3962 = vmatmul.bf16.gmra.mxu3 %v3838_v35  ;;  %v2928_v4 = vpop.f32.mrf.mxu1  ;;  %v2842_v56 = vpack.c.b16 %v2821_v57, %v2820_v54  ;;  %v2750_v33 = vrot.slane %v6040_v61, 5  ;;  %v3667_v24 = vor.u32 %v3666_v26, %v3663_v58  ;;  %v6041_v26 = vld [vmem:[%s6134_s28 + $0x98] sm:$0x1]  ;;  %v7449_v61 = vld [vmem:[%s6134_s28 + $0xac] sm:$0xf] }
 0x203   : > { %v4349_v36 = vpop.f32.mrf.mxu0  ;;  %v3004_v47 = vadd.f32 %v2928_v4, %v6837_v25  ;;  %v4243_v63 = vunpack.c.l.b16 %v4167_v21  ;;  %v4244_v23 = vunpack.c.l.b16 %v4170_v48  ;;  %v2753_v15 = vrot.slane %v6041_v26, 5  ;;  %v7847_v21 = vld [vmem:[#allocation4_spill] sm:$0xff]  ;;  %v5588_v48 = vld [vmem:[%s6134_s28 + $0xa8] sm:$0xf] }
 0x204   : > { %v4497_v29 = vadd.f32 %v7379_v2, %v4461_v52  ;;  %v3677_v52 = vor.u32 %v3676_v60, %v7421_v59  ;;  %v2752_v58 = vrot.slane %v2750_v33, 4  ;;  %v4531_v60 = vunpack.c.l.bf16 %v7847_v21 }
 0x205   : > { %v3923_v31 = vpop.f32.mrf.mxu3 }
 0x206   : > { %v4561_v7 = vadd.f32 %v4529_v1, %v4497_v29  ;;  %4388 = vmatmul.bf16.gmra.mxu0 %v4264_v27  ;;  %v4000_v35 = vadd.f32 %v3923_v31, %v3318_v18  ;;  %v5339_v1 = vld [vmem:[%s6134_s28 + $0x90] sm:$0xe]  ;;  %v3818_v27 = vunpack.c.l.b16 %v3659_v41  ;;  %v4656_v18 = vsel %vm4592_vm6, %v4560_v12, %v4624_v8 }
 0x207   : > { %v5355_v57 = vrot.slane %v5339_v1, 9  ;;  %v3668_v29 = vrot.slane %v3667_v24, 4  ;;  %v3680_v41 = vshll.u32 %v7431_v50, 16  ;;  %v2754_v24 = vsel %vm6449_vm5, %v2752_v58, %v2753_v15 }
 0x208   : > { %vm4593_vm7 = vcmp.ge.f32.partialorder %v4561_v7, 0.0  ;;  %v4625_v38 = vmul.f32 0.01, %v4561_v7  ;;  %v4426_v19 = vadd.f32 %v4349_v36, %v4000_v35  ;;  %v3243_v5 = vpop.f32.mrf.mxu2  ;;  %v3839_v35 = vpack.c.b16 %v3818_v27, %v7417_v6 }
 0x209   : > { %v3319_v28 = vadd.f32 %v3243_v5, %v3004_v47  ;;  %v3682_v6 = vrot.slane %v3680_v41, 5  ;;  %v3685_v27 = vshrl.u32 %v5588_v48, 16 }
 0x20a   : > { %v4657_v25 = vsel %vm4593_vm7, %v4561_v7, %v4625_v38  ;;  %v4462_v4 = vmul.f32 %v7363_v13, %v4426_v19  ;;  %v2931_v37 = vpop.f32.mrf.mxu1  ;;  %v4265_v38 = vpack.c.b16 %v4244_v23, %v4243_v63  ;;  %v3678_v19 = vrot.slane %v3677_v52, 4 }
 0x20b   : > { %v5854_v36 = vpack.c.bf16 %v4657_v25, %v4656_v18  ;;  %v4351_v54 = vpop.f32.mrf.mxu0  ;;  %v3005_v5 = vadd.f32 %v2931_v37, %v6856_v46  ;;  %v3688_v18 = vshll.u32 %v5588_v48, 16  ;;  %v3694_v63 = vshll.u32 %v7449_v61, 16 }
 0x20c   : > { %v4498_v12 = vadd.f32 %v7379_v2, %v4462_v4  ;;  %2970 = vmatmul.bf16.gmra.mxu1 %v2842_v56  ;;  %v2751_v56 = vsel %vm6449_vm5, %v5355_v57, %v2750_v33  ;;  %v3698_v33 = vshrl.u32 %v7449_v61, 16  ;;  %v2823_v46 = vunpack.c.l.b16 %v2754_v24  ;;  %v6042_v24 = vld [vmem:[%s6134_s28 + $0xa0] sm:$0xf] }
 0x20d   : > { %5855 = vst [vmem:[%s7438_s25] sm:$0xff] %v5854_v36   ;;  %v3925_v31 = vpop.f32.mrf.mxu3  ;;  %3285 = vmatmul.bf16.gmra.mxu2 %v5821_v22  ;;  %v5659_v22 = vld [vmem:[%s6134_s28 + $0x9c] sm:$0xe]  ;;  %v2822_v4 = vunpack.c.l.b16 %v2751_v56  ;;  %v3683_v57 = vsel %vm6149_vm2, %v3678_v19, %v3682_v6  ;;  %v7470_v41 = vrot.slane %v3694_v63, 5  ;;  %v4176_v56 = vrot.slane %v7431_v50, 5 }
 0x20e   : > { %v4562_v8 = vadd.f32 %v4530_v11, %v4498_v12  ;;  %v4001_v7 = vadd.f32 %v3925_v31, %v3319_v28  ;;  %v3673_v11 = vsel %vm6149_vm2, %v3668_v29, %v7421_v59  ;;  %v7848_v28 = vld [vmem:[#allocation5_spill] sm:$0xff]  ;;  %v4173_v59 = vrot.slane %v7399_v53, 5 }
 0x20f   : > { %v4532_v37 = vunpack.c.l.bf16 %v7848_v28  ;;  %v7468_v58 = vunpack.c.l.b16 %v3673_v11  ;;  %v5675_v26 = vrot.slane %v5659_v22, 9  ;;  %v3687_v12 = vrot.slane %v3685_v27, 4  ;;  %v5340_v22 = vld [vmem:[%s6134_s28 + $0x9c] sm:$0xe] }
 0x210   : > { %v4427_v47 = vadd.f32 %v4351_v54, %v4001_v7  ;;  %v3246_v1 = vpop.f32.mrf.mxu2  ;;  %v3690_v29 = vrot.slane %v3688_v18, 5  ;;  %v3700_v31 = vrot.slane %v3698_v33, 4  ;;  %v4626_v21 = vmul.f32 0.01, %v4562_v8 }
 0x211   : > { %v3320_v52 = vadd.f32 %v3246_v1, %v3005_v5  ;;  %vm4594_vm8 = vcmp.ge.f32.partialorder %v4562_v8, 0.0  ;;  %v4175_v48 = vrot.slane %v4173_v59, 4  ;;  %v2757_v19 = vrot.slane %v6042_v24, 5 }
 0x212   : > { %v4463_v23 = vmul.f32 %v7363_v13, %v4427_v47  ;;  %3967 = vmatmul.bf16.gmra.mxu3 %v3839_v35  ;;  %v2933_v25 = vpop.f32.mrf.mxu1  ;;  %v2843_v35 = vpack.c.b16 %v2823_v46, %v2822_v4  ;;  %v7475_v47 = vld [vmem:[%s6134_s28 + $0xb0] sm:$0x1]  ;;  %v3820_v27 = vunpack.c.l.b16 %v3683_v57  ;;  %v3691_v18 = vor.u32 %v3690_v29, %v3687_v12 }
 0x213   : > { %v4354_v36 = vpop.f32.mrf.mxu0  ;;  %v3006_v11 = vadd.f32 %v2933_v25, %v6881_v51  ;;  %v3701_v50 = vor.u32 %v3700_v31, %v7470_v41  ;;  %v4658_v63 = vsel %vm4594_vm8, %v4562_v8, %v4626_v21  ;;  %v4177_v46 = vsel %vm6449_vm5, %v4175_v48, %v4176_v56  ;;  %v6043_v8 = vld [vmem:[%s6134_s28 + $0xa4] sm:$0x1]  ;;  %v7494_v56 = vld [vmem:[%s6134_s28 + $0xb8] sm:$0xf] }
 0x214   : > { %v4499_v54 = vadd.f32 %v7379_v2, %v4463_v23  ;;  %v5356_v28 = vrot.slane %v5340_v22, 9  ;;  %v2760_v57 = vrot.slane %v6043_v8, 5  ;;  %v3840_v12 = vpack.c.b16 %v3820_v27, %v7468_v58 }
 0x215   : > { %v3928_v15 = vpop.f32.mrf.mxu3  ;;  %v3692_v31 = vrot.slane %v3691_v18, 4  ;;  %v3702_v48 = vrot.slane %v3701_v50, 4  ;;  %v4180_v18 = vrot.slane %v7449_v61, 5  ;;  %v3722_v50 = vshrl.u32 %v7494_v56, 16  ;;  %v7850_v61 = vld [vmem:[#allocation7_spill] sm:$0xff] }
 0x216   : > { %v4563_v7 = vadd.f32 %v4531_v60, %v4499_v54  ;;  %4393 = vmatmul.bf16.gmra.mxu0 %v4265_v38  ;;  %v4002_v53 = vadd.f32 %v3928_v15, %v3320_v52  ;;  %v5822_v60 = vld [vmem:[%s6134_s28 + $0x9c] sm:$0xff]  ;;  %v4174_v38 = vsel %vm6449_vm5, %v5675_v26, %v4173_v59  ;;  %v2759_v54 = vrot.slane %v2757_v19, 4  ;;  %v5591_v26 = vld [vmem:[%s6134_s28 + $0xb4] sm:$0xf] }
 0x217   : > { %v4245_v29 = vunpack.c.l.b16 %v4174_v38  ;;  %v3697_v27 = vsel %vm6149_vm2, %v3692_v31, %v7470_v41  ;;  %v5660_v38 = vld [vmem:[%s6134_s28 + $0xa8] sm:$0xe] }
 0x218   : > { %vm4595_vm9 = vcmp.ge.f32.partialorder %v4563_v7, 0.0  ;;  %v4627_v5 = vmul.f32 0.01, %v4563_v7  ;;  %v4428_v1 = vadd.f32 %v4354_v36, %v4002_v53  ;;  %v3248_v6 = vpop.f32.mrf.mxu2  ;;  %v3704_v36 = vshll.u32 %v7475_v47, 16 }
 0x219   : > { %v3321_v52 = vadd.f32 %v3248_v6, %v3006_v11  ;;  %v4246_v53 = vunpack.c.l.b16 %v4177_v46  ;;  %v7849_v11 = vld [vmem:[#allocation6_spill] sm:$0xff] }
 0x21a   : > { %v4659_v33 = vsel %vm4595_vm9, %v4563_v7, %v4627_v5  ;;  %v4464_v23 = vmul.f32 %v7363_v13, %v4428_v1  ;;  %v2936_v51 = vpop.f32.mrf.mxu1  ;;  %v3706_v24 = vrot.slane %v3704_v36, 5  ;;  %v3709_v5 = vshrl.u32 %v5591_v26, 16 }
 0x21b   : > { %v5859_v25 = vpack.c.bf16 %v4659_v33, %v4658_v63  ;;  %v4356_v4 = vpop.f32.mrf.mxu0  ;;  %v3712_v1 = vshll.u32 %v5591_v26, 16  ;;  %v4533_v6 = vunpack.c.l.bf16 %v7849_v11  ;;  %v3007_v58 = vadd.f32 %v2936_v51, %v6895_v3 }
 0x21c   : > { %v4500_v59 = vadd.f32 %v7379_v2, %v4464_v23  ;;  %2975 = vmatmul.bf16.gmra.mxu1 %v2843_v35  ;;  %v2758_v35 = vsel %vm6449_vm5, %v5356_v28, %v2757_v19  ;;  %v3718_v19 = vshll.u32 %v7494_v56, 16  ;;  %v4266_v33 = vpack.c.b16 %v4246_v53, %v4245_v29 }
 0x21d   : > { %5931 = vst [vmem:[%s7438_s25 + $0x8] sm:$0xff] %v5859_v25   ;;  %v3930_v15 = vpop.f32.mrf.mxu3  ;;  %3290 = vmatmul.bf16.gmra.mxu2 %v5822_v60  ;;  %v3711_v41 = vrot.slane %v3709_v5, 4  ;;  %v3714_v46 = vrot.slane %v3712_v1, 5  ;;  %v4534_v28 = vunpack.c.l.bf16 %v7850_v61  ;;  %v4183_v26 = vrot.slane %v7475_v47, 5  ;;  %v7851_v61 = vld [vmem:[#allocation8_spill] sm:$0xff] }
 0x21e   : > { %v4564_v21 = vadd.f32 %v4532_v37, %v4500_v59  ;;  %v4003_v7 = vadd.f32 %v3930_v15, %v3321_v52  ;;  %v2761_v37 = vsel %vm6449_vm5, %v2759_v54, %v2760_v57  ;;  %v2824_v52 = vunpack.c.l.b16 %v2758_v35 }
 0x21f   : > { %v2825_v25 = vunpack.c.l.b16 %v2761_v37  ;;  %v7514_v59 = vunpack.c.l.b16 %v3697_v27  ;;  %v5676_v54 = vrot.slane %v5660_v38, 9  ;;  %v4182_v57 = vrot.slane %v4180_v18, 4 }
 0x220   : > { %v4429_v22 = vadd.f32 %v4356_v4, %v4003_v7  ;;  %v3251_v60 = vpop.f32.mrf.mxu2  ;;  %v3707_v4 = vsel %vm6149_vm2, %v3702_v48, %v3706_v24  ;;  %v7517_v15 = vrot.slane %v3718_v19, 5  ;;  %v4628_v29 = vmul.f32 0.01, %v4564_v21  ;;  %v7520_v48 = vld [vmem:[%s6134_s28 + $0xbc] sm:$0x1] }
 0x221   : > { %v3322_v3 = vadd.f32 %v3251_v60, %v3007_v58  ;;  %v3822_v53 = vunpack.c.l.b16 %v3707_v4  ;;  %vm4596_vm10 = vcmp.ge.f32.partialorder %v4564_v21, 0.0  ;;  %v2844_v35 = vpack.c.b16 %v2825_v25, %v2824_v52  ;;  %v6044_v24 = vld [vmem:[%s6134_s28 + $0xac] sm:$0xf]  ;;  %v5341_v60 = vld [vmem:[%s6134_s28 + $0xa8] sm:$0xe] }
 0x222   : > { %v4465_v63 = vmul.f32 %v7363_v13, %v4429_v22  ;;  %3972 = vmatmul.bf16.gmra.mxu3 %v3840_v12  ;;  %v2938_v23 = vpop.f32.mrf.mxu1  ;;  %v3724_v12 = vrot.slane %v3722_v50, 4  ;;  %v2764_v5 = vrot.slane %v6044_v24, 5  ;;  %v3715_v1 = vor.u32 %v3714_v46, %v3711_v41  ;;  %v6045_v25 = vld [vmem:[%s6134_s28 + $0xb0] sm:$0x1] }
 0x223   : > { %v4359_v51 = vpop.f32.mrf.mxu0  ;;  %v3008_v22 = vadd.f32 %v2938_v23, %v6905_v62  ;;  %v4181_v37 = vsel %vm6449_vm5, %v5676_v54, %v4180_v18  ;;  %v4184_v27 = vsel %vm6449_vm5, %v4182_v57, %v4183_v26  ;;  %v3728_v19 = vshll.u32 %v7520_v48, 16 }
 0x224   : > { %v4501_v36 = vadd.f32 %v7379_v2, %v4465_v63  ;;  %v3725_v38 = vor.u32 %v3724_v12, %v7517_v15  ;;  %v4660_v50 = vsel %vm4596_vm10, %v4564_v21, %v4628_v29  ;;  %v2766_v18 = vrot.slane %v2764_v5, 4  ;;  %v5594_v29 = vld [vmem:[%s6134_s28 + $0xc0] sm:$0xf] }
 0x225   : > { %v3933_v8 = vpop.f32.mrf.mxu3  ;;  %v2767_v4 = vrot.slane %v6045_v25, 5  ;;  %v3716_v46 = vrot.slane %v3715_v1, 4  ;;  %v3841_v54 = vpack.c.b16 %v3822_v53, %v7514_v59  ;;  %v4247_v26 = vunpack.c.l.b16 %v4181_v37  ;;  %v5661_v53 = vld [vmem:[%s6134_s28 + $0xb4] sm:$0xe]  ;;  %v7852_v37 = vld [vmem:[#allocation9_spill] sm:$0xff] }
 0x226   : > { %v4565_v31 = vadd.f32 %v4533_v6, %v4501_v36  ;;  %4398 = vmatmul.bf16.gmra.mxu0 %v4266_v33  ;;  %v4004_v7 = vadd.f32 %v3933_v8, %v3322_v3  ;;  %v5823_v6 = vld [vmem:[%s6134_s28 + $0xa8] sm:$0xff]  ;;  %v4535_v36 = vunpack.c.l.bf16 %v7851_v61  ;;  %v4248_v12 = vunpack.c.l.b16 %v4184_v27 }
 0x227   : > { %v3726_v24 = vrot.slane %v3725_v38, 4  ;;  %v3730_v1 = vrot.slane %v3728_v19, 5  ;;  %v4536_v27 = vunpack.c.l.bf16 %v7852_v37  ;;  %v7854_v37 = vld [vmem:[#allocation10_spill] sm:$0xff] }
 0x228   : > { %vm4597_vm11 = vcmp.ge.f32.partialorder %v4565_v31, 0.0  ;;  %v4629_v11 = vmul.f32 0.01, %v4565_v31  ;;  %v4430_v47 = vadd.f32 %v4359_v51, %v4004_v7  ;;  %v3253_v58 = vpop.f32.mrf.mxu2  ;;  %v5357_v51 = vrot.slane %v5341_v60, 9 }
 0x229   : > { %v3323_v33 = vadd.f32 %v3253_v58, %v3008_v22  ;;  %v4187_v22 = vrot.slane %v7494_v56, 5  ;;  %v3733_v58 = vshrl.u32 %v5594_v29, 16  ;;  %v3736_v60 = vshll.u32 %v5594_v29, 16  ;;  %v6046_v29 = vld [vmem:[%s6134_s28 + $0xb8] sm:$0xf] }
 0x22a   : > { %v4661_v63 = vsel %vm4597_vm11, %v4565_v31, %v4629_v11  ;;  %v4466_v62 = vmul.f32 %v7363_v13, %v4430_v47  ;;  %v2941_v3 = vpop.f32.mrf.mxu1  ;;  %v7543_v31 = vld [vmem:[%s6134_s28 + $0xc4] sm:$0xf]  ;;  %v2765_v7 = vsel %vm6449_vm5, %v5357_v51, %v2764_v5  ;;  %v3731_v56 = vsel %vm6149_vm2, %v3726_v24, %v3730_v1 }
 0x22b   : > { %v5864_v23 = vpack.c.bf16 %v4661_v63, %v4660_v50  ;;  %v4361_v52 = vpop.f32.mrf.mxu0  ;;  %v3009_v47 = vadd.f32 %v2941_v3, %v6924_v49  ;;  %v3742_v5 = vshll.u32 %v7543_v31, 16  ;;  %v4267_v49 = vpack.c.b16 %v4248_v12, %v4247_v26  ;;  %v7569_v26 = vld [vmem:[%s6134_s28 + $0xc8] sm:$0x1] }
 0x22c   : > { %v4502_v41 = vadd.f32 %v7379_v2, %v4466_v62  ;;  %2980 = vmatmul.bf16.gmra.mxu1 %v2844_v35  ;;  %v2768_v35 = vsel %vm6449_vm5, %v2766_v18, %v2767_v4  ;;  %v2826_v62 = vunpack.c.l.b16 %v2765_v7  ;;  %v4190_v51 = vrot.slane %v7520_v48, 5 }
 0x22d   : > { %5932 = vst [vmem:[%s7438_s25 + $0x10] sm:$0xff] %v5864_v23   ;;  %v3935_v21 = vpop.f32.mrf.mxu3  ;;  %3295 = vmatmul.bf16.gmra.mxu2 %v5823_v6  ;;  %v3746_v6 = vshrl.u32 %v7543_v31, 16  ;;  %v3735_v25 = vrot.slane %v3733_v58, 4  ;;  %v3738_v4 = vrot.slane %v3736_v60, 5  ;;  %v2771_v7 = vrot.slane %v6046_v29, 5 }
 0x22e   : > { %v7539_v8 = vadd.f32 %v4534_v28, %v4502_v41  ;;  %v4005_v57 = vadd.f32 %v3935_v21, %v3323_v33  ;;  %v3721_v28 = vsel %vm6149_vm2, %v3716_v46, %v7517_v15  ;;  %v2827_v15 = vunpack.c.l.b16 %v2768_v35 }
 0x22f   : > { %v5677_v33 = vrot.slane %v5661_v53, 9  ;;  %v7562_v23 = vunpack.c.l.b16 %v3721_v28  ;;  %v7565_v41 = vrot.slane %v3742_v5, 5  ;;  %v3748_v46 = vrot.slane %v3746_v6, 4 }
 0x230   : > { %v4431_v11 = vadd.f32 %v4361_v52, %v4005_v57  ;;  %v3256_v59 = vpop.f32.mrf.mxu2  ;;  %v4189_v52 = vrot.slane %v4187_v22, 4  ;;  %v4630_v61 = vmul.f32 0.01, %v7539_v8  ;;  %v3824_v57 = vunpack.c.l.b16 %v3731_v56 }
 0x231   : > { %v3324_v19 = vadd.f32 %v3256_v59, %v3009_v47  ;;  %vm4598_vm12 = vcmp.ge.f32.partialorder %v7539_v8, 0.0  ;;  %v2845_v12 = vpack.c.b16 %v2827_v15, %v2826_v62  ;;  %v4188_v48 = vsel %vm6449_vm5, %v5677_v33, %v4187_v22  ;;  %v5824_v47 = vld [vmem:[%s6134_s28 + $0xb4] sm:$0xff] }
 0x232   : > { %v4467_v38 = vmul.f32 %v7363_v13, %v4431_v11  ;;  %3977 = vmatmul.bf16.gmra.mxu3 %v3841_v54  ;;  %v2943_v50 = vpop.f32.mrf.mxu1  ;;  %v5342_v11 = vld [vmem:[%s6134_s28 + $0xb4] sm:$0xe]  ;;  %v4191_v59 = vsel %vm6449_vm5, %v4189_v52, %v4190_v51  ;;  %v3739_v28 = vor.u32 %v3738_v4, %v3735_v25  ;;  %v3749_v53 = vor.u32 %v3748_v46, %v7565_v41 }
 0x233   : > { %v4364_v63 = vpop.f32.mrf.mxu0  ;;  %v3010_v1 = vadd.f32 %v2943_v50, %v6945_v20  ;;  %v3752_v22 = vshll.u32 %v7569_v26, 16  ;;  %v4662_v58 = vsel %vm4598_vm12, %v7539_v8, %v4630_v61  ;;  %v2773_v50 = vrot.slane %v2771_v7, 4 }
 0x234   : > { %v4503_v3 = vadd.f32 %v7379_v2, %v4467_v38  ;;  %v4249_v56 = vunpack.c.l.b16 %v4188_v48  ;;  %v4250_v8 = vunpack.c.l.b16 %v4191_v59  ;;  %v3750_v52 = vrot.slane %v3749_v53, 4  ;;  %v7608_v59 = vld [vmem:[%s6134_s28 + $0xd0] sm:$0xf] }
 0x235   : > { %v3938_v18 = vpop.f32.mrf.mxu3  ;;  %v3754_v51 = vrot.slane %v3752_v22, 5  ;;  %v3842_v4 = vpack.c.b16 %v3824_v57, %v7562_v23 }
 0x236   : > { %v4567_v21 = vadd.f32 %v4535_v36, %v4503_v3  ;;  %4403 = vmatmul.bf16.gmra.mxu0 %v4267_v49  ;;  %v4006_v54 = vadd.f32 %v3938_v18, %v3324_v19  ;;  %v5358_v19 = vrot.slane %v5342_v11, 9  ;;  %v3740_v3 = vrot.slane %v3739_v28, 4 }
 0x237   : > { %v3755_v57 = vsel %vm6149_vm2, %v3750_v52, %v3754_v51 }
 0x238   : > { %vm4599_vm13 = vcmp.ge.f32.partialorder %v4567_v21, 0.0  ;;  %v4631_v35 = vmul.f32 0.01, %v4567_v21  ;;  %v4432_v24 = vadd.f32 %v4364_v63, %v4006_v54  ;;  %v3258_v36 = vpop.f32.mrf.mxu2  ;;  %v6047_v63 = vld [vmem:[%s6134_s28 + $0xbc] sm:$0x1]  ;;  %v2772_v46 = vsel %vm6449_vm5, %v5358_v19, %v2771_v7 }
 0x239   : > { %v3325_v5 = vadd.f32 %v3258_v36, %v3010_v1  ;;  %v2774_v62 = vrot.slane %v6047_v63, 5  ;;  %v3745_v23 = vsel %vm6149_vm2, %v3740_v3, %v7565_v41  ;;  %v2828_v36 = vunpack.c.l.b16 %v2772_v46  ;;  %v6048_v3 = vld [vmem:[%s6134_s28 + $0xc4] sm:$0xf] }
 0x23a   : > { %v4663_v60 = vsel %vm4599_vm13, %v4567_v21, %v4631_v35  ;;  %v4468_v20 = vmul.f32 %v7363_v13, %v4432_v24  ;;  %v2946_v6 = vpop.f32.mrf.mxu1  ;;  %v4194_v21 = vrot.slane %v7543_v31, 5  ;;  %v5662_v35 = vld [vmem:[%s6134_s28 + $0xc0] sm:$0xe]  ;;  %v4268_v24 = vpack.c.b16 %v4250_v8, %v4249_v56 }
 0x23b   : > { %v5869_v38 = vpack.c.bf16 %v4663_v60, %v4662_v58  ;;  %v4366_v49 = vpop.f32.mrf.mxu0  ;;  %v2775_v61 = vsel %vm6449_vm5, %v2773_v50, %v2774_v62  ;;  %v5678_v53 = vrot.slane %v5662_v35, 9  ;;  %v4197_v58 = vrot.slane %v7569_v26, 5  ;;  %v7855_v60 = vld [vmem:[#allocation11_spill] sm:$0xff] }
 0x23c   : > { %v4504_v15 = vadd.f32 %v7379_v2, %v4468_v20  ;;  %2985 = vmatmul.bf16.gmra.mxu1 %v2845_v12  ;;  %v7853_v12 = vld [vmem:[#allocation30_spill] sm:$0xff]  ;;  %v2829_v11 = vunpack.c.l.b16 %v2775_v61  ;;  %v4196_v22 = vrot.slane %v4194_v21, 4  ;;  %v4538_v41 = vunpack.c.l.bf16 %v7855_v60 }
 0x23d   : > { %5933 = vst [vmem:[%s7438_s25 + $0x18] sm:$0xff] %v5869_v38   ;;  %v3940_v33 = vpop.f32.mrf.mxu3  ;;  %3300 = vmatmul.bf16.gmra.mxu2 %v5824_v47  ;;  %v3011_v48 = vadd.f32 %v2946_v6, %v7853_v12  ;;  %v5597_v47 = vld [vmem:[%s6134_s28 + $0xcc] sm:$0xf]  ;;  %v3826_v6 = vunpack.c.l.b16 %v3755_v57  ;;  %v3766_v50 = vshll.u32 %v7608_v59, 16  ;;  %v3770_v63 = vshrl.u32 %v7608_v59, 16  ;;  %v5825_v61 = vld [vmem:[%s6134_s28 + $0xc0] sm:$0xff] }
 0x23e   : > { %v4568_v18 = vadd.f32 %v4536_v27, %v4504_v15  ;;  %v4007_v25 = vadd.f32 %v3940_v33, %v3325_v5  ;;  %v4537_v27 = vunpack.c.l.bf16 %v7854_v37  ;;  %v3825_v5 = vunpack.c.l.b16 %v3745_v23 }
 0x23f   : > { %v3760_v19 = vshll.u32 %v5597_v47, 16  ;;  %v2846_v56 = vpack.c.b16 %v2829_v11, %v2828_v36  ;;  %v4195_v33 = vsel %vm6449_vm5, %v5678_v53, %v4194_v21  ;;  %v4198_v8 = vsel %vm6449_vm5, %v4196_v22, %v4197_v58  ;;  %v6049_v11 = vld [vmem:[%s6134_s28 + $0xc8] sm:$0x1] }
 0x240   : > { %v4433_v54 = vadd.f32 %v4366_v49, %v4007_v25  ;;  %v3261_v29 = vpop.f32.mrf.mxu2  ;;  %v3757_v49 = vshrl.u32 %v5597_v47, 16  ;;  %v4632_v62 = vmul.f32 0.01, %v4568_v18  ;;  %vm4600_vm14 = vcmp.ge.f32.partialorder %v4568_v18, 0.0 }
 0x241   : > { %v3326_v31 = vadd.f32 %v3261_v29, %v3011_v48  ;;  %v2778_v52 = vrot.slane %v6048_v3, 5  ;;  %v3762_v48 = vrot.slane %v3760_v19, 5  ;;  %v7623_v29 = vrot.slane %v3766_v50, 5 }
 0x242   : > { %v4469_v7 = vmul.f32 %v7363_v13, %v4433_v54  ;;  %3982 = vmatmul.bf16.gmra.mxu3 %v3842_v4  ;;  %v2948_v1 = vpop.f32.mrf.mxu1  ;;  %v5343_v54 = vld [vmem:[%s6134_s28 + $0xc0] sm:$0xe]  ;;  %v3759_v12 = vrot.slane %v3757_v49, 4  ;;  %v3772_v21 = vrot.slane %v3770_v63, 4  ;;  %v4664_v35 = vsel %vm4600_vm14, %v4568_v18, %v4632_v62 }
 0x243   : > { %v4369_v28 = vpop.f32.mrf.mxu0  ;;  %v3012_v4 = vadd.f32 %v2948_v1, %v6987_v44  ;;  %v7628_v44 = vld [vmem:[%s6134_s28 + $0xd4] sm:$0x1]  ;;  %v5359_v1 = vrot.slane %v5343_v54, 9  ;;  %v2780_v36 = vrot.slane %v2778_v52, 4  ;;  %v2781_v47 = vrot.slane %v6049_v11, 5  ;;  %v5826_v11 = vld [vmem:[%s6134_s28 + $0xcc] sm:$0xff] }
 0x244   : > { %v4505_v20 = vadd.f32 %v7379_v2, %v4469_v7  ;;  %v3843_v18 = vpack.c.b16 %v3826_v6, %v3825_v5  ;;  %v4251_v53 = vunpack.c.l.b16 %v4195_v33  ;;  %v4252_v22 = vunpack.c.l.b16 %v4198_v8  ;;  %v7856_v6 = vld [vmem:[#allocation12_spill] sm:$0xff] }
 0x245   : > { %v3943_v38 = vpop.f32.mrf.mxu3  ;;  %v3763_v58 = vor.u32 %v3762_v48, %v3759_v12  ;;  %v3776_v49 = vshll.u32 %v7628_v44, 16  ;;  %v2779_v62 = vsel %vm6449_vm5, %v5359_v1, %v2778_v52  ;;  %v2782_v5 = vsel %vm6449_vm5, %v2780_v36, %v2781_v47  ;;  %v7857_v1 = vld [vmem:[#allocation13_spill] sm:$0xff] }
 0x246   : > { %v4569_v15 = vadd.f32 %v4537_v27, %v4505_v20  ;;  %4408 = vmatmul.bf16.gmra.mxu0 %v4268_v24  ;;  %v4008_v26 = vadd.f32 %v3943_v38, %v3326_v31  ;;  %v3773_v38 = vor.u32 %v3772_v21, %v7623_v29  ;;  %v4201_v52 = vrot.slane %v7608_v59, 5 }
 0x247   : > { %v4204_v59 = vrot.slane %v7628_v44, 5  ;;  %v4540_v36 = vunpack.c.l.bf16 %v7857_v1 }
 0x248   : > { %vm4601_vm15 = vcmp.ge.f32.partialorder %v4569_v15, 0.0  ;;  %v4633_v51 = vmul.f32 0.01, %v4569_v15  ;;  %v4434_v25 = vadd.f32 %v4369_v28, %v4008_v26  ;;  %v3263_v46 = vpop.f32.mrf.mxu2  ;;  %v4269_v26 = vpack.c.b16 %v4252_v22, %v4251_v53 }
 0x249   : > { %v3327_v24 = vadd.f32 %v3263_v46, %v3012_v4  ;;  %v3774_v3 = vrot.slane %v3773_v38, 4  ;;  %v2830_v4 = vunpack.c.l.b16 %v2779_v62  ;;  %v2831_v46 = vunpack.c.l.b16 %v2782_v5 }
 0x24a   : > { %v4665_v37 = vsel %vm4601_vm15, %v4569_v15, %v4633_v51  ;;  %v4470_v27 = vmul.f32 %v7363_v13, %v4434_v25  ;;  %v2951_v23 = vpop.f32.mrf.mxu1  ;;  %v4539_v15 = vunpack.c.l.bf16 %v7856_v6  ;;  %v3778_v51 = vrot.slane %v3776_v49, 5  ;;  %v5663_v25 = vld [vmem:[%s6134_s28 + $0xcc] sm:$0xe] }
 0x24b   : > { %v5874_v57 = vpack.c.bf16 %v4665_v37, %v4664_v35  ;;  %v4371_v7 = vpop.f32.mrf.mxu0  ;;  %v3013_v50 = vadd.f32 %v2951_v23, %v6996_v14  ;;  %v5679_v48 = vrot.slane %v5663_v25, 9  ;;  %v4203_v23 = vrot.slane %v4201_v52, 4 }
 0x24c   : > { %v4506_v31 = vadd.f32 %v7379_v2, %v4470_v27  ;;  %2990 = vmatmul.bf16.gmra.mxu1 %v2846_v56  ;;  %v3779_v27 = vsel %vm6149_vm2, %v3774_v3, %v3778_v51 }
 0x24d   : > { %5934 = vst [vmem:[%s7438_s25 + $0x20] sm:$0xff] %v5874_v57   ;;  %v3945_v28 = vpop.f32.mrf.mxu3  ;;  %3305 = vmatmul.bf16.gmra.mxu2 %v5825_v61  ;;  %v4202_v38 = vsel %vm6449_vm5, %v5679_v48, %v4201_v52 }
 0x24e   : > { %v4570_v60 = vadd.f32 %v4538_v41, %v4506_v31  ;;  %v4009_v20 = vadd.f32 %v3945_v28, %v3327_v24  ;;  %v3764_v41 = vrot.slane %v3763_v58, 4  ;;  %v2847_v24 = vpack.c.b16 %v2831_v46, %v2830_v4 }
 0x24f   : > { %v3828_v28 = vunpack.c.l.b16 %v3779_v27  ;;  %v4253_v62 = vunpack.c.l.b16 %v4202_v38 }
 0x250   : > { %v4435_v19 = vadd.f32 %v4371_v7, %v4009_v20  ;;  %v3266_v63 = vpop.f32.mrf.mxu2  ;;  %v3769_v12 = vsel %vm6149_vm2, %v3764_v41, %v7623_v29  ;;  %v4634_v21 = vmul.f32 0.01, %v4570_v60  ;;  %vm4602_vm0 = vcmp.ge.f32.partialorder %v4570_v60, 0.0  ;;  %v7858_v41 = vld [vmem:[#allocation14_spill] sm:$0xff] }
 0x251   : > { %v3328_v33 = vadd.f32 %v3266_v63, %v3013_v50  ;;  %v3827_v47 = vunpack.c.l.b16 %v3769_v12  ;;  %v7859_v12 = vld [vmem:[#allocation15_spill] sm:$0xff] }
 0x252   : > { %v4471_v56 = vmul.f32 %v7363_v13, %v4435_v19  ;;  %3987 = vmatmul.bf16.gmra.mxu3 %v3843_v18  ;;  %v2953_v8 = vpop.f32.mrf.mxu1  ;;  %v4666_v18 = vsel %vm4602_vm0, %v4570_v60, %v4634_v21  ;;  %v4542_v48 = vunpack.c.l.bf16 %v7859_v12 }
 0x253   : > { %v4374_v14 = vpop.f32.mrf.mxu0  ;;  %v3014_v31 = vadd.f32 %v2953_v8, %v7015_v39  ;;  %v4205_v39 = vsel %vm6449_vm5, %v4203_v23, %v4204_v59  ;;  %v3844_v60 = vpack.c.b16 %v3828_v28, %v3827_v47  ;;  %v7860_v47 = vld [vmem:[#allocation16_spill] sm:$0xff] }
 0x254   : > { %v4507_v61 = vadd.f32 %v7379_v2, %v4471_v56  ;;  %v4254_v5 = vunpack.c.l.b16 %v4205_v39  ;;  %v4541_v56 = vunpack.c.l.bf16 %v7858_v41  ;;  %v4543_v28 = vunpack.c.l.bf16 %v7860_v47 }
 0x255   : > { %v3948_v54 = vpop.f32.mrf.mxu3 }
 0x256   : > { %v4571_v35 = vadd.f32 %v4539_v15, %v4507_v61  ;;  %4413 = vmatmul.bf16.gmra.mxu0 %v4269_v26  ;;  %v4010_v37 = vadd.f32 %v3948_v54, %v3328_v33  ;;  %v4270_v33 = vpack.c.b16 %v4254_v5, %v4253_v62 }
 0x258   : > { %vm4603_vm1 = vcmp.ge.f32.partialorder %v4571_v35, 0.0  ;;  %v4635_v57 = vmul.f32 0.01, %v4571_v35  ;;  %v4436_v7 = vadd.f32 %v4374_v14, %v4010_v37  ;;  %v3268_v29 = vpop.f32.mrf.mxu2 }
 0x259   : > { %v3329_v22 = vadd.f32 %v3268_v29, %v3014_v31 }
 0x25a   : > { %v4667_v30 = vsel %vm4603_vm1, %v4571_v35, %v4635_v57  ;;  %v4472_v53 = vmul.f32 %v7363_v13, %v4436_v7  ;;  %v2956_v58 = vpop.f32.mrf.mxu1 }
 0x25b   : > { %v5879_v20 = vpack.c.bf16 %v4667_v30, %v4666_v18  ;;  %v4376_v44 = vpop.f32.mrf.mxu0  ;;  %v3015_v15 = vadd.f32 %v2956_v58, %v7028_v55 }
 0x25c   : > { %v4508_v49 = vadd.f32 %v7379_v2, %v4472_v53  ;;  %2995 = vmatmul.bf16.gmra.mxu1 %v2847_v24 }
 0x25d   : > { %5935 = vst [vmem:[%s7438_s25 + $0x28] sm:$0xff] %v5879_v20   ;;  %v3950_v19 = vpop.f32.mrf.mxu3  ;;  %3310 = vmatmul.bf16.gmra.mxu2 %v5826_v11 }
 0x25e   : > { %v4572_v50 = vadd.f32 %v4540_v36, %v4508_v49  ;;  %v4011_v63 = vadd.f32 %v3950_v19, %v3329_v22 }
 0x260   : > { %v4437_v6 = vadd.f32 %v4376_v44, %v4011_v63  ;;  %v3271_v26 = vpop.f32.mrf.mxu2  ;;  %v4636_v4 = vmul.f32 0.01, %v4572_v50  ;;  %vm4604_vm2 = vcmp.ge.f32.partialorder %v4572_v50, 0.0 }
 0x261   : > { %v3330_v8 = vadd.f32 %v3271_v26, %v3015_v15 }
 0x262   : > { %v4473_v43 = vmul.f32 %v7363_v13, %v4437_v6  ;;  %3992 = vmatmul.bf16.gmra.mxu3 %v3844_v60  ;;  %v2958_v3 = vpop.f32.mrf.mxu1  ;;  %v4668_v21 = vsel %vm4604_vm2, %v4572_v50, %v4636_v4  ;;  %v7861_v50 = vld [vmem:[#allocation17_spill] sm:$0xff] }
 0x263   : > { %v4379_v51 = vpop.f32.mrf.mxu0  ;;  %v3016_v54 = vadd.f32 %v2958_v3, %v7052_v32  ;;  %v7676_v32 = vld [vmem:[%s7768_s3] ss:$0 sm:$0xff]  ;;  %v4544_v63 = vunpack.c.l.bf16 %v7861_v50 }
 0x264   : > { %v4509_v25 = vadd.f32 %v7379_v2, %v4473_v43  ;;  %v7670_v2 = vld [vmem:[%s7767_s2] ss:$0 sm:$0xff] }
 0x265   : > { %v3953_v14 = vpop.f32.mrf.mxu3 }
 0x266   : > { %v4573_v46 = vadd.f32 %v4541_v56, %v4509_v25  ;;  %4418 = vmatmul.bf16.gmra.mxu0 %v4270_v33  ;;  %v4012_v52 = vadd.f32 %v3953_v14, %v3330_v8  ;;  %v7862_v14 = vld [vmem:[#allocation18_spill] sm:$0xff] }
 0x267   : > { %v4545_v4 = vunpack.c.l.bf16 %v7862_v14 }
 0x268   : > { %vm4605_vm3 = vcmp.ge.f32.partialorder %v4573_v46, 0.0  ;;  %v4637_v55 = vmul.f32 0.01, %v4573_v46  ;;  %v4438_v61 = vadd.f32 %v4379_v51, %v4012_v52  ;;  %v3273_v13 = vpop.f32.mrf.mxu2 }
 0x269   : > { %v3331_v27 = vadd.f32 %v3273_v13, %v3016_v54 }
 0x26a   : > { %v4669_v35 = vsel %vm4605_vm3, %v4573_v46, %v4637_v55  ;;  %v4474_v37 = vmul.f32 %v7670_v2, %v4438_v61  ;;  %v2961_v24 = vpop.f32.mrf.mxu1 }
 0x26b   : > { %v5884_v23 = vpack.c.bf16 %v4669_v35, %v4668_v21  ;;  %v4381_v59 = vpop.f32.mrf.mxu0  ;;  %v3017_v36 = vadd.f32 %v2961_v24, %v7067_v42  ;;  %v7863_v24 = vld [vmem:[#allocation19_spill] sm:$0xff] }
 0x26c   : > { %v4510_v57 = vadd.f32 %v7676_v32, %v4474_v37 }
 0x26d   : > { %5936 = vst [vmem:[%s7438_s25 + $0x30] sm:$0xff] %v5884_v23   ;;  %v3955_v7 = vpop.f32.mrf.mxu3  ;;  %v4546_v23 = vunpack.c.l.bf16 %v7863_v24 }
 0x26e   : > { %v4574_v31 = vadd.f32 %v4542_v48, %v4510_v57  ;;  %v4013_v29 = vadd.f32 %v3955_v7, %v3331_v27 }
 0x270   : > { %v4439_v1 = vadd.f32 %v4381_v59, %v4013_v29  ;;  %v3276_v11 = vpop.f32.mrf.mxu2  ;;  %v4638_v44 = vmul.f32 0.01, %v4574_v31  ;;  %vm4606_vm4 = vcmp.ge.f32.partialorder %v4574_v31, 0.0 }
 0x271   : > { %v3332_v30 = vadd.f32 %v3276_v11, %v3017_v36 }
 0x272   : > { %v4475_v18 = vmul.f32 %v7670_v2, %v4439_v1  ;;  %v2963_v53 = vpop.f32.mrf.mxu1  ;;  %v4670_v62 = vsel %vm4606_vm4, %v4574_v31, %v4638_v44 }
 0x273   : > { %v4384_v22 = vpop.f32.mrf.mxu0  ;;  %v3018_v42 = vadd.f32 %v2963_v53, %v7093_v16 }
 0x274   : > { %v4511_v58 = vadd.f32 %v7676_v32, %v4475_v18 }
 0x275   : > { %v3958_v20 = vpop.f32.mrf.mxu3 }
 0x276   : > { %v4575_v38 = vadd.f32 %v4543_v28, %v4511_v58  ;;  %v4014_v39 = vadd.f32 %v3958_v20, %v3332_v30 }
 0x278   : > { %vm4607_vm5 = vcmp.ge.f32.partialorder %v4575_v38, 0.0  ;;  %v4639_v49 = vmul.f32 0.01, %v4575_v38  ;;  %v4440_v19 = vadd.f32 %v4384_v22, %v4014_v39  ;;  %v3278_v60 = vpop.f32.mrf.mxu2  ;;  %v7864_v22 = vld [vmem:[#allocation20_spill] sm:$0xff] }
 0x279   : > { %v3333_v15 = vadd.f32 %v3278_v60, %v3018_v42  ;;  %v4547_v58 = vunpack.c.l.bf16 %v7864_v22 }
 0x27a   : > { %v4671_v5 = vsel %vm4607_vm5, %v4575_v38, %v4639_v49  ;;  %v4476_v6 = vmul.f32 %v7670_v2, %v4440_v19  ;;  %v2966_v26 = vpop.f32.mrf.mxu1 }
 0x27b   : > { %v5889_v41 = vpack.c.bf16 %v4671_v5, %v4670_v62  ;;  %v4386_v56 = vpop.f32.mrf.mxu0  ;;  %v3019_v16 = vadd.f32 %v2966_v26, %v7107_v9 }
 0x27c   : > { %v4512_v43 = vadd.f32 %v7676_v32, %v4476_v6  ;;  %v7865_v6 = vld [vmem:[#allocation21_spill] sm:$0xff] }
 0x27d   : > { %5937 = vst [vmem:[%s7438_s25 + $0x38] sm:$0xff] %v5889_v41   ;;  %v3960_v33 = vpop.f32.mrf.mxu3 }
 0x27e   : > { %v4576_v8 = vadd.f32 %v4544_v63, %v4512_v43  ;;  %v4015_v3 = vadd.f32 %v3960_v33, %v3333_v15  ;;  %v4548_v15 = vunpack.c.l.bf16 %v7865_v6 }
 0x280   : > { %v4441_v51 = vadd.f32 %v4386_v56, %v4015_v3  ;;  %v3281_v25 = vpop.f32.mrf.mxu2  ;;  %v4640_v12 = vmul.f32 0.01, %v4576_v8  ;;  %vm4608_vm6 = vcmp.ge.f32.partialorder %v4576_v8, 0.0 }
 0x281   : > { %v3334_v52 = vadd.f32 %v3281_v25, %v3019_v16 }
 0x282   : > { %v4477_v46 = vmul.f32 %v7670_v2, %v4441_v51  ;;  %v2968_v55 = vpop.f32.mrf.mxu1  ;;  %v4672_v59 = vsel %vm4608_vm6, %v4576_v8, %v4640_v12 }
 0x283   : > { %v4389_v61 = vpop.f32.mrf.mxu0  ;;  %v3020_v9 = vadd.f32 %v2968_v55, %v7130_v40 }
 0x284   : > { %v4513_v54 = vadd.f32 %v7676_v32, %v4477_v46 }
 0x285   : > { %v3963_v13 = vpop.f32.mrf.mxu3 }
 0x286   : > { %v4577_v48 = vadd.f32 %v4545_v4, %v4513_v54  ;;  %v4016_v21 = vadd.f32 %v3963_v13, %v3334_v52  ;;  %v7866_v52 = vld [vmem:[#allocation22_spill] sm:$0xff] }
 0x287   : > { %v4549_v55 = vunpack.c.l.bf16 %v7866_v52 }
 0x288   : > { %vm4609_vm7 = vcmp.ge.f32.partialorder %v4577_v48, 0.0  ;;  %v4641_v35 = vmul.f32 0.01, %v4577_v48  ;;  %v4442_v37 = vadd.f32 %v4389_v61, %v4016_v21  ;;  %v3283_v27 = vpop.f32.mrf.mxu2 }
 0x289   : > { %v3335_v31 = vadd.f32 %v3283_v27, %v3020_v9 }
 0x28a   : > { %v4673_v57 = vsel %vm4609_vm7, %v4577_v48, %v4641_v35  ;;  %v4478_v7 = vmul.f32 %v7670_v2, %v4442_v37  ;;  %v2971_v29 = vpop.f32.mrf.mxu1 }
 0x28b   : > { %v5894_v1 = vpack.c.bf16 %v4673_v57, %v4672_v59  ;;  %v4391_v36 = vpop.f32.mrf.mxu0  ;;  %v3021_v40 = vadd.f32 %v2971_v29, %v7145_v10  ;;  %v7867_v59 = vld [vmem:[#allocation23_spill] sm:$0xff] }
 0x28c   : > { %v4514_v11 = vadd.f32 %v7676_v32, %v4478_v7  ;;  %v4550_v57 = vunpack.c.l.bf16 %v7867_v59  ;;  %v7873_v59 = vld [vmem:[#allocation36_spill] sm:$0xff] }
 0x28d   : > { %5938 = vst [vmem:[%s7438_s25 + $0x40] sm:$0xff] %v5894_v1   ;;  %v3965_v47 = vpop.f32.mrf.mxu3 }
 0x28e   : > { %v4578_v28 = vadd.f32 %v4546_v23, %v4514_v11  ;;  %v4017_v18 = vadd.f32 %v3965_v47, %v3335_v31 }
 0x290   : > { %v4443_v30 = vadd.f32 %v4391_v36, %v4017_v18  ;;  %v3286_v53 = vpop.f32.mrf.mxu2  ;;  %v4642_v42 = vmul.f32 0.01, %v4578_v28  ;;  %vm4610_vm8 = vcmp.ge.f32.partialorder %v4578_v28, 0.0 }
 0x291   : > { %v3336_v44 = vadd.f32 %v3286_v53, %v3021_v40 }
 0x292   : > { %v4479_v20 = vmul.f32 %v7670_v2, %v4443_v30  ;;  %v2973_v38 = vpop.f32.mrf.mxu1  ;;  %v4674_v26 = vsel %vm4610_vm8, %v4578_v28, %v4642_v42 }
 0x293   : > { %v4394_v39 = vpop.f32.mrf.mxu0  ;;  %v3022_v10 = vadd.f32 %v2973_v38, %v7171_v45 }
 0x294   : > { %v4515_v49 = vadd.f32 %v7676_v32, %v4479_v20 }
 0x295   : > { %v3968_v19 = vpop.f32.mrf.mxu3 }
 0x296   : > { %v4579_v60 = vadd.f32 %v4547_v58, %v4515_v49  ;;  %v4018_v50 = vadd.f32 %v3968_v19, %v3336_v44  ;;  %v7868_v58 = vld [vmem:[#allocation24_spill] sm:$0xff] }
 0x297   : > { %v4551_v20 = vunpack.c.l.bf16 %v7868_v58 }
 0x298   : > { %vm4611_vm9 = vcmp.ge.f32.partialorder %v4579_v60, 0.0  ;;  %v4643_v63 = vmul.f32 0.01, %v4579_v60  ;;  %v4444_v62 = vadd.f32 %v4394_v39, %v4018_v50  ;;  %v3288_v5 = vpop.f32.mrf.mxu2 }
 0x299   : > { %v3337_v43 = vadd.f32 %v3288_v5, %v3022_v10 }
 0x29a   : > { %v4675_v41 = vsel %vm4611_vm9, %v4579_v60, %v4643_v63  ;;  %v4480_v56 = vmul.f32 %v7670_v2, %v4444_v62  ;;  %v2976_v33 = vpop.f32.mrf.mxu1 }
 0x29b   : > { %v5899_v8 = vpack.c.bf16 %v4675_v41, %v4674_v26  ;;  %v4396_v3 = vpop.f32.mrf.mxu0  ;;  %v3023_v45 = vadd.f32 %v2976_v33, %v7185_v17 }
 0x29c   : > { %v4516_v51 = vadd.f32 %v7676_v32, %v4480_v56 }
 0x29d   : > { %5939 = vst [vmem:[%s7438_s25 + $0x48] sm:$0xff] %v5899_v8   ;;  %v3970_v16 = vpop.f32.mrf.mxu3 }
 0x29e   : > { %v4580_v25 = vadd.f32 %v4548_v15, %v4516_v51  ;;  %v4019_v14 = vadd.f32 %v3970_v16, %v3337_v43  ;;  %v7870_v15 = vld [vmem:[#allocation25_spill] sm:$0xff] }
 0x29f   : > { %v4552_v26 = vunpack.c.l.bf16 %v7870_v15 }
 0x2a0   : > { %v4445_v4 = vadd.f32 %v4396_v3, %v4019_v14  ;;  %v3291_v46 = vpop.f32.mrf.mxu2  ;;  %v4644_v35 = vmul.f32 0.01, %v4580_v25  ;;  %vm4612_vm10 = vcmp.ge.f32.partialorder %v4580_v25, 0.0 }
 0x2a1   : > { %v3338_v54 = vadd.f32 %v3291_v46, %v3023_v45  ;;  %v7871_v46 = vld [vmem:[#allocation35_spill] sm:$0xff] }
 0x2a2   : > { %v4481_v61 = vmul.f32 %v7670_v2, %v4445_v4  ;;  %v2978_v13 = vpop.f32.mrf.mxu1  ;;  %v4676_v7 = vsel %vm4612_vm10, %v4580_v25, %v4644_v35 }
 0x2a3   : > { %v4399_v12 = vpop.f32.mrf.mxu0  ;;  %v3024_v17 = vadd.f32 %v2978_v13, %v7208_v34 }
 0x2a4   : > { %v4517_v48 = vadd.f32 %v7676_v32, %v4481_v61  ;;  %v7872_v61 = vld [vmem:[#allocation26_spill] sm:$0xff] }
 0x2a5   : > { %v3973_v21 = vpop.f32.mrf.mxu3 }
 0x2a6   : > { %v4581_v37 = vadd.f32 %v4549_v55, %v4517_v48  ;;  %v4020_v9 = vadd.f32 %v3973_v21, %v3338_v54  ;;  %v4553_v54 = vunpack.c.l.bf16 %v7872_v61 }
 0x2a8   : > { %vm4613_vm11 = vcmp.ge.f32.partialorder %v4581_v37, 0.0  ;;  %v4645_v27 = vmul.f32 0.01, %v4581_v37  ;;  %v4446_v24 = vadd.f32 %v4399_v12, %v4020_v9  ;;  %v3293_v23 = vpop.f32.mrf.mxu2 }
 0x2a9   : > { %v3339_v1 = vadd.f32 %v3293_v23, %v3024_v17 }
 0x2aa   : > { %v4677_v31 = vsel %vm4613_vm11, %v4581_v37, %v4645_v27  ;;  %v4482_v29 = vmul.f32 %v7670_v2, %v4446_v24  ;;  %v2981_v36 = vpop.f32.mrf.mxu1 }
 0x2ab   : > { %v5904_v11 = vpack.c.bf16 %v4677_v31, %v4676_v7  ;;  %v4401_v47 = vpop.f32.mrf.mxu0  ;;  %v3025_v34 = vadd.f32 %v2981_v36, %v7223_v0  ;;  %v7869_v0 = vld [vmem:[#allocation34_spill] sm:$0xff]  ;;  %v7874_v31 = vld [vmem:[#allocation27_spill] sm:$0xff] }
 0x2ac   : > { %v4518_v28 = vadd.f32 %v7676_v32, %v4482_v29  ;;  %v4554_v29 = vunpack.c.l.bf16 %v7874_v31 }
 0x2ad   : > { %5940 = vst [vmem:[%s7438_s25 + $0x50] sm:$0xff] %v5904_v11   ;;  %v3975_v18 = vpop.f32.mrf.mxu3 }
 0x2ae   : > { %v4582_v30 = vadd.f32 %v4550_v57, %v4518_v28  ;;  %v4021_v40 = vadd.f32 %v3975_v18, %v3339_v1 }
 0x2b0   : > { %v4447_v53 = vadd.f32 %v4401_v47, %v4021_v40  ;;  %v3296_v22 = vpop.f32.mrf.mxu2  ;;  %v4646_v60 = vmul.f32 0.01, %v4582_v30  ;;  %vm4614_vm12 = vcmp.ge.f32.partialorder %v4582_v30, 0.0 }
 0x2b1   : > { %v3340_v38 = vadd.f32 %v3296_v22, %v3025_v34 }
 0x2b2   : > { %v4483_v44 = vmul.f32 %v7670_v2, %v4447_v53  ;;  %v2983_v39 = vpop.f32.mrf.mxu1  ;;  %v4678_v41 = vsel %vm4614_vm12, %v4582_v30, %v4646_v60 }
 0x2b3   : > { %v4404_v49 = vpop.f32.mrf.mxu0  ;;  %v3026_v5 = vadd.f32 %v2983_v39, %v7869_v0  ;;  %v7876_v39 = vld [vmem:[#allocation28_spill] sm:$0xff] }
 0x2b4   : > { %v4519_v19 = vadd.f32 %v7676_v32, %v4483_v44 }
 0x2b5   : > { %v3978_v42 = vpop.f32.mrf.mxu3 }
 0x2b6   : > { %v4583_v50 = vadd.f32 %v4551_v20, %v4519_v19  ;;  %v4022_v63 = vadd.f32 %v3978_v42, %v3340_v38  ;;  %v7875_v20 = vld [vmem:[#allocation37_spill] sm:$0xff] }
 0x2b8   : > { %vm4615_vm13 = vcmp.ge.f32.partialorder %v4583_v50, 0.0  ;;  %v4647_v62 = vmul.f32 0.01, %v4583_v50  ;;  %v4448_v10 = vadd.f32 %v4404_v49, %v4022_v63  ;;  %v3298_v6 = vpop.f32.mrf.mxu2  ;;  %v4555_v49 = vunpack.c.l.bf16 %v7876_v39  ;;  %v7883_v39 = vld [vmem:[#allocation33_spill] sm:$0xff] }
 0x2b9   : > { %v3341_v33 = vadd.f32 %v3298_v6, %v3026_v5 }
 0x2ba   : > { %v4679_v56 = vsel %vm4615_vm13, %v4583_v50, %v4647_v62  ;;  %v4484_v43 = vmul.f32 %v7670_v2, %v4448_v10  ;;  %v2986_v8 = vpop.f32.mrf.mxu1 }
 0x2bb   : > { %v5909_v3 = vpack.c.bf16 %v4679_v56, %v4678_v41  ;;  %v4406_v51 = vpop.f32.mrf.mxu0  ;;  %v3027_v52 = vadd.f32 %v2986_v8, %v7871_v46 }
 0x2bc   : > { %v4520_v16 = vadd.f32 %v7676_v32, %v4484_v43  ;;  %v7878_v43 = vld [vmem:[#allocation29_spill] sm:$0xff] }
 0x2bd   : > { %5941 = vst [vmem:[%s7438_s25 + $0x58] sm:$0xff] %v5909_v3   ;;  %v3980_v25 = vpop.f32.mrf.mxu3 }
 0x2be   : > { %v4584_v14 = vadd.f32 %v4552_v26, %v4520_v16  ;;  %v4023_v4 = vadd.f32 %v3980_v25, %v3341_v33  ;;  %v7877_v26 = vld [vmem:[#allocation38_spill] sm:$0xff]  ;;  %v4556_v33 = vunpack.c.l.bf16 %v7878_v43 }
 0x2c0   : > { %v4449_v45 = vadd.f32 %v4406_v51, %v4023_v4  ;;  %v3301_v55 = vpop.f32.mrf.mxu2  ;;  %v4648_v9 = vmul.f32 0.01, %v4584_v14  ;;  %vm4616_vm14 = vcmp.ge.f32.partialorder %v4584_v14, 0.0 }
 0x2c1   : > { %v3342_v12 = vadd.f32 %v3301_v55, %v3027_v52 }
 0x2c2   : > { %v4485_v13 = vmul.f32 %v7670_v2, %v4449_v45  ;;  %v2988_v48 = vpop.f32.mrf.mxu1  ;;  %v4680_v1 = vsel %vm4616_vm14, %v4584_v14, %v4648_v9 }
 0x2c3   : > { %v4409_v21 = vpop.f32.mrf.mxu0  ;;  %v3028_v57 = vadd.f32 %v2988_v48, %v7873_v59  ;;  %v7880_v48 = vld [vmem:[#allocation31_spill] sm:$0xff] }
 0x2c4   : > { %v4521_v35 = vadd.f32 %v7676_v32, %v4485_v13 }
 0x2c5   : > { %v3983_v37 = vpop.f32.mrf.mxu3 }
 0x2c6   : > { %v4585_v27 = vadd.f32 %v4553_v54, %v4521_v35  ;;  %v4024_v24 = vadd.f32 %v3983_v37, %v3342_v12  ;;  %v7879_v54 = vld [vmem:[#allocation39_spill] sm:$0xff] }
 0x2c8   : > { %vm4617_vm15 = vcmp.ge.f32.partialorder %v4585_v27, 0.0  ;;  %v4649_v17 = vmul.f32 0.01, %v4585_v27  ;;  %v4450_v23 = vadd.f32 %v4409_v21, %v4024_v24  ;;  %v3303_v7 = vpop.f32.mrf.mxu2  ;;  %v4557_v21 = vunpack.c.l.bf16 %v7880_v48 }
 0x2c9   : > { %v3343_v47 = vadd.f32 %v3303_v7, %v3028_v57 }
 0x2ca   : > { %v4681_v36 = vsel %vm4617_vm15, %v4585_v27, %v4649_v17  ;;  %v4486_v11 = vmul.f32 %v7670_v2, %v4450_v23  ;;  %v2991_v28 = vpop.f32.mrf.mxu1 }
 0x2cb   : > { %v5914_v18 = vpack.c.bf16 %v4681_v36, %v4680_v1  ;;  %v4411_v30 = vpop.f32.mrf.mxu0  ;;  %v3029_v44 = vadd.f32 %v2991_v28, %v7875_v20 }
 0x2cc   : > { %v4522_v40 = vadd.f32 %v7676_v32, %v4486_v11  ;;  %v7882_v11 = vld [vmem:[#allocation32_spill] sm:$0xff] }
 0x2cd   : > { %5942 = vst [vmem:[%s7438_s25 + $0x60] sm:$0xff] %v5914_v18   ;;  %v3985_v53 = vpop.f32.mrf.mxu3 }
 0x2ce   : > { %v4586_v34 = vadd.f32 %v4554_v29, %v4522_v40  ;;  %v4025_v22 = vadd.f32 %v3985_v53, %v3343_v47  ;;  %v7881_v29 = vld [vmem:[#allocation40_spill] sm:$0xff]  ;;  %v4558_v47 = vunpack.c.l.bf16 %v7882_v11 }
 0x2d0   : > { %v4451_v58 = vadd.f32 %v4411_v30, %v4025_v22  ;;  %v3306_v38 = vpop.f32.mrf.mxu2  ;;  %v4650_v10 = vmul.f32 0.01, %v4586_v34  ;;  %vm4618_vm0 = vcmp.ge.f32.partialorder %v4586_v34, 0.0 }
 0x2d1   : > { %v3344_v42 = vadd.f32 %v3306_v38, %v3029_v44 }
 0x2d2   : > { %v4487_v19 = vmul.f32 %v7670_v2, %v4451_v58  ;;  %v2993_v60 = vpop.f32.mrf.mxu1  ;;  %v4682_v8 = vsel %vm4618_vm0, %v4586_v34, %v4650_v10 }
 0x2d3   : > { %v4414_v50 = vpop.f32.mrf.mxu0  ;;  %v3030_v41 = vadd.f32 %v2993_v60, %v7877_v26 }
 0x2d4   : > { %v4523_v63 = vadd.f32 %v7676_v32, %v4487_v19 }
 0x2d5   : > { %v3988_v62 = vpop.f32.mrf.mxu3 }
 0x2d6   : > { %v4587_v0 = vadd.f32 %v4555_v49, %v4523_v63  ;;  %v4026_v5 = vadd.f32 %v3988_v62, %v3344_v42  ;;  %v4559_v49 = vunpack.c.l.bf16 %v7883_v39 }
 0x2d8   : > { %vm4619_vm1 = vcmp.ge.f32.partialorder %v4587_v0, 0.0  ;;  %v4651_v6 = vmul.f32 0.01, %v4587_v0  ;;  %v4452_v15 = vadd.f32 %v4414_v50, %v4026_v5  ;;  %v3308_v56 = vpop.f32.mrf.mxu2 }
 0x2d9   : > { %v3345_v16 = vadd.f32 %v3308_v56, %v3030_v41 }
 0x2da   : > { %v4683_v3 = vsel %vm4619_vm1, %v4587_v0, %v4651_v6  ;;  %v4488_v51 = vmul.f32 %v7670_v2, %v4452_v15  ;;  %v2996_v25 = vpop.f32.mrf.mxu1 }
 0x2db   : > { %v5919_v14 = vpack.c.bf16 %v4683_v3, %v4682_v8  ;;  %v4416_v4 = vpop.f32.mrf.mxu0  ;;  %v3031_v13 = vadd.f32 %v2996_v25, %v7879_v54 }
 0x2dc   : > { %v4524_v45 = vadd.f32 %v7676_v32, %v4488_v51 }
 0x2dd   : > { %5943 = vst [vmem:[%s7438_s25 + $0x68] sm:$0xff] %v5919_v14   ;;  %v3990_v46 = vpop.f32.mrf.mxu3 }
 0x2de   : > { %v4588_v52 = vadd.f32 %v4556_v33, %v4524_v45  ;;  %v4027_v55 = vadd.f32 %v3990_v46, %v3345_v16 }
 0x2e0   : > { %v4453_v61 = vadd.f32 %v4416_v4, %v4027_v55  ;;  %v3311_v12 = vpop.f32.mrf.mxu2  ;;  %v4652_v23 = vmul.f32 0.01, %v4588_v52  ;;  %vm4620_vm2 = vcmp.ge.f32.partialorder %v4588_v52, 0.0 }
 0x2e1   : > { %v3346_v37 = vadd.f32 %v3311_v12, %v3031_v13 }
 0x2e2   : > { %v4489_v35 = vmul.f32 %v7670_v2, %v4453_v61  ;;  %v2998_v27 = vpop.f32.mrf.mxu1  ;;  %v4684_v28 = vsel %vm4620_vm2, %v4588_v52, %v4652_v23 }
 0x2e3   : > { %v4419_v24 = vpop.f32.mrf.mxu0  ;;  %v3032_v1 = vadd.f32 %v2998_v27, %v7881_v29 }
 0x2e4   : > { %v4525_v9 = vadd.f32 %v7676_v32, %v4489_v35 }
 0x2e5   : > { %v3993_v17 = vpop.f32.mrf.mxu3 }
 0x2e6   : > { %v4589_v59 = vadd.f32 %v4557_v21, %v4525_v9  ;;  %v4028_v57 = vadd.f32 %v3993_v17, %v3346_v37 }
 0x2e8   : > { %vm4621_vm3 = vcmp.ge.f32.partialorder %v4589_v59, 0.0  ;;  %v4653_v7 = vmul.f32 0.01, %v4589_v59  ;;  %v4454_v31 = vadd.f32 %v4419_v24, %v4028_v57  ;;  %v3313_v36 = vpop.f32.mrf.mxu2 }
 0x2e9   : > { %v3347_v40 = vadd.f32 %v3313_v36, %v3032_v1 }
 0x2ea   : > { %v4685_v18 = vsel %vm4621_vm3, %v4589_v59, %v4653_v7  ;;  %v4490_v30 = vmul.f32 %v7670_v2, %v4454_v31 }
 0x2eb   : > { %v5924_v53 = vpack.c.bf16 %v4685_v18, %v4684_v28  ;;  %v4421_v44 = vpop.f32.mrf.mxu0 }
 0x2ec   : > { %v4526_v34 = vadd.f32 %v7676_v32, %v4490_v30 }
 0x2ed   : > { %5944 = vst [vmem:[%s7438_s25 + $0x70] sm:$0xff] %v5924_v53   ;;  %v3995_v22 = vpop.f32.mrf.mxu3 }
 0x2ee   : > { %v4590_v58 = vadd.f32 %v4558_v47, %v4526_v34  ;;  %v4029_v20 = vadd.f32 %v3995_v22, %v3347_v40 }
 0x2f0   : > { %v4455_v38 = vadd.f32 %v4421_v44, %v4029_v20  ;;  %v4654_v60 = vmul.f32 0.01, %v4590_v58  ;;  %vm4622_vm4 = vcmp.ge.f32.partialorder %v4590_v58, 0.0 }
 0x2f2   : > { %v4491_v19 = vmul.f32 %v7670_v2, %v4455_v38  ;;  %v4686_v62 = vsel %vm4622_vm4, %v4590_v58, %v4654_v60 }
 0x2f4   : > { %v4527_v42 = vadd.f32 %v7676_v32, %v4491_v19 }
 0x2f6   : > { %v4591_v50 = vadd.f32 %v4559_v49, %v4527_v42 }
 0x2f8   : > { %vm4623_vm5 = vcmp.ge.f32.partialorder %v4591_v50, 0.0  ;;  %v4655_v63 = vmul.f32 0.01, %v4591_v50 }
 0x2fa   : > { %v4687_v10 = vsel %vm4623_vm5, %v4591_v50, %v4655_v63 }
 0x2fb   : > { %v5929_v0 = vpack.c.bf16 %v4687_v10, %v4686_v62 }
 0x2fd   : > { %5945 = vst [vmem:[%s7438_s25 + $0x78] sm:$0xff] %v5929_v0  }
 0x2fe PF: > { %s14_s17 = sadd.s32 1, %s6074_s17   ;;  %s7884_s15 = smov %s6070_s16 }
 0x2ff   : > { %p11_p5 = scmp.ge.s32.totalorder %s14_s17, 4   ;;  %s7885_s16 = smov %s7887_s18 }
 0x301   :  { %13 = sbr.rel (!%p11_p5) target bundleno = 2 (0x2), region = 85 }

// kernel: forward.5
= control target key start
LH: loop header
LB: loop body
LE: loop exit
PB: predicated region body
PF: predicated region fallthrough
CT: control target
= control target key end

     0   :  { %9 = vsyncpa [#allocation3], 0  ;;  %s5315_s0 = inlined_call_operand.vmem [shape: bf16[2,4,9,9,128], index: 0, kind: input, shape index: {}]   ;;  %s5316_s1 = inlined_call_operand.vmem [shape: bf16[9,128,256], index: 1, kind: input, shape index: {}]   ;;  %s5317_s2 = inlined_call_operand.vmem [shape: f32[1,256], index: 2, kind: input, shape index: {}]   ;;  %s5318_s3 = inlined_call_operand.vmem [shape: f32[1,256], index: 3, kind: input, shape index: {}]   ;;  %s5319_s4 = inlined_call_operand.hbm [shape: f32[2,64,256], index: 4, kind: output, shape index: {}]  }
   0x1   :  { %11 = vsyncpa [#allocation3 + $0x1], 0  ;;  %s3884_s15 = smov 0   ;;  %s3886_s16 = smov 0  }
   0x2   :  { %s3888_s17 = smov 0   ;;  %s3890_s18 = smov 0  }
   0x3   :  { %s3892_s19 = smov 0   ;;  %s3894_s20 = smov 0  }
   0x4 LB: > { %s2647_s21 = sadd.s32 4294967295, %s3855_s20   ;;  %s2648_s22 = sadd.s32 4294967294, %s3855_s20   ;;  %s3855_s20 = sphi %s3894_s20, %s17_s20   ;;  %s3851_s19 = sphi %s3892_s19, %s5328_s19   ;;  %s3847_s18 = sphi %s3890_s18, %s5327_s18   ;;  %s3843_s17 = sphi %s3888_s17, %s5326_s17   ;;  %s3839_s16 = sphi %s3886_s16, %s5325_s16   ;;  %s3835_s15 = sphi %s3884_s15, %s5324_s15  }
   0x5   : > { %s26_s23 = sadd.s32 1, %s3851_s19  ;;  %s142_s24 = sadd.s32 1, %s3843_s17 }
   0x6   : > { %p27_p0 = scmp.ge.s32.totalorder %s26_s23, 2  ;;  %p152_p1 = scmp.ne.s32.totalorder %s3843_s17, %s3839_s16 }
   0x7   : > { %p153_p2 = scmp.eq.s32.totalorder %s2647_s21, 1  ;;  %p158_p3 = scmp.ne.s32.totalorder %s3839_s16, %s3835_s15 }
   0x8   : > { %s5330_s23 = smov (%p27_p0, %s26_s23), 0  ;;  %p159_p5 = scmp.eq.s32.totalorder %s2648_s22, 1 }
   0x9   : > { %p3924_p4 = por %p153_p2, %p152_p1  ;;  %s137_s26 = ssub.s32 %s3851_s19, %s5330_s23 }
   0xa   : > { %p2654_p6 = scmp.ge.s32.totalorder %s3855_s20, 1  ;;  %p140_p7 = scmp.eq.s32.totalorder %s137_s26, 0 }
   0xb   : > { %p3931_p8 = por %p159_p5, %p158_p3  ;;  %p210_p9 = scmp.lt.s32.totalorder %s3855_s20, 3 }
   0xc   : > { %s3937_s28 = scalar_select %p140_p7, %s3843_s17, %s142_s24  }
   0xd   : > { %p211_p10 = pnand %p2654_p6, %p210_p9 }
   0xe   : > { %p249_p11 = scmp.lt.s32.totalorder (!%p211_p10), %s3847_s18, 1  ;;  %s3702_s24 = sshll.u32 (!%p211_p10), %s3847_s18, 7 }
   0xf   : > { %214 = sbr.rel (%p211_p10) target bundleno = 484 (0x1e4), region = 36  ;;  %s2531_s5 = scalar_lea.hbm (!%p211_p10), %s5319_s4, %s3702_s24 }
  0x10   : > { %s2534_s6 = sshll.u32 (!%p211_p10), %s2531_s5, 4  ;;  %s3797_s10 = scalar_lea.hbm (!%p211_p10), %s5319_s4, 256  ;;  %s2535_s6 = int_to_ptr.hbm [resolvable:$true] %s2534_s6 }
  0x11   : > { %s3791_s7 = sshra.s32 (!%p211_p10), %s2535_s6, 4  ;;  %s3792_s7 = int_to_ptr.hbm [resolvable:$true] %s3791_s7 }
  0x12   : > { %s3793_s8 = scalar_lea.hbm (!%p211_p10), %s3792_s7, 128  ;;  %p3798_p1 = scmp.lt.s32.totalorder (!%p211_p10), %s3792_s7, %s5319_s4 }
  0x13   : > { %p3794_p12 = scmp.ne.s32.totalorder (!%p211_p10), %s3792_s7, %s3793_s8  ;;  %p3799_p2 = scmp.lt.s32.totalorder (!%p211_p10), %s3797_s10, %s3793_s8 }
  0x14   : > { %v2755_v0 = vld [vmem:[%s5316_s1 + $0xf0] sm:$0xf]  ;;  %v3573_v1 = vld [vmem:[%s5316_s1 + $0xf4] sm:$0xf0]  ;;  %v3572_v2 = vld [vmem:[%s5316_s1 + $0xf4] sm:$0xf] }
  0x15   : > { %v2756_v3 = vor.u32 %v3573_v1, %v2755_v0  ;;  %v2757_v4 = vld [vmem:[%s5316_s1 + $0xf8] sm:$0xf0]  ;;  %v2747_v5 = vld [vmem:[%s5316_s1 + $0xe0] sm:$0xf]  ;;  %v3571_v6 = vld [vmem:[%s5316_s1 + $0xe4] sm:$0xf0]  ;;  %p3795_p13 = pnand %p3794_p12, %p3924_p4  ;;  %p3800_p3 = por %p3799_p2, %p3798_p1 }
  0x16   : > { %v2760_v7 = vor.u32 %v3572_v2, %v2757_v4  ;;  %v3570_v8 = vld [vmem:[%s5316_s1 + $0xe4] sm:$0xf]  ;;  %v2749_v9 = vld [vmem:[%s5316_s1 + $0xe8] sm:$0xf0]  ;;  %v2748_v10 = vor.u32 %v3571_v6, %v2747_v5  ;;  %v2739_v12 = vld [vmem:[%s5316_s1 + $0xd0] sm:$0xf] }
  0x17   : > { %425 = vmatpush.bf16.msra.mxu0 %v2756_v3  ;;  %3703 = vmatpush.bf16.msra.mxu2 %v2756_v3  ;;  %v2752_v11 = vor.u32 %v3570_v8, %v2749_v9  ;;  %v3569_v13 = vld [vmem:[%s5316_s1 + $0xd4] sm:$0xf0]  ;;  %v3568_v14 = vld [vmem:[%s5316_s1 + $0xd4] sm:$0xf]  ;;  %v2741_v15 = vld [vmem:[%s5316_s1 + $0xd8] sm:$0xf0]  ;;  %p3796_p0 = pneg %p3795_p13 }
  0x18   : > { %454 = vmatpush.bf16.msra.mxu1 %v2760_v7  ;;  %3711 = vmatpush.bf16.msra.mxu3 %v2760_v7  ;;  %v2740_v16 = vor.u32 %v3569_v13, %v2739_v12  ;;  %v2744_v17 = vor.u32 %v3568_v14, %v2741_v15  ;;  %v2731_v18 = vld [vmem:[%s5316_s1 + $0xc0] sm:$0xf]  ;;  %v3567_v19 = vld [vmem:[%s5316_s1 + $0xc4] sm:$0xf0]  ;;  %v3566_v20 = vld [vmem:[%s5316_s1 + $0xc4] sm:$0xf] }
  0x19   : > { %v2733_v21 = vld [vmem:[%s5316_s1 + $0xc8] sm:$0xf0]  ;;  %v2732_v22 = vor.u32 %v3567_v19, %v2731_v18  ;;  %v2723_v24 = vld [vmem:[%s5316_s1 + $0xb0] sm:$0xf]  ;;  %v3565_v25 = vld [vmem:[%s5316_s1 + $0xb4] sm:$0xf0]  ;;  %p3801_p5 = pnand %p3800_p3, %p3796_p0 }
  0x1a   : > { %v2736_v23 = vor.u32 %v3566_v20, %v2733_v21  ;;  %v3564_v26 = vld [vmem:[%s5316_s1 + $0xb4] sm:$0xf]  ;;  %v2725_v27 = vld [vmem:[%s5316_s1 + $0xb8] sm:$0xf0]  ;;  %v2724_v28 = vor.u32 %v3565_v25, %v2723_v24  ;;  %s250_s11 = scalar_select %p249_p11, %s3847_s18, 1 }
  0x1b   : > { %426 = vmatpush.bf16.msra.mxu0 %v2748_v10  ;;  %3704 = vmatpush.bf16.msra.mxu2 %v2748_v10  ;;  %v2728_v29 = vor.u32 %v3564_v26, %v2725_v27  ;;  %v2715_v30 = vld [vmem:[%s5316_s1 + $0xa0] sm:$0xf]  ;;  %v3563_v31 = vld [vmem:[%s5316_s1 + $0xa4] sm:$0xf0]  ;;  %v3562_v32 = vld [vmem:[%s5316_s1 + $0xa4] sm:$0xf] }
  0x1c   : > { %455 = vmatpush.bf16.msra.mxu1 %v2752_v11  ;;  %3712 = vmatpush.bf16.msra.mxu3 %v2752_v11  ;;  %v2717_v33 = vld [vmem:[%s5316_s1 + $0xa8] sm:$0xf0]  ;;  %v2716_v34 = vor.u32 %v3563_v31, %v2715_v30  ;;  %s3719_s30 = smul.u32 288, %s250_s11  ;;  %v2707_v36 = vld [vmem:[%s5316_s1 + $0x90] sm:$0xf]  ;;  %s246_s11 = sand.u32 1, %s3839_s16  }
  0x1d   : > { %v2720_v35 = vor.u32 %v3562_v32, %v2717_v33  ;;  %v3561_v37 = vld [vmem:[%s5316_s1 + $0x94] sm:$0xf0]  ;;  %v3560_v38 = vld [vmem:[%s5316_s1 + $0x94] sm:$0xf]  ;;  %v2709_v39 = vld [vmem:[%s5316_s1 + $0x98] sm:$0xf0] }
  0x1e   : > { %v2708_v40 = vor.u32 %v3561_v37, %v2707_v36  ;;  %s4028_s21 = scalar_lea.vmem %s5315_s0, %s3719_s30  ;;  %v2712_v41 = vor.u32 %v3560_v38, %v2709_v39  ;;  %v2699_v42 = vld [vmem:[%s5316_s1 + $0x80] sm:$0xf]  ;;  %v3559_v43 = vld [vmem:[%s5316_s1 + $0x84] sm:$0xf0]  ;;  %v3558_v44 = vld [vmem:[%s5316_s1 + $0x84] sm:$0xf] }
  0x1f   : > { %427 = vmatpush.bf16.msra.mxu0 %v2740_v16  ;;  %3705 = vmatpush.bf16.msra.mxu2 %v2740_v16  ;;  %v2701_v45 = vld [vmem:[%s5316_s1 + $0x88] sm:$0xf0]  ;;  %v2835_v46 = vld [vmem:[%s5316_s1 + $0x70] sm:$0xf]  ;;  %v3553_v47 = vld [vmem:[%s5316_s1 + $0x74] sm:$0xf0]  ;;  %v2700_v51 = vor.u32 %v3559_v43, %v2699_v42 }
  0x20   : > { %456 = vmatpush.bf16.msra.mxu1 %v2744_v17  ;;  %3713 = vmatpush.bf16.msra.mxu3 %v2744_v17  ;;  %v2683_v48 = vld [vmem:[%s4028_s21 + $0x48] sm:$0xf]  ;;  %v3552_v49 = vld [vmem:[%s5316_s1 + $0x74] sm:$0xf]  ;;  %v2837_v50 = vld [vmem:[%s5316_s1 + $0x78] sm:$0xf0]  ;;  %v2704_v55 = vor.u32 %v3558_v44, %v2701_v45  ;;  %v2836_v58 = vor.u32 %v3553_v47, %v2835_v46 }
  0x21   : > { %v3554_v52 = vld [vmem:[%s4028_s21 + $0x4c] sm:$0xf0]  ;;  %v2691_v53 = vld [vmem:[%s4028_s21 + $0x68] sm:$0xf]  ;;  %v3589_v57 = vld [vmem:[%s5316_s1 + $0x174] sm:$0xf0]  ;;  %v2840_v59 = vor.u32 %v3552_v49, %v2837_v50 }
  0x22   : > { %v3556_v54 = vld [vmem:[%s4028_s21 + $0x6c] sm:$0xf0]  ;;  %v3588_v60 = vld [vmem:[%s5316_s1 + $0x174] sm:$0xf]  ;;  %v2917_v61 = vld [vmem:[%s5316_s1 + $0x178] sm:$0xf0]  ;;  %v2684_v63 = vor.u32 %v3554_v52, %v2683_v48 }
  0x23   : > { %428 = vmatpush.bf16.msra.mxu0 %v2732_v22  ;;  %3706 = vmatpush.bf16.msra.mxu2 %v2732_v22  ;;  %v2915_v56 = vld [vmem:[%s5316_s1 + $0x170] sm:$0xf]  ;;  %v2827_v62 = vld [vmem:[%s5316_s1 + $0x60] sm:$0xf]  ;;  %v2692_v0 = vor.u32 %v3556_v54, %v2691_v53  ;;  %v3551_v1 = vld [vmem:[%s5316_s1 + $0x64] sm:$0xf0]  ;;  %v2920_v5 = vor.u32 %v3588_v60, %v2917_v61 }
  0x24   : > { %457 = vmatpush.bf16.msra.mxu1 %v2736_v23  ;;  %3714 = vmatpush.bf16.msra.mxu3 %v2736_v23  ;;  %v3550_v2 = vld [vmem:[%s5316_s1 + $0x64] sm:$0xf]  ;;  %v2829_v3 = vld [vmem:[%s5316_s1 + $0x68] sm:$0xf0]  ;;  %v2916_v4 = vor.u32 %v3589_v57, %v2915_v56  ;;  %v2907_v6 = vld [vmem:[%s5316_s1 + $0x160] sm:$0xf]  ;;  %v2828_v8 = vor.u32 %v3551_v1, %v2827_v62 }
  0x25   : > { %v3587_v7 = vld [vmem:[%s5316_s1 + $0x164] sm:$0xf0]  ;;  %v2832_v9 = vor.u32 %v3550_v2, %v2829_v3  ;;  %v3586_v10 = vld [vmem:[%s5316_s1 + $0x164] sm:$0xf]  ;;  %v2909_v11 = vld [vmem:[%s5316_s1 + $0x168] sm:$0xf0] }
  0x26   : > { %v2819_v12 = vld [vmem:[%s5316_s1 + $0x50] sm:$0xf]  ;;  %v3549_v13 = vld [vmem:[%s5316_s1 + $0x54] sm:$0xf0]  ;;  %v3548_v14 = vld [vmem:[%s5316_s1 + $0x54] sm:$0xf]  ;;  %v2908_v17 = vor.u32 %v3587_v7, %v2907_v6  ;;  %v2912_v18 = vor.u32 %v3586_v10, %v2909_v11 }
  0x27   : > { %429 = vmatpush.bf16.msra.mxu0 %v2724_v28  ;;  %3707 = vmatpush.bf16.msra.mxu2 %v2724_v28  ;;  %v2821_v15 = vld [vmem:[%s5316_s1 + $0x58] sm:$0xf0]  ;;  %v2899_v16 = vld [vmem:[%s5316_s1 + $0x150] sm:$0xf]  ;;  %v3585_v19 = vld [vmem:[%s5316_s1 + $0x154] sm:$0xf0]  ;;  %v2820_v22 = vor.u32 %v3549_v13, %v2819_v12 }
  0x28   : > { %458 = vmatpush.bf16.msra.mxu1 %v2728_v29  ;;  %3715 = vmatpush.bf16.msra.mxu3 %v2728_v29  ;;  %v3584_v20 = vld [vmem:[%s5316_s1 + $0x154] sm:$0xf]  ;;  %v645_v21 = vld [vmem:[%s4028_s21] sm:$0xf]  ;;  %v2824_v23 = vor.u32 %v3548_v14, %v2821_v15  ;;  %v2901_v24 = vld [vmem:[%s5316_s1 + $0x158] sm:$0xf0] }
  0x29   : > { %v2811_v25 = vld [vmem:[%s5316_s1 + $0x40] sm:$0xf]  ;;  %v647_v26 = vld [vmem:[%s4028_s21 + $0x8] sm:$0xf]  ;;  %v3546_v28 = vld [vmem:[%s5316_s1 + $0x44] sm:$0xf]  ;;  %v2904_v36 = vor.u32 %v3584_v20, %v2901_v24 }
  0x2a   : > { %v3547_v27 = vld [vmem:[%s5316_s1 + $0x44] sm:$0xf0]  ;;  %v2813_v29 = vld [vmem:[%s5316_s1 + $0x48] sm:$0xf0]  ;;  %v2891_v30 = vld [vmem:[%s5316_s1 + $0x140] sm:$0xf] }
  0x2b   : > { %430 = vmatpush.bf16.msra.mxu0 %v2716_v34  ;;  %3708 = vmatpush.bf16.msra.mxu2 %v2716_v34  ;;  %v665_v31 = vshrl.u32 %v645_v21, 16  ;;  %v668_v32 = vshll.u32 %v645_v21, 16  ;;  %v679_v33 = vshrl.u32 %v647_v26, 16  ;;  %v682_v34 = vshll.u32 %v647_v26, 16  ;;  %v3583_v37 = vld [vmem:[%s5316_s1 + $0x144] sm:$0xf0] }
  0x2c   : > { %459 = vmatpush.bf16.msra.mxu1 %v2720_v35  ;;  %3716 = vmatpush.bf16.msra.mxu3 %v2720_v35  ;;  %v2900_v35 = vor.u32 %v3585_v19, %v2899_v16  ;;  %v3582_v38 = vld [vmem:[%s5316_s1 + $0x144] sm:$0xf]  ;;  %v2893_v39 = vld [vmem:[%s5316_s1 + $0x148] sm:$0xf0]  ;;  %v2687_v42 = vld [vmem:[%s4028_s21 + $0x58] sm:$0xf]  ;;  %v2892_v57 = vor.u32 %v3583_v37, %v2891_v30 }
  0x2d   : > { %v3555_v43 = vld [vmem:[%s4028_s21 + $0x5c] sm:$0xf0]  ;;  %v2695_v44 = vld [vmem:[%s4028_s21 + $0x78] sm:$0xf]  ;;  %v2803_v46 = vld [vmem:[%s5316_s1 + $0x30] sm:$0xf] }
  0x2e   : > { %v3557_v45 = vld [vmem:[%s4028_s21 + $0x7c] sm:$0xf0]  ;;  %v3545_v47 = vld [vmem:[%s5316_s1 + $0x34] sm:$0xf0]  ;;  %v3544_v48 = vld [vmem:[%s5316_s1 + $0x34] sm:$0xf]  ;;  %v2688_v3 = vor.u32 %v3555_v43, %v2687_v42 }
  0x2f   : > { %431 = vmatpush.bf16.msra.mxu0 %v2708_v40  ;;  %3709 = vmatpush.bf16.msra.mxu2 %v2708_v40  ;;  %v2812_v40 = vor.u32 %v3547_v27, %v2811_v25  ;;  %v2805_v49 = vld [vmem:[%s5316_s1 + $0x38] sm:$0xf0]  ;;  %v2883_v50 = vld [vmem:[%s5316_s1 + $0x130] sm:$0xf]  ;;  %v3580_v52 = vld [vmem:[%s5316_s1 + $0x134] sm:$0xf]  ;;  %v2804_v62 = vor.u32 %v3545_v47, %v2803_v46 }
  0x30   : > { %460 = vmatpush.bf16.msra.mxu1 %v2712_v41  ;;  %3717 = vmatpush.bf16.msra.mxu3 %v2712_v41  ;;  %v2816_v41 = vor.u32 %v3546_v28, %v2813_v29  ;;  %v667_v53 = vrot.slane %v665_v31, 4  ;;  %v670_v54 = vrot.slane %v668_v32, 5  ;;  %v684_v56 = vrot.slane %v682_v34, 5  ;;  %v646_v60 = vld [vmem:[%s4028_s21 + $0x4] sm:$0x1]  ;;  %s2655_s14 = sshll.u32 %s246_s11, 7 }
  0x31   : > { %v648_v61 = vld [vmem:[%s4028_s21 + $0xc] sm:$0x1]  ;;  %v3543_v1 = vld [vmem:[%s5316_s1 + $0x24] sm:$0xf0]  ;;  %v3542_v2 = vld [vmem:[%s5316_s1 + $0x24] sm:$0xf] }
  0x32   : > { %v4189_v6 = vld [vmem:[%s5316_s1 + $0x120] sm:$0xf]  ;;  %v4194_v7 = vld [vmem:[%s5316_s1 + $0x124] sm:$0xf0]  ;;  %v671_v10 = vor.u32 %v670_v54, %v667_v53  ;;  %v674_v11 = vshll.u32 %v646_v60, 16  ;;  %v688_v13 = vshll.u32 %v648_v61, 16 }
  0x33   : > { %432 = vmatpush.bf16.msra.mxu0 %v2700_v51  ;;  %3710 = vmatpush.bf16.msra.mxu2 %v2700_v51  ;;  %v3581_v51 = vld [vmem:[%s5316_s1 + $0x134] sm:$0xf0]  ;;  %v2787_v16 = vld [vmem:[%s5316_s1 + $0x10] sm:$0xf]  ;;  %v2789_v19 = vld [vmem:[%s5316_s1 + $0x18] sm:$0xf0]  ;;  %v2876_v24 = vor.u32 %v4194_v7, %v4189_v6 }
  0x34   : > { %461 = vmatpush.bf16.msra.mxu1 %v2704_v55  ;;  %3718 = vmatpush.bf16.msra.mxu3 %v2704_v55  ;;  %v681_v55 = vrot.slane %v679_v33, 4  ;;  %v2884_v14 = vor.u32 %v3581_v51, %v2883_v50  ;;  %vm661_vm0 = vsmask.f32 3328  ;;  %vm662_vm1 = vsmask.f32 7440  ;;  %s5198_s22 = scalar_lea.vmem [#allocation2], %s2655_s14 }
  0x35   : > { %v4227_v26 = vld [vmem:[%s5316_s1 + $0x110] sm:$0xf]  ;;  %v4232_v27 = vld [vmem:[%s5316_s1 + $0x114] sm:$0xf0]  ;;  %v4237_v28 = vld [vmem:[%s5316_s1 + $0x114] sm:$0xf] }
  0x36   : > { %433 = vmatmul.bf16.vlgmr.msra.gmra.mxu0 %v2684_v63  ;;  %443 = vmatmul.bf16.vlgmr.msra.gmra.mxu2 %v2692_v0  ;;  %v685_v12 = vor.u32 %v684_v56, %v681_v55  ;;  %v2869_v29 = vld [vmem:[%s5316_s1 + $0x118] sm:$0xf0]  ;;  %v672_v30 = vrot.slane %v671_v10, 4  ;;  %v676_v31 = vrot.slane %v674_v11, 5  ;;  %v690_v33 = vrot.slane %v688_v13, 5  ;;  %vm4250_vm2 = vmor %vm661_vm0, %vm662_vm1  ;;  %s2532_s18 = sshll.u32 %s5198_s22, 4  ;;  %s2533_s18 = int_to_ptr.vmem [resolvable:$true] %s2532_s18 }
  0x37   : > { %587 = vmatpush.bf16.msrb.mxu2 %v2836_v58  ;;  %462 = vmatmul.bf16.vlgmr.msra.gmra.mxu1 %v2684_v63  ;;  %v2896_v58 = vor.u32 %v3582_v38, %v2893_v39  ;;  %v2808_v63 = vor.u32 %v3544_v48, %v2805_v49  ;;  %v2779_v34 = vld [vmem:[%s5316_s1] sm:$0xf]  ;;  %v3538_v43 = vld [vmem:[%s5316_s1 + $0x4] sm:$0xf]  ;;  %v3575_v46 = vld [vmem:[%s5316_s1 + $0x104] sm:$0xf0]  ;;  %v2868_v49 = vor.u32 %v4232_v27, %v4227_v26 }
  0x38   : > { %616 = vmatpush.bf16.msrb.mxu3 %v2840_v59  ;;  %889 = vmatpush.bf16.msrb.mxu0 %v2916_v4  ;;  %v2885_v59 = vld [vmem:[%s5316_s1 + $0x138] sm:$0xf0]  ;;  %v2696_v4 = vor.u32 %v3557_v45, %v2695_v44  ;;  %v686_v32 = vrot.slane %v685_v12, 4  ;;  %v2781_v44 = vld [vmem:[%s5316_s1 + $0x8] sm:$0xf0]  ;;  %v2872_v50 = vor.u32 %v4237_v28, %v2869_v29  ;;  %v677_v53 = vsel %vm4250_vm2, %v672_v30, %v676_v31  ;;  %s2518_s30 = scalar_lea.sflag [#allocation3], %s246_s11 }
  0x39   : > { %472 = vmatmul.bf16.vlgmr.msra.gmra.mxu3 %v2692_v0  ;;  %918 = vmatpush.bf16.msrb.mxu1 %v2920_v5  ;;  %v2795_v0 = vld [vmem:[%s5316_s1 + $0x20] sm:$0xf]  ;;  %v2797_v5 = vld [vmem:[%s5316_s1 + $0x28] sm:$0xf0]  ;;  %v2888_v15 = vor.u32 %v3580_v52, %v2885_v59  ;;  %v3019_v47 = vld [vmem:[%s5316_s1 + $0x1f0] sm:$0xf]  ;;  %v793_v10 = vunpack.c.l.b16 %v677_v53 }
  0x3a   : > { %v2796_v20 = vor.u32 %v3543_v1, %v2795_v0  ;;  %v2800_v21 = vor.u32 %v3542_v2, %v2797_v5  ;;  %v4263_v45 = vld [vmem:[%s5316_s1 + $0x100] sm:$0xf]  ;;  %v3609_v48 = vld [vmem:[%s5316_s1 + $0x1f4] sm:$0xf0]  ;;  %v3574_v51 = vld [vmem:[%s5316_s1 + $0x104] sm:$0xf]  ;;  %v691_v54 = vsel %vm4250_vm2, %v686_v32, %v690_v33  ;;  %v2784_v0 = vor.u32 %v3538_v43, %v2781_v44 }
  0x3b   : > { %588 = vmatpush.bf16.msrb.mxu2 %v2828_v8  ;;  %v4199_v8 = vld [vmem:[%s5316_s1 + $0x124] sm:$0xf]  ;;  %v2861_v52 = vld [vmem:[%s5316_s1 + $0x108] sm:$0xf0]  ;;  %v3608_v55 = vld [vmem:[%s5316_s1 + $0x1f4] sm:$0xf]  ;;  %v3020_v5 = vor.u32 %v3609_v48, %v3019_v47  ;;  %v794_v11 = vunpack.c.l.b16 %v691_v54 }
  0x3c   : > { %617 = vmatpush.bf16.msrb.mxu3 %v2832_v9  ;;  %890 = vmatpush.bf16.msrb.mxu0 %v2908_v17  ;;  %v4204_v9 = vld [vmem:[%s5316_s1 + $0x128] sm:$0xf0]  ;;  %v3541_v17 = vld [vmem:[%s5316_s1 + $0x14] sm:$0xf0]  ;;  %v3021_v56 = vld [vmem:[%s5316_s1 + $0x1f8] sm:$0xf0] }
  0x3d   : > { %919 = vmatpush.bf16.msrb.mxu1 %v2912_v18  ;;  %v3540_v18 = vld [vmem:[%s5316_s1 + $0x14] sm:$0xf]  ;;  %v2880_v25 = vor.u32 %v4199_v8, %v4204_v9  ;;  %v2763_v1 = vld [vmem:[%s4028_s21] sm:$0xf]  ;;  %v3534_v2 = vld [vmem:[%s4028_s21 + $0x4] sm:$0xf0]  ;;  %v3024_v6 = vor.u32 %v3608_v55, %v3021_v56  ;;  %v801_v29 = vpack.c.b16 %v794_v11, %v793_v10 }
  0x3e   : > { %v2792_v42 = vor.u32 %v3540_v18, %v2789_v19  ;;  %v3629_v7 = vld [vmem:[%s5316_s1 + $0x274] sm:$0xf0]  ;;  %v3628_v8 = vld [vmem:[%s5316_s1 + $0x274] sm:$0xf]  ;;  %v3125_v9 = vld [vmem:[%s5316_s1 + $0x278] sm:$0xf0] }
  0x3f   : > { %589 = vmatpush.bf16.msrb.mxu2 %v2820_v22  ;;  %v649_v22 = vld [vmem:[%s4028_s21 + $0x10] sm:$0xf]  ;;  %v3606_v12 = vld [vmem:[%s5316_s1 + $0x1e4] sm:$0xf]  ;;  %v3013_v13 = vld [vmem:[%s5316_s1 + $0x1e8] sm:$0xf0] }
  0x40   : > { %618 = vmatpush.bf16.msrb.mxu3 %v2824_v23  ;;  %891 = vmatpush.bf16.msrb.mxu0 %v2900_v35  ;;  %v651_v23 = vld [vmem:[%s4028_s21 + $0x18] sm:$0xf]  ;;  %v3539_v35 = vld [vmem:[%s5316_s1 + $0x4] sm:$0xf0]  ;;  %v693_v37 = vshrl.u32 %v649_v22, 16  ;;  %v696_v38 = vshll.u32 %v649_v22, 16  ;;  %v3128_v22 = vor.u32 %v3628_v8, %v3125_v9 }
  0x41   : > { %920 = vmatpush.bf16.msrb.mxu1 %v2904_v36  ;;  %v707_v39 = vshrl.u32 %v651_v23, 16  ;;  %v3011_v19 = vld [vmem:[%s5316_s1 + $0x1e0] sm:$0xf]  ;;  %v3627_v26 = vld [vmem:[%s5316_s1 + $0x264] sm:$0xf0] }
  0x42   : > { %v695_v59 = vrot.slane %v693_v37, 4  ;;  %v698_v60 = vrot.slane %v696_v38, 5  ;;  %v3626_v27 = vld [vmem:[%s5316_s1 + $0x264] sm:$0xf]  ;;  %v3117_v28 = vld [vmem:[%s5316_s1 + $0x268] sm:$0xf0] }
  0x43   : > { %590 = vmatpush.bf16.msrb.mxu2 %v2812_v40  ;;  %v710_v40 = vshll.u32 %v651_v23, 16  ;;  %v709_v61 = vrot.slane %v707_v39, 4  ;;  %v3115_v23 = vld [vmem:[%s5316_s1 + $0x260] sm:$0xf]  ;;  %v3604_v32 = vld [vmem:[%s5316_s1 + $0x1d4] sm:$0xf] }
  0x44   : > { %619 = vmatpush.bf16.msrb.mxu3 %v2816_v41  ;;  %892 = vmatpush.bf16.msrb.mxu0 %v2892_v57  ;;  %v2788_v41 = vor.u32 %v3541_v17, %v2787_v16  ;;  %v650_v57 = vld [vmem:[%s4028_s21 + $0x14] sm:$0x1]  ;;  %v2864_v16 = vor.u32 %v3574_v51, %v2861_v52  ;;  %v699_v17 = vor.u32 %v698_v60, %v695_v59  ;;  %v3005_v33 = vld [vmem:[%s5316_s1 + $0x1d8] sm:$0xf0]  ;;  %v3003_v38 = vld [vmem:[%s5316_s1 + $0x1d0] sm:$0xf] }
  0x45   : > { %921 = vmatpush.bf16.msrb.mxu1 %v2896_v58  ;;  %v652_v58 = vld [vmem:[%s4028_s21 + $0x1c] sm:$0x1]  ;;  %v3605_v39 = vld [vmem:[%s5316_s1 + $0x1d4] sm:$0xf0]  ;;  %v653_v43 = vld [vmem:[%s4028_s21 + $0x20] sm:$0xf] }
  0x46   : > { %438 = vmatmul.bf16.gmra.mxu0 %v2688_v3  ;;  %448 = vmatmul.bf16.gmra.mxu2 %v2696_v4  ;;  %v655_v44 = vld [vmem:[%s4028_s21 + $0x28] sm:$0xf]  ;;  %v3624_v47 = vld [vmem:[%s5316_s1 + $0x254] sm:$0xf]  ;;  %v3109_v48 = vld [vmem:[%s5316_s1 + $0x258] sm:$0xf0] }
  0x47   : > { %591 = vmatpush.bf16.msrb.mxu2 %v2804_v62  ;;  %467 = vmatmul.bf16.gmra.mxu1 %v2688_v3  ;;  %v712_v62 = vrot.slane %v710_v40, 5  ;;  %v3123_v3 = vld [vmem:[%s5316_s1 + $0x270] sm:$0xf]  ;;  %v3116_v40 = vor.u32 %v3627_v26, %v3115_v23  ;;  %v3602_v51 = vld [vmem:[%s5316_s1 + $0x1c4] sm:$0xf]  ;;  %v721_v54 = vshrl.u32 %v653_v43, 16  ;;  %v3112_v59 = vor.u32 %v3624_v47, %v3109_v48 }
  0x48   : > { %620 = vmatpush.bf16.msrb.mxu3 %v2808_v63  ;;  %893 = vmatpush.bf16.msrb.mxu0 %v2884_v14  ;;  %v2780_v63 = vor.u32 %v3539_v35, %v2779_v34  ;;  %v702_v14 = vshll.u32 %v650_v57, 16  ;;  %v4344_v35 = vrot.slane %v699_v17, 4  ;;  %v2997_v52 = vld [vmem:[%s5316_s1 + $0x1c8] sm:$0xf0]  ;;  %v3603_v53 = vld [vmem:[%s5316_s1 + $0x1c4] sm:$0xf0] }
  0x49   : > { %477 = vmatmul.bf16.gmra.mxu3 %v2696_v4  ;;  %922 = vmatpush.bf16.msrb.mxu1 %v2888_v15  ;;  %v2860_v4 = vor.u32 %v3575_v46, %v4263_v45  ;;  %v716_v15 = vshll.u32 %v652_v58, 16  ;;  %v713_v18 = vor.u32 %v712_v62, %v709_v61  ;;  %v3008_v45 = vor.u32 %v3604_v32, %v3005_v33  ;;  %v3625_v46 = vld [vmem:[%s5316_s1 + $0x254] sm:$0xf0]  ;;  %v3099_v60 = vld [vmem:[%s5316_s1 + $0x240] sm:$0xf] }
  0x4a   : > { %v4334_v30 = vrot.slane %v702_v14, 5  ;;  %v724_v55 = vshll.u32 %v653_v43, 16  ;;  %v735_v56 = vshrl.u32 %v655_v44, 16  ;;  %v738_v57 = vshll.u32 %v655_v44, 16  ;;  %v3623_v62 = vld [vmem:[%s5316_s1 + $0x244] sm:$0xf0] }
  0x4b   : > { %592 = vmatpush.bf16.msrb.mxu2 %v2796_v20  ;;  %v3607_v20 = vld [vmem:[%s5316_s1 + $0x1e4] sm:$0xf0]  ;;  %v4336_v31 = vrot.slane %v716_v15, 5  ;;  %v4346_v37 = vrot.slane %v713_v18, 4  ;;  %v3000_v61 = vor.u32 %v3602_v51, %v2997_v52  ;;  %v654_v8 = vld [vmem:[%s4028_s21 + $0x24] sm:$0x1]  ;;  %v3100_v15 = vor.u32 %v3623_v62, %v3099_v60 }
  0x4c   : > { %621 = vmatpush.bf16.msrb.mxu3 %v2800_v21  ;;  %894 = vmatpush.bf16.msrb.mxu0 %v2876_v24  ;;  %v3124_v21 = vor.u32 %v3629_v7, %v3123_v3  ;;  %v2764_v24 = vor.u32 %v3534_v2, %v2763_v1  ;;  %v3012_v34 = vor.u32 %v3607_v20, %v3011_v19  ;;  %v3535_v7 = vld [vmem:[%s4028_s21 + $0x14] sm:$0xf0]  ;;  %v723_v9 = vrot.slane %v721_v54, 4  ;;  %v3091_v17 = vld [vmem:[%s5316_s1 + $0x230] sm:$0xf] }
  0x4d   : > { %923 = vmatpush.bf16.msrb.mxu1 %v2880_v25  ;;  %v3016_v25 = vor.u32 %v3606_v12, %v3013_v13  ;;  %v705_v1 = vsel %vm4250_vm2, %v4344_v35, %v4334_v30  ;;  %v719_v2 = vsel %vm4250_vm2, %v4346_v37, %v4336_v31  ;;  %v726_v10 = vrot.slane %v724_v55, 5  ;;  %v2987_v13 = vld [vmem:[%s5316_s1 + $0x1b0] sm:$0xf]  ;;  %v3601_v14 = vld [vmem:[%s5316_s1 + $0x1b4] sm:$0xf0] }
  0x4e   : > { %v737_v11 = vrot.slane %v735_v56, 4  ;;  %v740_v12 = vrot.slane %v738_v57, 5  ;;  %v3621_v19 = vld [vmem:[%s5316_s1 + $0x234] sm:$0xf0]  ;;  %v3620_v20 = vld [vmem:[%s5316_s1 + $0x234] sm:$0xf]  ;;  %v796_v23 = vunpack.c.l.b16 %v719_v2 }
  0x4f   : > { %593 = vmatpush.bf16.msrb.mxu2 %v2788_v41  ;;  %v3120_v41 = vor.u32 %v3626_v27, %v3117_v28  ;;  %v2981_v26 = vld [vmem:[%s5316_s1 + $0x1a8] sm:$0xf0]  ;;  %v2988_v27 = vor.u32 %v3601_v14, %v2987_v13  ;;  %v2979_v30 = vld [vmem:[%s5316_s1 + $0x1a0] sm:$0xf]  ;;  %v3599_v31 = vld [vmem:[%s5316_s1 + $0x1a4] sm:$0xf0]  ;;  %v3092_v32 = vor.u32 %v3621_v19, %v3091_v17 }
  0x50   : > { %622 = vmatpush.bf16.msrb.mxu3 %v2792_v42  ;;  %895 = vmatpush.bf16.msrb.mxu0 %v2868_v49  ;;  %v3107_v42 = vld [vmem:[%s5316_s1 + $0x250] sm:$0xf]  ;;  %v3004_v49 = vor.u32 %v3605_v39, %v3003_v38  ;;  %v741_v35 = vor.u32 %v740_v12, %v737_v11  ;;  %v3597_v52 = vld [vmem:[%s5316_s1 + $0x194] sm:$0xf0]  ;;  %v2973_v55 = vld [vmem:[%s5316_s1 + $0x198] sm:$0xf0] }
  0x51   : > { %924 = vmatpush.bf16.msrb.mxu1 %v2872_v50  ;;  %v2995_v50 = vld [vmem:[%s5316_s1 + $0x1c0] sm:$0xf]  ;;  %v3108_v58 = vor.u32 %v3625_v46, %v3107_v42  ;;  %v659_v42 = vld [vmem:[%s4028_s21 + $0x38] sm:$0xf]  ;;  %v2971_v51 = vld [vmem:[%s5316_s1 + $0x190] sm:$0xf] }
  0x52   : > { %v2996_v3 = vor.u32 %v3603_v53, %v2995_v50  ;;  %v766_v50 = vshll.u32 %v659_v42, 16  ;;  %v3596_v53 = vld [vmem:[%s5316_s1 + $0x194] sm:$0xf]  ;;  %v2972_v54 = vor.u32 %v3597_v52, %v2971_v51  ;;  %v3083_v56 = vld [vmem:[%s5316_s1 + $0x220] sm:$0xf] }
  0x53   : > { %594 = vmatpush.bf16.msrb.mxu2 %v2780_v63  ;;  %v3622_v63 = vld [vmem:[%s5316_s1 + $0x244] sm:$0xf]  ;;  %v3619_v57 = vld [vmem:[%s5316_s1 + $0x224] sm:$0xf0]  ;;  %v2963_v62 = vld [vmem:[%s5316_s1 + $0x180] sm:$0xf] }
  0x54   : > { %623 = vmatpush.bf16.msrb.mxu3 %v2784_v0  ;;  %896 = vmatpush.bf16.msrb.mxu0 %v2860_v4  ;;  %v3101_v0 = vld [vmem:[%s5316_s1 + $0x248] sm:$0xf0]  ;;  %v3600_v4 = vld [vmem:[%s5316_s1 + $0x1b4] sm:$0xf]  ;;  %v3618_v60 = vld [vmem:[%s5316_s1 + $0x224] sm:$0xf] }
  0x55   : > { %925 = vmatpush.bf16.msrb.mxu1 %v2864_v16  ;;  %v3104_v16 = vor.u32 %v3622_v63, %v3101_v0  ;;  %v3595_v2 = vld [vmem:[%s5316_s1 + $0x184] sm:$0xf0]  ;;  %v3077_v12 = vld [vmem:[%s5316_s1 + $0x218] sm:$0xf0]  ;;  %v3067_v13 = vld [vmem:[%s5316_s1 + $0x200] sm:$0xf] }
  0x56   : > { %595 = vmatmul.bf16.vlgmr.msrb.gmra.mxu2 %v2764_v24  ;;  %v3615_v17 = vld [vmem:[%s5316_s1 + $0x204] sm:$0xf0]  ;;  %v3069_v19 = vld [vmem:[%s5316_s1 + $0x208] sm:$0xf0] }
  0x57   : > { %1093 = vmatpush.bf16.msra.mxu2 %v3020_v5  ;;  %897 = vmatmul.bf16.vlgmr.msrb.gmra.mxu0 %v801_v29  ;;  %v2989_v5 = vld [vmem:[%s5316_s1 + $0x1b8] sm:$0xf0] }
  0x58   : > { %1122 = vmatpush.bf16.msra.mxu3 %v3024_v6  ;;  %1297 = vmatpush.bf16.msra.mxu0 %v3124_v21  ;;  %v2767_v6 = vld [vmem:[%s4028_s21 + $0x10] sm:$0xf]  ;;  %v2992_v18 = vor.u32 %v3600_v4, %v2989_v5  ;;  %v3093_v21 = vld [vmem:[%s5316_s1 + $0x238] sm:$0xf0]  ;;  %v2965_v4 = vld [vmem:[%s5316_s1 + $0x188] sm:$0xf0]  ;;  %v2964_v5 = vor.u32 %v3595_v2, %v2963_v62 }
  0x59   : > { %1326 = vmatpush.bf16.msra.mxu1 %v3128_v22  ;;  %624 = vmatmul.bf16.vlgmr.msrb.gmra.mxu3 %v2764_v24  ;;  %v795_v22 = vunpack.c.l.b16 %v705_v1  ;;  %v656_v24 = vld [vmem:[%s4028_s21 + $0x2c] sm:$0x1]  ;;  %v2768_v28 = vor.u32 %v3535_v7, %v2767_v6  ;;  %v3096_v33 = vor.u32 %v3620_v20, %v3093_v21  ;;  %v3075_v7 = vld [vmem:[%s5316_s1 + $0x210] sm:$0xf]  ;;  %v3536_v20 = vld [vmem:[%s4028_s21 + $0x24] sm:$0xf0] }
  0x5a   : > { %926 = vmatmul.bf16.vlgmr.msrb.gmra.mxu1 %v801_v29  ;;  %v730_v29 = vshll.u32 %v654_v8, 16  ;;  %v744_v37 = vshll.u32 %v656_v24, 16  ;;  %v3617_v8 = vld [vmem:[%s5316_s1 + $0x214] sm:$0xf0]  ;;  %v768_v24 = vrot.slane %v766_v50, 5 }
  0x5b   : > { %1094 = vmatpush.bf16.msra.mxu2 %v3012_v34  ;;  %v727_v34 = vor.u32 %v726_v10, %v723_v9  ;;  %v802_v39 = vpack.c.b16 %v796_v23, %v795_v22  ;;  %v3616_v9 = vld [vmem:[%s5316_s1 + $0x214] sm:$0xf]  ;;  %v2771_v10 = vld [vmem:[%s4028_s21 + $0x20] sm:$0xf]  ;;  %v3076_v11 = vor.u32 %v3617_v8, %v3075_v7  ;;  %v3323_v50 = vld [vmem:[%s5316_s1 + $0x370] sm:$0xf] }
  0x5c   : > { %1123 = vmatpush.bf16.msra.mxu3 %v3016_v25  ;;  %1298 = vmatpush.bf16.msra.mxu0 %v3116_v40  ;;  %v3598_v25 = vld [vmem:[%s5316_s1 + $0x1a4] sm:$0xf]  ;;  %v2980_v40 = vor.u32 %v3599_v31, %v2979_v30  ;;  %v732_v44 = vrot.slane %v730_v29, 5  ;;  %v746_v46 = vrot.slane %v744_v37, 5  ;;  %v2772_v29 = vor.u32 %v3536_v20, %v2771_v10  ;;  %v3203_v2 = vld [vmem:[%s5316_s1 + $0x2d0] sm:$0xf] }
  0x5d   : > { %1327 = vmatpush.bf16.msra.mxu1 %v3120_v41  ;;  %v2984_v38 = vor.u32 %v3598_v25, %v2981_v26  ;;  %v657_v41 = vld [vmem:[%s4028_s21 + $0x30] sm:$0xf]  ;;  %v728_v43 = vrot.slane %v727_v34, 4  ;;  %v658_v25 = vld [vmem:[%s4028_s21 + $0x34] sm:$0x1] }
  0x5e   : > { %v749_v47 = vshrl.u32 %v657_v41, 16  ;;  %v752_v48 = vshll.u32 %v657_v41, 16  ;;  %v660_v26 = vld [vmem:[%s4028_s21 + $0x3c] sm:$0x1]  ;;  %v3645_v41 = vld [vmem:[%s5316_s1 + $0x2f4] sm:$0xf0] }
  0x5f   : > { %1095 = vmatpush.bf16.msra.mxu2 %v3004_v49  ;;  %v763_v49 = vshrl.u32 %v659_v42, 16  ;;  %v733_v63 = vsel %vm4250_vm2, %v728_v43, %v732_v44  ;;  %v772_v34 = vshll.u32 %v660_v26, 16  ;;  %v3644_v42 = vld [vmem:[%s5316_s1 + $0x2f4] sm:$0xf]  ;;  %v3221_v44 = vld [vmem:[%s5316_s1 + $0x2f8] sm:$0xf0] }
  0x60   : > { %1124 = vmatpush.bf16.msra.mxu3 %v3008_v45  ;;  %1299 = vmatpush.bf16.msra.mxu0 %v3108_v58  ;;  %v742_v45 = vrot.slane %v741_v35, 4  ;;  %v2976_v58 = vor.u32 %v3596_v53, %v2973_v55  ;;  %v797_v14 = vunpack.c.l.b16 %v733_v63  ;;  %v751_v21 = vrot.slane %v749_v47, 4  ;;  %v3665_v53 = vld [vmem:[%s5316_s1 + $0x374] sm:$0xf0]  ;;  %v3325_v55 = vld [vmem:[%s5316_s1 + $0x378] sm:$0xf0] }
  0x61   : > { %1328 = vmatpush.bf16.msra.mxu1 %v3112_v59  ;;  %v3084_v59 = vor.u32 %v3619_v57, %v3083_v56  ;;  %v754_v22 = vrot.slane %v752_v48, 5  ;;  %v765_v23 = vrot.slane %v763_v49, 4  ;;  %v3224_v47 = vor.u32 %v3644_v42, %v3221_v44  ;;  %v3642_v48 = vld [vmem:[%s5316_s1 + $0x2e4] sm:$0xf]  ;;  %v3213_v49 = vld [vmem:[%s5316_s1 + $0x2e8] sm:$0xf0] }
  0x62   : > { %v747_v0 = vsel %vm4250_vm2, %v742_v45, %v746_v46  ;;  %v3211_v45 = vld [vmem:[%s5316_s1 + $0x2e0] sm:$0xf]  ;;  %v3643_v46 = vld [vmem:[%s5316_s1 + $0x2e4] sm:$0xf0]  ;;  %v3216_v57 = vor.u32 %v3642_v48, %v3213_v49  ;;  %v3307_v20 = vld [vmem:[%s5316_s1 + $0x350] sm:$0xf] }
  0x63   : > { %1096 = vmatpush.bf16.msra.mxu2 %v2996_v3  ;;  %v3594_v3 = vld [vmem:[%s5316_s1 + $0x184] sm:$0xf]  ;;  %v755_v31 = vor.u32 %v754_v22, %v751_v21  ;;  %v3212_v52 = vor.u32 %v3643_v46, %v3211_v45  ;;  %v3315_v7 = vld [vmem:[%s5316_s1 + $0x360] sm:$0xf]  ;;  %v3663_v8 = vld [vmem:[%s5316_s1 + $0x364] sm:$0xf0] }
  0x64   : > { %1125 = vmatpush.bf16.msra.mxu3 %v3000_v61  ;;  %1300 = vmatpush.bf16.msra.mxu0 %v3100_v15  ;;  %v3085_v61 = vld [vmem:[%s5316_s1 + $0x228] sm:$0xf0]  ;;  %v2968_v6 = vor.u32 %v3594_v3, %v2965_v4  ;;  %v798_v15 = vunpack.c.l.b16 %v747_v0  ;;  %v3641_v3 = vld [vmem:[%s5316_s1 + $0x2d4] sm:$0xf0]  ;;  %v3640_v4 = vld [vmem:[%s5316_s1 + $0x2d4] sm:$0xf]  ;;  %v3316_v10 = vor.u32 %v3663_v8, %v3315_v7 }
  0x65   : > { %1329 = vmatpush.bf16.msra.mxu1 %v3104_v16  ;;  %v3088_v1 = vor.u32 %v3618_v60, %v3085_v61  ;;  %v3080_v16 = vor.u32 %v3616_v9, %v3077_v12  ;;  %v756_v35 = vrot.slane %v755_v31, 4  ;;  %v2775_v60 = vld [vmem:[%s4028_s21 + $0x30] sm:$0xf]  ;;  %v3537_v61 = vld [vmem:[%s4028_s21 + $0x34] sm:$0xf0] }
  0x66   : > { %600 = vmatmul.bf16.gmra.mxu2 %v2768_v28  ;;  %v803_v30 = vpack.c.b16 %v798_v15, %v797_v14  ;;  %v2776_v0 = vor.u32 %v3537_v61, %v2775_v60  ;;  %v3317_v12 = vld [vmem:[%s5316_s1 + $0x368] sm:$0xf0]  ;;  %v3639_v15 = vld [vmem:[%s5316_s1 + $0x2c4] sm:$0xf0]  ;;  %v3661_v21 = vld [vmem:[%s5316_s1 + $0x354] sm:$0xf0] }
  0x67   : > { %1097 = vmatpush.bf16.msra.mxu2 %v2988_v27  ;;  %902 = vmatmul.bf16.gmra.mxu0 %v802_v39  ;;  %v3068_v27 = vor.u32 %v3615_v17, %v3067_v13  ;;  %v3195_v13 = vld [vmem:[%s5316_s1 + $0x2c0] sm:$0xf]  ;;  %v3197_v17 = vld [vmem:[%s5316_s1 + $0x2c8] sm:$0xf0]  ;;  %v3660_v22 = vld [vmem:[%s5316_s1 + $0x354] sm:$0xf] }
  0x68   : > { %1126 = vmatpush.bf16.msra.mxu3 %v2992_v18  ;;  %1301 = vmatpush.bf16.msra.mxu0 %v3092_v32  ;;  %v3614_v18 = vld [vmem:[%s5316_s1 + $0x204] sm:$0xf]  ;;  %v758_v32 = vshll.u32 %v658_v25, 16  ;;  %v2947_v26 = vld [vmem:[%s4028_s21 + $0x90] sm:$0xf] }
  0x69   : > { %1330 = vmatpush.bf16.msra.mxu1 %v3096_v33  ;;  %629 = vmatmul.bf16.gmra.mxu3 %v2768_v28  ;;  %v3072_v28 = vor.u32 %v3614_v18, %v3069_v19  ;;  %v769_v33 = vor.u32 %v768_v24, %v765_v23  ;;  %v3196_v18 = vor.u32 %v3639_v15, %v3195_v13  ;;  %v3309_v24 = vld [vmem:[%s5316_s1 + $0x358] sm:$0xf0]  ;;  %v3658_v42 = vld [vmem:[%s5316_s1 + $0x344] sm:$0xf]  ;;  %v3179_v45 = vld [vmem:[%s5316_s1 + $0x2a0] sm:$0xf] }
  0x6a   : > { %931 = vmatmul.bf16.gmra.mxu1 %v802_v39  ;;  %v760_v37 = vrot.slane %v758_v32, 5  ;;  %v774_v39 = vrot.slane %v772_v34, 5  ;;  %v3308_v23 = vor.u32 %v3661_v21, %v3307_v20  ;;  %v3312_v25 = vor.u32 %v3660_v22, %v3309_v24  ;;  %v3187_v32 = vld [vmem:[%s5316_s1 + $0x2b0] sm:$0xf]  ;;  %v3636_v34 = vld [vmem:[%s5316_s1 + $0x2b4] sm:$0xf] }
  0x6b   : > { %1098 = vmatpush.bf16.msra.mxu2 %v2980_v40  ;;  %v3219_v40 = vld [vmem:[%s5316_s1 + $0x2f0] sm:$0xf]  ;;  %v3635_v46 = vld [vmem:[%s5316_s1 + $0x2a4] sm:$0xf0]  ;;  %v3181_v49 = vld [vmem:[%s5316_s1 + $0x2a8] sm:$0xf0] }
  0x6c   : > { %1127 = vmatpush.bf16.msra.mxu3 %v2984_v38  ;;  %1302 = vmatpush.bf16.msra.mxu0 %v3084_v59  ;;  %v770_v38 = vrot.slane %v769_v33, 4  ;;  %v3220_v43 = vor.u32 %v3645_v41, %v3219_v40  ;;  %v761_v51 = vsel %vm4250_vm2, %v756_v35, %v760_v37  ;;  %v3637_v33 = vld [vmem:[%s5316_s1 + $0x2b4] sm:$0xf0]  ;;  %v3189_v37 = vld [vmem:[%s5316_s1 + $0x2b8] sm:$0xf0]  ;;  %v3180_v48 = vor.u32 %v3635_v46, %v3179_v45 }
  0x6d   : > { %1331 = vmatpush.bf16.msra.mxu1 %v3088_v1  ;;  %v799_v62 = vunpack.c.l.b16 %v761_v51  ;;  %v3188_v35 = vor.u32 %v3637_v33, %v3187_v32  ;;  %v3192_v40 = vor.u32 %v3636_v34, %v3189_v37  ;;  %v3657_v51 = vld [vmem:[%s5316_s1 + $0x334] sm:$0xf0]  ;;  %v3611_v60 = vld [vmem:[%s4028_s21 + $0xec] sm:$0xf0]  ;;  %v3654_v8 = vld [vmem:[%s5316_s1 + $0x324] sm:$0xf] }
  0x6e   : > { %v775_v56 = vsel %vm4250_vm2, %v770_v38, %v774_v39  ;;  %v3299_v38 = vld [vmem:[%s5316_s1 + $0x340] sm:$0xf]  ;;  %v3659_v39 = vld [vmem:[%s5316_s1 + $0x344] sm:$0xf0]  ;;  %v3630_v13 = vld [vmem:[%s5316_s1 + $0x284] sm:$0xf] }
  0x6f   : > { %1099 = vmatpush.bf16.msra.mxu2 %v2972_v54  ;;  %v3664_v54 = vld [vmem:[%s5316_s1 + $0x374] sm:$0xf]  ;;  %v800_v63 = vunpack.c.l.b16 %v775_v56  ;;  %v3300_v41 = vor.u32 %v3659_v39, %v3299_v38  ;;  %v2951_v56 = vld [vmem:[%s4028_s21 + $0xa0] sm:$0xf]  ;;  %v3165_v15 = vld [vmem:[%s5316_s1 + $0x288] sm:$0xf0] }
  0x70   : > { %1128 = vmatpush.bf16.msra.mxu3 %v2976_v58  ;;  %1303 = vmatpush.bf16.msra.mxu0 %v3076_v11  ;;  %v3324_v58 = vor.u32 %v3665_v53, %v3323_v50  ;;  %v3328_v59 = vor.u32 %v3664_v54, %v3325_v55  ;;  %v3662_v11 = vld [vmem:[%s5316_s1 + $0x364] sm:$0xf]  ;;  %v3291_v50 = vld [vmem:[%s5316_s1 + $0x330] sm:$0xf]  ;;  %v3656_v54 = vld [vmem:[%s5316_s1 + $0x334] sm:$0xf] }
  0x71   : > { %1332 = vmatpush.bf16.msra.mxu1 %v3080_v16  ;;  %v804_v1 = vpack.c.b16 %v800_v63, %v799_v62  ;;  %v3320_v14 = vor.u32 %v3662_v11, %v3317_v12  ;;  %v3638_v16 = vld [vmem:[%s5316_s1 + $0x2c4] sm:$0xf]  ;;  %v3292_v53 = vor.u32 %v3657_v51, %v3291_v50  ;;  %v3293_v55 = vld [vmem:[%s5316_s1 + $0x338] sm:$0xf0]  ;;  %v3171_v63 = vld [vmem:[%s5316_s1 + $0x290] sm:$0xf] }
  0x72   : > { %v3200_v19 = vor.u32 %v3638_v16, %v3197_v17  ;;  %v3163_v11 = vld [vmem:[%s5316_s1 + $0x280] sm:$0xf]  ;;  %v3631_v12 = vld [vmem:[%s5316_s1 + $0x284] sm:$0xf0]  ;;  %v3275_v16 = vld [vmem:[%s5316_s1 + $0x310] sm:$0xf] }
  0x73   : > { %1100 = vmatpush.bf16.msra.mxu2 %v2964_v5  ;;  %v3204_v5 = vor.u32 %v3641_v3, %v3203_v2  ;;  %v3173_v3 = vld [vmem:[%s5316_s1 + $0x298] sm:$0xf0]  ;;  %v3653_v17 = vld [vmem:[%s5316_s1 + $0x314] sm:$0xf0]  ;;  %v3652_v20 = vld [vmem:[%s5316_s1 + $0x314] sm:$0xf] }
  0x74   : > { %1129 = vmatpush.bf16.msra.mxu3 %v2968_v6  ;;  %1304 = vmatpush.bf16.msra.mxu0 %v3068_v27  ;;  %v3205_v6 = vld [vmem:[%s5316_s1 + $0x2d8] sm:$0xf0]  ;;  %v3590_v27 = vld [vmem:[%s4028_s21 + $0x94] sm:$0xf0]  ;;  %v2955_v22 = vld [vmem:[%s4028_s21 + $0xb0] sm:$0xf] }
  0x75   : > { %1333 = vmatpush.bf16.msra.mxu1 %v3072_v28  ;;  %v3208_v9 = vor.u32 %v3640_v4, %v3205_v6  ;;  %v3051_v28 = vld [vmem:[%s4028_s21 + $0xd8] sm:$0xf]  ;;  %v3283_v4 = vld [vmem:[%s5316_s1 + $0x320] sm:$0xf]  ;;  %v3277_v21 = vld [vmem:[%s5316_s1 + $0x318] sm:$0xf0] }
  0x76   : > { %605 = vmatmul.bf16.gmra.mxu2 %v2772_v29  ;;  %v3280_v24 = vor.u32 %v3652_v20, %v3277_v21  ;;  %v3269_v34 = vld [vmem:[%s5316_s1 + $0x308] sm:$0xf0]  ;;  %v3129_v38 = vld [vmem:[%s4028_s21 + $0x90] sm:$0xf]  ;;  %v3131_v39 = vld [vmem:[%s4028_s21 + $0x98] sm:$0xf] }
  0x77   : > { %907 = vmatmul.bf16.gmra.mxu0 %v803_v30  ;;  %1612 = vmatpush.bf16.msrb.mxu2 %v3220_v43  ;;  %v3301_v43 = vld [vmem:[%s5316_s1 + $0x348] sm:$0xf0]  ;;  %v3685_v45 = vld [vmem:[%s5316_s1 + $0x3f4] sm:$0xf0]  ;;  %v3684_v46 = vld [vmem:[%s5316_s1 + $0x3f4] sm:$0xf] }
  0x78   : > { %1641 = vmatpush.bf16.msrb.mxu3 %v3224_v47  ;;  %1816 = vmatpush.bf16.msrb.mxu0 %v3324_v58  ;;  %v3304_v44 = vor.u32 %v3658_v42, %v3301_v43  ;;  %v3634_v47 = vld [vmem:[%s5316_s1 + $0x2a4] sm:$0xf]  ;;  %v3296_v58 = vor.u32 %v3656_v54, %v3293_v55  ;;  %v1402_v42 = vshrl.u32 %v3131_v39, 16  ;;  %v1405_v43 = vshll.u32 %v3131_v39, 16  ;;  %v2959_v54 = vld [vmem:[%s4028_s21 + $0xc0] sm:$0xf] }
  0x79   : > { %634 = vmatmul.bf16.gmra.mxu3 %v2772_v29  ;;  %1845 = vmatpush.bf16.msrb.mxu1 %v3328_v59  ;;  %v3610_v29 = vld [vmem:[%s4028_s21 + $0xdc] sm:$0xf0]  ;;  %v3055_v59 = vld [vmem:[%s4028_s21 + $0xe8] sm:$0xf] }
  0x7a   : > { %936 = vmatmul.bf16.gmra.mxu1 %v803_v30  ;;  %v2948_v30 = vor.u32 %v3590_v27, %v2947_v26  ;;  %v3052_v31 = vor.u32 %v3610_v29, %v3051_v28  ;;  %v3056_v62 = vor.u32 %v3611_v60, %v3055_v59  ;;  %v3612_v26 = vld [vmem:[%s4028_s21 + $0xfc] sm:$0xf0]  ;;  %v3651_v29 = vld [vmem:[%s5316_s1 + $0x304] sm:$0xf0]  ;;  %v1407_v59 = vrot.slane %v1405_v43, 5 }
  0x7b   : > { %1613 = vmatpush.bf16.msrb.mxu2 %v3212_v52  ;;  %v3184_v52 = vor.u32 %v3634_v47, %v3181_v49  ;;  %v3267_v28 = vld [vmem:[%s5316_s1 + $0x300] sm:$0xf]  ;;  %v3429_v49 = vld [vmem:[%s5316_s1 + $0x3f8] sm:$0xf0]  ;;  %v3593_v55 = vld [vmem:[%s4028_s21 + $0xc4] sm:$0xf0] }
  0x7c   : > { %1642 = vmatpush.bf16.msrb.mxu3 %v3216_v57  ;;  %1817 = vmatpush.bf16.msrb.mxu0 %v3316_v10  ;;  %v3591_v57 = vld [vmem:[%s4028_s21 + $0xa4] sm:$0xf0]  ;;  %v3268_v33 = vor.u32 %v3651_v29, %v3267_v28  ;;  %v3432_v51 = vor.u32 %v3684_v46, %v3429_v49  ;;  %v3130_v60 = vld [vmem:[%s4028_s21 + $0x94] sm:$0x1]  ;;  %v3698_v49 = vld [vmem:[%s5316_s1 + $0x464] sm:$0xf] }
  0x7d   : > { %1846 = vmatpush.bf16.msrb.mxu1 %v3320_v14  ;;  %v2952_v61 = vor.u32 %v3591_v57, %v2951_v56  ;;  %v3164_v14 = vor.u32 %v3631_v12, %v3163_v11 }
  0x7f   : > { %1614 = vmatpush.bf16.msrb.mxu2 %v3204_v5  ;;  %v3655_v5 = vld [vmem:[%s5316_s1 + $0x324] sm:$0xf0] }
  0x80   : > { %1643 = vmatpush.bf16.msrb.mxu3 %v3208_v9  ;;  %1818 = vmatpush.bf16.msrb.mxu0 %v3308_v23  ;;  %v3284_v7 = vor.u32 %v3655_v5, %v3283_v4  ;;  %v3285_v9 = vld [vmem:[%s5316_s1 + $0x328] sm:$0xf0]  ;;  %v3592_v23 = vld [vmem:[%s4028_s21 + $0xb4] sm:$0xf0]  ;;  %v3132_v4 = vld [vmem:[%s4028_s21 + $0x9c] sm:$0x1] }
  0x81   : > { %1847 = vmatpush.bf16.msrb.mxu1 %v3312_v25  ;;  %v3288_v10 = vor.u32 %v3654_v8, %v3285_v9  ;;  %v3059_v25 = vld [vmem:[%s4028_s21 + $0xf8] sm:$0xf]  ;;  %v2956_v27 = vor.u32 %v3592_v23, %v2955_v22  ;;  %v3525_v8 = vld [vmem:[%s5316_s1 + $0x478] sm:$0xf0]  ;;  %v3063_v9 = vld [vmem:[%s4028_s21 + $0x108] sm:$0xf] }
  0x82   : > { %v3060_v32 = vor.u32 %v3612_v26, %v3059_v25  ;;  %v3133_v22 = vld [vmem:[%s4028_s21 + $0xa0] sm:$0xf]  ;;  %v3135_v23 = vld [vmem:[%s4028_s21 + $0xa8] sm:$0xf] }
  0x83   : > { %1615 = vmatpush.bf16.msrb.mxu2 %v3196_v18  ;;  %v3168_v18 = vor.u32 %v3630_v13, %v3165_v15  ;;  %v2960_v13 = vor.u32 %v3593_v55, %v2959_v54  ;;  %v1416_v28 = vshrl.u32 %v3133_v22, 16  ;;  %v1419_v29 = vshll.u32 %v3133_v22, 16 }
  0x84   : > { %1644 = vmatpush.bf16.msrb.mxu3 %v3200_v19  ;;  %1819 = vmatpush.bf16.msrb.mxu0 %v3300_v41  ;;  %v3276_v19 = vor.u32 %v3653_v17, %v3275_v16  ;;  %v1391_v41 = vshll.u32 %v3129_v38, 16  ;;  %v1397_v16 = vshll.u32 %v3130_v60, 16 }
  0x85   : > { %1848 = vmatpush.bf16.msrb.mxu1 %v3304_v44  ;;  %v3427_v44 = vld [vmem:[%s5316_s1 + $0x3f0] sm:$0xf] }
  0x86   : > { %610 = vmatmul.bf16.gmra.mxu2 %v2776_v0  ;;  %v1393_v57 = vrot.slane %v1391_v41, 5  ;;  %v1399_v25 = vrot.slane %v1397_v16, 5  ;;  %v3515_v41 = vld [vmem:[%s5316_s1 + $0x460] sm:$0xf] }
  0x87   : > { %912 = vmatmul.bf16.gmra.mxu0 %v804_v1  ;;  %1616 = vmatpush.bf16.msrb.mxu2 %v3188_v35 }
  0x88   : > { %1645 = vmatpush.bf16.msrb.mxu3 %v3192_v40  ;;  %1820 = vmatpush.bf16.msrb.mxu0 %v3292_v53  ;;  %v1388_v40 = vshrl.u32 %v3129_v38, 16 }
  0x89   : > { %639 = vmatmul.bf16.gmra.mxu3 %v2776_v0  ;;  %1849 = vmatpush.bf16.msrb.mxu1 %v3296_v58  ;;  %v3633_v0 = vld [vmem:[%s5316_s1 + $0x294] sm:$0xf0]  ;;  %v1404_v58 = vrot.slane %v1402_v42, 4  ;;  %v3699_v42 = vld [vmem:[%s5316_s1 + $0x464] sm:$0xf0] }
  0x8a   : > { %941 = vmatmul.bf16.gmra.mxu1 %v804_v1  ;;  %v3632_v1 = vld [vmem:[%s5316_s1 + $0x294] sm:$0xf]  ;;  %v3172_v2 = vor.u32 %v3633_v0, %v3171_v63  ;;  %v1390_v56 = vrot.slane %v1388_v40, 4  ;;  %v3682_v63 = vld [vmem:[%s5316_s1 + $0x3e4] sm:$0xf] }
  0x8b   : > { %1617 = vmatpush.bf16.msrb.mxu2 %v3180_v48  ;;  %v3176_v6 = vor.u32 %v3632_v1, %v3173_v3  ;;  %v3428_v48 = vor.u32 %v3685_v45, %v3427_v44  ;;  %v3421_v1 = vld [vmem:[%s5316_s1 + $0x3e8] sm:$0xf0]  ;;  %v3701_v3 = vld [vmem:[%s5316_s1 + $0x474] sm:$0xf0]  ;;  %v1408_v17 = vor.u32 %v1407_v59, %v1404_v58  ;;  %v3413_v40 = vld [vmem:[%s5316_s1 + $0x3d8] sm:$0xf0] }
  0x8c   : > { %1646 = vmatpush.bf16.msrb.mxu3 %v3184_v52  ;;  %1821 = vmatpush.bf16.msrb.mxu0 %v3284_v7  ;;  %v3424_v5 = vor.u32 %v3682_v63, %v3421_v1  ;;  %v3700_v7 = vld [vmem:[%s5316_s1 + $0x474] sm:$0xf]  ;;  %v1394_v15 = vor.u32 %v1393_v57, %v1390_v56  ;;  %v1418_v57 = vrot.slane %v1416_v28, 4  ;;  %v1421_v58 = vrot.slane %v1419_v29, 5  ;;  %v3134_v63 = vld [vmem:[%s4028_s21 + $0xa4] sm:$0x1] }
  0x8d   : > { %1850 = vmatpush.bf16.msrb.mxu1 %v3288_v10  ;;  %v3613_v10 = vld [vmem:[%s4028_s21 + $0x10c] sm:$0xf0]  ;;  %v3528_v11 = vor.u32 %v3700_v7, %v3525_v8  ;;  %v1409_v26 = vrot.slane %v1408_v17, 4  ;;  %v3679_v1 = vld [vmem:[%s5316_s1 + $0x3c4] sm:$0xf0] }
  0x8e   : > { %v3064_v20 = vor.u32 %v3613_v10, %v3063_v9  ;;  %v3136_v7 = vld [vmem:[%s4028_s21 + $0xac] sm:$0x1]  ;;  %v3696_v10 = vld [vmem:[%s5316_s1 + $0x454] sm:$0xf]  ;;  %v1422_v22 = vor.u32 %v1421_v58, %v1418_v57  ;;  %v3137_v28 = vld [vmem:[%s4028_s21 + $0xb0] sm:$0xf] }
  0x8f   : > { %1618 = vmatpush.bf16.msrb.mxu2 %v3172_v2  ;;  %v3523_v2 = vld [vmem:[%s5316_s1 + $0x470] sm:$0xf]  ;;  %v3139_v29 = vld [vmem:[%s4028_s21 + $0xb8] sm:$0xf]  ;;  %v3695_v57 = vld [vmem:[%s5316_s1 + $0x444] sm:$0xf0] }
  0x90   : > { %1647 = vmatpush.bf16.msrb.mxu3 %v3176_v6  ;;  %1822 = vmatpush.bf16.msrb.mxu0 %v3276_v19  ;;  %v3524_v6 = vor.u32 %v3701_v3, %v3523_v2  ;;  %v3678_v2 = vld [vmem:[%s5316_s1 + $0x3c4] sm:$0xf] }
  0x91   : > { %1851 = vmatpush.bf16.msrb.mxu1 %v3280_v24  ;;  %v1395_v24 = vrot.slane %v1394_v15, 4  ;;  %v3646_v15 = vld [vmem:[%s4028_s21 + $0xc] sm:$0xf0] }
  0x93   : > { %1619 = vmatpush.bf16.msrb.mxu2 %v3164_v14  ;;  %v1400_v44 = vsel %vm4250_vm2, %v1395_v24, %v1399_v25  ;;  %v1439_v25 = vshll.u32 %v3136_v7, 16 }
  0x94   : > { %1648 = vmatpush.bf16.msrb.mxu3 %v3168_v18  ;;  %1823 = vmatpush.bf16.msrb.mxu0 %v3268_v33  ;;  %v1411_v18 = vshll.u32 %v3132_v4, 16  ;;  %v3411_v33 = vld [vmem:[%s5316_s1 + $0x3d0] sm:$0xf]  ;;  %v3405_v4 = vld [vmem:[%s5316_s1 + $0x3c8] sm:$0xf0] }
  0x95   : > { %v3408_v8 = vor.u32 %v3678_v2, %v3405_v4 }
  0x96   : > { %1101 = vmatmul.bf16.vlgmr.msra.gmra.mxu2 %v2948_v30 }
  0x97   : > { %1305 = vmatmul.bf16.vlgmr.msra.gmra.mxu0 %v3052_v31  ;;  %2020 = vmatpush.bf16.msra.mxu2 %v3428_v48  ;;  %v3516_v48 = vor.u32 %v3699_v42, %v3515_v41  ;;  %v1458_v41 = vshrl.u32 %v3139_v29, 16  ;;  %v1461_v42 = vshll.u32 %v3139_v29, 16  ;;  %v3692_v29 = vld [vmem:[%s5316_s1 + $0x434] sm:$0xf] }
  0x98   : > { %2335 = vmatpush.bf16.msra.mxu0 %v3524_v6  ;;  %v3697_v6 = vld [vmem:[%s5316_s1 + $0x454] sm:$0xf0] }
  0x99   : > { %1130 = vmatmul.bf16.vlgmr.msra.gmra.mxu3 %v2948_v30  ;;  %v3650_v30 = vld [vmem:[%s5316_s1 + $0x304] sm:$0xf]  ;;  %v1460_v7 = vrot.slane %v1458_v41, 4 }
  0x9a   : > { %1334 = vmatmul.bf16.vlgmr.msra.gmra.mxu1 %v3052_v31  ;;  %v3272_v37 = vor.u32 %v3650_v30, %v3269_v34  ;;  %2049 = vmatpush.bf16.msra.mxu3 %v3432_v51  ;;  %v1430_v30 = vshrl.u32 %v3135_v23, 16  ;;  %v3681_v34 = vld [vmem:[%s5316_s1 + $0x3d4] sm:$0xf0]  ;;  %v3517_v51 = vld [vmem:[%s5316_s1 + $0x468] sm:$0xf0] }
  0x9b   : > { %v3412_v39 = vor.u32 %v3681_v34, %v3411_v33  ;;  %v3520_v55 = vor.u32 %v3698_v49, %v3517_v51  ;;  %v3397_v51 = vld [vmem:[%s5316_s1 + $0x3b8] sm:$0xf0] }
  0x9c   : > { %1852 = vmatpush.bf16.msrb.mxu1 %v3272_v37  ;;  %v3680_v37 = vld [vmem:[%s5316_s1 + $0x3d4] sm:$0xf]  ;;  %v1432_v59 = vrot.slane %v1430_v30, 4  ;;  %2336 = vmatpush.bf16.msra.mxu0 %v3516_v48 }
  0x9d   : > { %v3416_v46 = vor.u32 %v3680_v37, %v3413_v40  ;;  %v1441_v37 = vrot.slane %v1439_v25, 5  ;;  %v1447_v40 = vshll.u32 %v3137_v28, 16  ;;  %v3693_v25 = vld [vmem:[%s5316_s1 + $0x434] sm:$0xf0] }
  0x9e   : > { %2050 = vmatpush.bf16.msra.mxu3 %v3424_v5  ;;  %v3507_v5 = vld [vmem:[%s5316_s1 + $0x450] sm:$0xf] }
  0x9f   : > { %v3508_v9 = vor.u32 %v3697_v6, %v3507_v5  ;;  %v3138_v5 = vld [vmem:[%s4028_s21 + $0xb4] sm:$0x1]  ;;  %v1449_v6 = vrot.slane %v1447_v40, 5 }
  0xa0   : > { %2364 = vmatpush.bf16.msra.mxu1 %v3528_v11  ;;  %v3509_v11 = vld [vmem:[%s5316_s1 + $0x458] sm:$0xf0]  ;;  %v1453_v40 = vshll.u32 %v3138_v5, 16 }
  0xa1   : > { %v3512_v16 = vor.u32 %v3696_v10, %v3509_v11  ;;  %2337 = vmatpush.bf16.msra.mxu0 %v3508_v9  ;;  %v3675_v11 = vld [vmem:[%s5316_s1 + $0x3a4] sm:$0xf0] }
  0xa2   : > { %2051 = vmatpush.bf16.msra.mxu3 %v3416_v46  ;;  %v3676_v46 = vld [vmem:[%s5316_s1 + $0x3b4] sm:$0xf] }
  0xa4   : > { %2365 = vmatpush.bf16.msra.mxu1 %v3520_v55  ;;  %v3499_v55 = vld [vmem:[%s5316_s1 + $0x440] sm:$0xf] }
  0xa6   : > { %1106 = vmatmul.bf16.gmra.mxu2 %v2952_v61  ;;  %2052 = vmatpush.bf16.msra.mxu3 %v3408_v8  ;;  %v1463_v8 = vrot.slane %v1461_v42, 5 }
  0xa7   : > { %1310 = vmatmul.bf16.gmra.mxu0 %v3056_v62 }
  0xa8   : > { %2366 = vmatpush.bf16.msra.mxu1 %v3512_v16 }
  0xa9   : > { %1135 = vmatmul.bf16.gmra.mxu3 %v2952_v61  ;;  %v3419_v61 = vld [vmem:[%s5316_s1 + $0x3e0] sm:$0xf] }
  0xaa   : > { %1339 = vmatmul.bf16.gmra.mxu1 %v3056_v62  ;;  %v3683_v62 = vld [vmem:[%s5316_s1 + $0x3e4] sm:$0xf0] }
  0xab   : > { %v3420_v0 = vor.u32 %v3683_v62, %v3419_v61  ;;  %v1516_v61 = vunpack.c.l.b16 %v1400_v44  ;;  %v3395_v44 = vld [vmem:[%s5316_s1 + $0x3b0] sm:$0xf] }
  0xad   : > { %2021 = vmatpush.bf16.msra.mxu2 %v3420_v0  ;;  %v3403_v0 = vld [vmem:[%s5316_s1 + $0x3c0] sm:$0xf] }
  0xae   : > { %v3404_v3 = vor.u32 %v3679_v1, %v3403_v0  ;;  %v3501_v0 = vld [vmem:[%s5316_s1 + $0x448] sm:$0xf0] }
  0xb1   : > { %2022 = vmatpush.bf16.msra.mxu2 %v3412_v39  ;;  %v1444_v39 = vshrl.u32 %v3137_v28, 16 }
  0xb3   : > { %v4717_v31 = vpop.f32.mrf.mxu0 }
  0xb4   : > { %v4722_v35 = vpop.f32.mrf.mxu1 }
  0xb5   : > { %2023 = vmatpush.bf16.msra.mxu2 %v3404_v3 }
  0xb6   : > { %1111 = vmatmul.bf16.gmra.mxu2 %v2956_v27 }
  0xb7   : > { %1315 = vmatmul.bf16.gmra.mxu0 %v3060_v32 }
  0xb9   : > { %1140 = vmatmul.bf16.gmra.mxu3 %v2956_v27  ;;  %v4735_v47 = vpop.f32.mrf.mxu2  ;;  %v1413_v27 = vrot.slane %v1411_v18, 5 }
  0xba   : > { %1344 = vmatmul.bf16.gmra.mxu1 %v3060_v32  ;;  %v1433_v32 = vshll.u32 %v3135_v23, 16  ;;  %v1425_v23 = vshll.u32 %v3134_v63, 16  ;;  %v3694_v63 = vld [vmem:[%s5316_s1 + $0x444] sm:$0xf] }
  0xbb   : > { %v4742_v52 = vpop.f32.mrf.mxu0  ;;  %v1414_v45 = vsel %vm4250_vm2, %v1409_v26, %v1413_v27  ;;  %v3504_v3 = vor.u32 %v3694_v63, %v3501_v0  ;;  %v3143_v63 = vld [vmem:[%s4028_s21 + $0xc8] sm:$0xf] }
  0xbc   : > { %v4740_v50 = vpop.f32.mrf.mxu3  ;;  %v4744_v53 = vpop.f32.mrf.mxu1  ;;  %v1435_v60 = vrot.slane %v1433_v32, 5  ;;  %v1517_v62 = vunpack.c.l.b16 %v1414_v45  ;;  %v1423_v32 = vrot.slane %v1422_v22, 4  ;;  %v1427_v33 = vrot.slane %v1425_v23, 5  ;;  %v3677_v45 = vld [vmem:[%s5316_s1 + $0x3b4] sm:$0xf0] }
  0xbd   : > { %v3396_v49 = vor.u32 %v3677_v45, %v3395_v44  ;;  %2367 = vmatpush.bf16.msra.mxu1 %v3504_v3  ;;  %v3389_v23 = vld [vmem:[%s5316_s1 + $0x3a8] sm:$0xf0]  ;;  %v1464_v45 = vor.u32 %v1463_v8, %v1460_v7  ;;  %v3483_v7 = vld [vmem:[%s5316_s1 + $0x420] sm:$0xf]  ;;  %v3691_v8 = vld [vmem:[%s5316_s1 + $0x424] sm:$0xf0] }
  0xbe   : > { %v1524_v18 = vpack.c.b16 %v1517_v62, %v1516_v61  ;;  %v1436_v24 = vor.u32 %v1435_v60, %v1432_v59  ;;  %v1428_v60 = vsel %vm4250_vm2, %v1423_v32, %v1427_v33  ;;  %v3400_v61 = vor.u32 %v3676_v46, %v3397_v51  ;;  %v3255_v32 = vld [vmem:[%s4028_s21 + $0x18] sm:$0xf]  ;;  %v3647_v33 = vld [vmem:[%s4028_s21 + $0x1c] sm:$0xf0] }
  0xbf   : > { %v3500_v62 = vor.u32 %v3695_v57, %v3499_v55  ;;  %2024 = vmatpush.bf16.msra.mxu2 %v3396_v49  ;;  %v1518_v16 = vunpack.c.l.b16 %v1428_v60  ;;  %v3256_v49 = vor.u32 %v3647_v33, %v3255_v32  ;;  %v3141_v55 = vld [vmem:[%s4028_s21 + $0xc0] sm:$0xf]  ;;  %v1455_v60 = vrot.slane %v1453_v40, 5  ;;  %v3259_v33 = vld [vmem:[%s4028_s21 + $0x28] sm:$0xf] }
  0xc0   : > { %v1437_v34 = vrot.slane %v1436_v24, 4  ;;  %2053 = vmatpush.bf16.msra.mxu3 %v3400_v61  ;;  %v3491_v24 = vld [vmem:[%s5316_s1 + $0x430] sm:$0xf]  ;;  %v1472_v0 = vshrl.u32 %v3141_v55, 16 }
  0xc1   : > { %v4776_v12 = vpop.f32.mrf.mxu2  ;;  %2338 = vmatpush.bf16.msra.mxu0 %v3500_v62  ;;  %v3492_v28 = vor.u32 %v3693_v25, %v3491_v24  ;;  %v1486_v24 = vshrl.u32 %v3143_v63, 16 }
  0xc2   : > { %v1442_v2 = vsel %vm4250_vm2, %v1437_v34, %v1441_v37 }
  0xc3   : > { %v4780_v19 = vpop.f32.mrf.mxu0 }
  0xc4   : > { %v4778_v14 = vpop.f32.mrf.mxu3  ;;  %v4782_v21 = vpop.f32.mrf.mxu1 }
  0xc5   : > { %2339 = vmatpush.bf16.msra.mxu0 %v3492_v28  ;;  %v1474_v28 = vrot.slane %v1472_v0, 4 }
  0xc6   : > { %1116 = vmatmul.bf16.gmra.mxu2 %v2960_v13 }
  0xc7   : > { %1320 = vmatmul.bf16.gmra.mxu0 %v3064_v20 }
  0xc9   : > { %1145 = vmatmul.bf16.gmra.mxu3 %v2960_v13  ;;  %v4795_v38 = vpop.f32.mrf.mxu2  ;;  %v3251_v13 = vld [vmem:[%s4028_s21 + $0x8] sm:$0xf] }
  0xca   : > { %1349 = vmatmul.bf16.gmra.mxu1 %v3064_v20  ;;  %v3252_v26 = vor.u32 %v3646_v15, %v3251_v13  ;;  %v3674_v13 = vld [vmem:[%s5316_s1 + $0x3a4] sm:$0xf] }
  0xcb   : > { %v4818_v54 = vpop.f32.mrf.mxu0 }
  0xcc   : > { %v4806_v43 = vpop.f32.mrf.mxu3  ;;  %v4820_v56 = vpop.f32.mrf.mxu1 }
  0xd1   : > { %v4850_v17 = vpop.f32.mrf.mxu2 }
  0xd4   : > { %v4852_v20 = vpop.f32.mrf.mxu3  ;;  %v898_v27 = vpop.f32.mrf.mxu0 }
  0xd6   : > { %1620 = vmatmul.bf16.vlgmr.msrb.gmra.mxu2 %v1524_v18 }
  0xd7   : > { %v927_v30 = vpop.f32.mrf.mxu1  ;;  %1824 = vmatmul.bf16.vlgmr.msrb.gmra.mxu0 %v3252_v26 }
  0xd9   : > { %1649 = vmatmul.bf16.vlgmr.msrb.gmra.mxu3 %v1524_v18  ;;  %v596_v48 = vpop.f32.mrf.mxu2  ;;  %v1519_v18 = vunpack.c.l.b16 %v1442_v2  ;;  %v3673_v2 = vld [vmem:[%s5316_s1 + $0x394] sm:$0xf0] }
  0xda   : > { %1853 = vmatmul.bf16.vlgmr.msrb.gmra.mxu1 %v3252_v26  ;;  %v597_v58 = vadd.f32 %v596_v48, %v4717_v31  ;;  %v1446_v31 = vrot.slane %v1444_v39, 4  ;;  %v3140_v26 = vld [vmem:[%s4028_s21 + $0xbc] sm:$0x1] }
  0xdb   : > { %v1525_v44 = vpack.c.b16 %v1519_v18, %v1518_v16  ;;  %v1467_v46 = vshll.u32 %v3140_v26, 16  ;;  %v3484_v16 = vor.u32 %v3691_v8, %v3483_v7  ;;  %v3690_v18 = vld [vmem:[%s5316_s1 + $0x424] sm:$0xf] }
  0xdc   : > { %v625_v59 = vpop.f32.mrf.mxu3  ;;  %v900_v4 = vpop.f32.mrf.mxu0  ;;  %v4887_v9 = vadd.f32 %v898_v27, %v597_v58  ;;  %v3392_v27 = vor.u32 %v3674_v13, %v3389_v23  ;;  %v1450_v39 = vor.u32 %v1449_v6, %v1446_v31  ;;  %v3672_v31 = vld [vmem:[%s5316_s1 + $0x394] sm:$0xf]  ;;  %v3381_v6 = vld [vmem:[%s5316_s1 + $0x398] sm:$0xf0] }
  0xdd   : > { %v626_v1 = vadd.f32 %v625_v59, %v4722_v35  ;;  %v3387_v35 = vld [vmem:[%s5316_s1 + $0x3a0] sm:$0xf]  ;;  %v1469_v62 = vrot.slane %v1467_v46, 5  ;;  %v3384_v13 = vor.u32 %v3672_v31, %v3381_v6  ;;  %2340 = vmatpush.bf16.msra.mxu0 %v3484_v16  ;;  %v3475_v46 = vld [vmem:[%s5316_s1 + $0x410] sm:$0xf] }
  0xde   : > { %v3388_v22 = vor.u32 %v3675_v11, %v3387_v35  ;;  %2054 = vmatpush.bf16.msra.mxu3 %v3392_v27  ;;  %v1451_v59 = vrot.slane %v1450_v39, 4  ;;  %v3142_v27 = vld [vmem:[%s4028_s21 + $0xc4] sm:$0x1] }
  0xdf   : > { %v929_v10 = vpop.f32.mrf.mxu1  ;;  %v4898_v15 = vadd.f32 %v927_v30, %v626_v1  ;;  %v3493_v30 = vld [vmem:[%s5316_s1 + $0x438] sm:$0xf0]  ;;  %v1475_v1 = vshll.u32 %v3141_v55, 16  ;;  %v3670_v39 = vld [vmem:[%s5316_s1 + $0x384] sm:$0xf]  ;;  %v1481_v0 = vshll.u32 %v3142_v27, 16 }
  0xe0   : > { %2025 = vmatpush.bf16.msra.mxu2 %v3388_v22  ;;  %v3496_v34 = vor.u32 %v3692_v29, %v3493_v30  ;;  %v3485_v22 = vld [vmem:[%s5316_s1 + $0x428] sm:$0xf0]  ;;  %v3686_v6 = vld [vmem:[%s5316_s1 + $0x404] sm:$0xf] }
  0xe1   : > { %v598_v37 = vpop.f32.mrf.mxu2  ;;  %v3488_v25 = vor.u32 %v3690_v18, %v3485_v22  ;;  %v1477_v29 = vrot.slane %v1475_v1, 5 }
  0xe2   : > { %v599_v41 = vadd.f32 %v598_v37, %v4742_v52  ;;  %2368 = vmatpush.bf16.msra.mxu1 %v3496_v34  ;;  %v1465_v52 = vrot.slane %v1464_v45, 4  ;;  %2055 = vmatpush.bf16.msra.mxu3 %v3384_v13  ;;  %v3648_v34 = vld [vmem:[%s4028_s21 + $0x2c] sm:$0xf0]  ;;  %v3671_v37 = vld [vmem:[%s5316_s1 + $0x384] sm:$0xf0] }
  0xe3   : > { %v3373_v45 = vld [vmem:[%s5316_s1 + $0x388] sm:$0xf0]  ;;  %v3260_v31 = vor.u32 %v3648_v34, %v3259_v33 }
  0xe4   : > { %v627_v42 = vpop.f32.mrf.mxu3  ;;  %v903_v51 = vpop.f32.mrf.mxu0  ;;  %v4921_v57 = vadd.f32 %v900_v4, %v599_v41  ;;  %v1456_v4 = vsel %vm4250_vm2, %v1451_v59, %v1455_v60  ;;  %v1470_v11 = vsel %vm4250_vm2, %v1465_v52, %v1469_v62  ;;  %v3376_v55 = vor.u32 %v3670_v39, %v3373_v45  ;;  %v3688_v59 = vld [vmem:[%s5316_s1 + $0x414] sm:$0xf]  ;;  %v3477_v60 = vld [vmem:[%s5316_s1 + $0x418] sm:$0xf0]  ;;  %v3144_v52 = vld [vmem:[%s4028_s21 + $0xcc] sm:$0x1] }
  0xe5   : > { %v628_v48 = vadd.f32 %v627_v42, %v4744_v53  ;;  %v3379_v53 = vld [vmem:[%s5316_s1 + $0x390] sm:$0xf]  ;;  %v1520_v41 = vunpack.c.l.b16 %v1456_v4  ;;  %v1521_v42 = vunpack.c.l.b16 %v1470_v11  ;;  %v3480_v62 = vor.u32 %v3688_v59, %v3477_v60  ;;  %v3467_v4 = vld [vmem:[%s5316_s1 + $0x400] sm:$0xf] }
  0xe6   : > { %1625 = vmatmul.bf16.gmra.mxu2 %v1525_v44  ;;  %v3380_v5 = vor.u32 %v3673_v2, %v3379_v53  ;;  %2369 = vmatpush.bf16.msra.mxu1 %v3488_v25  ;;  %v1495_v8 = vshll.u32 %v3144_v52, 16  ;;  %v3433_v25 = vld [vmem:[%s4028_s21 + $0x8] sm:$0xf] }
  0xe7   : > { %v932_v58 = vpop.f32.mrf.mxu1  ;;  %v4923_v61 = vadd.f32 %v929_v10, %v628_v48  ;;  %1829 = vmatmul.bf16.gmra.mxu0 %v3256_v49  ;;  %v3689_v48 = vld [vmem:[%s5316_s1 + $0x414] sm:$0xf0]  ;;  %2056 = vmatpush.bf16.msra.mxu3 %v3376_v55  ;;  %v1526_v2 = vpack.c.b16 %v1521_v42, %v1520_v41  ;;  %v3649_v55 = vld [vmem:[%s4028_s21 + $0x3c] sm:$0xf0] }
  0xe8   : > { %2026 = vmatpush.bf16.msra.mxu2 %v3380_v5  ;;  %v3687_v5 = vld [vmem:[%s5316_s1 + $0x404] sm:$0xf0] }
  0xe9   : > { %1654 = vmatmul.bf16.gmra.mxu3 %v1525_v44  ;;  %v601_v3 = vpop.f32.mrf.mxu2 }
  0xea   : > { %1858 = vmatmul.bf16.gmra.mxu1 %v3256_v49  ;;  %v602_v10 = vadd.f32 %v601_v3, %v4780_v19  ;;  %v1489_v19 = vshll.u32 %v3143_v63, 16  ;;  %v1488_v49 = vrot.slane %v1486_v24, 4  ;;  %v1478_v3 = vor.u32 %v1477_v29, %v1474_v28  ;;  %v3435_v28 = vld [vmem:[%s4028_s21 + $0x10] sm:$0xf] }
  0xeb   : > { %2370 = vmatpush.bf16.msra.mxu1 %v3480_v62  ;;  %v2125_v41 = vshrl.u32 %v3435_v28, 16  ;;  %v2128_v42 = vshll.u32 %v3435_v28, 16  ;;  %v3436_v62 = vld [vmem:[%s4028_s21 + $0x14] sm:$0x1] }
  0xec   : > { %v630_v35 = vpop.f32.mrf.mxu3  ;;  %v905_v26 = vpop.f32.mrf.mxu0  ;;  %v4957_v30 = vadd.f32 %v903_v51, %v602_v10  ;;  %v1491_v51 = vrot.slane %v1489_v19, 5  ;;  %v3468_v10 = vor.u32 %v3687_v5, %v3467_v4  ;;  %v1497_v19 = vrot.slane %v1495_v8, 5 }
  0xed   : > { %v631_v23 = vadd.f32 %v630_v35, %v4782_v21  ;;  %v3371_v21 = vld [vmem:[%s5316_s1 + $0x380] sm:$0xf]  ;;  %v3469_v35 = vld [vmem:[%s5316_s1 + $0x408] sm:$0xf0]  ;;  %v2127_v59 = vrot.slane %v2125_v41, 4  ;;  %v2130_v60 = vrot.slane %v2128_v42, 5 }
  0xee   : > { %v3372_v44 = vor.u32 %v3671_v37, %v3371_v21  ;;  %v3472_v13 = vor.u32 %v3686_v6, %v3469_v35  ;;  %v2111_v21 = vshrl.u32 %v3433_v25, 16  ;;  %v2114_v37 = vshll.u32 %v3433_v25, 16 }
  0xef   : > { %v934_v32 = vpop.f32.mrf.mxu1  ;;  %v4970_v40 = vadd.f32 %v932_v58, %v631_v23  ;;  %v3476_v58 = vor.u32 %v3689_v48, %v3475_v46  ;;  %v1479_v23 = vrot.slane %v1478_v3, 4  ;;  %v2131_v5 = vor.u32 %v2130_v60, %v2127_v59 }
  0xf0   : > { %2027 = vmatpush.bf16.msra.mxu2 %v3372_v44  ;;  %2371 = vmatpush.bf16.msra.mxu1 %v3472_v13  ;;  %v2134_v6 = vshll.u32 %v3436_v62, 16 }
  0xf1   : > { %v603_v63 = vpop.f32.mrf.mxu2  ;;  %2341 = vmatpush.bf16.msra.mxu0 %v3476_v58  ;;  %v3434_v58 = vld [vmem:[%s4028_s21 + $0xc] sm:$0x1] }
  0xf2   : > { %v604_v1 = vadd.f32 %v603_v63, %v4818_v54  ;;  %v1492_v54 = vor.u32 %v1491_v51, %v1488_v49  ;;  %v3263_v49 = vld [vmem:[%s4028_s21 + $0x38] sm:$0xf]  ;;  %v2113_v51 = vrot.slane %v2111_v21, 4  ;;  %v2120_v3 = vshll.u32 %v3434_v58, 16  ;;  %v3355_v21 = vld [vmem:[%s4028_s21 + $0x50] sm:$0xf] }
  0xf3   : > { %v2136_v35 = vrot.slane %v2134_v6, 5 }
  0xf4   : > { %v632_v53 = vpop.f32.mrf.mxu3  ;;  %v908_v11 = vpop.f32.mrf.mxu0  ;;  %v5002_v16 = vadd.f32 %v905_v26, %v604_v1  ;;  %v1493_v24 = vrot.slane %v1492_v54, 4 }
  0xf5   : > { %v633_v7 = vadd.f32 %v632_v53, %v4820_v56  ;;  %2342 = vmatpush.bf16.msra.mxu0 %v3468_v10  ;;  %v1483_v56 = vrot.slane %v1481_v0, 5  ;;  %v2122_v10 = vrot.slane %v2120_v3, 5 }
  0xf6   : > { %1630 = vmatmul.bf16.gmra.mxu2 %v1526_v2  ;;  %v1498_v34 = vsel %vm4250_vm2, %v1493_v24, %v1497_v19 }
  0xf7   : > { %v937_v18 = vpop.f32.mrf.mxu1  ;;  %v5004_v22 = vadd.f32 %v934_v32, %v633_v7  ;;  %1834 = vmatmul.bf16.gmra.mxu0 %v3260_v31  ;;  %v1484_v32 = vsel %vm4250_vm2, %v1479_v23, %v1483_v56  ;;  %v1523_v48 = vunpack.c.l.b16 %v1498_v34 }
  0xf8   : > { %v1522_v46 = vunpack.c.l.b16 %v1484_v32 }
  0xf9   : > { %1659 = vmatmul.bf16.gmra.mxu3 %v1526_v2  ;;  %v606_v27 = vpop.f32.mrf.mxu2  ;;  %v3264_v2 = vor.u32 %v3649_v55, %v3263_v49 }
  0xfa   : > { %1863 = vmatmul.bf16.gmra.mxu1 %v3260_v31  ;;  %v607_v26 = vadd.f32 %v606_v27, %v4735_v47  ;;  %v1527_v1 = vpack.c.b16 %v1523_v48, %v1522_v46 }
  0xfc   : > { %v635_v29 = vpop.f32.mrf.mxu3  ;;  %v910_v39 = vpop.f32.mrf.mxu0  ;;  %v5014_v44 = vadd.f32 %v908_v11, %v607_v26  ;;  %v3437_v11 = vld [vmem:[%s4028_s21 + $0x18] sm:$0xf] }
  0xfd   : > { %v636_v33 = vadd.f32 %v635_v29, %v4740_v50  ;;  %v2116_v50 = vrot.slane %v2114_v37, 5  ;;  %v2139_v25 = vshrl.u32 %v3437_v11, 16  ;;  %v2142_v27 = vshll.u32 %v3437_v11, 16 }
  0xff   : > { %v939_v47 = vpop.f32.mrf.mxu1  ;;  %v5016_v45 = vadd.f32 %v937_v18, %v636_v33  ;;  %v2117_v31 = vor.u32 %v2116_v50, %v2113_v51  ;;  %v3439_v18 = vld [vmem:[%s4028_s21 + $0x20] sm:$0xf]  ;;  %v2141_v41 = vrot.slane %v2139_v25, 4  ;;  %v2144_v42 = vrot.slane %v2142_v27, 5  ;;  %v3440_v51 = vld [vmem:[%s4028_s21 + $0x24] sm:$0x1] }
 0x100   : > { %v2153_v29 = vshrl.u32 %v3439_v18, 16  ;;  %v2156_v32 = vshll.u32 %v3439_v18, 16  ;;  %v3359_v27 = vld [vmem:[%s4028_s21 + $0x60] sm:$0xf] }
 0x101   : > { %v608_v52 = vpop.f32.mrf.mxu2 }
 0x102   : > { %v609_v63 = vadd.f32 %v608_v52, %v4776_v12  ;;  %v2118_v12 = vrot.slane %v2117_v31, 4  ;;  %v2155_v46 = vrot.slane %v2153_v29, 4  ;;  %v2158_v48 = vrot.slane %v2156_v32, 5 }
 0x103   : > { %v2145_v52 = vor.u32 %v2144_v42, %v2141_v41 }
 0x104   : > { %v637_v0 = vpop.f32.mrf.mxu3  ;;  %v913_v4 = vpop.f32.mrf.mxu0  ;;  %v5024_v7 = vadd.f32 %v910_v39, %v609_v63  ;;  %v2123_v19 = vsel %vm4250_vm2, %v2118_v12, %v2122_v10 }
 0x105   : > { %v638_v53 = vadd.f32 %v637_v0, %v4778_v14  ;;  %v2132_v14 = vrot.slane %v2131_v5, 4  ;;  %v2239_v37 = vunpack.c.l.b16 %v2123_v19  ;;  %v2159_v0 = vor.u32 %v2158_v48, %v2155_v46  ;;  %v3441_v5 = vld [vmem:[%s4028_s21 + $0x28] sm:$0xf] }
 0x106   : > { %1635 = vmatmul.bf16.gmra.mxu2 %v1527_v1  ;;  %v2167_v11 = vshrl.u32 %v3441_v5, 16 }
 0x107   : > { %v942_v54 = vpop.f32.mrf.mxu1  ;;  %v5026_v8 = vadd.f32 %v939_v47, %v638_v53  ;;  %1839 = vmatmul.bf16.gmra.mxu0 %v3264_v2  ;;  %v2137_v26 = vsel %vm4250_vm2, %v2132_v14, %v2136_v35  ;;  %v3438_v47 = vld [vmem:[%s4028_s21 + $0x1c] sm:$0x1] }
 0x108   : > { %v2240_v39 = vunpack.c.l.b16 %v2137_v26  ;;  %v2148_v62 = vshll.u32 %v3438_v47, 16  ;;  %v2169_v29 = vrot.slane %v2167_v11, 4 }
 0x109   : > { %1664 = vmatmul.bf16.gmra.mxu3 %v1527_v1  ;;  %v611_v13 = vpop.f32.mrf.mxu2  ;;  %v2162_v1 = vshll.u32 %v3440_v51, 16 }
 0x10a   : > { %1868 = vmatmul.bf16.gmra.mxu1 %v3264_v2  ;;  %v612_v23 = vadd.f32 %v611_v13, %v4795_v38  ;;  %v2247_v60 = vpack.c.b16 %v2240_v39, %v2239_v37  ;;  %v2150_v3 = vrot.slane %v2148_v62, 5  ;;  %v2170_v13 = vshll.u32 %v3441_v5, 16  ;;  %v3444_v39 = vld [vmem:[%s4028_s21 + $0x34] sm:$0x1] }
 0x10c   : > { %v640_v56 = vpop.f32.mrf.mxu3  ;;  %v915_v28 = vpop.f32.mrf.mxu0  ;;  %v5036_v33 = vadd.f32 %v913_v4, %v612_v23  ;;  %v2164_v4 = vrot.slane %v2162_v1, 5  ;;  %v2172_v32 = vrot.slane %v2170_v13, 5  ;;  %v3363_v13 = vld [vmem:[%s4028_s21 + $0x70] sm:$0xf] }
 0x10d   : > { %v641_v24 = vadd.f32 %v640_v56, %v4806_v43  ;;  %v3666_v43 = vld [vmem:[%s4028_s21 + $0x54] sm:$0xf0] }
 0x10e   : > { %v3356_v58 = vor.u32 %v3666_v43, %v3355_v21 }
 0x10f   : > { %v944_v34 = vpop.f32.mrf.mxu1  ;;  %v5038_v38 = vadd.f32 %v942_v54, %v641_v24  ;;  %v3443_v54 = vld [vmem:[%s4028_s21 + $0x30] sm:$0xf] }
 0x110   : > { %v2181_v56 = vshrl.u32 %v3443_v54, 16  ;;  %v2184_v24 = vshll.u32 %v3443_v54, 16 }
 0x111   : > { %v613_v49 = vpop.f32.mrf.mxu2 }
 0x112   : > { %v614_v50 = vadd.f32 %v613_v49, %v4850_v17  ;;  %v2146_v17 = vrot.slane %v2145_v52, 4  ;;  %v2183_v21 = vrot.slane %v2181_v56, 4  ;;  %v2186_v43 = vrot.slane %v2184_v24, 5 }
 0x113   : > { %v2173_v49 = vor.u32 %v2172_v32, %v2169_v29 }
 0x114   : > { %v642_v55 = vpop.f32.mrf.mxu3  ;;  %v1306_v63 = vpop.f32.mrf.mxu0  ;;  %v5046_v53 = vadd.f32 %v915_v28, %v614_v50  ;;  %v2151_v35 = vsel %vm4250_vm2, %v2146_v17, %v2150_v3 }
 0x115   : > { %v643_v59 = vadd.f32 %v642_v55, %v4852_v20  ;;  %v2160_v20 = vrot.slane %v2159_v0, 4  ;;  %v2241_v28 = vunpack.c.l.b16 %v2151_v35  ;;  %v2187_v55 = vor.u32 %v2186_v43, %v2183_v21  ;;  %v3445_v0 = vld [vmem:[%s4028_s21 + $0x38] sm:$0xf] }
 0x116   : > { %2028 = vmatmul.bf16.vlgmr.msra.gmra.mxu2 %v3356_v58  ;;  %v2195_v5 = vshrl.u32 %v3445_v0, 16 }
 0x117   : > { %v1335_v2 = vpop.f32.mrf.mxu1  ;;  %v5048_v31 = vadd.f32 %v944_v34, %v643_v59  ;;  %2343 = vmatmul.bf16.vlgmr.msra.gmra.mxu0 %v2247_v60  ;;  %v2165_v23 = vsel %vm4250_vm2, %v2160_v20, %v2164_v4  ;;  %v3442_v34 = vld [vmem:[%s4028_s21 + $0x2c] sm:$0x1] }
 0x118   : > { %v2242_v26 = vunpack.c.l.b16 %v2165_v23  ;;  %v2176_v51 = vshll.u32 %v3442_v34, 16  ;;  %v2197_v56 = vrot.slane %v2195_v5, 4 }
 0x119   : > { %2057 = vmatmul.bf16.vlgmr.msra.gmra.mxu3 %v3356_v58  ;;  %v1102_v6 = vpop.f32.mrf.mxu2  ;;  %v2190_v58 = vshll.u32 %v3444_v39, 16 }
 0x11a   : > { %2372 = vmatmul.bf16.vlgmr.msra.gmra.mxu1 %v2247_v60  ;;  %v1151_v12 = vadd.f32 %v1102_v6, %v4887_v9  ;;  %v2248_v48 = vpack.c.b16 %v2242_v26, %v2241_v28  ;;  %v2178_v62 = vrot.slane %v2176_v51, 5  ;;  %v2198_v6 = vshll.u32 %v3445_v0, 16  ;;  %v3446_v28 = vld [vmem:[%s4028_s21 + $0x3c] sm:$0x1]  ;;  %v3448_v26 = vld [vmem:[%s4028_s21 + $0x44] sm:$0x1] }
 0x11c   : > { %v1131_v10 = vpop.f32.mrf.mxu3  ;;  %v1308_v18 = vpop.f32.mrf.mxu0  ;;  %v5058_v19 = vadd.f32 %v1306_v63, %v1151_v12  ;;  %v2192_v63 = vrot.slane %v2190_v58, 5  ;;  %v2200_v24 = vrot.slane %v2198_v6, 5 }
 0x11d   : > { %v1152_v14 = vadd.f32 %v1131_v10, %v4898_v15  ;;  %v3667_v15 = vld [vmem:[%s4028_s21 + $0x64] sm:$0xf0] }
 0x11e   : > { %v3360_v47 = vor.u32 %v3667_v15, %v3359_v27 }
 0x11f   : > { %v1337_v25 = vpop.f32.mrf.mxu1  ;;  %v5060_v9 = vadd.f32 %v1335_v2, %v1152_v14  ;;  %v3447_v2 = vld [vmem:[%s4028_s21 + $0x40] sm:$0xf] }
 0x120   : > { %v2209_v10 = vshrl.u32 %v3447_v2, 16  ;;  %v2212_v14 = vshll.u32 %v3447_v2, 16 }
 0x121   : > { %v1104_v37 = vpop.f32.mrf.mxu2 }
 0x122   : > { %v1153_v41 = vadd.f32 %v1104_v37, %v4921_v57  ;;  %v2174_v57 = vrot.slane %v2173_v49, 4  ;;  %v2214_v27 = vrot.slane %v2212_v14, 5  ;;  %v2201_v37 = vor.u32 %v2200_v24, %v2197_v56 }
 0x124   : > { %v1133_v42 = vpop.f32.mrf.mxu3  ;;  %v1311_v50 = vpop.f32.mrf.mxu0  ;;  %v5068_v59 = vadd.f32 %v1308_v18, %v1153_v41  ;;  %v2179_v4 = vsel %vm4250_vm2, %v2174_v57, %v2178_v62  ;;  %v2204_v41 = vshll.u32 %v3446_v28, 16 }
 0x125   : > { %v1154_v46 = vadd.f32 %v1133_v42, %v4923_v61  ;;  %v2188_v61 = vrot.slane %v2187_v55, 4  ;;  %v2243_v18 = vunpack.c.l.b16 %v2179_v4 }
 0x126   : > { %2033 = vmatmul.bf16.gmra.mxu2 %v3360_v47  ;;  %v2206_v51 = vrot.slane %v2204_v41, 5 }
 0x127   : > { %v1340_v60 = vpop.f32.mrf.mxu1  ;;  %v5070_v52 = vadd.f32 %v1337_v25, %v1154_v46  ;;  %2348 = vmatmul.bf16.gmra.mxu0 %v2248_v48  ;;  %v2193_v12 = vsel %vm4250_vm2, %v2188_v61, %v2192_v63  ;;  %v2211_v25 = vrot.slane %v2209_v10, 4 }
 0x128   : > { %v2244_v23 = vunpack.c.l.b16 %v2193_v12 }
 0x129   : > { %2062 = vmatmul.bf16.gmra.mxu3 %v3360_v47  ;;  %v1107_v1 = vpop.f32.mrf.mxu2  ;;  %v2215_v42 = vor.u32 %v2214_v27, %v2211_v25  ;;  %v2218_v47 = vshll.u32 %v3448_v26, 16 }
 0x12a   : > { %2377 = vmatmul.bf16.gmra.mxu1 %v2248_v48  ;;  %v1155_v17 = vadd.f32 %v1107_v1, %v4957_v30  ;;  %v2249_v43 = vpack.c.b16 %v2244_v23, %v2243_v18 }
 0x12c   : > { %v1136_v3 = vpop.f32.mrf.mxu3  ;;  %v1313_v54 = vpop.f32.mrf.mxu0  ;;  %v5080_v35 = vadd.f32 %v1311_v50, %v1155_v17  ;;  %v2220_v50 = vrot.slane %v2218_v47, 5  ;;  %v3367_v17 = vld [vmem:[%s4028_s21 + $0x80] sm:$0xf] }
 0x12d   : > { %v1156_v20 = vadd.f32 %v1136_v3, %v4970_v40  ;;  %v3668_v40 = vld [vmem:[%s4028_s21 + $0x74] sm:$0xf0]  ;;  %v3669_v3 = vld [vmem:[%s4028_s21 + $0x84] sm:$0xf0] }
 0x12e   : > { %v3364_v34 = vor.u32 %v3668_v40, %v3363_v13  ;;  %v3368_v6 = vor.u32 %v3669_v3, %v3367_v17 }
 0x12f   : > { %v1342_v11 = vpop.f32.mrf.mxu1  ;;  %v5082_v30 = vadd.f32 %v1340_v60, %v1156_v20 }
 0x131   : > { %v1109_v15 = vpop.f32.mrf.mxu2 }
 0x132   : > { %v1157_v29 = vadd.f32 %v1109_v15, %v5002_v16  ;;  %v2202_v16 = vrot.slane %v2201_v37, 4 }
 0x134   : > { %v1138_v32 = vpop.f32.mrf.mxu3  ;;  %v1316_v39 = vpop.f32.mrf.mxu0  ;;  %v5090_v46 = vadd.f32 %v1313_v54, %v1157_v29  ;;  %v2207_v61 = vsel %vm4250_vm2, %v2202_v16, %v2206_v51 }
 0x135   : > { %v1158_v21 = vadd.f32 %v1138_v32, %v5004_v22  ;;  %v2216_v22 = vrot.slane %v2215_v42, 4  ;;  %v2245_v20 = vunpack.c.l.b16 %v2207_v61 }
 0x136   : > { %2038 = vmatmul.bf16.gmra.mxu2 %v3364_v34 }
 0x137   : > { %v1345_v48 = vpop.f32.mrf.mxu1  ;;  %v5092_v49 = vadd.f32 %v1342_v11, %v1158_v21  ;;  %2353 = vmatmul.bf16.gmra.mxu0 %v2249_v43  ;;  %v2221_v63 = vsel %vm4250_vm2, %v2216_v22, %v2220_v50 }
 0x138   : > { %v2246_v4 = vunpack.c.l.b16 %v2221_v63 }
 0x139   : > { %2067 = vmatmul.bf16.gmra.mxu3 %v3364_v34  ;;  %v1112_v55 = vpop.f32.mrf.mxu2 }
 0x13a   : > { %2382 = vmatmul.bf16.gmra.mxu1 %v2249_v43  ;;  %v1159_v58 = vadd.f32 %v1112_v55, %v5014_v44  ;;  %v2250_v12 = vpack.c.b16 %v2246_v4, %v2245_v20 }
 0x13c   : > { %v1141_v60 = vpop.f32.mrf.mxu3  ;;  %v1318_v62 = vpop.f32.mrf.mxu0  ;;  %v5100_v0 = vadd.f32 %v1316_v39, %v1159_v58 }
 0x13d   : > { %v1160_v57 = vadd.f32 %v1141_v60, %v5016_v45 }
 0x13f   : > { %v1347_v1 = vpop.f32.mrf.mxu1  ;;  %v5102_v2 = vadd.f32 %v1345_v48, %v1160_v57 }
 0x141   : > { %v1114_v44 = vpop.f32.mrf.mxu2 }
 0x142   : > { %v1161_v5 = vadd.f32 %v1114_v44, %v5024_v7 }
 0x144   : > { %v1143_v45 = vpop.f32.mrf.mxu3  ;;  %v1321_v10 = vpop.f32.mrf.mxu0  ;;  %v5108_v36 = vadd.f32 %v1318_v62, %v1161_v5 }
 0x145   : > { %v1162_v54 = vadd.f32 %v1143_v45, %v5026_v8 }
 0x146   : > { %2043 = vmatmul.bf16.gmra.mxu2 %v3368_v6 }
 0x147   : > { %v1350_v14 = vpop.f32.mrf.mxu1  ;;  %v5110_v11 = vadd.f32 %v1347_v1, %v1162_v54  ;;  %2358 = vmatmul.bf16.gmra.mxu0 %v2250_v12 }
 0x149   : > { %2072 = vmatmul.bf16.gmra.mxu3 %v3368_v6  ;;  %v1117_v13 = vpop.f32.mrf.mxu2 }
 0x14a   : > { %2387 = vmatmul.bf16.gmra.mxu1 %v2250_v12  ;;  %v1163_v40 = vadd.f32 %v1117_v13, %v5036_v33 }
 0x14c   : > { %v1146_v18 = vpop.f32.mrf.mxu3  ;;  %v1323_v23 = vpop.f32.mrf.mxu0  ;;  %v5114_v56 = vadd.f32 %v1321_v10, %v1163_v40  ;;  %v2409_v10 = vld [vmem:[%s5317_s2] sm:$0x3] }
 0x14d   : > { %v1164_v7 = vadd.f32 %v1146_v18, %v5038_v38  ;;  %v2431_v40 = vld [vmem:[%s5318_s3] sm:$0x3] }
 0x14f   : > { %v1352_v8 = vpop.f32.mrf.mxu1  ;;  %v5116_v24 = vadd.f32 %v1350_v14, %v1164_v7 }
 0x151   : > { %v1119_v25 = vpop.f32.mrf.mxu2 }
 0x152   : > { %v1165_v27 = vadd.f32 %v1119_v25, %v5046_v53  ;;  %v5180_v25 = vperm.slane %v2409_v10, 1 }
 0x154   : > { %v1148_v15 = vpop.f32.mrf.mxu3  ;;  %v1825_v26 = vpop.f32.mrf.mxu0  ;;  %v5120_v29 = vadd.f32 %v1323_v23, %v1165_v27  ;;  %v5178_v23 = vperm.slane %v2409_v10, 0 }
 0x155   : > { %v1166_v28 = vadd.f32 %v1148_v15, %v5048_v31  ;;  %v5184_v15 = vperm.slane %v2431_v40, 0 }
 0x157   : > { %v1854_v32 = vpop.f32.mrf.mxu1  ;;  %v5122_v33 = vadd.f32 %v1352_v8, %v1166_v28 }
 0x159   : > { %v1621_v34 = vpop.f32.mrf.mxu2 }
 0x15a   : > { %v1670_v45 = vadd.f32 %v1621_v34, %v5058_v19 }
 0x15c   : > { %v1650_v38 = vpop.f32.mrf.mxu3  ;;  %v1827_v21 = vpop.f32.mrf.mxu0  ;;  %v1874_v14 = vadd.f32 %v1825_v26, %v1670_v45 }
 0x15d   : > { %v1671_v54 = vadd.f32 %v1650_v38, %v5060_v9  ;;  %v5187_v38 = vperm.slane %v2431_v40, 1 }
 0x15f   : > { %v1856_v43 = vpop.f32.mrf.mxu1  ;;  %v1875_v18 = vadd.f32 %v1854_v32, %v1671_v54 }
 0x161   : > { %v1623_v37 = vpop.f32.mrf.mxu2 }
 0x162   : > { %v1672_v9 = vadd.f32 %v1623_v37, %v5068_v59 }
 0x164   : > { %v1652_v39 = vpop.f32.mrf.mxu3  ;;  %v5124_v41 = vpop.f32.mrf.mxu0  ;;  %v1876_v59 = vadd.f32 %v1827_v21, %v1672_v9 }
 0x165   : > { %v1673_v26 = vadd.f32 %v1652_v39, %v5070_v52 }
 0x167   : > { %v5126_v42 = vpop.f32.mrf.mxu1 }
 0x169   : > { %v1626_v53 = vpop.f32.mrf.mxu2 }
 0x16c   : > { %v5128_v47 = vpop.f32.mrf.mxu3  ;;  %v5130_v31 = vpop.f32.mrf.mxu0 }
 0x16f   : > { %v5132_v48 = vpop.f32.mrf.mxu1 }
 0x171   : > { %v5134_v16 = vpop.f32.mrf.mxu2 }
 0x174   : > { %v5136_v51 = vpop.f32.mrf.mxu3  ;;  %v5138_v22 = vpop.f32.mrf.mxu0 }
 0x177   : > { %v5140_v50 = vpop.f32.mrf.mxu1 }
 0x179   : > { %v5142_v55 = vpop.f32.mrf.mxu2 }
 0x17c   : > { %v5144_v58 = vpop.f32.mrf.mxu3  ;;  %v5146_v60 = vpop.f32.mrf.mxu0 }
 0x17f   : > { %v5148_v57 = vpop.f32.mrf.mxu1 }
 0x181   : > { %v5150_v62 = vpop.f32.mrf.mxu2 }
 0x184   : > { %v5152_v61 = vpop.f32.mrf.mxu3  ;;  %v5154_v63 = vpop.f32.mrf.mxu0 }
 0x187   : > { %v5156_v1 = vpop.f32.mrf.mxu1 }
 0x189   : > { %v5158_v17 = vpop.f32.mrf.mxu2 }
 0x18c   : > { %v5160_v3 = vpop.f32.mrf.mxu3  ;;  %v5162_v20 = vpop.f32.mrf.mxu0 }
 0x18f   : > { %v5164_v4 = vpop.f32.mrf.mxu1 }
 0x191   : > { %v5166_v44 = vpop.f32.mrf.mxu2 }
 0x194   : > { %v5168_v5 = vpop.f32.mrf.mxu3  ;;  %v2344_v6 = vpop.f32.mrf.mxu0 }
 0x197   : > { %v2373_v12 = vpop.f32.mrf.mxu1 }
 0x199   : > { %v2029_v13 = vpop.f32.mrf.mxu2 }
 0x19a   : > { %v2078_v7 = vadd.f32 %v2029_v13, %v1874_v14  ;;  %v1877_v14 = vadd.f32 %v1856_v43, %v1673_v26 }
 0x19c   : > { %v2058_v19 = vpop.f32.mrf.mxu3  ;;  %v2393_v27 = vadd.f32 %v2344_v6, %v2078_v7  ;;  %v2346_v28 = vpop.f32.mrf.mxu0 }
 0x19d   : > { %v2079_v8 = vadd.f32 %v2058_v19, %v1875_v18  ;;  %v1674_v18 = vadd.f32 %v1626_v53, %v5080_v35 }
 0x19e   : > { %v2415_v45 = vmul.f32 %v5178_v23, %v2393_v27  ;;  %v1675_v27 = vadd.f32 %v5128_v47, %v5082_v30 }
 0x19f   : > { %v2394_v34 = vadd.f32 %v2373_v12, %v2079_v8  ;;  %v2375_v32 = vpop.f32.mrf.mxu1  ;;  %v1878_v53 = vadd.f32 %v5124_v41, %v1674_v18 }
 0x1a0   : > { %v2437_v10 = vadd.f32 %v5184_v15, %v2415_v45 }
 0x1a1   : > { %v2416_v54 = vmul.f32 %v5180_v25, %v2394_v34  ;;  %v2031_v6 = vpop.f32.mrf.mxu2 }
 0x1a2   : > { %vm2453_vm3 = vcmp.ge.f32.partialorder %v2437_v10, 0.0  ;;  %v2469_v13 = vmul.f32 0.01, %v2437_v10  ;;  %v2080_v52 = vadd.f32 %v2031_v6, %v1876_v59 }
 0x1a3   : > { %v2438_v37 = vadd.f32 %v5187_v38, %v2416_v54 }
 0x1a4   : > { %v2060_v39 = vpop.f32.mrf.mxu3  ;;  %v2485_v7 = vsel %vm2453_vm3, %v2437_v10, %v2469_v13  ;;  %v2395_v19 = vadd.f32 %v2346_v28, %v2080_v52  ;;  %v2349_v8 = vpop.f32.mrf.mxu0  ;;  %v1879_v28 = vadd.f32 %v5126_v42, %v1675_v27  ;;  %v1677_v13 = vadd.f32 %v5136_v51, %v5092_v49 }
 0x1a5   : > { %vm2454_vm4 = vcmp.ge.f32.partialorder %v2438_v37, 0.0  ;;  %v2470_v12 = vmul.f32 0.01, %v2438_v37  ;;  %v2081_v40 = vadd.f32 %v2060_v39, %v1877_v14  ;;  %2501 = vst [vmem:[%s5198_s22] sm:$0xff] %v2485_v7 }
 0x1a6   : > { %v2417_v26 = vmul.f32 %v5178_v23, %v2395_v19  ;;  %v1881_v19 = vadd.f32 %v5132_v48, %v1677_v13 }
 0x1a7   : > { %v2486_v21 = vsel %vm2454_vm4, %v2438_v37, %v2470_v12  ;;  %v2396_v43 = vadd.f32 %v2375_v32, %v2081_v40  ;;  %v2378_v9 = vpop.f32.mrf.mxu1  ;;  %v1676_v37 = vadd.f32 %v5134_v16, %v5090_v46 }
 0x1a8   : > { %2502 = vst [vmem:[%s5198_s22 + $0x8] sm:$0xff] %v2486_v21  ;;  %v2439_v35 = vadd.f32 %v5184_v15, %v2417_v26 }
 0x1a9   : > { %v2418_v34 = vmul.f32 %v5180_v25, %v2396_v43  ;;  %v2034_v47 = vpop.f32.mrf.mxu2  ;;  %v1880_v46 = vadd.f32 %v5130_v31, %v1676_v37  ;;  %v1678_v43 = vadd.f32 %v5142_v55, %v5100_v0  ;;  %v1679_v31 = vadd.f32 %v5144_v58, %v5102_v2 }
 0x1aa   : > { %vm2455_vm5 = vcmp.ge.f32.partialorder %v2439_v35, 0.0  ;;  %v2471_v45 = vmul.f32 0.01, %v2439_v35  ;;  %v2082_v32 = vadd.f32 %v2034_v47, %v1878_v53  ;;  %v1680_v37 = vadd.f32 %v5150_v62, %v5108_v36 }
 0x1ab   : > { %v2440_v30 = vadd.f32 %v5187_v38, %v2418_v34  ;;  %v1882_v0 = vadd.f32 %v5138_v22, %v1678_v43  ;;  %v1883_v2 = vadd.f32 %v5140_v50, %v1679_v31  ;;  %v1681_v22 = vadd.f32 %v5152_v61, %v5110_v11 }
 0x1ac   : > { %v2063_v54 = vpop.f32.mrf.mxu3  ;;  %v2487_v6 = vsel %vm2455_vm5, %v2439_v35, %v2471_v45  ;;  %v2397_v14 = vadd.f32 %v2349_v8, %v2082_v32  ;;  %v2351_v41 = vpop.f32.mrf.mxu0  ;;  %v1884_v36 = vadd.f32 %v5146_v60, %v1680_v37  ;;  %v1683_v60 = vadd.f32 %v5160_v3, %v5116_v24 }
 0x1ad   : > { %vm2456_vm6 = vcmp.ge.f32.partialorder %v2440_v30, 0.0  ;;  %v2472_v10 = vmul.f32 0.01, %v2440_v30  ;;  %v2083_v59 = vadd.f32 %v2063_v54, %v1879_v28  ;;  %2503 = vst [vmem:[%s5198_s22 + $0x10] sm:$0xff] %v2487_v6  ;;  %v1885_v11 = vadd.f32 %v5148_v57, %v1681_v22 }
 0x1ae   : > { %v2419_v12 = vmul.f32 %v5178_v23, %v2397_v14  ;;  %v1887_v31 = vadd.f32 %v5156_v1, %v1683_v60 }
 0x1af   : > { %v2488_v52 = vsel %vm2456_vm6, %v2440_v30, %v2472_v10  ;;  %v2398_v42 = vadd.f32 %v2378_v9, %v2083_v59  ;;  %v2380_v39 = vpop.f32.mrf.mxu1 }
 0x1b0   : > { %2504 = vst [vmem:[%s5198_s22 + $0x18] sm:$0xff] %v2488_v52  ;;  %v2441_v18 = vadd.f32 %v5184_v15, %v2419_v12 }
 0x1b1   : > { %v2420_v40 = vmul.f32 %v5180_v25, %v2398_v42  ;;  %v2036_v7 = vpop.f32.mrf.mxu2 }
 0x1b2   : > { %vm2457_vm7 = vcmp.ge.f32.partialorder %v2441_v18, 0.0  ;;  %v2473_v49 = vmul.f32 0.01, %v2441_v18  ;;  %v2084_v51 = vadd.f32 %v2036_v7, %v1880_v46 }
 0x1b3   : > { %v2442_v16 = vadd.f32 %v5187_v38, %v2420_v40 }
 0x1b4   : > { %v2065_v8 = vpop.f32.mrf.mxu3  ;;  %v2489_v9 = vsel %vm2457_vm7, %v2441_v18, %v2473_v49  ;;  %v2399_v26 = vadd.f32 %v2351_v41, %v2084_v51  ;;  %v2354_v48 = vpop.f32.mrf.mxu0 }
 0x1b5   : > { %vm2458_vm8 = vcmp.ge.f32.partialorder %v2442_v16, 0.0  ;;  %v2474_v27 = vmul.f32 0.01, %v2442_v16  ;;  %v2085_v21 = vadd.f32 %v2065_v8, %v1881_v19  ;;  %2505 = vst [vmem:[%s5198_s22 + $0x20] sm:$0xff] %v2489_v9  ;;  %v1682_v19 = vadd.f32 %v5158_v17, %v5114_v56 }
 0x1b6   : > { %v2421_v53 = vmul.f32 %v5178_v23, %v2399_v26 }
 0x1b7   : > { %v2490_v34 = vsel %vm2458_vm8, %v2442_v16, %v2474_v27  ;;  %v2400_v35 = vadd.f32 %v2380_v39, %v2085_v21  ;;  %v2383_v30 = vpop.f32.mrf.mxu1  ;;  %v1886_v9 = vadd.f32 %v5154_v63, %v1682_v19 }
 0x1b8   : > { %2506 = vst [vmem:[%s5198_s22 + $0x28] sm:$0xff] %v2490_v34  ;;  %v2443_v28 = vadd.f32 %v5184_v15, %v2421_v53 }
 0x1b9   : > { %v2422_v47 = vmul.f32 %v5180_v25, %v2400_v35  ;;  %v2039_v45 = vpop.f32.mrf.mxu2 }
 0x1ba   : > { %vm2459_vm9 = vcmp.ge.f32.partialorder %v2443_v28, 0.0  ;;  %v2475_v58 = vmul.f32 0.01, %v2443_v28  ;;  %v2086_v32 = vadd.f32 %v2039_v45, %v1882_v0 }
 0x1bb   : > { %v2444_v55 = vadd.f32 %v5187_v38, %v2422_v47 }
 0x1bc   : > { %v2068_v54 = vpop.f32.mrf.mxu3  ;;  %v2491_v6 = vsel %vm2459_vm9, %v2443_v28, %v2475_v58  ;;  %v2401_v14 = vadd.f32 %v2354_v48, %v2086_v32  ;;  %v2356_v42 = vpop.f32.mrf.mxu0  ;;  %v1685_v28 = vadd.f32 %v5168_v5, %v5122_v33 }
 0x1bd   : > { %vm2460_vm10 = vcmp.ge.f32.partialorder %v2444_v55, 0.0  ;;  %v2476_v10 = vmul.f32 0.01, %v2444_v55  ;;  %v2087_v59 = vadd.f32 %v2068_v54, %v1883_v2  ;;  %2507 = vst [vmem:[%s5198_s22 + $0x30] sm:$0xff] %v2491_v6 }
 0x1be   : > { %v2423_v50 = vmul.f32 %v5178_v23, %v2401_v14  ;;  %v1889_v32 = vadd.f32 %v5164_v4, %v1685_v28 }
 0x1bf   : > { %v2492_v41 = vsel %vm2460_vm10, %v2444_v55, %v2476_v10  ;;  %v2402_v13 = vadd.f32 %v2383_v30, %v2087_v59  ;;  %v2385_v12 = vpop.f32.mrf.mxu1  ;;  %v1684_v30 = vadd.f32 %v5166_v44, %v5120_v29 }
 0x1c0   : > { %2508 = vst [vmem:[%s5198_s22 + $0x38] sm:$0xff] %v2492_v41  ;;  %v2445_v39 = vadd.f32 %v5184_v15, %v2423_v50 }
 0x1c1   : > { %v2424_v52 = vmul.f32 %v5180_v25, %v2402_v13  ;;  %v2041_v40 = vpop.f32.mrf.mxu2  ;;  %v1888_v58 = vadd.f32 %v5162_v20, %v1684_v30 }
 0x1c2   : > { %vm2461_vm11 = vcmp.ge.f32.partialorder %v2445_v39, 0.0  ;;  %v2477_v61 = vmul.f32 0.01, %v2445_v39  ;;  %v2088_v18 = vadd.f32 %v2041_v40, %v1884_v36 }
 0x1c3   : > { %v2446_v62 = vadd.f32 %v5187_v38, %v2424_v52 }
 0x1c4   : > { %v2070_v46 = vpop.f32.mrf.mxu3  ;;  %v2493_v49 = vsel %vm2461_vm11, %v2445_v39, %v2477_v61  ;;  %v2403_v51 = vadd.f32 %v2356_v42, %v2088_v18  ;;  %v2359_v56 = vpop.f32.mrf.mxu0 }
 0x1c5   : > { %vm2462_vm12 = vcmp.ge.f32.partialorder %v2446_v62, 0.0  ;;  %v2478_v16 = vmul.f32 0.01, %v2446_v62  ;;  %v2089_v7 = vadd.f32 %v2070_v46, %v1885_v11  ;;  %2509 = vst [vmem:[%s5198_s22 + $0x40] sm:$0xff] %v2493_v49 }
 0x1c6   : > { %v2425_v57 = vmul.f32 %v5178_v23, %v2403_v51 }
 0x1c7   : > { %v2494_v8 = vsel %vm2462_vm12, %v2446_v62, %v2478_v16  ;;  %v2404_v27 = vadd.f32 %v2385_v12, %v2089_v7  ;;  %v2388_v3 = vpop.f32.mrf.mxu1 }
 0x1c8   : > { %2510 = vst [vmem:[%s5198_s22 + $0x48] sm:$0xff] %v2494_v8  ;;  %v2447_v43 = vadd.f32 %v5184_v15, %v2425_v57 }
 0x1c9   : > { %v2426_v21 = vmul.f32 %v5180_v25, %v2404_v27  ;;  %v2044_v17 = vpop.f32.mrf.mxu2 }
 0x1ca   : > { %vm2463_vm13 = vcmp.ge.f32.partialorder %v2447_v43, 0.0  ;;  %v2479_v24 = vmul.f32 0.01, %v2447_v43  ;;  %v2090_v34 = vadd.f32 %v2044_v17, %v1886_v9 }
 0x1cb   : > { %v2448_v26 = vadd.f32 %v5187_v38, %v2426_v21 }
 0x1cc   : > { %v2073_v35 = vpop.f32.mrf.mxu3  ;;  %v2495_v63 = vsel %vm2463_vm13, %v2447_v43, %v2479_v24  ;;  %v2405_v47 = vadd.f32 %v2359_v56, %v2090_v34  ;;  %v2361_v59 = vpop.f32.mrf.mxu0 }
 0x1cd   : > { %vm2464_vm14 = vcmp.ge.f32.partialorder %v2448_v26, 0.0  ;;  %v2480_v48 = vmul.f32 0.01, %v2448_v26  ;;  %v2091_v53 = vadd.f32 %v2073_v35, %v1887_v31  ;;  %2511 = vst [vmem:[%s5198_s22 + $0x50] sm:$0xff] %v2495_v63 }
 0x1ce   : > { %v2427_v55 = vmul.f32 %v5178_v23, %v2405_v47 }
 0x1cf   : > { %v2496_v1 = vsel %vm2464_vm14, %v2448_v26, %v2480_v48  ;;  %v2406_v0 = vadd.f32 %v2388_v3, %v2091_v53  ;;  %v2390_v14 = vpop.f32.mrf.mxu1 }
 0x1d0   : > { %2512 = vst [vmem:[%s5198_s22 + $0x58] sm:$0xff] %v2496_v1  ;;  %v2449_v2 = vadd.f32 %v5184_v15, %v2427_v55 }
 0x1d1   : > { %v2428_v45 = vmul.f32 %v5180_v25, %v2406_v0  ;;  %v2046_v44 = vpop.f32.mrf.mxu2 }
 0x1d2   : > { %vm2465_vm15 = vcmp.ge.f32.partialorder %v2449_v2, 0.0  ;;  %v2481_v33 = vmul.f32 0.01, %v2449_v2  ;;  %v2092_v5 = vadd.f32 %v2046_v44, %v1888_v58 }
 0x1d3   : > { %v2450_v29 = vadd.f32 %v5187_v38, %v2428_v45 }
 0x1d4   : > { %v2075_v54 = vpop.f32.mrf.mxu3  ;;  %v2497_v6 = vsel %vm2465_vm15, %v2449_v2, %v2481_v33  ;;  %v2407_v20 = vadd.f32 %v2361_v59, %v2092_v5 }
 0x1d5   : > { %vm2466_vm0 = vcmp.ge.f32.partialorder %v2450_v29, 0.0  ;;  %v2482_v10 = vmul.f32 0.01, %v2450_v29  ;;  %v2093_v37 = vadd.f32 %v2075_v54, %v1889_v32  ;;  %2513 = vst [vmem:[%s5198_s22 + $0x60] sm:$0xff] %v2497_v6 }
 0x1d6   : > { %v2429_v4 = vmul.f32 %v5178_v23, %v2407_v20 }
 0x1d7   : > { %v2498_v22 = vsel %vm2466_vm0, %v2450_v29, %v2482_v10  ;;  %v2408_v41 = vadd.f32 %v2390_v14, %v2093_v37 }
 0x1d8   : > { %2514 = vst [vmem:[%s5198_s22 + $0x68] sm:$0xff] %v2498_v22  ;;  %v2451_v50 = vadd.f32 %v5184_v15, %v2429_v4 }
 0x1d9   : > { %v2430_v13 = vmul.f32 %v5180_v25, %v2408_v41 }
 0x1da   : > { %vm2467_vm1 = vcmp.ge.f32.partialorder %v2451_v50, 0.0  ;;  %v2483_v42 = vmul.f32 0.01, %v2451_v50 }
 0x1db   : > { %v2452_v52 = vadd.f32 %v5187_v38, %v2430_v13 }
 0x1dc   : > { %v2499_v12 = vsel %vm2467_vm1, %v2451_v50, %v2483_v42 }
 0x1dd   : > { %vm2468_vm2 = vcmp.ge.f32.partialorder %v2452_v52, 0.0  ;;  %v2484_v39 = vmul.f32 0.01, %v2452_v52  ;;  %2515 = vst [vmem:[%s5198_s22 + $0x70] sm:$0xff] %v2499_v12 }
 0x1df   : > { %v2500_v36 = vsel %vm2468_vm2, %v2452_v52, %v2484_v39 }
 0x1e0   : > { %2516 = vst [vmem:[%s5198_s22 + $0x78] sm:$0xff] %v2500_v36 }
 0x1e1   : > { %3804 = shalt.err (!%p3801_p5)
}
 0x1e2   : > { %s3857_s11 = smov 256   ;;  %s3858_s14 = smov 16  }
 0x1e3   : > { %3720 = dma.vmem_to_hbm [thread:$0]  (%p3924_p4), %s2533_s18, 2048, %s2535_s6, %s2518_s30, %s3857_s11, %s3857_s11, %s3858_s14  }
 0x1e4 PF: > { %p3726_p6 = scmp.ge.s32.totalorder %s3855_s20, 2  ;;  %s2549_s22 = sand.u32 1, %s3835_s15  }
 0x1e5   : > { %s2550_s24 = scalar_lea.sflag [#allocation3], %s2549_s22 }
 0x1e6   : > { %p3723_p7 = pnand %p3726_p6, %p3931_p8 }
 0x1e8   : > { %p3724_p9 = pneg %p3723_p7 }
 0x1ea   : > { %3830 = dma.done.wait (%p3724_p9), %s2550_s24, 2048  }
 0x1eb   : > { %3832 = vsyncadd (%p3724_p9), %s2550_s24, 4294965248  ;;  %s17_s20 = sadd.s32 1, %s3855_s20   ;;  %s5324_s15 = smov %s3839_s16 }
 0x1ec   : > { %p14_p10 = scmp.ge.s32.totalorder %s17_s20, 4   ;;  %s5325_s16 = smov %s3843_s17 }
 0x1ed   : > { %s5326_s17 = smov %s3937_s28  ;;  %s5327_s18 = smov %s3851_s19 }
 0x1ee   : > { %s5328_s19 = smov %s5330_s23  ;;  %16 = sbr.rel (!%p14_p10) target bundleno = 4 (0x4), region = 93 }
 0x1f3   :  { %2556 = vsyncpa [#allocation3], 1 }
 0x1f4   :  { %2558 = vsyncpa [#allocation3 + $0x1], 1 }

</bundles_post_ra>
